<compile_context>
chip_gen: v6e
topology: v6e:2x2x1
jax: 0.10.0
libtpu: 0.0.40
codegen_flags: <defaults>
</compile_context>

<pallas_src>
import functools

import jax
import jax.numpy as jnp
from jax.experimental import pallas as pl
from jax.experimental.pallas import tpu as pltpu

_DEFAULT = jax.lax.Precision.DEFAULT
_HI = jax.lax.Precision.HIGHEST
_VMEM_LIMIT = 32 * 1024 * 1024          # safe on v5e/v6e (128 MiB) and v7x (64 MiB)


# ---------------------------------------------------------------------------
# Kernel A: squeeze (1x1x1 conv) + ReLU  --  row-tiled GEMM
# ---------------------------------------------------------------------------
def _squeeze_kernel(x_ref, w_ref, b_ref, s_ref, *, precision):
    s = jnp.dot(x_ref[...], w_ref[...],
                preferred_element_type=jnp.float32, precision=precision)
    s_ref[...] = jnp.maximum(s + b_ref[...], 0.0).astype(s_ref.dtype)


def _choose_row_tile(P, target=2048):
    # Big, bounded tile; ragged last block is handled by pl.cdiv grid + Pallas
    # masking (no whole-volume fallback).
    return P if P <= target else target


def _squeeze(x2d, w_sq, b_sq, out_dtype, precision):
    P, Cin = x2d.shape
    Csq = w_sq.shape[1]
    tp = _choose_row_tile(P)
    kernel = functools.partial(_squeeze_kernel, precision=precision)
    return pl.pallas_call(
        kernel,
        out_shape=jax.ShapeDtypeStruct((P, Csq), out_dtype),
        grid_spec=pltpu.PrefetchScalarGridSpec(
            num_scalar_prefetch=0,
            grid=(pl.cdiv(P, tp),),
            in_specs=[
                pl.BlockSpec((tp, Cin), lambda i: (i, 0)),
                pl.BlockSpec((Cin, Csq), lambda i: (0, 0)),
                pl.BlockSpec((1, Csq), lambda i: (0, 0)),
            ],
            out_specs=pl.BlockSpec((tp, Csq), lambda i: (i, 0))),
        compiler_params=pltpu.CompilerParams(
            dimension_semantics=("parallel",),
            vmem_limit_bytes=_VMEM_LIMIT),
    )(x2d, w_sq, b_sq)


# ---------------------------------------------------------------------------
# Kernel B: expand1x1 + expand3x3 + ReLU + concat, fused as 3 depth-tap GEMMs
# ---------------------------------------------------------------------------
def _expand_kernel(s9_ref, w_ref, b_ref, o_ref, *, Td, precision):
    # s9_ref: (1, Td+2, HW, 9*Csq)  (kh,kw)-packed squeezed planes (+ D halo)
    # w_ref : (3, 9*Csq, Ce1+Ce3)   per-depth-tap weights, e1 folded into kd=1
    # b_ref : (1, Ce1+Ce3)
    # o_ref : (Td, HW, Ce1+Ce3)
    HW = o_ref.shape[1]
    K9 = w_ref.shape[1]
    Cout = w_ref.shape[2]

    def tap(kd):
        lhs = s9_ref[0, kd:kd + Td].reshape(Td * HW, K9)   # contiguous, aligned
        return jnp.dot(lhs, w_ref[kd],
                       preferred_element_type=jnp.float32, precision=precision)

    acc = tap(0) + tap(1) + tap(2)            # 3 accumulated MXU matmuls
    y = jnp.maximum(acc + b_ref[...], 0.0)    # fused bias + ReLU (e1 | e3 cols)
    o_ref[...] = y.reshape(Td, HW, Cout).astype(o_ref.dtype)   # single store


def _choose_depth_tile(D, N, HW, K9, Cout, in_bytes, budget=12 * 1024 * 1024):
    """Largest divisor of D whose double-buffered kernel-B working set fits."""
    def fits(td):
        in_win = (td + 2) * HW * K9 * in_bytes   # packed input window
        out_blk = td * HW * Cout * 4             # f32 output block
        acc = td * HW * Cout * 4                 # f32 accumulator value
        return 2 * (in_win + out_blk) + acc <= budget
    divs = [td for td in range(1, D + 1) if D % td == 0 and fits(td)]
    if not divs:
        return 1   # TODO(synk): tile H*W as well for very large planes
    # prefer keeping >= 2 parallel grid steps so both v7x TensorCores work
    pref = [td for td in divs if N * (D // td) >= 2]
    return max(pref) if pref else max(divs)


def _expand(s9, wB, bB, *, Td, precision):
    NBL, _, HW, K9 = s9.shape            # NBL = N * (D // Td) blocks
    Cout = wB.shape[-1]
    kernel = functools.partial(_expand_kernel, Td=Td, precision=precision)
    return pl.pallas_call(
        kernel,
        out_shape=jax.ShapeDtypeStruct((NBL * Td, HW, Cout), jnp.float32),
        grid_spec=pltpu.PrefetchScalarGridSpec(
            num_scalar_prefetch=0,
            grid=(NBL,),
            in_specs=[
                pl.BlockSpec((1, Td + 2, HW, K9), lambda i: (i, 0, 0, 0)),
                pl.BlockSpec((3, K9, Cout), lambda i: (0, 0, 0)),
                pl.BlockSpec((1, Cout), lambda i: (0, 0)),
            ],
            out_specs=pl.BlockSpec((Td, HW, Cout), lambda i: (i, 0, 0))),
        compiler_params=pltpu.CompilerParams(
            dimension_semantics=("parallel",),
            vmem_limit_bytes=_VMEM_LIMIT),
    )(s9, wB, bB)


# ---------------------------------------------------------------------------
# Fire forward (wrapper: layout plumbing in JAX, all FLOPs in Pallas)
# ---------------------------------------------------------------------------
def fire_forward(x, w_sq, b_sq, w_e1, b_e1, w_e3, b_e3,
                 *, precision=_DEFAULT, intermediate_dtype=jnp.bfloat16):
    """x: (N, Cin, D, H, W) float32; weights in PyTorch OIDHW layout.

    Intermediates (squeezed activation, packed taps, expand weights) are kept
    in `intermediate_dtype` (bf16 by default, matching what the MXU already
    does under Precision.DEFAULT).  For closer f32 parity with PyTorch pass
    intermediate_dtype=jnp.float32 and precision=jax.lax.Precision.HIGHEST.
    """
    N, Cin, D, H, W = x.shape
    Csq = w_sq.shape[0]
    Ce1 = w_e1.shape[0]
    Ce3 = w_e3.shape[0]
    Cout = Ce1 + Ce3
    HW = H * W
    K9 = 9 * Csq
    P = N * D * HW

    # TODO(synk): keep activations channels-last across the whole network so
    # this NCDHW->NDHWC transpose (and the final one back) amortizes away.
    x_cl = jnp.transpose(x, (0, 2, 3, 4, 1)).reshape(P, Cin)

    # --- kernel A: squeeze + ReLU (bf16 activation) ------------------------
    s = _squeeze(x_cl, w_sq.reshape(Csq, Cin).T, b_sq.reshape(1, Csq),
                 intermediate_dtype, precision)                   # (P, Csq)

    # --- layout plumbing (pure data movement, no FLOPs) ---------------------
    # Pad D/H/W by one, pack the 9 spatial (kh, kw) taps into the lane axis,
    # and slice (Td+2)-plane depth windows so kernel B's operands are
    # contiguous, lane/sublane-aligned GEMM inputs with no halo junk rows.
    Td = _choose_depth_tile(D, N, HW, K9, Cout,
                            in_bytes=jnp.dtype(intermediate_dtype).itemsize)
    NB = D // Td
    s_pad = jnp.pad(s.reshape(N, D, H, W, Csq),
                    ((0, 0), (1, 1), (1, 1), (1, 1), (0, 0)))
    wins = jnp.stack([s_pad[:, b * Td:b * Td + Td + 2] for b in range(NB)],
                     axis=1)                         # (N, NB, Td+2, H+2, W+2, Csq)
    s9 = jnp.concatenate(
        [wins[:, :, :, kh:kh + H, kw:kw + W, :]
         for kh in range(3) for kw in range(3)],
        axis=-1)                                     # (N, NB, Td+2, H, W, 9*Csq)
    s9 = s9.reshape(N * NB, Td + 2, HW, K9)

    # --- kernel-B weights: (kd, 9*Csq, Ce1+Ce3); expand1x1 folded into the
    # centre tap's (kd=1, kh=1, kw=1) rows of the left Ce1 columns -----------
    w3 = jnp.transpose(w_e3, (2, 3, 4, 1, 0)).reshape(3, K9, Ce3)
    w1 = jnp.zeros((3, K9, Ce1), w3.dtype)
    w1 = w1.at[1, 4 * Csq:5 * Csq, :].set(w_e1.reshape(Ce1, Csq).T)
    wB = jnp.concatenate([w1, w3], axis=-1).astype(intermediate_dtype)
    bB = jnp.concatenate([b_e1, b_e3]).reshape(1, Cout).astype(jnp.float32)

    out = _expand(s9, wB, bB, Td=Td, precision=precision)   # (N*D, HW, Cout)
    out = out.reshape(N, D, H, W, Cout)
    return jnp.transpose(out, (0, 4, 1, 2, 3))               # (N, Cout, D, H, W)


# ---------------------------------------------------------------------------
# Pure-JAX reference (lax conv, f32 HIGHEST) for correctness check
# ---------------------------------------------------------------------------
def fire_reference(x, w_sq, b_sq, w_e1, b_e1, w_e3, b_e3):
    def conv(x, w, pad):
        dn = jax.lax.conv_dimension_numbers(x.shape, w.shape,
                                            ('NCDHW', 'OIDHW', 'NCDHW'))
        return jax.lax.conv_general_dilated(
            x, w, (1, 1, 1), [(pad, pad)] * 3,
            dimension_numbers=dn, precision=_HI)

    def bias(b):
        return b[None, :, None, None, None]

    s = jnp.maximum(conv(x, w_sq, 0) + bias(b_sq), 0.0)
    e1 = jnp.maximum(conv(s, w_e1, 0) + bias(b_e1), 0.0)
    e3 = jnp.maximum(conv(s, w_e3, 1) + bias(b_e3), 0.0)
    return jnp.concatenate([e1, e3], axis=1)


# ---------------------------------------------------------------------------
if __name__ == "__main__":
    import numpy as np

    # Small Fire config: inplanes=8, squeeze=16, expand1x1=32, expand3x3=32
    N, Cin, D, H, W = 2, 8, 8, 16, 16
    Csq, Ce1, Ce3 = 16, 32, 32

    key = jax.random.PRNGKey(0)
    ks = jax.random.split(key, 7)

    def uinit(k, shape, fan_in):
        bound = 1.0 / np.sqrt(fan_in)
        return jax.random.uniform(k, shape, jnp.float32, -bound, bound)

    # PyTorch Conv3d weight layout: (out, in, kD, kH, kW)
    w_sq = uinit(ks[0], (Csq, Cin, 1, 1, 1), Cin * 1)
    b_sq = uinit(ks[1], (Csq,), Cin * 1)
    w_e1 = uinit(ks[2], (Ce1, Csq, 1, 1, 1), Csq * 1)
    b_e1 = uinit(ks[3], (Ce1,), Csq * 1)
    w_e3 = uinit(ks[4], (Ce3, Csq, 3, 3, 3), Csq * 27)
    b_e3 = uinit(ks[5], (Ce3,), Csq * 27)

    x = jax.random.normal(ks[6], (N, Cin, D, H, W), jnp.float32)

    out = jax.block_until_ready(
        jax.jit(fire_forward)(x, w_sq, b_sq, w_e1, b_e1, w_e3, b_e3))
    ref = jax.block_until_ready(
        fire_reference(x, w_sq, b_sq, w_e1, b_e1, w_e3, b_e3))

    assert out.shape == (N, Ce1 + Ce3, D, H, W), out.shape
    # Pallas path uses bf16 intermediates + Precision.DEFAULT MXU passes; the
    # reference is full-f32 HIGHEST -> compare with bf16-appropriate tolerance.
    np.testing.assert_allclose(np.asarray(out), np.asarray(ref),
                               rtol=3e-2, atol=3e-2)
    print("KERNEL_OK")
</pallas_src>

<mosaic_0001>
module attributes {stable_mosaic.version = 11 : i64} {
  func.func @_squeeze_kernel(%arg0: i32, %arg1: memref<2048x8xf32, #tpu.memory_space<vmem>>, %arg2: memref<8x16xf32, #tpu.memory_space<vmem>>, %arg3: memref<1x16xf32, #tpu.memory_space<vmem>>, %arg4: memref<2048x16xbf16, #tpu.memory_space<vmem>>) attributes {dimension_semantics = [#tpu.dimension_semantics<parallel>], iteration_bounds = array<i64: 2>, scalar_prefetch = 0 : i64, scratch_operands = 0 : i64, tpu.core_type = #tpu.core_type<tc>, window_params = [{transform_indices = @transform_0, window_bounds = array<i64: 2048, 8>}, {pipeline_mode = #tpu.pipeline_mode<synchronous>, transform_indices = @transform_1, window_bounds = array<i64: 8, 16>}, {pipeline_mode = #tpu.pipeline_mode<synchronous>, transform_indices = @transform_2, window_bounds = array<i64: 1, 16>}, {transform_indices = @transform_3, window_bounds = array<i64: 2048, 16>}]} {
    %c0 = arith.constant 0 : index
    %c0_0 = arith.constant 0 : index
    %0 = vector.load %arg1[%c0, %c0_0] : memref<2048x8xf32, #tpu.memory_space<vmem>>, vector<2048x8xf32>
    %c0_1 = arith.constant 0 : index
    %c0_2 = arith.constant 0 : index
    %1 = vector.load %arg2[%c0_1, %c0_2] : memref<8x16xf32, #tpu.memory_space<vmem>>, vector<8x16xf32>
    %cst = arith.constant dense<0.000000e+00> : vector<2048x16xf32>
    %2 = tpu.matmul %0, %1, %cst {dimension_numbers = #tpu.dot_dimension_numbers<[1], [0], [0], [1], [0, 0, 1, 1], [], []>} : vector<2048x8xf32>, vector<8x16xf32>, vector<2048x16xf32> -> vector<2048x16xf32>
    %c0_3 = arith.constant 0 : index
    %c0_4 = arith.constant 0 : index
    %3 = vector.load %arg3[%c0_3, %c0_4] : memref<1x16xf32, #tpu.memory_space<vmem>>, vector<1x16xf32>
    %4 = vector.broadcast %3 : vector<1x16xf32> to vector<2048x16xf32>
    %5 = arith.addf %2, %4 : vector<2048x16xf32>
    %cst_5 = arith.constant 0.000000e+00 : f32
    %6 = vector.broadcast %cst_5 : f32 to vector<2048x16xf32>
    %7 = arith.maximumf %5, %6 : vector<2048x16xf32>
    %8 = arith.truncf %7 : vector<2048x16xf32> to vector<2048x16xbf16>
    %c0_6 = arith.constant 0 : index
    %c0_7 = arith.constant 0 : index
    %9 = vector.load %arg4[%c0_6, %c0_7] : memref<2048x16xbf16, #tpu.memory_space<vmem>>, vector<2048x16xbf16>
    tpu.vector_store %arg4[%c0_6, %c0_7], %8 {strides = array<i32>} : memref<2048x16xbf16, #tpu.memory_space<vmem>>, vector<2048x16xbf16>,
    return
  }
  func.func @transform_0(%arg0: i32) -> (i32, i32) {
    %c0_i32 = arith.constant 0 : i32
    %c0_i32_0 = arith.constant 0 : i32
    return %arg0, %c0_i32 : i32, i32
  }
  func.func @transform_1(%arg0: i32) -> (i32, i32) {
    %c0_i32 = arith.constant 0 : i32
    %c0_i32_0 = arith.constant 0 : i32
    %c0_i32_1 = arith.constant 0 : i32
    return %c0_i32, %c0_i32_0 : i32, i32
  }
  func.func @transform_2(%arg0: i32) -> (i32, i32) {
    %c0_i32 = arith.constant 0 : i32
    %c0_i32_0 = arith.constant 0 : i32
    %c0_i32_1 = arith.constant 0 : i32
    return %c0_i32, %c0_i32_0 : i32, i32
  }
  func.func @transform_3(%arg0: i32) -> (i32, i32) {
    %c0_i32 = arith.constant 0 : i32
    %c0_i32_0 = arith.constant 0 : i32
    return %arg0, %c0_i32 : i32, i32
  }
}

module attributes {stable_mosaic.version = 11 : i64} {
  func.func @_expand_kernel(%arg0: i32, %arg1: memref<1x10x256x144xbf16, #tpu.memory_space<vmem>>, %arg2: memref<3x144x64xbf16, #tpu.memory_space<vmem>>, %arg3: memref<1x64xf32, #tpu.memory_space<vmem>>, %arg4: memref<8x256x64xf32, #tpu.memory_space<vmem>>) attributes {dimension_semantics = [#tpu.dimension_semantics<parallel>], iteration_bounds = array<i64: 2>, scalar_prefetch = 0 : i64, scratch_operands = 0 : i64, tpu.core_type = #tpu.core_type<tc>, window_params = [{transform_indices = @transform_0, window_bounds = array<i64: 1, 10, 256, 144>}, {pipeline_mode = #tpu.pipeline_mode<synchronous>, transform_indices = @transform_1, window_bounds = array<i64: 3, 144, 64>}, {pipeline_mode = #tpu.pipeline_mode<synchronous>, transform_indices = @transform_2, window_bounds = array<i64: 1, 64>}, {transform_indices = @transform_3, window_bounds = array<i64: 8, 256, 64>}]} {
    %c0 = arith.constant 0 : index
    %c0_0 = arith.constant 0 : index
    %c0_1 = arith.constant 0 : index
    %c0_2 = arith.constant 0 : index
    %0 = vector.load %arg1[%c0, %c0_0, %c0_1, %c0_2] : memref<1x10x256x144xbf16, #tpu.memory_space<vmem>>, vector<1x8x256x144xbf16>
    %1 = vector.shape_cast %0 : vector<1x8x256x144xbf16> to vector<8x256x144xbf16>
    %2 = vector.shape_cast %1 : vector<8x256x144xbf16> to vector<2048x144xbf16>
    %c0_3 = arith.constant 0 : index
    %c0_4 = arith.constant 0 : index
    %c0_5 = arith.constant 0 : index
    %3 = vector.load %arg2[%c0_3, %c0_4, %c0_5] : memref<3x144x64xbf16, #tpu.memory_space<vmem>>, vector<1x144x64xbf16>
    %4 = vector.shape_cast %3 : vector<1x144x64xbf16> to vector<144x64xbf16>
    %cst = arith.constant dense<0.000000e+00> : vector<2048x64xf32>
    %5 = tpu.matmul %2, %4, %cst {dimension_numbers = #tpu.dot_dimension_numbers<[1], [0], [0], [1], [0, 0, 1, 1], [], []>} : vector<2048x144xbf16>, vector<144x64xbf16>, vector<2048x64xf32> -> vector<2048x64xf32>
    %c0_6 = arith.constant 0 : index
    %c1 = arith.constant 1 : index
    %c0_7 = arith.constant 0 : index
    %c0_8 = arith.constant 0 : index
    %6 = vector.load %arg1[%c0_6, %c1, %c0_7, %c0_8] : memref<1x10x256x144xbf16, #tpu.memory_space<vmem>>, vector<1x8x256x144xbf16>
    %7 = vector.shape_cast %6 : vector<1x8x256x144xbf16> to vector<8x256x144xbf16>
    %8 = vector.shape_cast %7 : vector<8x256x144xbf16> to vector<2048x144xbf16>
    %c1_9 = arith.constant 1 : index
    %c0_10 = arith.constant 0 : index
    %c0_11 = arith.constant 0 : index
    %9 = vector.load %arg2[%c1_9, %c0_10, %c0_11] : memref<3x144x64xbf16, #tpu.memory_space<vmem>>, vector<1x144x64xbf16>
    %10 = vector.shape_cast %9 : vector<1x144x64xbf16> to vector<144x64xbf16>
    %cst_12 = arith.constant dense<0.000000e+00> : vector<2048x64xf32>
    %11 = tpu.matmul %8, %10, %cst_12 {dimension_numbers = #tpu.dot_dimension_numbers<[1], [0], [0], [1], [0, 0, 1, 1], [], []>} : vector<2048x144xbf16>, vector<144x64xbf16>, vector<2048x64xf32> -> vector<2048x64xf32>
    %12 = arith.addf %5, %11 : vector<2048x64xf32>
    %c0_13 = arith.constant 0 : index
    %c2 = arith.constant 2 : index
    %c0_14 = arith.constant 0 : index
    %c0_15 = arith.constant 0 : index
    %13 = vector.load %arg1[%c0_13, %c2, %c0_14, %c0_15] : memref<1x10x256x144xbf16, #tpu.memory_space<vmem>>, vector<1x8x256x144xbf16>
    %14 = vector.shape_cast %13 : vector<1x8x256x144xbf16> to vector<8x256x144xbf16>
    %15 = vector.shape_cast %14 : vector<8x256x144xbf16> to vector<2048x144xbf16>
    %c2_16 = arith.constant 2 : index
    %c0_17 = arith.constant 0 : index
    %c0_18 = arith.constant 0 : index
    %16 = vector.load %arg2[%c2_16, %c0_17, %c0_18] : memref<3x144x64xbf16, #tpu.memory_space<vmem>>, vector<1x144x64xbf16>
    %17 = vector.shape_cast %16 : vector<1x144x64xbf16> to vector<144x64xbf16>
    %cst_19 = arith.constant dense<0.000000e+00> : vector<2048x64xf32>
    %18 = tpu.matmul %15, %17, %cst_19 {dimension_numbers = #tpu.dot_dimension_numbers<[1], [0], [0], [1], [0, 0, 1, 1], [], []>} : vector<2048x144xbf16>, vector<144x64xbf16>, vector<2048x64xf32> -> vector<2048x64xf32>
    %19 = arith.addf %12, %18 : vector<2048x64xf32>
    %c0_20 = arith.constant 0 : index
    %c0_21 = arith.constant 0 : index
    %20 = vector.load %arg3[%c0_20, %c0_21] : memref<1x64xf32, #tpu.memory_space<vmem>>, vector<1x64xf32>
    %21 = vector.broadcast %20 : vector<1x64xf32> to vector<2048x64xf32>
    %22 = arith.addf %19, %21 : vector<2048x64xf32>
    %cst_22 = arith.constant 0.000000e+00 : f32
    %23 = vector.broadcast %cst_22 : f32 to vector<2048x64xf32>
    %24 = arith.maximumf %22, %23 : vector<2048x64xf32>
    %25 = vector.shape_cast %24 : vector<2048x64xf32> to vector<8x256x64xf32>
    %c0_23 = arith.constant 0 : index
    %c0_24 = arith.constant 0 : index
    %c0_25 = arith.constant 0 : index
    %26 = vector.load %arg4[%c0_23, %c0_24, %c0_25] : memref<8x256x64xf32, #tpu.memory_space<vmem>>, vector<8x256x64xf32>
    tpu.vector_store %arg4[%c0_23, %c0_24, %c0_25], %25 {strides = array<i32>} : memref<8x256x64xf32, #tpu.memory_space<vmem>>, vector<8x256x64xf32>,
    return
  }
  func.func @transform_0(%arg0: i32) -> (i32, i32, i32, i32) {
    %c0_i32 = arith.constant 0 : i32
    %c0_i32_0 = arith.constant 0 : i32
    %c0_i32_1 = arith.constant 0 : i32
    %c0_i32_2 = arith.constant 0 : i32
    return %arg0, %c0_i32, %c0_i32_0, %c0_i32_1 : i32, i32, i32, i32
  }
  func.func @transform_1(%arg0: i32) -> (i32, i32, i32) {
    %c0_i32 = arith.constant 0 : i32
    %c0_i32_0 = arith.constant 0 : i32
    %c0_i32_1 = arith.constant 0 : i32
    %c0_i32_2 = arith.constant 0 : i32
    return %c0_i32, %c0_i32_0, %c0_i32_1 : i32, i32, i32
  }
  func.func @transform_2(%arg0: i32) -> (i32, i32) {
    %c0_i32 = arith.constant 0 : i32
    %c0_i32_0 = arith.constant 0 : i32
    %c0_i32_1 = arith.constant 0 : i32
    return %c0_i32, %c0_i32_0 : i32, i32
  }
  func.func @transform_3(%arg0: i32) -> (i32, i32, i32) {
    %c0_i32 = arith.constant 0 : i32
    %c0_i32_0 = arith.constant 0 : i32
    %c0_i32_1 = arith.constant 0 : i32
    return %arg0, %c0_i32, %c0_i32_0 : i32, i32, i32
  }
}

</mosaic_0001>

<bundles_post_ra>
// kernel: fire_forward.2
= control target key start
LH: loop header
LB: loop body
LE: loop exit
PB: predicated region body
PF: predicated region fallthrough
CT: control target
= control target key end

     0   :  { %s5608_s12 = smov 0   ;;  %s6931_s0 = inlined_call_operand.vmem [shape: f32[4096,8], index: 0, kind: input, shape index: {}]   ;;  %s6932_s1 = inlined_call_operand.vmem [shape: f32[8,16], index: 1, kind: input, shape index: {}]   ;;  %s6933_s2 = inlined_call_operand.vmem [shape: f32[1,16], index: 2, kind: input, shape index: {}]   ;;  %s6934_s3 = inlined_call_operand.vmem [shape: bf16[4096,16], index: 3, kind: output, shape index: {}]  }
   0x1 LB: > { %s4145_s13 = sadd.s32 4294967295, %s5586_s12   ;;  %p4149_p0 = scmp.ge.s32.totalorder %s5586_s12, 1  ;;  %s5586_s12 = sphi %s5608_s12, %s13_s12  }
   0x2   : > { %p138_p1 = scmp.lt.s32.totalorder %s5586_s12, 3 }
   0x4   : > { %p139_p2 = pnand %p4149_p0, %p138_p1 }
   0x5   : > { %s4150_s16 = sshll.u32 (!%p139_p2), %s4145_s13, 8 }
   0x6   : > { %142 = sbr.rel (%p139_p2) target bundleno = 471 (0x1d7), region = 32  ;;  %p163_p3 = scmp.lt.s32.totalorder (!%p139_p2), %s4150_s16, 511 }
   0xb   : > { %v430_v0 = vld [vmem:[%s6932_s1] sm:$0xff]  ;;  %s6936_s16 = smov (!%p163_p3, %s4150_s16), 511  ;;  %vm438_vm0 = vcmask 64512   ;;  %vm3832_vm1 = vcmask 125952  }
   0xc   : > { %5182 = vmatprep.subr.mxu0 %v430_v0  ;;  %5568 = vmatprep.subr.mxu1 %v430_v0  ;;  %s4151_s17 = sshll.u32 %s6936_s16, 3  ;;  %s4153_s23 = sshll.u32 %s6936_s16, 2 }
   0xd   : > { %5183 = vmatpush3.msra.mxu0 %v430_v0  ;;  %5569 = vmatpush3.msra.mxu1 %v430_v0  ;;  %s5625_s20 = scalar_lea.vmem %s6931_s0, %s4151_s17  ;;  %s6040_s26 = scalar_lea.vmem %s6934_s3, %s4153_s23 }
   0xe   : > { %v174_v1 = vld [vmem:[%s5625_s20] sm:$0xff]  ;;  %v175_v3 = vld [vmem:[%s5625_s20 + $0x8] sm:$0xff]  ;;  %v176_v5 = vld [vmem:[%s5625_s20 + $0x10] sm:$0xff] }
   0xf   : > { %v302_v2 = vld [vmem:[%s5625_s20 + $0x400] sm:$0xff]  ;;  %5184 = vmatprep.mubr.msk.f32.mxu0 %vm438_vm0, %v174_v1  ;;  %v303_v4 = vld [vmem:[%s5625_s20 + $0x408] sm:$0xff]  ;;  %v304_v6 = vld [vmem:[%s5625_s20 + $0x410] sm:$0xff] }
  0x10   : > { %5376 = vmatprep.mubr.msk.f32.mxu1 %vm438_vm0, %v302_v2  ;;  %5185 = vmatmul.mubr.msk.f32.vlgmr.msra.gmra.mxu0 %vm438_vm0, %v175_v3  ;;  %v177_v7 = vld [vmem:[%s5625_s20 + $0x18] sm:$0xff]  ;;  %v178_v9 = vld [vmem:[%s5625_s20 + $0x20] sm:$0xff]  ;;  %v179_v11 = vld [vmem:[%s5625_s20 + $0x28] sm:$0xff] }
  0x11   : > { %5377 = vmatmul.mubr.msk.f32.vlgmr.msra.gmra.mxu1 %vm438_vm0, %v303_v4  ;;  %5187 = vmatprep.mubr.msk.f32.mxu0 %vm438_vm0, %v176_v5  ;;  %v305_v8 = vld [vmem:[%s5625_s20 + $0x418] sm:$0xff]  ;;  %v306_v10 = vld [vmem:[%s5625_s20 + $0x420] sm:$0xff]  ;;  %v307_v12 = vld [vmem:[%s5625_s20 + $0x428] sm:$0xff] }
  0x12   : > { %5379 = vmatprep.mubr.msk.f32.mxu1 %vm438_vm0, %v304_v6  ;;  %v180_v13 = vld [vmem:[%s5625_s20 + $0x30] sm:$0xff]  ;;  %v181_v15 = vld [vmem:[%s5625_s20 + $0x38] sm:$0xff]  ;;  %v182_v17 = vld [vmem:[%s5625_s20 + $0x40] sm:$0xff] }
  0x13   : > { %v308_v14 = vld [vmem:[%s5625_s20 + $0x430] sm:$0xff]  ;;  %v309_v16 = vld [vmem:[%s5625_s20 + $0x438] sm:$0xff]  ;;  %v310_v18 = vld [vmem:[%s5625_s20 + $0x440] sm:$0xff] }
  0x14   : > { %5188 = vmatmul.mubr.msk.f32.gmra.mxu0 %vm438_vm0, %v177_v7  ;;  %v183_v19 = vld [vmem:[%s5625_s20 + $0x48] sm:$0xff]  ;;  %v184_v21 = vld [vmem:[%s5625_s20 + $0x50] sm:$0xff]  ;;  %v185_v23 = vld [vmem:[%s5625_s20 + $0x58] sm:$0xff] }
  0x15   : > { %5380 = vmatmul.mubr.msk.f32.gmra.mxu1 %vm438_vm0, %v305_v8  ;;  %5190 = vmatprep.mubr.msk.f32.mxu0 %vm438_vm0, %v178_v9  ;;  %v311_v20 = vld [vmem:[%s5625_s20 + $0x448] sm:$0xff]  ;;  %v312_v22 = vld [vmem:[%s5625_s20 + $0x450] sm:$0xff]  ;;  %v313_v24 = vld [vmem:[%s5625_s20 + $0x458] sm:$0xff] }
  0x16   : > { %5382 = vmatprep.mubr.msk.f32.mxu1 %vm438_vm0, %v306_v10  ;;  %v186_v25 = vld [vmem:[%s5625_s20 + $0x60] sm:$0xff]  ;;  %v187_v27 = vld [vmem:[%s5625_s20 + $0x68] sm:$0xff]  ;;  %v188_v29 = vld [vmem:[%s5625_s20 + $0x70] sm:$0xff] }
  0x17   : > { %v314_v26 = vld [vmem:[%s5625_s20 + $0x460] sm:$0xff]  ;;  %v315_v28 = vld [vmem:[%s5625_s20 + $0x468] sm:$0xff]  ;;  %v316_v30 = vld [vmem:[%s5625_s20 + $0x470] sm:$0xff] }
  0x18   : > { %5191 = vmatmul.mubr.msk.f32.gmra.mxu0 %vm438_vm0, %v179_v11  ;;  %v189_v31 = vld [vmem:[%s5625_s20 + $0x78] sm:$0xff]  ;;  %v190_v33 = vld [vmem:[%s5625_s20 + $0x80] sm:$0xff]  ;;  %v191_v35 = vld [vmem:[%s5625_s20 + $0x88] sm:$0xff] }
  0x19   : > { %5383 = vmatmul.mubr.msk.f32.gmra.mxu1 %vm438_vm0, %v307_v12  ;;  %5193 = vmatprep.mubr.msk.f32.mxu0 %vm438_vm0, %v180_v13  ;;  %v317_v32 = vld [vmem:[%s5625_s20 + $0x478] sm:$0xff]  ;;  %v318_v34 = vld [vmem:[%s5625_s20 + $0x480] sm:$0xff]  ;;  %v319_v36 = vld [vmem:[%s5625_s20 + $0x488] sm:$0xff] }
  0x1a   : > { %5385 = vmatprep.mubr.msk.f32.mxu1 %vm438_vm0, %v308_v14  ;;  %v192_v37 = vld [vmem:[%s5625_s20 + $0x90] sm:$0xff]  ;;  %v193_v39 = vld [vmem:[%s5625_s20 + $0x98] sm:$0xff]  ;;  %v194_v41 = vld [vmem:[%s5625_s20 + $0xa0] sm:$0xff] }
  0x1b   : > { %v320_v38 = vld [vmem:[%s5625_s20 + $0x490] sm:$0xff]  ;;  %v321_v40 = vld [vmem:[%s5625_s20 + $0x498] sm:$0xff]  ;;  %v322_v42 = vld [vmem:[%s5625_s20 + $0x4a0] sm:$0xff] }
  0x1c   : > { %5194 = vmatmul.mubr.msk.f32.gmra.mxu0 %vm438_vm0, %v181_v15  ;;  %v195_v43 = vld [vmem:[%s5625_s20 + $0xa8] sm:$0xff]  ;;  %v196_v45 = vld [vmem:[%s5625_s20 + $0xb0] sm:$0xff]  ;;  %v197_v47 = vld [vmem:[%s5625_s20 + $0xb8] sm:$0xff] }
  0x1d   : > { %5386 = vmatmul.mubr.msk.f32.gmra.mxu1 %vm438_vm0, %v309_v16  ;;  %5196 = vmatprep.mubr.msk.f32.mxu0 %vm438_vm0, %v182_v17  ;;  %v323_v44 = vld [vmem:[%s5625_s20 + $0x4a8] sm:$0xff]  ;;  %v324_v46 = vld [vmem:[%s5625_s20 + $0x4b0] sm:$0xff]  ;;  %v325_v48 = vld [vmem:[%s5625_s20 + $0x4b8] sm:$0xff] }
  0x1e   : > { %5388 = vmatprep.mubr.msk.f32.mxu1 %vm438_vm0, %v310_v18  ;;  %v198_v49 = vld [vmem:[%s5625_s20 + $0xc0] sm:$0xff]  ;;  %v199_v51 = vld [vmem:[%s5625_s20 + $0xc8] sm:$0xff]  ;;  %v200_v53 = vld [vmem:[%s5625_s20 + $0xd0] sm:$0xff] }
  0x1f   : > { %v326_v50 = vld [vmem:[%s5625_s20 + $0x4c0] sm:$0xff]  ;;  %v327_v52 = vld [vmem:[%s5625_s20 + $0x4c8] sm:$0xff]  ;;  %v328_v54 = vld [vmem:[%s5625_s20 + $0x4d0] sm:$0xff] }
  0x20   : > { %5197 = vmatmul.mubr.msk.f32.gmra.mxu0 %vm438_vm0, %v183_v19  ;;  %v201_v55 = vld [vmem:[%s5625_s20 + $0xd8] sm:$0xff]  ;;  %v202_v57 = vld [vmem:[%s5625_s20 + $0xe0] sm:$0xff]  ;;  %v203_v59 = vld [vmem:[%s5625_s20 + $0xe8] sm:$0xff] }
  0x21   : > { %5389 = vmatmul.mubr.msk.f32.gmra.mxu1 %vm438_vm0, %v311_v20  ;;  %5199 = vmatprep.mubr.msk.f32.mxu0 %vm438_vm0, %v184_v21  ;;  %v329_v56 = vld [vmem:[%s5625_s20 + $0x4d8] sm:$0xff]  ;;  %v330_v58 = vld [vmem:[%s5625_s20 + $0x4e0] sm:$0xff]  ;;  %v331_v60 = vld [vmem:[%s5625_s20 + $0x4e8] sm:$0xff] }
  0x22   : > { %5391 = vmatprep.mubr.msk.f32.mxu1 %vm438_vm0, %v312_v22  ;;  %v204_v61 = vld [vmem:[%s5625_s20 + $0xf0] sm:$0xff]  ;;  %v205_v63 = vld [vmem:[%s5625_s20 + $0xf8] sm:$0xff]  ;;  %v206_v1 = vld [vmem:[%s5625_s20 + $0x100] sm:$0xff] }
  0x23   : > { %v332_v62 = vld [vmem:[%s5625_s20 + $0x4f0] sm:$0xff]  ;;  %v333_v0 = vld [vmem:[%s5625_s20 + $0x4f8] sm:$0xff]  ;;  %v334_v2 = vld [vmem:[%s5625_s20 + $0x500] sm:$0xff] }
  0x24   : > { %5200 = vmatmul.mubr.msk.f32.gmra.mxu0 %vm438_vm0, %v185_v23  ;;  %v207_v3 = vld [vmem:[%s5625_s20 + $0x108] sm:$0xff]  ;;  %v208_v5 = vld [vmem:[%s5625_s20 + $0x110] sm:$0xff]  ;;  %v209_v7 = vld [vmem:[%s5625_s20 + $0x118] sm:$0xff] }
  0x25   : > { %5392 = vmatmul.mubr.msk.f32.gmra.mxu1 %vm438_vm0, %v313_v24  ;;  %5202 = vmatprep.mubr.msk.f32.mxu0 %vm438_vm0, %v186_v25  ;;  %v335_v4 = vld [vmem:[%s5625_s20 + $0x508] sm:$0xff]  ;;  %v336_v6 = vld [vmem:[%s5625_s20 + $0x510] sm:$0xff]  ;;  %v337_v8 = vld [vmem:[%s5625_s20 + $0x518] sm:$0xff] }
  0x26   : > { %5394 = vmatprep.mubr.msk.f32.mxu1 %vm438_vm0, %v314_v26  ;;  %v210_v9 = vld [vmem:[%s5625_s20 + $0x120] sm:$0xff]  ;;  %v211_v11 = vld [vmem:[%s5625_s20 + $0x128] sm:$0xff]  ;;  %v212_v13 = vld [vmem:[%s5625_s20 + $0x130] sm:$0xff] }
  0x27   : > { %v338_v10 = vld [vmem:[%s5625_s20 + $0x520] sm:$0xff]  ;;  %v339_v12 = vld [vmem:[%s5625_s20 + $0x528] sm:$0xff]  ;;  %v340_v14 = vld [vmem:[%s5625_s20 + $0x530] sm:$0xff] }
  0x28   : > { %5203 = vmatmul.mubr.msk.f32.gmra.mxu0 %vm438_vm0, %v187_v27  ;;  %v213_v15 = vld [vmem:[%s5625_s20 + $0x138] sm:$0xff]  ;;  %v214_v17 = vld [vmem:[%s5625_s20 + $0x140] sm:$0xff]  ;;  %v215_v19 = vld [vmem:[%s5625_s20 + $0x148] sm:$0xff] }
  0x29   : > { %5395 = vmatmul.mubr.msk.f32.gmra.mxu1 %vm438_vm0, %v315_v28  ;;  %5205 = vmatprep.mubr.msk.f32.mxu0 %vm438_vm0, %v188_v29  ;;  %v341_v16 = vld [vmem:[%s5625_s20 + $0x538] sm:$0xff]  ;;  %v342_v18 = vld [vmem:[%s5625_s20 + $0x540] sm:$0xff]  ;;  %v343_v20 = vld [vmem:[%s5625_s20 + $0x548] sm:$0xff] }
  0x2a   : > { %5397 = vmatprep.mubr.msk.f32.mxu1 %vm438_vm0, %v316_v30  ;;  %v216_v21 = vld [vmem:[%s5625_s20 + $0x150] sm:$0xff]  ;;  %v217_v23 = vld [vmem:[%s5625_s20 + $0x158] sm:$0xff]  ;;  %v218_v25 = vld [vmem:[%s5625_s20 + $0x160] sm:$0xff] }
  0x2b   : > { %v344_v22 = vld [vmem:[%s5625_s20 + $0x550] sm:$0xff]  ;;  %v345_v24 = vld [vmem:[%s5625_s20 + $0x558] sm:$0xff]  ;;  %v346_v26 = vld [vmem:[%s5625_s20 + $0x560] sm:$0xff] }
  0x2c   : > { %5206 = vmatmul.mubr.msk.f32.gmra.mxu0 %vm438_vm0, %v189_v31  ;;  %v219_v27 = vld [vmem:[%s5625_s20 + $0x168] sm:$0xff]  ;;  %v220_v29 = vld [vmem:[%s5625_s20 + $0x170] sm:$0xff]  ;;  %v221_v31 = vld [vmem:[%s5625_s20 + $0x178] sm:$0xff] }
  0x2d   : > { %5398 = vmatmul.mubr.msk.f32.gmra.mxu1 %vm438_vm0, %v317_v32  ;;  %5208 = vmatprep.mubr.msk.f32.mxu0 %vm438_vm0, %v190_v33  ;;  %v347_v28 = vld [vmem:[%s5625_s20 + $0x568] sm:$0xff]  ;;  %v348_v30 = vld [vmem:[%s5625_s20 + $0x570] sm:$0xff]  ;;  %v349_v32 = vld [vmem:[%s5625_s20 + $0x578] sm:$0xff] }
  0x2e   : > { %5400 = vmatprep.mubr.msk.f32.mxu1 %vm438_vm0, %v318_v34  ;;  %v222_v33 = vld [vmem:[%s5625_s20 + $0x180] sm:$0xff] }
  0x2f   : > { %v350_v34 = vld [vmem:[%s5625_s20 + $0x580] sm:$0xff] }
  0x30   : > { %5209 = vmatmul.mubr.msk.f32.gmra.mxu0 %vm438_vm0, %v191_v35  ;;  %v223_v35 = vld [vmem:[%s5625_s20 + $0x188] sm:$0xff] }
  0x31   : > { %5401 = vmatmul.mubr.msk.f32.gmra.mxu1 %vm438_vm0, %v319_v36  ;;  %5211 = vmatprep.mubr.msk.f32.mxu0 %vm438_vm0, %v192_v37  ;;  %v351_v36 = vld [vmem:[%s5625_s20 + $0x588] sm:$0xff]  ;;  %v224_v37 = vld [vmem:[%s5625_s20 + $0x190] sm:$0xff] }
  0x32   : > { %5403 = vmatprep.mubr.msk.f32.mxu1 %vm438_vm0, %v320_v38  ;;  %v352_v38 = vld [vmem:[%s5625_s20 + $0x590] sm:$0xff] }
  0x34   : > { %5212 = vmatmul.mubr.msk.f32.gmra.mxu0 %vm438_vm0, %v193_v39  ;;  %v225_v39 = vld [vmem:[%s5625_s20 + $0x198] sm:$0xff] }
  0x35   : > { %5404 = vmatmul.mubr.msk.f32.gmra.mxu1 %vm438_vm0, %v321_v40  ;;  %5214 = vmatprep.mubr.msk.f32.mxu0 %vm438_vm0, %v194_v41  ;;  %v353_v40 = vld [vmem:[%s5625_s20 + $0x598] sm:$0xff]  ;;  %v226_v41 = vld [vmem:[%s5625_s20 + $0x1a0] sm:$0xff] }
  0x36   : > { %5406 = vmatprep.mubr.msk.f32.mxu1 %vm438_vm0, %v322_v42  ;;  %v354_v42 = vld [vmem:[%s5625_s20 + $0x5a0] sm:$0xff] }
  0x38   : > { %5215 = vmatmul.mubr.msk.f32.gmra.mxu0 %vm438_vm0, %v195_v43  ;;  %v227_v43 = vld [vmem:[%s5625_s20 + $0x1a8] sm:$0xff] }
  0x39   : > { %5407 = vmatmul.mubr.msk.f32.gmra.mxu1 %vm438_vm0, %v323_v44  ;;  %5217 = vmatprep.mubr.msk.f32.mxu0 %vm438_vm0, %v196_v45  ;;  %v355_v44 = vld [vmem:[%s5625_s20 + $0x5a8] sm:$0xff]  ;;  %v228_v45 = vld [vmem:[%s5625_s20 + $0x1b0] sm:$0xff] }
  0x3a   : > { %5409 = vmatprep.mubr.msk.f32.mxu1 %vm438_vm0, %v324_v46  ;;  %v356_v46 = vld [vmem:[%s5625_s20 + $0x5b0] sm:$0xff] }
  0x3c   : > { %5218 = vmatmul.mubr.msk.f32.gmra.mxu0 %vm438_vm0, %v197_v47  ;;  %v229_v47 = vld [vmem:[%s5625_s20 + $0x1b8] sm:$0xff] }
  0x3d   : > { %5410 = vmatmul.mubr.msk.f32.gmra.mxu1 %vm438_vm0, %v325_v48  ;;  %5220 = vmatprep.mubr.msk.f32.mxu0 %vm438_vm0, %v198_v49  ;;  %v357_v48 = vld [vmem:[%s5625_s20 + $0x5b8] sm:$0xff]  ;;  %v230_v49 = vld [vmem:[%s5625_s20 + $0x1c0] sm:$0xff] }
  0x3e   : > { %5412 = vmatprep.mubr.msk.f32.mxu1 %vm438_vm0, %v326_v50  ;;  %v358_v50 = vld [vmem:[%s5625_s20 + $0x5c0] sm:$0xff] }
  0x40   : > { %5221 = vmatmul.mubr.msk.f32.gmra.mxu0 %vm438_vm0, %v199_v51  ;;  %v231_v51 = vld [vmem:[%s5625_s20 + $0x1c8] sm:$0xff] }
  0x41   : > { %5413 = vmatmul.mubr.msk.f32.gmra.mxu1 %vm438_vm0, %v327_v52  ;;  %5223 = vmatprep.mubr.msk.f32.mxu0 %vm438_vm0, %v200_v53  ;;  %v359_v52 = vld [vmem:[%s5625_s20 + $0x5c8] sm:$0xff]  ;;  %v232_v53 = vld [vmem:[%s5625_s20 + $0x1d0] sm:$0xff] }
  0x42   : > { %5415 = vmatprep.mubr.msk.f32.mxu1 %vm438_vm0, %v328_v54  ;;  %v360_v54 = vld [vmem:[%s5625_s20 + $0x5d0] sm:$0xff] }
  0x44   : > { %5224 = vmatmul.mubr.msk.f32.gmra.mxu0 %vm438_vm0, %v201_v55  ;;  %v233_v55 = vld [vmem:[%s5625_s20 + $0x1d8] sm:$0xff] }
  0x45   : > { %5416 = vmatmul.mubr.msk.f32.gmra.mxu1 %vm438_vm0, %v329_v56  ;;  %5226 = vmatprep.mubr.msk.f32.mxu0 %vm438_vm0, %v202_v57  ;;  %v361_v56 = vld [vmem:[%s5625_s20 + $0x5d8] sm:$0xff]  ;;  %v234_v57 = vld [vmem:[%s5625_s20 + $0x1e0] sm:$0xff] }
  0x46   : > { %5418 = vmatprep.mubr.msk.f32.mxu1 %vm438_vm0, %v330_v58  ;;  %v362_v58 = vld [vmem:[%s5625_s20 + $0x5e0] sm:$0xff] }
  0x48   : > { %5227 = vmatmul.mubr.msk.f32.gmra.mxu0 %vm438_vm0, %v203_v59  ;;  %v235_v59 = vld [vmem:[%s5625_s20 + $0x1e8] sm:$0xff] }
  0x49   : > { %5419 = vmatmul.mubr.msk.f32.gmra.mxu1 %vm438_vm0, %v331_v60  ;;  %5229 = vmatprep.mubr.msk.f32.mxu0 %vm438_vm0, %v204_v61  ;;  %v363_v60 = vld [vmem:[%s5625_s20 + $0x5e8] sm:$0xff]  ;;  %v236_v61 = vld [vmem:[%s5625_s20 + $0x1f0] sm:$0xff] }
  0x4a   : > { %5421 = vmatprep.mubr.msk.f32.mxu1 %vm438_vm0, %v332_v62  ;;  %v364_v62 = vld [vmem:[%s5625_s20 + $0x5f0] sm:$0xff] }
  0x4c   : > { %5230 = vmatmul.mubr.msk.f32.gmra.mxu0 %vm438_vm0, %v205_v63  ;;  %v237_v63 = vld [vmem:[%s5625_s20 + $0x1f8] sm:$0xff] }
  0x4d   : > { %5422 = vmatmul.mubr.msk.f32.gmra.mxu1 %vm438_vm0, %v333_v0  ;;  %5232 = vmatprep.mubr.msk.f32.mxu0 %vm438_vm0, %v206_v1  ;;  %v365_v0 = vld [vmem:[%s5625_s20 + $0x5f8] sm:$0xff]  ;;  %v238_v1 = vld [vmem:[%s5625_s20 + $0x200] sm:$0xff] }
  0x4e   : > { %5424 = vmatprep.mubr.msk.f32.mxu1 %vm438_vm0, %v334_v2  ;;  %v366_v2 = vld [vmem:[%s5625_s20 + $0x600] sm:$0xff] }
  0x50   : > { %5233 = vmatmul.mubr.msk.f32.gmra.mxu0 %vm438_vm0, %v207_v3  ;;  %v239_v3 = vld [vmem:[%s5625_s20 + $0x208] sm:$0xff] }
  0x51   : > { %5425 = vmatmul.mubr.msk.f32.gmra.mxu1 %vm438_vm0, %v335_v4  ;;  %5235 = vmatprep.mubr.msk.f32.mxu0 %vm438_vm0, %v208_v5  ;;  %v367_v4 = vld [vmem:[%s5625_s20 + $0x608] sm:$0xff]  ;;  %v240_v5 = vld [vmem:[%s5625_s20 + $0x210] sm:$0xff] }
  0x52   : > { %5427 = vmatprep.mubr.msk.f32.mxu1 %vm438_vm0, %v336_v6  ;;  %v368_v6 = vld [vmem:[%s5625_s20 + $0x610] sm:$0xff] }
  0x54   : > { %5236 = vmatmul.mubr.msk.f32.gmra.mxu0 %vm438_vm0, %v209_v7  ;;  %v241_v7 = vld [vmem:[%s5625_s20 + $0x218] sm:$0xff] }
  0x55   : > { %5428 = vmatmul.mubr.msk.f32.gmra.mxu1 %vm438_vm0, %v337_v8  ;;  %5238 = vmatprep.mubr.msk.f32.mxu0 %vm438_vm0, %v210_v9  ;;  %v369_v8 = vld [vmem:[%s5625_s20 + $0x618] sm:$0xff]  ;;  %v242_v9 = vld [vmem:[%s5625_s20 + $0x220] sm:$0xff] }
  0x56   : > { %5430 = vmatprep.mubr.msk.f32.mxu1 %vm438_vm0, %v338_v10  ;;  %v370_v10 = vld [vmem:[%s5625_s20 + $0x620] sm:$0xff] }
  0x58   : > { %5239 = vmatmul.mubr.msk.f32.gmra.mxu0 %vm438_vm0, %v211_v11  ;;  %v243_v11 = vld [vmem:[%s5625_s20 + $0x228] sm:$0xff] }
  0x59   : > { %5431 = vmatmul.mubr.msk.f32.gmra.mxu1 %vm438_vm0, %v339_v12  ;;  %5241 = vmatprep.mubr.msk.f32.mxu0 %vm438_vm0, %v212_v13  ;;  %v371_v12 = vld [vmem:[%s5625_s20 + $0x628] sm:$0xff]  ;;  %v244_v13 = vld [vmem:[%s5625_s20 + $0x230] sm:$0xff] }
  0x5a   : > { %5433 = vmatprep.mubr.msk.f32.mxu1 %vm438_vm0, %v340_v14  ;;  %v372_v14 = vld [vmem:[%s5625_s20 + $0x630] sm:$0xff] }
  0x5c   : > { %5242 = vmatmul.mubr.msk.f32.gmra.mxu0 %vm438_vm0, %v213_v15  ;;  %v245_v15 = vld [vmem:[%s5625_s20 + $0x238] sm:$0xff] }
  0x5d   : > { %5434 = vmatmul.mubr.msk.f32.gmra.mxu1 %vm438_vm0, %v341_v16  ;;  %5244 = vmatprep.mubr.msk.f32.mxu0 %vm438_vm0, %v214_v17  ;;  %v373_v16 = vld [vmem:[%s5625_s20 + $0x638] sm:$0xff]  ;;  %v246_v17 = vld [vmem:[%s5625_s20 + $0x240] sm:$0xff] }
  0x5e   : > { %5436 = vmatprep.mubr.msk.f32.mxu1 %vm438_vm0, %v342_v18  ;;  %v374_v18 = vld [vmem:[%s5625_s20 + $0x640] sm:$0xff] }
  0x60   : > { %5245 = vmatmul.mubr.msk.f32.gmra.mxu0 %vm438_vm0, %v215_v19  ;;  %v247_v19 = vld [vmem:[%s5625_s20 + $0x248] sm:$0xff] }
  0x61   : > { %5437 = vmatmul.mubr.msk.f32.gmra.mxu1 %vm438_vm0, %v343_v20  ;;  %5247 = vmatprep.mubr.msk.f32.mxu0 %vm438_vm0, %v216_v21  ;;  %v375_v20 = vld [vmem:[%s5625_s20 + $0x648] sm:$0xff]  ;;  %v248_v21 = vld [vmem:[%s5625_s20 + $0x250] sm:$0xff] }
  0x62   : > { %5439 = vmatprep.mubr.msk.f32.mxu1 %vm438_vm0, %v344_v22  ;;  %v376_v22 = vld [vmem:[%s5625_s20 + $0x650] sm:$0xff] }
  0x64   : > { %5248 = vmatmul.mubr.msk.f32.gmra.mxu0 %vm438_vm0, %v217_v23  ;;  %v249_v23 = vld [vmem:[%s5625_s20 + $0x258] sm:$0xff] }
  0x65   : > { %5440 = vmatmul.mubr.msk.f32.gmra.mxu1 %vm438_vm0, %v345_v24  ;;  %5250 = vmatprep.mubr.msk.f32.mxu0 %vm438_vm0, %v218_v25  ;;  %v377_v24 = vld [vmem:[%s5625_s20 + $0x658] sm:$0xff]  ;;  %v250_v25 = vld [vmem:[%s5625_s20 + $0x260] sm:$0xff] }
  0x66   : > { %5442 = vmatprep.mubr.msk.f32.mxu1 %vm438_vm0, %v346_v26  ;;  %v378_v26 = vld [vmem:[%s5625_s20 + $0x660] sm:$0xff] }
  0x68   : > { %5251 = vmatmul.mubr.msk.f32.gmra.mxu0 %vm438_vm0, %v219_v27  ;;  %v251_v27 = vld [vmem:[%s5625_s20 + $0x268] sm:$0xff] }
  0x69   : > { %5443 = vmatmul.mubr.msk.f32.gmra.mxu1 %vm438_vm0, %v347_v28  ;;  %5253 = vmatprep.mubr.msk.f32.mxu0 %vm438_vm0, %v220_v29  ;;  %v379_v28 = vld [vmem:[%s5625_s20 + $0x668] sm:$0xff]  ;;  %v252_v29 = vld [vmem:[%s5625_s20 + $0x270] sm:$0xff] }
  0x6a   : > { %5445 = vmatprep.mubr.msk.f32.mxu1 %vm438_vm0, %v348_v30  ;;  %v380_v30 = vld [vmem:[%s5625_s20 + $0x670] sm:$0xff] }
  0x6c   : > { %5254 = vmatmul.mubr.msk.f32.gmra.mxu0 %vm438_vm0, %v221_v31  ;;  %v253_v31 = vld [vmem:[%s5625_s20 + $0x278] sm:$0xff] }
  0x6d   : > { %5446 = vmatmul.mubr.msk.f32.gmra.mxu1 %vm438_vm0, %v349_v32  ;;  %5256 = vmatprep.mubr.msk.f32.mxu0 %vm438_vm0, %v222_v33  ;;  %v381_v32 = vld [vmem:[%s5625_s20 + $0x678] sm:$0xff]  ;;  %v254_v33 = vld [vmem:[%s5625_s20 + $0x280] sm:$0xff] }
  0x6e   : > { %5448 = vmatprep.mubr.msk.f32.mxu1 %vm438_vm0, %v350_v34  ;;  %v382_v34 = vld [vmem:[%s5625_s20 + $0x680] sm:$0xff] }
  0x70   : > { %5257 = vmatmul.mubr.msk.f32.gmra.mxu0 %vm438_vm0, %v223_v35  ;;  %v255_v35 = vld [vmem:[%s5625_s20 + $0x288] sm:$0xff] }
  0x71   : > { %5449 = vmatmul.mubr.msk.f32.gmra.mxu1 %vm438_vm0, %v351_v36  ;;  %5259 = vmatprep.mubr.msk.f32.mxu0 %vm438_vm0, %v224_v37  ;;  %v383_v36 = vld [vmem:[%s5625_s20 + $0x688] sm:$0xff]  ;;  %v256_v37 = vld [vmem:[%s5625_s20 + $0x290] sm:$0xff] }
  0x72   : > { %5451 = vmatprep.mubr.msk.f32.mxu1 %vm438_vm0, %v352_v38  ;;  %v384_v38 = vld [vmem:[%s5625_s20 + $0x690] sm:$0xff] }
  0x74   : > { %5260 = vmatmul.mubr.msk.f32.gmra.mxu0 %vm438_vm0, %v225_v39  ;;  %v257_v39 = vld [vmem:[%s5625_s20 + $0x298] sm:$0xff] }
  0x75   : > { %5452 = vmatmul.mubr.msk.f32.gmra.mxu1 %vm438_vm0, %v353_v40  ;;  %5262 = vmatprep.mubr.msk.f32.mxu0 %vm438_vm0, %v226_v41  ;;  %v385_v40 = vld [vmem:[%s5625_s20 + $0x698] sm:$0xff]  ;;  %v258_v41 = vld [vmem:[%s5625_s20 + $0x2a0] sm:$0xff] }
  0x76   : > { %5454 = vmatprep.mubr.msk.f32.mxu1 %vm438_vm0, %v354_v42  ;;  %v386_v42 = vld [vmem:[%s5625_s20 + $0x6a0] sm:$0xff] }
  0x78   : > { %5263 = vmatmul.mubr.msk.f32.gmra.mxu0 %vm438_vm0, %v227_v43  ;;  %v259_v43 = vld [vmem:[%s5625_s20 + $0x2a8] sm:$0xff] }
  0x79   : > { %5455 = vmatmul.mubr.msk.f32.gmra.mxu1 %vm438_vm0, %v355_v44  ;;  %5265 = vmatprep.mubr.msk.f32.mxu0 %vm438_vm0, %v228_v45  ;;  %v387_v44 = vld [vmem:[%s5625_s20 + $0x6a8] sm:$0xff]  ;;  %v260_v45 = vld [vmem:[%s5625_s20 + $0x2b0] sm:$0xff] }
  0x7a   : > { %5457 = vmatprep.mubr.msk.f32.mxu1 %vm438_vm0, %v356_v46  ;;  %v388_v46 = vld [vmem:[%s5625_s20 + $0x6b0] sm:$0xff] }
  0x7c   : > { %5266 = vmatmul.mubr.msk.f32.gmra.mxu0 %vm438_vm0, %v229_v47  ;;  %v261_v47 = vld [vmem:[%s5625_s20 + $0x2b8] sm:$0xff] }
  0x7d   : > { %5458 = vmatmul.mubr.msk.f32.gmra.mxu1 %vm438_vm0, %v357_v48  ;;  %5268 = vmatprep.mubr.msk.f32.mxu0 %vm438_vm0, %v230_v49  ;;  %v389_v48 = vld [vmem:[%s5625_s20 + $0x6b8] sm:$0xff]  ;;  %v262_v49 = vld [vmem:[%s5625_s20 + $0x2c0] sm:$0xff] }
  0x7e   : > { %5460 = vmatprep.mubr.msk.f32.mxu1 %vm438_vm0, %v358_v50  ;;  %v390_v50 = vld [vmem:[%s5625_s20 + $0x6c0] sm:$0xff] }
  0x80   : > { %5269 = vmatmul.mubr.msk.f32.gmra.mxu0 %vm438_vm0, %v231_v51  ;;  %v263_v51 = vld [vmem:[%s5625_s20 + $0x2c8] sm:$0xff] }
  0x81   : > { %5461 = vmatmul.mubr.msk.f32.gmra.mxu1 %vm438_vm0, %v359_v52  ;;  %5271 = vmatprep.mubr.msk.f32.mxu0 %vm438_vm0, %v232_v53  ;;  %v391_v52 = vld [vmem:[%s5625_s20 + $0x6c8] sm:$0xff]  ;;  %v264_v53 = vld [vmem:[%s5625_s20 + $0x2d0] sm:$0xff] }
  0x82   : > { %5463 = vmatprep.mubr.msk.f32.mxu1 %vm438_vm0, %v360_v54  ;;  %v392_v54 = vld [vmem:[%s5625_s20 + $0x6d0] sm:$0xff] }
  0x84   : > { %5272 = vmatmul.mubr.msk.f32.gmra.mxu0 %vm438_vm0, %v233_v55  ;;  %v265_v55 = vld [vmem:[%s5625_s20 + $0x2d8] sm:$0xff] }
  0x85   : > { %5464 = vmatmul.mubr.msk.f32.gmra.mxu1 %vm438_vm0, %v361_v56  ;;  %5274 = vmatprep.mubr.msk.f32.mxu0 %vm438_vm0, %v234_v57  ;;  %v393_v56 = vld [vmem:[%s5625_s20 + $0x6d8] sm:$0xff]  ;;  %v266_v57 = vld [vmem:[%s5625_s20 + $0x2e0] sm:$0xff] }
  0x86   : > { %5466 = vmatprep.mubr.msk.f32.mxu1 %vm438_vm0, %v362_v58  ;;  %v394_v58 = vld [vmem:[%s5625_s20 + $0x6e0] sm:$0xff] }
  0x88   : > { %5275 = vmatmul.mubr.msk.f32.gmra.mxu0 %vm438_vm0, %v235_v59  ;;  %v267_v59 = vld [vmem:[%s5625_s20 + $0x2e8] sm:$0xff] }
  0x89   : > { %5467 = vmatmul.mubr.msk.f32.gmra.mxu1 %vm438_vm0, %v363_v60  ;;  %5277 = vmatprep.mubr.msk.f32.mxu0 %vm438_vm0, %v236_v61  ;;  %v395_v60 = vld [vmem:[%s5625_s20 + $0x6e8] sm:$0xff]  ;;  %v268_v61 = vld [vmem:[%s5625_s20 + $0x2f0] sm:$0xff] }
  0x8a   : > { %5469 = vmatprep.mubr.msk.f32.mxu1 %vm438_vm0, %v364_v62  ;;  %v396_v62 = vld [vmem:[%s5625_s20 + $0x6f0] sm:$0xff] }
  0x8c   : > { %5278 = vmatmul.mubr.msk.f32.gmra.mxu0 %vm438_vm0, %v237_v63  ;;  %v269_v63 = vld [vmem:[%s5625_s20 + $0x2f8] sm:$0xff] }
  0x8d   : > { %5470 = vmatmul.mubr.msk.f32.gmra.mxu1 %vm438_vm0, %v365_v0  ;;  %5280 = vmatprep.mubr.msk.f32.mxu0 %vm438_vm0, %v238_v1  ;;  %v397_v0 = vld [vmem:[%s5625_s20 + $0x6f8] sm:$0xff]  ;;  %v270_v1 = vld [vmem:[%s5625_s20 + $0x300] sm:$0xff] }
  0x8e   : > { %5472 = vmatprep.mubr.msk.f32.mxu1 %vm438_vm0, %v366_v2  ;;  %v398_v2 = vld [vmem:[%s5625_s20 + $0x700] sm:$0xff] }
  0x90   : > { %5281 = vmatmul.mubr.msk.f32.gmra.mxu0 %vm438_vm0, %v239_v3  ;;  %v271_v3 = vld [vmem:[%s5625_s20 + $0x308] sm:$0xff] }
  0x91   : > { %5473 = vmatmul.mubr.msk.f32.gmra.mxu1 %vm438_vm0, %v367_v4  ;;  %5283 = vmatprep.mubr.msk.f32.mxu0 %vm438_vm0, %v240_v5  ;;  %v399_v4 = vld [vmem:[%s5625_s20 + $0x708] sm:$0xff]  ;;  %v6020_v5 = vld [vmem:[%s6933_s2] ss:$0 sm:$0xff] }
  0x92   : > { %5475 = vmatprep.mubr.msk.f32.mxu1 %vm438_vm0, %v368_v6  ;;  %v272_v6 = vld [vmem:[%s5625_s20 + $0x310] sm:$0xff] }
  0x94   : > { %5284 = vmatmul.mubr.msk.f32.gmra.mxu0 %vm438_vm0, %v241_v7  ;;  %v400_v7 = vld [vmem:[%s5625_s20 + $0x710] sm:$0xff] }
  0x95   : > { %5476 = vmatmul.mubr.msk.f32.gmra.mxu1 %vm438_vm0, %v369_v8  ;;  %5286 = vmatprep.mubr.msk.f32.mxu0 %vm438_vm0, %v242_v9 }
  0x96   : > { %5478 = vmatprep.mubr.msk.f32.mxu1 %vm438_vm0, %v370_v10 }
  0x98   : > { %5287 = vmatmul.mubr.msk.f32.gmra.mxu0 %vm438_vm0, %v243_v11 }
  0x99   : > { %5479 = vmatmul.mubr.msk.f32.gmra.mxu1 %vm438_vm0, %v371_v12  ;;  %5289 = vmatprep.mubr.msk.f32.mxu0 %vm438_vm0, %v244_v13  ;;  %v273_v12 = vld [vmem:[%s5625_s20 + $0x318] sm:$0xff] }
  0x9a   : > { %5481 = vmatprep.mubr.msk.f32.mxu1 %vm438_vm0, %v372_v14  ;;  %v401_v13 = vld [vmem:[%s5625_s20 + $0x718] sm:$0xff] }
  0x9c   : > { %5290 = vmatmul.mubr.msk.f32.gmra.mxu0 %vm438_vm0, %v245_v15 }
  0x9d   : > { %5482 = vmatmul.mubr.msk.f32.gmra.mxu1 %vm438_vm0, %v373_v16  ;;  %5292 = vmatprep.mubr.msk.f32.mxu0 %vm438_vm0, %v246_v17  ;;  %v274_v16 = vld [vmem:[%s5625_s20 + $0x320] sm:$0xff] }
  0x9e   : > { %5484 = vmatprep.mubr.msk.f32.mxu1 %vm438_vm0, %v374_v18  ;;  %v402_v17 = vld [vmem:[%s5625_s20 + $0x720] sm:$0xff] }
  0xa0   : > { %5293 = vmatmul.mubr.msk.f32.gmra.mxu0 %vm438_vm0, %v247_v19 }
  0xa1   : > { %5485 = vmatmul.mubr.msk.f32.gmra.mxu1 %vm438_vm0, %v375_v20  ;;  %5295 = vmatprep.mubr.msk.f32.mxu0 %vm438_vm0, %v248_v21 }
  0xa2   : > { %5487 = vmatprep.mubr.msk.f32.mxu1 %vm438_vm0, %v376_v22 }
  0xa4   : > { %5296 = vmatmul.mubr.msk.f32.gmra.mxu0 %vm438_vm0, %v249_v23 }
  0xa5   : > { %5488 = vmatmul.mubr.msk.f32.gmra.mxu1 %vm438_vm0, %v377_v24  ;;  %5298 = vmatprep.mubr.msk.f32.mxu0 %vm438_vm0, %v250_v25 }
  0xa6   : > { %5490 = vmatprep.mubr.msk.f32.mxu1 %vm438_vm0, %v378_v26 }
  0xa8   : > { %5299 = vmatmul.mubr.msk.f32.gmra.mxu0 %vm438_vm0, %v251_v27 }
  0xa9   : > { %5491 = vmatmul.mubr.msk.f32.gmra.mxu1 %vm438_vm0, %v379_v28  ;;  %5301 = vmatprep.mubr.msk.f32.mxu0 %vm438_vm0, %v252_v29  ;;  %v275_v28 = vld [vmem:[%s5625_s20 + $0x328] sm:$0xff] }
  0xaa   : > { %5493 = vmatprep.mubr.msk.f32.mxu1 %vm438_vm0, %v380_v30  ;;  %v403_v29 = vld [vmem:[%s5625_s20 + $0x728] sm:$0xff] }
  0xac   : > { %5302 = vmatmul.mubr.msk.f32.gmra.mxu0 %vm438_vm0, %v253_v31 }
  0xad   : > { %5494 = vmatmul.mubr.msk.f32.gmra.mxu1 %vm438_vm0, %v381_v32  ;;  %5304 = vmatprep.mubr.msk.f32.mxu0 %vm438_vm0, %v254_v33 }
  0xae   : > { %5496 = vmatprep.mubr.msk.f32.mxu1 %vm438_vm0, %v382_v34  ;;  %v276_v34 = vld [vmem:[%s5625_s20 + $0x330] sm:$0xff] }
  0xb0   : > { %5305 = vmatmul.mubr.msk.f32.gmra.mxu0 %vm438_vm0, %v255_v35  ;;  %v404_v35 = vld [vmem:[%s5625_s20 + $0x730] sm:$0xff] }
  0xb1   : > { %5497 = vmatmul.mubr.msk.f32.gmra.mxu1 %vm438_vm0, %v383_v36  ;;  %5307 = vmatprep.mubr.msk.f32.mxu0 %vm438_vm0, %v256_v37 }
  0xb2   : > { %5499 = vmatprep.mubr.msk.f32.mxu1 %vm438_vm0, %v384_v38 }
  0xb4   : > { %5308 = vmatmul.mubr.msk.f32.gmra.mxu0 %vm438_vm0, %v257_v39 }
  0xb5   : > { %5500 = vmatmul.mubr.msk.f32.gmra.mxu1 %vm438_vm0, %v385_v40  ;;  %5310 = vmatprep.mubr.msk.f32.mxu0 %vm438_vm0, %v258_v41 }
  0xb6   : > { %5502 = vmatprep.mubr.msk.f32.mxu1 %vm438_vm0, %v386_v42 }
  0xb8   : > { %5311 = vmatmul.mubr.msk.f32.gmra.mxu0 %vm438_vm0, %v259_v43 }
  0xb9   : > { %5503 = vmatmul.mubr.msk.f32.gmra.mxu1 %vm438_vm0, %v387_v44  ;;  %5313 = vmatprep.mubr.msk.f32.mxu0 %vm438_vm0, %v260_v45 }
  0xba   : > { %5505 = vmatprep.mubr.msk.f32.mxu1 %vm438_vm0, %v388_v46 }
  0xbc   : > { %5314 = vmatmul.mubr.msk.f32.gmra.mxu0 %vm438_vm0, %v261_v47 }
  0xbd   : > { %5506 = vmatmul.mubr.msk.f32.gmra.mxu1 %vm438_vm0, %v389_v48  ;;  %5316 = vmatprep.mubr.msk.f32.mxu0 %vm438_vm0, %v262_v49  ;;  %v277_v48 = vld [vmem:[%s5625_s20 + $0x338] sm:$0xff] }
  0xbe   : > { %5508 = vmatprep.mubr.msk.f32.mxu1 %vm438_vm0, %v390_v50  ;;  %v405_v49 = vld [vmem:[%s5625_s20 + $0x738] sm:$0xff] }
  0xc0   : > { %5317 = vmatmul.mubr.msk.f32.gmra.mxu0 %vm438_vm0, %v263_v51 }
  0xc1   : > { %5509 = vmatmul.mubr.msk.f32.gmra.mxu1 %vm438_vm0, %v391_v52  ;;  %5319 = vmatprep.mubr.msk.f32.mxu0 %vm438_vm0, %v264_v53 }
  0xc2   : > { %5511 = vmatprep.mubr.msk.f32.mxu1 %vm438_vm0, %v392_v54  ;;  %v278_v54 = vld [vmem:[%s5625_s20 + $0x340] sm:$0xff] }
  0xc4   : > { %5320 = vmatmul.mubr.msk.f32.gmra.mxu0 %vm438_vm0, %v265_v55 }
  0xc5   : > { %5512 = vmatmul.mubr.msk.f32.gmra.mxu1 %vm438_vm0, %v393_v56  ;;  %5322 = vmatprep.mubr.msk.f32.mxu0 %vm438_vm0, %v266_v57 }
  0xc6   : > { %5514 = vmatprep.mubr.msk.f32.mxu1 %vm438_vm0, %v394_v58 }
  0xc8   : > { %5323 = vmatmul.mubr.msk.f32.gmra.mxu0 %vm438_vm0, %v267_v59  ;;  %v406_v59 = vld [vmem:[%s5625_s20 + $0x740] sm:$0xff] }
  0xc9   : > { %5515 = vmatmul.mubr.msk.f32.gmra.mxu1 %vm438_vm0, %v395_v60  ;;  %5325 = vmatprep.mubr.msk.f32.mxu0 %vm438_vm0, %v268_v61 }
  0xca   : > { %5517 = vmatprep.mubr.msk.f32.mxu1 %vm438_vm0, %v396_v62 }
  0xcc   : > { %5326 = vmatmul.mubr.msk.f32.gmra.mxu0 %vm438_vm0, %v269_v63 }
  0xcd   : > { %5518 = vmatmul.mubr.msk.f32.gmra.mxu1 %vm438_vm0, %v397_v0  ;;  %5328 = vmatprep.mubr.msk.f32.mxu0 %vm438_vm0, %v270_v1 }
  0xce   : > { %5520 = vmatprep.mubr.msk.f32.mxu1 %vm438_vm0, %v398_v2 }
  0xd0   : > { %v5186_v8 = vpop.f32.mrf.mxu0  ;;  %5329 = vmatmul.mubr.msk.f32.gmra.mxu0 %vm438_vm0, %v271_v3 }
  0xd1   : > { %v5378_v9 = vpop.f32.mrf.mxu1  ;;  %5521 = vmatmul.mubr.msk.f32.gmra.mxu1 %vm438_vm0, %v399_v4  ;;  %v1279_v10 = vadd.f32 %v5186_v8, %v6020_v5  ;;  %5331 = vmatprep.mubr.msk.f32.mxu0 %vm438_vm0, %v272_v6  ;;  %v279_v4 = vld [vmem:[%s5625_s20 + $0x348] sm:$0xff] }
  0xd2   : > { %v1919_v11 = vadd.f32 %v5378_v9, %v6020_v5  ;;  %5523 = vmatprep.mubr.msk.f32.mxu1 %vm438_vm0, %v400_v7  ;;  %v1273_v14 = vpop.f32.mrf.mxu0  ;;  %v407_v6 = vld [vmem:[%s5625_s20 + $0x748] sm:$0xff] }
  0xd3   : > { %v1913_v15 = vpop.f32.mrf.mxu1  ;;  %v2553_v18 = vmax.f32 %v1279_v10, 0.0  ;;  %v1274_v20 = vadd.f32 %v6020_v5, %v1273_v14 }
  0xd4   : > { %v2681_v19 = vmax.f32 %v1919_v11, 0.0  ;;  %v1914_v21 = vadd.f32 %v6020_v5, %v1913_v15  ;;  %v5189_v22 = vpop.f32.mrf.mxu0  ;;  %5332 = vmatmul.mubr.msk.f32.gmra.mxu0 %vm438_vm0, %v273_v12  ;;  %v280_v11 = vld [vmem:[%s5625_s20 + $0x350] sm:$0xff] }
  0xd5   : > { %v5381_v23 = vpop.f32.mrf.mxu1  ;;  %5524 = vmatmul.mubr.msk.f32.gmra.mxu1 %vm438_vm0, %v401_v13  ;;  %v4670_v24 = vpack.c.bf16 %v2553_v18, %v2553_v18  ;;  %v2552_v26 = vmax.f32 %v1274_v20, 0.0  ;;  %5334 = vmatprep.mubr.msk.f32.mxu0 %vm438_vm0, %v274_v16  ;;  %v1289_v30 = vadd.f32 %v5189_v22, %v6020_v5  ;;  %v408_v12 = vld [vmem:[%s5625_s20 + $0x750] sm:$0xff] }
  0xd6   : > { %v4798_v25 = vpack.c.bf16 %v2681_v19, %v2681_v19  ;;  %v2680_v27 = vmax.f32 %v1914_v21, 0.0  ;;  %5526 = vmatprep.mubr.msk.f32.mxu1 %vm438_vm0, %v402_v17  ;;  %v1929_v31 = vadd.f32 %v5381_v23, %v6020_v5  ;;  %v1283_v32 = vpop.f32.mrf.mxu0 }
  0xd7   : > { %v1923_v33 = vpop.f32.mrf.mxu1  ;;  %3834 = vst.msk [vmem:[%s6040_s26 + $0x4] sm:$0xf] %vm3832_vm1, %v4670_v24  ;;  %v4669_v36 = vpack.c.bf16 %v2552_v26, %v2552_v26  ;;  %v1284_v38 = vadd.f32 %v6020_v5, %v1283_v32  ;;  %v2555_v40 = vmax.f32 %v1289_v30, 0.0  ;;  %v409_v26 = vld [vmem:[%s5625_s20 + $0x758] sm:$0xff]  ;;  %v410_v32 = vld [vmem:[%s5625_s20 + $0x760] sm:$0xff] }
  0xd8   : > { %3962 = vst.msk [vmem:[%s6040_s26 + $0x204] sm:$0xf] %vm3832_vm1, %v4798_v25  ;;  %v4797_v37 = vpack.c.bf16 %v2680_v27, %v2680_v27  ;;  %v1924_v39 = vadd.f32 %v6020_v5, %v1923_v33  ;;  %v2683_v41 = vmax.f32 %v1929_v31, 0.0  ;;  %v5192_v42 = vpop.f32.mrf.mxu0  ;;  %5335 = vmatmul.mubr.msk.f32.gmra.mxu0 %vm438_vm0, %v275_v28  ;;  %v281_v25 = vld [vmem:[%s5625_s20 + $0x358] sm:$0xff]  ;;  %v282_v31 = vld [vmem:[%s5625_s20 + $0x360] sm:$0xff] }
  0xd9   : > { %v5384_v43 = vpop.f32.mrf.mxu1  ;;  %5527 = vmatmul.mubr.msk.f32.gmra.mxu1 %vm438_vm0, %v403_v29  ;;  %3833 = vst.msk [vmem:[%s6040_s26] sm:$0xf] %vm3832_vm1, %v4669_v36  ;;  %v2554_v44 = vmax.f32 %v1284_v38, 0.0  ;;  %v1299_v46 = vadd.f32 %v5192_v42, %v6020_v5  ;;  %5337 = vmatprep.mubr.msk.f32.mxu0 %vm438_vm0, %v276_v34  ;;  %v4672_v50 = vpack.c.bf16 %v2555_v40, %v2555_v40 }
  0xda   : > { %3961 = vst.msk [vmem:[%s6040_s26 + $0x200] sm:$0xf] %vm3832_vm1, %v4797_v37  ;;  %v2682_v45 = vmax.f32 %v1924_v39, 0.0  ;;  %v1939_v47 = vadd.f32 %v5384_v43, %v6020_v5  ;;  %5529 = vmatprep.mubr.msk.f32.mxu1 %vm438_vm0, %v404_v35  ;;  %v4800_v51 = vpack.c.bf16 %v2683_v41, %v2683_v41  ;;  %v1293_v52 = vpop.f32.mrf.mxu0 }
  0xdb   : > { %v1933_v53 = vpop.f32.mrf.mxu1  ;;  %v4671_v55 = vpack.c.bf16 %v2554_v44, %v2554_v44  ;;  %v2557_v57 = vmax.f32 %v1299_v46, 0.0  ;;  %3836 = vst.msk [vmem:[%s6040_s26 + $0xc] sm:$0xf] %vm3832_vm1, %v4672_v50  ;;  %v1294_v60 = vadd.f32 %v6020_v5, %v1293_v52  ;;  %v411_v46 = vld [vmem:[%s5625_s20 + $0x768] sm:$0xff] }
  0xdc   : > { %v4799_v56 = vpack.c.bf16 %v2682_v45, %v2682_v45  ;;  %v2685_v58 = vmax.f32 %v1939_v47, 0.0  ;;  %3964 = vst.msk [vmem:[%s6040_s26 + $0x20c] sm:$0xf] %vm3832_vm1, %v4800_v51  ;;  %v1934_v61 = vadd.f32 %v6020_v5, %v1933_v53  ;;  %v5195_v62 = vpop.f32.mrf.mxu0  ;;  %5338 = vmatmul.mubr.msk.f32.gmra.mxu0 %vm438_vm0, %v277_v48  ;;  %v283_v45 = vld [vmem:[%s5625_s20 + $0x368] sm:$0xff]  ;;  %v284_v51 = vld [vmem:[%s5625_s20 + $0x370] sm:$0xff] }
  0xdd   : > { %v5387_v63 = vpop.f32.mrf.mxu1  ;;  %5530 = vmatmul.mubr.msk.f32.gmra.mxu1 %vm438_vm0, %v405_v49  ;;  %3835 = vst.msk [vmem:[%s6040_s26 + $0x8] sm:$0xf] %vm3832_vm1, %v4671_v55  ;;  %v4674_v0 = vpack.c.bf16 %v2557_v57, %v2557_v57  ;;  %v1309_v2 = vadd.f32 %v5195_v62, %v6020_v5  ;;  %5340 = vmatprep.mubr.msk.f32.mxu0 %vm438_vm0, %v278_v54  ;;  %v2556_v7 = vmax.f32 %v1294_v60, 0.0 }
  0xde   : > { %3963 = vst.msk [vmem:[%s6040_s26 + $0x208] sm:$0xf] %vm3832_vm1, %v4799_v56  ;;  %v4802_v1 = vpack.c.bf16 %v2685_v58, %v2685_v58  ;;  %v1949_v3 = vadd.f32 %v5387_v63, %v6020_v5  ;;  %v2684_v8 = vmax.f32 %v1934_v61, 0.0  ;;  %v1303_v9 = vpop.f32.mrf.mxu0  ;;  %5532 = vmatprep.mubr.msk.f32.mxu1 %vm438_vm0, %v406_v59  ;;  %v412_v56 = vld [vmem:[%s5625_s20 + $0x770] sm:$0xff] }
  0xdf   : > { %v1943_v10 = vpop.f32.mrf.mxu1  ;;  %3838 = vst.msk [vmem:[%s6040_s26 + $0x14] sm:$0xf] %vm3832_vm1, %v4674_v0  ;;  %v2559_v13 = vmax.f32 %v1309_v2, 0.0  ;;  %v1304_v15 = vadd.f32 %v6020_v5, %v1303_v9  ;;  %v4673_v17 = vpack.c.bf16 %v2556_v7, %v2556_v7  ;;  %v413_v2 = vld [vmem:[%s5625_s20 + $0x778] sm:$0xff]  ;;  %v414_v9 = vld [vmem:[%s5625_s20 + $0x780] sm:$0xff] }
  0xe0   : > { %3966 = vst.msk [vmem:[%s6040_s26 + $0x214] sm:$0xf] %vm3832_vm1, %v4802_v1  ;;  %v2687_v14 = vmax.f32 %v1949_v3, 0.0  ;;  %v1944_v16 = vadd.f32 %v6020_v5, %v1943_v10  ;;  %v4801_v18 = vpack.c.bf16 %v2684_v8, %v2684_v8  ;;  %v5198_v19 = vpop.f32.mrf.mxu0  ;;  %5341 = vmatmul.mubr.msk.f32.gmra.mxu0 %vm438_vm0, %v279_v4  ;;  %v285_v1 = vld [vmem:[%s5625_s20 + $0x378] sm:$0xff]  ;;  %v286_v8 = vld [vmem:[%s5625_s20 + $0x380] sm:$0xff] }
  0xe1   : > { %v5390_v20 = vpop.f32.mrf.mxu1  ;;  %5533 = vmatmul.mubr.msk.f32.gmra.mxu1 %vm438_vm0, %v407_v6  ;;  %v4676_v21 = vpack.c.bf16 %v2559_v13, %v2559_v13  ;;  %v2558_v23 = vmax.f32 %v1304_v15, 0.0  ;;  %5343 = vmatprep.mubr.msk.f32.mxu0 %vm438_vm0, %v280_v11  ;;  %3837 = vst.msk [vmem:[%s6040_s26 + $0x10] sm:$0xf] %vm3832_vm1, %v4673_v17  ;;  %v1319_v27 = vadd.f32 %v5198_v19, %v6020_v5 }
  0xe2   : > { %v4804_v22 = vpack.c.bf16 %v2687_v14, %v2687_v14  ;;  %v2686_v24 = vmax.f32 %v1944_v16, 0.0  ;;  %5535 = vmatprep.mubr.msk.f32.mxu1 %vm438_vm0, %v408_v12  ;;  %3965 = vst.msk [vmem:[%s6040_s26 + $0x210] sm:$0xf] %vm3832_vm1, %v4801_v18  ;;  %v1959_v28 = vadd.f32 %v5390_v20, %v6020_v5  ;;  %v1313_v29 = vpop.f32.mrf.mxu0 }
  0xe3   : > { %v1953_v30 = vpop.f32.mrf.mxu1  ;;  %3840 = vst.msk [vmem:[%s6040_s26 + $0x1c] sm:$0xf] %vm3832_vm1, %v4676_v21  ;;  %v4675_v33 = vpack.c.bf16 %v2558_v23, %v2558_v23  ;;  %v1314_v35 = vadd.f32 %v6020_v5, %v1313_v29  ;;  %v2561_v37 = vmax.f32 %v1319_v27, 0.0  ;;  %v415_v23 = vld [vmem:[%s5625_s20 + $0x788] sm:$0xff]  ;;  %v416_v29 = vld [vmem:[%s5625_s20 + $0x790] sm:$0xff] }
  0xe4   : > { %3968 = vst.msk [vmem:[%s6040_s26 + $0x21c] sm:$0xf] %vm3832_vm1, %v4804_v22  ;;  %v4803_v34 = vpack.c.bf16 %v2686_v24, %v2686_v24  ;;  %v1954_v36 = vadd.f32 %v6020_v5, %v1953_v30  ;;  %v2689_v38 = vmax.f32 %v1959_v28, 0.0  ;;  %v5201_v39 = vpop.f32.mrf.mxu0  ;;  %5344 = vmatmul.mubr.msk.f32.gmra.mxu0 %vm438_vm0, %v281_v25  ;;  %v287_v22 = vld [vmem:[%s5625_s20 + $0x388] sm:$0xff]  ;;  %v288_v28 = vld [vmem:[%s5625_s20 + $0x390] sm:$0xff] }
  0xe5   : > { %v5393_v40 = vpop.f32.mrf.mxu1  ;;  %5536 = vmatmul.mubr.msk.f32.gmra.mxu1 %vm438_vm0, %v409_v26  ;;  %3839 = vst.msk [vmem:[%s6040_s26 + $0x18] sm:$0xf] %vm3832_vm1, %v4675_v33  ;;  %v2560_v41 = vmax.f32 %v1314_v35, 0.0  ;;  %v1329_v43 = vadd.f32 %v5201_v39, %v6020_v5  ;;  %5346 = vmatprep.mubr.msk.f32.mxu0 %vm438_vm0, %v282_v31  ;;  %v4678_v47 = vpack.c.bf16 %v2561_v37, %v2561_v37 }
  0xe6   : > { %3967 = vst.msk [vmem:[%s6040_s26 + $0x218] sm:$0xf] %vm3832_vm1, %v4803_v34  ;;  %v2688_v42 = vmax.f32 %v1954_v36, 0.0  ;;  %v1969_v44 = vadd.f32 %v5393_v40, %v6020_v5  ;;  %5538 = vmatprep.mubr.msk.f32.mxu1 %vm438_vm0, %v410_v32  ;;  %v4806_v48 = vpack.c.bf16 %v2689_v38, %v2689_v38  ;;  %v1323_v49 = vpop.f32.mrf.mxu0 }
  0xe7   : > { %v1963_v50 = vpop.f32.mrf.mxu1  ;;  %v4677_v52 = vpack.c.bf16 %v2560_v41, %v2560_v41  ;;  %v2563_v54 = vmax.f32 %v1329_v43, 0.0  ;;  %3842 = vst.msk [vmem:[%s6040_s26 + $0x24] sm:$0xf] %vm3832_vm1, %v4678_v47  ;;  %v1324_v57 = vadd.f32 %v6020_v5, %v1323_v49  ;;  %v417_v43 = vld [vmem:[%s5625_s20 + $0x798] sm:$0xff] }
  0xe8   : > { %v4805_v53 = vpack.c.bf16 %v2688_v42, %v2688_v42  ;;  %v2691_v55 = vmax.f32 %v1969_v44, 0.0  ;;  %3970 = vst.msk [vmem:[%s6040_s26 + $0x224] sm:$0xf] %vm3832_vm1, %v4806_v48  ;;  %v1964_v58 = vadd.f32 %v6020_v5, %v1963_v50  ;;  %v5204_v59 = vpop.f32.mrf.mxu0  ;;  %5347 = vmatmul.mubr.msk.f32.gmra.mxu0 %vm438_vm0, %v283_v45  ;;  %v289_v42 = vld [vmem:[%s5625_s20 + $0x398] sm:$0xff]  ;;  %v290_v48 = vld [vmem:[%s5625_s20 + $0x3a0] sm:$0xff] }
  0xe9   : > { %v5396_v60 = vpop.f32.mrf.mxu1  ;;  %5539 = vmatmul.mubr.msk.f32.gmra.mxu1 %vm438_vm0, %v411_v46  ;;  %3841 = vst.msk [vmem:[%s6040_s26 + $0x20] sm:$0xf] %vm3832_vm1, %v4677_v52  ;;  %v4680_v61 = vpack.c.bf16 %v2563_v54, %v2563_v54  ;;  %v1339_v63 = vadd.f32 %v5204_v59, %v6020_v5  ;;  %5349 = vmatprep.mubr.msk.f32.mxu0 %vm438_vm0, %v284_v51  ;;  %v2562_v3 = vmax.f32 %v1324_v57, 0.0 }
  0xea   : > { %3969 = vst.msk [vmem:[%s6040_s26 + $0x220] sm:$0xf] %vm3832_vm1, %v4805_v53  ;;  %v4808_v62 = vpack.c.bf16 %v2691_v55, %v2691_v55  ;;  %v1979_v0 = vadd.f32 %v5396_v60, %v6020_v5  ;;  %v2690_v4 = vmax.f32 %v1964_v58, 0.0  ;;  %v1333_v6 = vpop.f32.mrf.mxu0  ;;  %5541 = vmatprep.mubr.msk.f32.mxu1 %vm438_vm0, %v412_v56  ;;  %v418_v53 = vld [vmem:[%s5625_s20 + $0x7a0] sm:$0xff] }
  0xeb   : > { %v1973_v7 = vpop.f32.mrf.mxu1  ;;  %3844 = vst.msk [vmem:[%s6040_s26 + $0x2c] sm:$0xf] %vm3832_vm1, %v4680_v61  ;;  %v2565_v10 = vmax.f32 %v1339_v63, 0.0  ;;  %v1334_v12 = vadd.f32 %v6020_v5, %v1333_v6  ;;  %v4679_v14 = vpack.c.bf16 %v2562_v3, %v2562_v3  ;;  %v419_v63 = vld [vmem:[%s5625_s20 + $0x7a8] sm:$0xff]  ;;  %v420_v6 = vld [vmem:[%s5625_s20 + $0x7b0] sm:$0xff] }
  0xec   : > { %3972 = vst.msk [vmem:[%s6040_s26 + $0x22c] sm:$0xf] %vm3832_vm1, %v4808_v62  ;;  %v2693_v11 = vmax.f32 %v1979_v0, 0.0  ;;  %v1974_v13 = vadd.f32 %v6020_v5, %v1973_v7  ;;  %v4807_v15 = vpack.c.bf16 %v2690_v4, %v2690_v4  ;;  %v5207_v16 = vpop.f32.mrf.mxu0  ;;  %5350 = vmatmul.mubr.msk.f32.gmra.mxu0 %vm438_vm0, %v285_v1  ;;  %v291_v62 = vld [vmem:[%s5625_s20 + $0x3a8] sm:$0xff]  ;;  %v292_v4 = vld [vmem:[%s5625_s20 + $0x3b0] sm:$0xff] }
  0xed   : > { %v5399_v17 = vpop.f32.mrf.mxu1  ;;  %5542 = vmatmul.mubr.msk.f32.gmra.mxu1 %vm438_vm0, %v413_v2  ;;  %v4682_v18 = vpack.c.bf16 %v2565_v10, %v2565_v10  ;;  %v2564_v20 = vmax.f32 %v1334_v12, 0.0  ;;  %5352 = vmatprep.mubr.msk.f32.mxu0 %vm438_vm0, %v286_v8  ;;  %3843 = vst.msk [vmem:[%s6040_s26 + $0x28] sm:$0xf] %vm3832_vm1, %v4679_v14  ;;  %v1349_v24 = vadd.f32 %v5207_v16, %v6020_v5 }
  0xee   : > { %v4810_v19 = vpack.c.bf16 %v2693_v11, %v2693_v11  ;;  %v2692_v21 = vmax.f32 %v1974_v13, 0.0  ;;  %5544 = vmatprep.mubr.msk.f32.mxu1 %vm438_vm0, %v414_v9  ;;  %3971 = vst.msk [vmem:[%s6040_s26 + $0x228] sm:$0xf] %vm3832_vm1, %v4807_v15  ;;  %v1989_v25 = vadd.f32 %v5399_v17, %v6020_v5  ;;  %v1343_v26 = vpop.f32.mrf.mxu0 }
  0xef   : > { %v1983_v27 = vpop.f32.mrf.mxu1  ;;  %3846 = vst.msk [vmem:[%s6040_s26 + $0x34] sm:$0xf] %vm3832_vm1, %v4682_v18  ;;  %v4681_v30 = vpack.c.bf16 %v2564_v20, %v2564_v20  ;;  %v1344_v32 = vadd.f32 %v6020_v5, %v1343_v26  ;;  %v2567_v34 = vmax.f32 %v1349_v24, 0.0  ;;  %v421_v20 = vld [vmem:[%s5625_s20 + $0x7b8] sm:$0xff]  ;;  %v422_v26 = vld [vmem:[%s5625_s20 + $0x7c0] sm:$0xff] }
  0xf0   : > { %3974 = vst.msk [vmem:[%s6040_s26 + $0x234] sm:$0xf] %vm3832_vm1, %v4810_v19  ;;  %v4809_v31 = vpack.c.bf16 %v2692_v21, %v2692_v21  ;;  %v1984_v33 = vadd.f32 %v6020_v5, %v1983_v27  ;;  %v2695_v35 = vmax.f32 %v1989_v25, 0.0  ;;  %v5210_v36 = vpop.f32.mrf.mxu0  ;;  %5353 = vmatmul.mubr.msk.f32.gmra.mxu0 %vm438_vm0, %v287_v22  ;;  %v293_v19 = vld [vmem:[%s5625_s20 + $0x3b8] sm:$0xff]  ;;  %v294_v25 = vld [vmem:[%s5625_s20 + $0x3c0] sm:$0xff] }
  0xf1   : > { %v5402_v37 = vpop.f32.mrf.mxu1  ;;  %5545 = vmatmul.mubr.msk.f32.gmra.mxu1 %vm438_vm0, %v415_v23  ;;  %3845 = vst.msk [vmem:[%s6040_s26 + $0x30] sm:$0xf] %vm3832_vm1, %v4681_v30  ;;  %v2566_v38 = vmax.f32 %v1344_v32, 0.0  ;;  %v1359_v40 = vadd.f32 %v5210_v36, %v6020_v5  ;;  %5355 = vmatprep.mubr.msk.f32.mxu0 %vm438_vm0, %v288_v28  ;;  %v4684_v44 = vpack.c.bf16 %v2567_v34, %v2567_v34 }
  0xf2   : > { %3973 = vst.msk [vmem:[%s6040_s26 + $0x230] sm:$0xf] %vm3832_vm1, %v4809_v31  ;;  %v2694_v39 = vmax.f32 %v1984_v33, 0.0  ;;  %v1999_v41 = vadd.f32 %v5402_v37, %v6020_v5  ;;  %5547 = vmatprep.mubr.msk.f32.mxu1 %vm438_vm0, %v416_v29  ;;  %v4812_v45 = vpack.c.bf16 %v2695_v35, %v2695_v35  ;;  %v1353_v46 = vpop.f32.mrf.mxu0 }
  0xf3   : > { %v1993_v47 = vpop.f32.mrf.mxu1  ;;  %v4683_v49 = vpack.c.bf16 %v2566_v38, %v2566_v38  ;;  %v2569_v51 = vmax.f32 %v1359_v40, 0.0  ;;  %3848 = vst.msk [vmem:[%s6040_s26 + $0x3c] sm:$0xf] %vm3832_vm1, %v4684_v44  ;;  %v1354_v54 = vadd.f32 %v6020_v5, %v1353_v46  ;;  %v423_v40 = vld [vmem:[%s5625_s20 + $0x7c8] sm:$0xff] }
  0xf4   : > { %v4811_v50 = vpack.c.bf16 %v2694_v39, %v2694_v39  ;;  %v2697_v52 = vmax.f32 %v1999_v41, 0.0  ;;  %3976 = vst.msk [vmem:[%s6040_s26 + $0x23c] sm:$0xf] %vm3832_vm1, %v4812_v45  ;;  %v1994_v55 = vadd.f32 %v6020_v5, %v1993_v47  ;;  %v5213_v56 = vpop.f32.mrf.mxu0  ;;  %5356 = vmatmul.mubr.msk.f32.gmra.mxu0 %vm438_vm0, %v289_v42  ;;  %v295_v39 = vld [vmem:[%s5625_s20 + $0x3c8] sm:$0xff]  ;;  %v296_v45 = vld [vmem:[%s5625_s20 + $0x3d0] sm:$0xff] }
  0xf5   : > { %v5405_v57 = vpop.f32.mrf.mxu1  ;;  %5548 = vmatmul.mubr.msk.f32.gmra.mxu1 %vm438_vm0, %v417_v43  ;;  %3847 = vst.msk [vmem:[%s6040_s26 + $0x38] sm:$0xf] %vm3832_vm1, %v4683_v49  ;;  %v4686_v58 = vpack.c.bf16 %v2569_v51, %v2569_v51  ;;  %v1369_v60 = vadd.f32 %v5213_v56, %v6020_v5  ;;  %5358 = vmatprep.mubr.msk.f32.mxu0 %vm438_vm0, %v290_v48  ;;  %v2568_v0 = vmax.f32 %v1354_v54, 0.0 }
  0xf6   : > { %3975 = vst.msk [vmem:[%s6040_s26 + $0x238] sm:$0xf] %vm3832_vm1, %v4811_v50  ;;  %v4814_v59 = vpack.c.bf16 %v2697_v52, %v2697_v52  ;;  %v2009_v61 = vadd.f32 %v5405_v57, %v6020_v5  ;;  %v2696_v1 = vmax.f32 %v1994_v55, 0.0  ;;  %v1363_v2 = vpop.f32.mrf.mxu0  ;;  %5550 = vmatprep.mubr.msk.f32.mxu1 %vm438_vm0, %v418_v53  ;;  %v424_v50 = vld [vmem:[%s5625_s20 + $0x7d0] sm:$0xff] }
  0xf7   : > { %v2003_v3 = vpop.f32.mrf.mxu1  ;;  %3850 = vst.msk [vmem:[%s6040_s26 + $0x44] sm:$0xf] %vm3832_vm1, %v4686_v58  ;;  %v2571_v7 = vmax.f32 %v1369_v60, 0.0  ;;  %v1364_v9 = vadd.f32 %v6020_v5, %v1363_v2  ;;  %v4685_v11 = vpack.c.bf16 %v2568_v0, %v2568_v0  ;;  %v425_v60 = vld [vmem:[%s5625_s20 + $0x7d8] sm:$0xff]  ;;  %v426_v2 = vld [vmem:[%s5625_s20 + $0x7e0] sm:$0xff] }
  0xf8   : > { %3978 = vst.msk [vmem:[%s6040_s26 + $0x244] sm:$0xf] %vm3832_vm1, %v4814_v59  ;;  %v2699_v8 = vmax.f32 %v2009_v61, 0.0  ;;  %v2004_v10 = vadd.f32 %v6020_v5, %v2003_v3  ;;  %v4813_v12 = vpack.c.bf16 %v2696_v1, %v2696_v1  ;;  %v5216_v13 = vpop.f32.mrf.mxu0  ;;  %5359 = vmatmul.mubr.msk.f32.gmra.mxu0 %vm438_vm0, %v291_v62  ;;  %v297_v59 = vld [vmem:[%s5625_s20 + $0x3d8] sm:$0xff]  ;;  %v298_v1 = vld [vmem:[%s5625_s20 + $0x3e0] sm:$0xff] }
  0xf9   : > { %v5408_v14 = vpop.f32.mrf.mxu1  ;;  %5551 = vmatmul.mubr.msk.f32.gmra.mxu1 %vm438_vm0, %v419_v63  ;;  %v4688_v15 = vpack.c.bf16 %v2571_v7, %v2571_v7  ;;  %v2570_v17 = vmax.f32 %v1364_v9, 0.0  ;;  %5361 = vmatprep.mubr.msk.f32.mxu0 %vm438_vm0, %v292_v4  ;;  %3849 = vst.msk [vmem:[%s6040_s26 + $0x40] sm:$0xf] %vm3832_vm1, %v4685_v11  ;;  %v1379_v21 = vadd.f32 %v5216_v13, %v6020_v5 }
  0xfa   : > { %v4816_v16 = vpack.c.bf16 %v2699_v8, %v2699_v8  ;;  %v2698_v18 = vmax.f32 %v2004_v10, 0.0  ;;  %5553 = vmatprep.mubr.msk.f32.mxu1 %vm438_vm0, %v420_v6  ;;  %3977 = vst.msk [vmem:[%s6040_s26 + $0x240] sm:$0xf] %vm3832_vm1, %v4813_v12  ;;  %v2019_v22 = vadd.f32 %v5408_v14, %v6020_v5  ;;  %v1373_v23 = vpop.f32.mrf.mxu0 }
  0xfb   : > { %v2013_v24 = vpop.f32.mrf.mxu1  ;;  %3852 = vst.msk [vmem:[%s6040_s26 + $0x4c] sm:$0xf] %vm3832_vm1, %v4688_v15  ;;  %v4687_v27 = vpack.c.bf16 %v2570_v17, %v2570_v17  ;;  %v1374_v29 = vadd.f32 %v6020_v5, %v1373_v23  ;;  %v2573_v31 = vmax.f32 %v1379_v21, 0.0  ;;  %v427_v17 = vld [vmem:[%s5625_s20 + $0x7e8] sm:$0xff]  ;;  %v428_v23 = vld [vmem:[%s5625_s20 + $0x7f0] sm:$0xff] }
  0xfc   : > { %3980 = vst.msk [vmem:[%s6040_s26 + $0x24c] sm:$0xf] %vm3832_vm1, %v4816_v16  ;;  %v4815_v28 = vpack.c.bf16 %v2698_v18, %v2698_v18  ;;  %v2014_v30 = vadd.f32 %v6020_v5, %v2013_v24  ;;  %v2701_v32 = vmax.f32 %v2019_v22, 0.0  ;;  %v5219_v33 = vpop.f32.mrf.mxu0  ;;  %5362 = vmatmul.mubr.msk.f32.gmra.mxu0 %vm438_vm0, %v293_v19  ;;  %v299_v16 = vld [vmem:[%s5625_s20 + $0x3e8] sm:$0xff]  ;;  %v300_v22 = vld [vmem:[%s5625_s20 + $0x3f0] sm:$0xff] }
  0xfd   : > { %v5411_v34 = vpop.f32.mrf.mxu1  ;;  %5554 = vmatmul.mubr.msk.f32.gmra.mxu1 %vm438_vm0, %v421_v20  ;;  %3851 = vst.msk [vmem:[%s6040_s26 + $0x48] sm:$0xf] %vm3832_vm1, %v4687_v27  ;;  %v2572_v35 = vmax.f32 %v1374_v29, 0.0  ;;  %v1389_v37 = vadd.f32 %v5219_v33, %v6020_v5  ;;  %5364 = vmatprep.mubr.msk.f32.mxu0 %vm438_vm0, %v294_v25  ;;  %v4690_v41 = vpack.c.bf16 %v2573_v31, %v2573_v31 }
  0xfe   : > { %3979 = vst.msk [vmem:[%s6040_s26 + $0x248] sm:$0xf] %vm3832_vm1, %v4815_v28  ;;  %v2700_v36 = vmax.f32 %v2014_v30, 0.0  ;;  %v2029_v38 = vadd.f32 %v5411_v34, %v6020_v5  ;;  %5556 = vmatprep.mubr.msk.f32.mxu1 %vm438_vm0, %v422_v26  ;;  %v4818_v42 = vpack.c.bf16 %v2701_v32, %v2701_v32  ;;  %v1383_v43 = vpop.f32.mrf.mxu0 }
  0xff   : > { %v2023_v44 = vpop.f32.mrf.mxu1  ;;  %v4689_v46 = vpack.c.bf16 %v2572_v35, %v2572_v35  ;;  %v2575_v48 = vmax.f32 %v1389_v37, 0.0  ;;  %3854 = vst.msk [vmem:[%s6040_s26 + $0x54] sm:$0xf] %vm3832_vm1, %v4690_v41  ;;  %v1384_v51 = vadd.f32 %v6020_v5, %v1383_v43  ;;  %v429_v37 = vld [vmem:[%s5625_s20 + $0x7f8] sm:$0xff] }
 0x100   : > { %v4817_v47 = vpack.c.bf16 %v2700_v36, %v2700_v36  ;;  %v2703_v49 = vmax.f32 %v2029_v38, 0.0  ;;  %3982 = vst.msk [vmem:[%s6040_s26 + $0x254] sm:$0xf] %vm3832_vm1, %v4818_v42  ;;  %v2024_v52 = vadd.f32 %v6020_v5, %v2023_v44  ;;  %v5222_v53 = vpop.f32.mrf.mxu0  ;;  %5365 = vmatmul.mubr.msk.f32.gmra.mxu0 %vm438_vm0, %v295_v39  ;;  %v301_v36 = vld [vmem:[%s5625_s20 + $0x3f8] sm:$0xff] }
 0x101   : > { %v5414_v54 = vpop.f32.mrf.mxu1  ;;  %5557 = vmatmul.mubr.msk.f32.gmra.mxu1 %vm438_vm0, %v423_v40  ;;  %3853 = vst.msk [vmem:[%s6040_s26 + $0x50] sm:$0xf] %vm3832_vm1, %v4689_v46  ;;  %v4692_v55 = vpack.c.bf16 %v2575_v48, %v2575_v48  ;;  %v1399_v57 = vadd.f32 %v5222_v53, %v6020_v5  ;;  %5367 = vmatprep.mubr.msk.f32.mxu0 %vm438_vm0, %v296_v45  ;;  %v2574_v61 = vmax.f32 %v1384_v51, 0.0 }
 0x102   : > { %3981 = vst.msk [vmem:[%s6040_s26 + $0x250] sm:$0xf] %vm3832_vm1, %v4817_v47  ;;  %v4820_v56 = vpack.c.bf16 %v2703_v49, %v2703_v49  ;;  %v2039_v58 = vadd.f32 %v5414_v54, %v6020_v5  ;;  %v2702_v62 = vmax.f32 %v2024_v52, 0.0  ;;  %v1393_v63 = vpop.f32.mrf.mxu0  ;;  %5559 = vmatprep.mubr.msk.f32.mxu1 %vm438_vm0, %v424_v50 }
 0x103   : > { %v2033_v0 = vpop.f32.mrf.mxu1  ;;  %3856 = vst.msk [vmem:[%s6040_s26 + $0x5c] sm:$0xf] %vm3832_vm1, %v4692_v55  ;;  %v2577_v3 = vmax.f32 %v1399_v57, 0.0  ;;  %v1394_v6 = vadd.f32 %v6020_v5, %v1393_v63  ;;  %v4691_v8 = vpack.c.bf16 %v2574_v61, %v2574_v61 }
 0x104   : > { %3984 = vst.msk [vmem:[%s6040_s26 + $0x25c] sm:$0xf] %vm3832_vm1, %v4820_v56  ;;  %v2705_v4 = vmax.f32 %v2039_v58, 0.0  ;;  %v2034_v7 = vadd.f32 %v6020_v5, %v2033_v0  ;;  %v4819_v9 = vpack.c.bf16 %v2702_v62, %v2702_v62  ;;  %v5225_v10 = vpop.f32.mrf.mxu0  ;;  %5368 = vmatmul.mubr.msk.f32.gmra.mxu0 %vm438_vm0, %v297_v59 }
 0x105   : > { %v5417_v11 = vpop.f32.mrf.mxu1  ;;  %5560 = vmatmul.mubr.msk.f32.gmra.mxu1 %vm438_vm0, %v425_v60  ;;  %v4694_v12 = vpack.c.bf16 %v2577_v3, %v2577_v3  ;;  %v2576_v14 = vmax.f32 %v1394_v6, 0.0  ;;  %5370 = vmatprep.mubr.msk.f32.mxu0 %vm438_vm0, %v298_v1  ;;  %3855 = vst.msk [vmem:[%s6040_s26 + $0x58] sm:$0xf] %vm3832_vm1, %v4691_v8  ;;  %v1409_v18 = vadd.f32 %v5225_v10, %v6020_v5 }
 0x106   : > { %v4822_v13 = vpack.c.bf16 %v2705_v4, %v2705_v4  ;;  %v2704_v15 = vmax.f32 %v2034_v7, 0.0  ;;  %5562 = vmatprep.mubr.msk.f32.mxu1 %vm438_vm0, %v426_v2  ;;  %3983 = vst.msk [vmem:[%s6040_s26 + $0x258] sm:$0xf] %vm3832_vm1, %v4819_v9  ;;  %v2049_v19 = vadd.f32 %v5417_v11, %v6020_v5  ;;  %v1403_v20 = vpop.f32.mrf.mxu0 }
 0x107   : > { %v2043_v21 = vpop.f32.mrf.mxu1  ;;  %3858 = vst.msk [vmem:[%s6040_s26 + $0x64] sm:$0xf] %vm3832_vm1, %v4694_v12  ;;  %v4693_v24 = vpack.c.bf16 %v2576_v14, %v2576_v14  ;;  %v1404_v26 = vadd.f32 %v6020_v5, %v1403_v20  ;;  %v2579_v28 = vmax.f32 %v1409_v18, 0.0 }
 0x108   : > { %3986 = vst.msk [vmem:[%s6040_s26 + $0x264] sm:$0xf] %vm3832_vm1, %v4822_v13  ;;  %v4821_v25 = vpack.c.bf16 %v2704_v15, %v2704_v15  ;;  %v2044_v27 = vadd.f32 %v6020_v5, %v2043_v21  ;;  %v2707_v29 = vmax.f32 %v2049_v19, 0.0  ;;  %v5228_v30 = vpop.f32.mrf.mxu0  ;;  %5371 = vmatmul.mubr.msk.f32.gmra.mxu0 %vm438_vm0, %v299_v16 }
 0x109   : > { %v5420_v31 = vpop.f32.mrf.mxu1  ;;  %5563 = vmatmul.mubr.msk.f32.gmra.mxu1 %vm438_vm0, %v427_v17  ;;  %3857 = vst.msk [vmem:[%s6040_s26 + $0x60] sm:$0xf] %vm3832_vm1, %v4693_v24  ;;  %v2578_v32 = vmax.f32 %v1404_v26, 0.0  ;;  %v1419_v34 = vadd.f32 %v5228_v30, %v6020_v5  ;;  %5373 = vmatprep.mubr.msk.f32.mxu0 %vm438_vm0, %v300_v22  ;;  %v4696_v38 = vpack.c.bf16 %v2579_v28, %v2579_v28 }
 0x10a   : > { %3985 = vst.msk [vmem:[%s6040_s26 + $0x260] sm:$0xf] %vm3832_vm1, %v4821_v25  ;;  %v2706_v33 = vmax.f32 %v2044_v27, 0.0  ;;  %v2059_v35 = vadd.f32 %v5420_v31, %v6020_v5  ;;  %5565 = vmatprep.mubr.msk.f32.mxu1 %vm438_vm0, %v428_v23  ;;  %v4824_v39 = vpack.c.bf16 %v2707_v29, %v2707_v29  ;;  %v1413_v40 = vpop.f32.mrf.mxu0 }
 0x10b   : > { %v2053_v41 = vpop.f32.mrf.mxu1  ;;  %v4695_v42 = vpack.c.bf16 %v2578_v32, %v2578_v32  ;;  %v2581_v44 = vmax.f32 %v1419_v34, 0.0  ;;  %3860 = vst.msk [vmem:[%s6040_s26 + $0x6c] sm:$0xf] %vm3832_vm1, %v4696_v38  ;;  %v1414_v46 = vadd.f32 %v6020_v5, %v1413_v40 }
 0x10c   : > { %v4823_v43 = vpack.c.bf16 %v2706_v33, %v2706_v33  ;;  %v2709_v45 = vmax.f32 %v2059_v35, 0.0  ;;  %3988 = vst.msk [vmem:[%s6040_s26 + $0x26c] sm:$0xf] %vm3832_vm1, %v4824_v39  ;;  %v2054_v47 = vadd.f32 %v6020_v5, %v2053_v41  ;;  %v5231_v48 = vpop.f32.mrf.mxu0  ;;  %5374 = vmatmul.mubr.msk.f32.gmra.mxu0 %vm438_vm0, %v301_v36 }
 0x10d   : > { %v5423_v49 = vpop.f32.mrf.mxu1  ;;  %5566 = vmatmul.mubr.msk.f32.gmra.mxu1 %vm438_vm0, %v429_v37  ;;  %3859 = vst.msk [vmem:[%s6040_s26 + $0x68] sm:$0xf] %vm3832_vm1, %v4695_v42  ;;  %v4698_v50 = vpack.c.bf16 %v2581_v44, %v2581_v44  ;;  %v1429_v52 = vadd.f32 %v5231_v48, %v6020_v5  ;;  %v2580_v54 = vmax.f32 %v1414_v46, 0.0 }
 0x10e   : > { %3987 = vst.msk [vmem:[%s6040_s26 + $0x268] sm:$0xf] %vm3832_vm1, %v4823_v43  ;;  %v4826_v51 = vpack.c.bf16 %v2709_v45, %v2709_v45  ;;  %v2069_v53 = vadd.f32 %v5423_v49, %v6020_v5  ;;  %v2708_v55 = vmax.f32 %v2054_v47, 0.0  ;;  %v1423_v56 = vpop.f32.mrf.mxu0 }
 0x10f   : > { %v2063_v57 = vpop.f32.mrf.mxu1  ;;  %3862 = vst.msk [vmem:[%s6040_s26 + $0x74] sm:$0xf] %vm3832_vm1, %v4698_v50  ;;  %v2583_v58 = vmax.f32 %v1429_v52, 0.0  ;;  %v1424_v60 = vadd.f32 %v6020_v5, %v1423_v56  ;;  %v4697_v62 = vpack.c.bf16 %v2580_v54, %v2580_v54 }
 0x110   : > { %3990 = vst.msk [vmem:[%s6040_s26 + $0x274] sm:$0xf] %vm3832_vm1, %v4826_v51  ;;  %v2711_v59 = vmax.f32 %v2069_v53, 0.0  ;;  %v2064_v61 = vadd.f32 %v6020_v5, %v2063_v57  ;;  %v4825_v63 = vpack.c.bf16 %v2708_v55, %v2708_v55  ;;  %v5234_v0 = vpop.f32.mrf.mxu0 }
 0x111   : > { %v5426_v1 = vpop.f32.mrf.mxu1  ;;  %v4700_v2 = vpack.c.bf16 %v2583_v58, %v2583_v58  ;;  %v2582_v4 = vmax.f32 %v1424_v60, 0.0  ;;  %3861 = vst.msk [vmem:[%s6040_s26 + $0x70] sm:$0xf] %vm3832_vm1, %v4697_v62  ;;  %v1439_v7 = vadd.f32 %v5234_v0, %v6020_v5 }
 0x112   : > { %v4828_v3 = vpack.c.bf16 %v2711_v59, %v2711_v59  ;;  %v2710_v6 = vmax.f32 %v2064_v61, 0.0  ;;  %3989 = vst.msk [vmem:[%s6040_s26 + $0x270] sm:$0xf] %vm3832_vm1, %v4825_v63  ;;  %v2079_v8 = vadd.f32 %v5426_v1, %v6020_v5  ;;  %v1433_v9 = vpop.f32.mrf.mxu0 }
 0x113   : > { %v2073_v10 = vpop.f32.mrf.mxu1  ;;  %3864 = vst.msk [vmem:[%s6040_s26 + $0x7c] sm:$0xf] %vm3832_vm1, %v4700_v2  ;;  %v4699_v11 = vpack.c.bf16 %v2582_v4, %v2582_v4  ;;  %v1434_v13 = vadd.f32 %v6020_v5, %v1433_v9  ;;  %v2585_v15 = vmax.f32 %v1439_v7, 0.0 }
 0x114   : > { %3992 = vst.msk [vmem:[%s6040_s26 + $0x27c] sm:$0xf] %vm3832_vm1, %v4828_v3  ;;  %v4827_v12 = vpack.c.bf16 %v2710_v6, %v2710_v6  ;;  %v2074_v14 = vadd.f32 %v6020_v5, %v2073_v10  ;;  %v2713_v16 = vmax.f32 %v2079_v8, 0.0  ;;  %v5237_v17 = vpop.f32.mrf.mxu0  ;;  %v6385_v6 = vld [vmem:[%s6933_s2] ss:$0 sm:$0xff] }
 0x115   : > { %v5429_v18 = vpop.f32.mrf.mxu1  ;;  %3863 = vst.msk [vmem:[%s6040_s26 + $0x78] sm:$0xf] %vm3832_vm1, %v4699_v11  ;;  %v2584_v19 = vmax.f32 %v1434_v13, 0.0  ;;  %v1449_v21 = vadd.f32 %v5237_v17, %v6020_v5  ;;  %v4702_v23 = vpack.c.bf16 %v2585_v15, %v2585_v15 }
 0x116   : > { %3991 = vst.msk [vmem:[%s6040_s26 + $0x278] sm:$0xf] %vm3832_vm1, %v4827_v12  ;;  %v2712_v20 = vmax.f32 %v2074_v14, 0.0  ;;  %v2089_v22 = vadd.f32 %v5429_v18, %v6020_v5  ;;  %v4830_v24 = vpack.c.bf16 %v2713_v16, %v2713_v16  ;;  %v1443_v25 = vpop.f32.mrf.mxu0 }
 0x117   : > { %v2083_v26 = vpop.f32.mrf.mxu1  ;;  %v4701_v27 = vpack.c.bf16 %v2584_v19, %v2584_v19  ;;  %v2587_v29 = vmax.f32 %v1449_v21, 0.0  ;;  %3866 = vst.msk [vmem:[%s6040_s26 + $0x84] sm:$0xf] %vm3832_vm1, %v4702_v23  ;;  %v1444_v31 = vadd.f32 %v6020_v5, %v1443_v25 }
 0x118   : > { %v4829_v28 = vpack.c.bf16 %v2712_v20, %v2712_v20  ;;  %v2715_v30 = vmax.f32 %v2089_v22, 0.0  ;;  %3994 = vst.msk [vmem:[%s6040_s26 + $0x284] sm:$0xf] %vm3832_vm1, %v4830_v24  ;;  %v2084_v32 = vadd.f32 %v6020_v5, %v2083_v26  ;;  %v5240_v33 = vpop.f32.mrf.mxu0 }
 0x119   : > { %v5432_v34 = vpop.f32.mrf.mxu1  ;;  %3865 = vst.msk [vmem:[%s6040_s26 + $0x80] sm:$0xf] %vm3832_vm1, %v4701_v27  ;;  %v4704_v35 = vpack.c.bf16 %v2587_v29, %v2587_v29  ;;  %v1459_v37 = vadd.f32 %v5240_v33, %v6020_v5  ;;  %v2586_v39 = vmax.f32 %v1444_v31, 0.0 }
 0x11a   : > { %3993 = vst.msk [vmem:[%s6040_s26 + $0x280] sm:$0xf] %vm3832_vm1, %v4829_v28  ;;  %v4832_v36 = vpack.c.bf16 %v2715_v30, %v2715_v30  ;;  %v2099_v38 = vadd.f32 %v5432_v34, %v6020_v5  ;;  %v2714_v40 = vmax.f32 %v2084_v32, 0.0  ;;  %v1453_v41 = vpop.f32.mrf.mxu0 }
 0x11b   : > { %v2093_v42 = vpop.f32.mrf.mxu1  ;;  %3868 = vst.msk [vmem:[%s6040_s26 + $0x8c] sm:$0xf] %vm3832_vm1, %v4704_v35  ;;  %v2589_v43 = vmax.f32 %v1459_v37, 0.0  ;;  %v1454_v45 = vadd.f32 %v6020_v5, %v1453_v41  ;;  %v4703_v47 = vpack.c.bf16 %v2586_v39, %v2586_v39 }
 0x11c   : > { %3996 = vst.msk [vmem:[%s6040_s26 + $0x28c] sm:$0xf] %vm3832_vm1, %v4832_v36  ;;  %v2717_v44 = vmax.f32 %v2099_v38, 0.0  ;;  %v2094_v46 = vadd.f32 %v6020_v5, %v2093_v42  ;;  %v4831_v48 = vpack.c.bf16 %v2714_v40, %v2714_v40  ;;  %v5243_v49 = vpop.f32.mrf.mxu0 }
 0x11d   : > { %v5435_v50 = vpop.f32.mrf.mxu1  ;;  %v4706_v51 = vpack.c.bf16 %v2589_v43, %v2589_v43  ;;  %v2588_v53 = vmax.f32 %v1454_v45, 0.0  ;;  %3867 = vst.msk [vmem:[%s6040_s26 + $0x88] sm:$0xf] %vm3832_vm1, %v4703_v47  ;;  %v1469_v55 = vadd.f32 %v5243_v49, %v6020_v5 }
 0x11e   : > { %v4834_v52 = vpack.c.bf16 %v2717_v44, %v2717_v44  ;;  %v2716_v54 = vmax.f32 %v2094_v46, 0.0  ;;  %3995 = vst.msk [vmem:[%s6040_s26 + $0x288] sm:$0xf] %vm3832_vm1, %v4831_v48  ;;  %v2109_v56 = vadd.f32 %v5435_v50, %v6020_v5  ;;  %v1463_v57 = vpop.f32.mrf.mxu0 }
 0x11f   : > { %v2103_v58 = vpop.f32.mrf.mxu1  ;;  %3870 = vst.msk [vmem:[%s6040_s26 + $0x94] sm:$0xf] %vm3832_vm1, %v4706_v51  ;;  %v4705_v59 = vpack.c.bf16 %v2588_v53, %v2588_v53  ;;  %v1464_v61 = vadd.f32 %v6020_v5, %v1463_v57  ;;  %v2591_v63 = vmax.f32 %v1469_v55, 0.0 }
 0x120   : > { %3998 = vst.msk [vmem:[%s6040_s26 + $0x294] sm:$0xf] %vm3832_vm1, %v4834_v52  ;;  %v4833_v60 = vpack.c.bf16 %v2716_v54, %v2716_v54  ;;  %v2104_v62 = vadd.f32 %v6020_v5, %v2103_v58  ;;  %v2719_v0 = vmax.f32 %v2109_v56, 0.0  ;;  %v5246_v1 = vpop.f32.mrf.mxu0 }
 0x121   : > { %v5438_v2 = vpop.f32.mrf.mxu1  ;;  %3869 = vst.msk [vmem:[%s6040_s26 + $0x90] sm:$0xf] %vm3832_vm1, %v4705_v59  ;;  %v2590_v3 = vmax.f32 %v1464_v61, 0.0  ;;  %v1479_v7 = vadd.f32 %v6385_v6, %v5246_v1  ;;  %v4708_v8 = vpack.c.bf16 %v2591_v63, %v2591_v63 }
 0x122   : > { %3997 = vst.msk [vmem:[%s6040_s26 + $0x290] sm:$0xf] %vm3832_vm1, %v4833_v60  ;;  %v2718_v4 = vmax.f32 %v2104_v62, 0.0  ;;  %v2119_v5 = vadd.f32 %v6385_v6, %v5438_v2  ;;  %v4836_v9 = vpack.c.bf16 %v2719_v0, %v2719_v0  ;;  %v1473_v10 = vpop.f32.mrf.mxu0 }
 0x123   : > { %v2113_v11 = vpop.f32.mrf.mxu1  ;;  %v4707_v12 = vpack.c.bf16 %v2590_v3, %v2590_v3  ;;  %v2593_v14 = vmax.f32 %v1479_v7, 0.0  ;;  %3872 = vst.msk [vmem:[%s6040_s26 + $0x9c] sm:$0xf] %vm3832_vm1, %v4708_v8  ;;  %v1474_v16 = vadd.f32 %v6385_v6, %v1473_v10 }
 0x124   : > { %v4835_v13 = vpack.c.bf16 %v2718_v4, %v2718_v4  ;;  %v2721_v15 = vmax.f32 %v2119_v5, 0.0  ;;  %4000 = vst.msk [vmem:[%s6040_s26 + $0x29c] sm:$0xf] %vm3832_vm1, %v4836_v9  ;;  %v2114_v17 = vadd.f32 %v6385_v6, %v2113_v11  ;;  %v5249_v18 = vpop.f32.mrf.mxu0 }
 0x125   : > { %v5441_v19 = vpop.f32.mrf.mxu1  ;;  %3871 = vst.msk [vmem:[%s6040_s26 + $0x98] sm:$0xf] %vm3832_vm1, %v4707_v12  ;;  %v4710_v20 = vpack.c.bf16 %v2593_v14, %v2593_v14  ;;  %v1489_v22 = vadd.f32 %v6385_v6, %v5249_v18  ;;  %v2592_v24 = vmax.f32 %v1474_v16, 0.0 }
 0x126   : > { %3999 = vst.msk [vmem:[%s6040_s26 + $0x298] sm:$0xf] %vm3832_vm1, %v4835_v13  ;;  %v4838_v21 = vpack.c.bf16 %v2721_v15, %v2721_v15  ;;  %v2129_v23 = vadd.f32 %v6385_v6, %v5441_v19  ;;  %v2720_v25 = vmax.f32 %v2114_v17, 0.0  ;;  %v1483_v26 = vpop.f32.mrf.mxu0 }
 0x127   : > { %v2123_v27 = vpop.f32.mrf.mxu1  ;;  %3874 = vst.msk [vmem:[%s6040_s26 + $0xa4] sm:$0xf] %vm3832_vm1, %v4710_v20  ;;  %v2595_v28 = vmax.f32 %v1489_v22, 0.0  ;;  %v1484_v30 = vadd.f32 %v6385_v6, %v1483_v26  ;;  %v4709_v32 = vpack.c.bf16 %v2592_v24, %v2592_v24 }
 0x128   : > { %4002 = vst.msk [vmem:[%s6040_s26 + $0x2a4] sm:$0xf] %vm3832_vm1, %v4838_v21  ;;  %v2723_v29 = vmax.f32 %v2129_v23, 0.0  ;;  %v2124_v31 = vadd.f32 %v6385_v6, %v2123_v27  ;;  %v4837_v33 = vpack.c.bf16 %v2720_v25, %v2720_v25  ;;  %v5252_v34 = vpop.f32.mrf.mxu0 }
 0x129   : > { %v5444_v35 = vpop.f32.mrf.mxu1  ;;  %v4712_v36 = vpack.c.bf16 %v2595_v28, %v2595_v28  ;;  %v2594_v38 = vmax.f32 %v1484_v30, 0.0  ;;  %3873 = vst.msk [vmem:[%s6040_s26 + $0xa0] sm:$0xf] %vm3832_vm1, %v4709_v32  ;;  %v1499_v40 = vadd.f32 %v6385_v6, %v5252_v34 }
 0x12a   : > { %v4840_v37 = vpack.c.bf16 %v2723_v29, %v2723_v29  ;;  %v2722_v39 = vmax.f32 %v2124_v31, 0.0  ;;  %4001 = vst.msk [vmem:[%s6040_s26 + $0x2a0] sm:$0xf] %vm3832_vm1, %v4837_v33  ;;  %v2139_v41 = vadd.f32 %v6385_v6, %v5444_v35  ;;  %v1493_v42 = vpop.f32.mrf.mxu0 }
 0x12b   : > { %v2133_v43 = vpop.f32.mrf.mxu1  ;;  %3876 = vst.msk [vmem:[%s6040_s26 + $0xac] sm:$0xf] %vm3832_vm1, %v4712_v36  ;;  %v4711_v44 = vpack.c.bf16 %v2594_v38, %v2594_v38  ;;  %v1494_v46 = vadd.f32 %v6385_v6, %v1493_v42  ;;  %v2597_v48 = vmax.f32 %v1499_v40, 0.0 }
 0x12c   : > { %4004 = vst.msk [vmem:[%s6040_s26 + $0x2ac] sm:$0xf] %vm3832_vm1, %v4840_v37  ;;  %v4839_v45 = vpack.c.bf16 %v2722_v39, %v2722_v39  ;;  %v2134_v47 = vadd.f32 %v6385_v6, %v2133_v43  ;;  %v2725_v49 = vmax.f32 %v2139_v41, 0.0  ;;  %v5255_v50 = vpop.f32.mrf.mxu0 }
 0x12d   : > { %v5447_v51 = vpop.f32.mrf.mxu1  ;;  %3875 = vst.msk [vmem:[%s6040_s26 + $0xa8] sm:$0xf] %vm3832_vm1, %v4711_v44  ;;  %v2596_v52 = vmax.f32 %v1494_v46, 0.0  ;;  %v1509_v54 = vadd.f32 %v6385_v6, %v5255_v50  ;;  %v4714_v56 = vpack.c.bf16 %v2597_v48, %v2597_v48 }
 0x12e   : > { %4003 = vst.msk [vmem:[%s6040_s26 + $0x2a8] sm:$0xf] %vm3832_vm1, %v4839_v45  ;;  %v2724_v53 = vmax.f32 %v2134_v47, 0.0  ;;  %v2149_v55 = vadd.f32 %v6385_v6, %v5447_v51  ;;  %v4842_v57 = vpack.c.bf16 %v2725_v49, %v2725_v49  ;;  %v1503_v58 = vpop.f32.mrf.mxu0 }
 0x12f   : > { %v2143_v59 = vpop.f32.mrf.mxu1  ;;  %v4713_v60 = vpack.c.bf16 %v2596_v52, %v2596_v52  ;;  %v2599_v62 = vmax.f32 %v1509_v54, 0.0  ;;  %3878 = vst.msk [vmem:[%s6040_s26 + $0xb4] sm:$0xf] %vm3832_vm1, %v4714_v56  ;;  %v1504_v0 = vadd.f32 %v6385_v6, %v1503_v58 }
 0x130   : > { %v4841_v61 = vpack.c.bf16 %v2724_v53, %v2724_v53  ;;  %v2727_v63 = vmax.f32 %v2149_v55, 0.0  ;;  %4006 = vst.msk [vmem:[%s6040_s26 + $0x2b4] sm:$0xf] %vm3832_vm1, %v4842_v57  ;;  %v2144_v1 = vadd.f32 %v6385_v6, %v2143_v59  ;;  %v5258_v2 = vpop.f32.mrf.mxu0 }
 0x131   : > { %v5450_v3 = vpop.f32.mrf.mxu1  ;;  %3877 = vst.msk [vmem:[%s6040_s26 + $0xb0] sm:$0xf] %vm3832_vm1, %v4713_v60  ;;  %v4716_v4 = vpack.c.bf16 %v2599_v62, %v2599_v62  ;;  %v1519_v5 = vadd.f32 %v6385_v6, %v5258_v2  ;;  %v2598_v9 = vmax.f32 %v1504_v0, 0.0 }
 0x132   : > { %4005 = vst.msk [vmem:[%s6040_s26 + $0x2b0] sm:$0xf] %vm3832_vm1, %v4841_v61  ;;  %v4844_v7 = vpack.c.bf16 %v2727_v63, %v2727_v63  ;;  %v2159_v8 = vadd.f32 %v6385_v6, %v5450_v3  ;;  %v2726_v10 = vmax.f32 %v2144_v1, 0.0  ;;  %v1513_v11 = vpop.f32.mrf.mxu0 }
 0x133   : > { %v2153_v12 = vpop.f32.mrf.mxu1  ;;  %3880 = vst.msk [vmem:[%s6040_s26 + $0xbc] sm:$0xf] %vm3832_vm1, %v4716_v4  ;;  %v2601_v13 = vmax.f32 %v1519_v5, 0.0  ;;  %v1514_v15 = vadd.f32 %v6385_v6, %v1513_v11  ;;  %v4715_v17 = vpack.c.bf16 %v2598_v9, %v2598_v9 }
 0x134   : > { %4008 = vst.msk [vmem:[%s6040_s26 + $0x2bc] sm:$0xf] %vm3832_vm1, %v4844_v7  ;;  %v2729_v14 = vmax.f32 %v2159_v8, 0.0  ;;  %v2154_v16 = vadd.f32 %v6385_v6, %v2153_v12  ;;  %v4843_v18 = vpack.c.bf16 %v2726_v10, %v2726_v10  ;;  %v5261_v19 = vpop.f32.mrf.mxu0 }
 0x135   : > { %v5453_v20 = vpop.f32.mrf.mxu1  ;;  %v4718_v21 = vpack.c.bf16 %v2601_v13, %v2601_v13  ;;  %v2600_v23 = vmax.f32 %v1514_v15, 0.0  ;;  %3879 = vst.msk [vmem:[%s6040_s26 + $0xb8] sm:$0xf] %vm3832_vm1, %v4715_v17  ;;  %v1529_v25 = vadd.f32 %v6385_v6, %v5261_v19 }
 0x136   : > { %v4846_v22 = vpack.c.bf16 %v2729_v14, %v2729_v14  ;;  %v2728_v24 = vmax.f32 %v2154_v16, 0.0  ;;  %4007 = vst.msk [vmem:[%s6040_s26 + $0x2b8] sm:$0xf] %vm3832_vm1, %v4843_v18  ;;  %v2169_v26 = vadd.f32 %v6385_v6, %v5453_v20  ;;  %v1523_v27 = vpop.f32.mrf.mxu0 }
 0x137   : > { %v2163_v28 = vpop.f32.mrf.mxu1  ;;  %3882 = vst.msk [vmem:[%s6040_s26 + $0xc4] sm:$0xf] %vm3832_vm1, %v4718_v21  ;;  %v4717_v29 = vpack.c.bf16 %v2600_v23, %v2600_v23  ;;  %v1524_v31 = vadd.f32 %v6385_v6, %v1523_v27  ;;  %v2603_v33 = vmax.f32 %v1529_v25, 0.0 }
 0x138   : > { %4010 = vst.msk [vmem:[%s6040_s26 + $0x2c4] sm:$0xf] %vm3832_vm1, %v4846_v22  ;;  %v4845_v30 = vpack.c.bf16 %v2728_v24, %v2728_v24  ;;  %v2164_v32 = vadd.f32 %v6385_v6, %v2163_v28  ;;  %v2731_v34 = vmax.f32 %v2169_v26, 0.0  ;;  %v5264_v35 = vpop.f32.mrf.mxu0 }
 0x139   : > { %v5456_v36 = vpop.f32.mrf.mxu1  ;;  %3881 = vst.msk [vmem:[%s6040_s26 + $0xc0] sm:$0xf] %vm3832_vm1, %v4717_v29  ;;  %v2602_v37 = vmax.f32 %v1524_v31, 0.0  ;;  %v1539_v39 = vadd.f32 %v6385_v6, %v5264_v35  ;;  %v4720_v41 = vpack.c.bf16 %v2603_v33, %v2603_v33 }
 0x13a   : > { %4009 = vst.msk [vmem:[%s6040_s26 + $0x2c0] sm:$0xf] %vm3832_vm1, %v4845_v30  ;;  %v2730_v38 = vmax.f32 %v2164_v32, 0.0  ;;  %v2179_v40 = vadd.f32 %v6385_v6, %v5456_v36  ;;  %v4848_v42 = vpack.c.bf16 %v2731_v34, %v2731_v34  ;;  %v1533_v43 = vpop.f32.mrf.mxu0 }
 0x13b   : > { %v2173_v44 = vpop.f32.mrf.mxu1  ;;  %v4719_v45 = vpack.c.bf16 %v2602_v37, %v2602_v37  ;;  %v2605_v47 = vmax.f32 %v1539_v39, 0.0  ;;  %3884 = vst.msk [vmem:[%s6040_s26 + $0xcc] sm:$0xf] %vm3832_vm1, %v4720_v41  ;;  %v1534_v49 = vadd.f32 %v6385_v6, %v1533_v43 }
 0x13c   : > { %v4847_v46 = vpack.c.bf16 %v2730_v38, %v2730_v38  ;;  %v2733_v48 = vmax.f32 %v2179_v40, 0.0  ;;  %4012 = vst.msk [vmem:[%s6040_s26 + $0x2cc] sm:$0xf] %vm3832_vm1, %v4848_v42  ;;  %v2174_v50 = vadd.f32 %v6385_v6, %v2173_v44  ;;  %v5267_v51 = vpop.f32.mrf.mxu0 }
 0x13d   : > { %v5459_v52 = vpop.f32.mrf.mxu1  ;;  %3883 = vst.msk [vmem:[%s6040_s26 + $0xc8] sm:$0xf] %vm3832_vm1, %v4719_v45  ;;  %v4722_v53 = vpack.c.bf16 %v2605_v47, %v2605_v47  ;;  %v1549_v55 = vadd.f32 %v6385_v6, %v5267_v51  ;;  %v2604_v57 = vmax.f32 %v1534_v49, 0.0 }
 0x13e   : > { %4011 = vst.msk [vmem:[%s6040_s26 + $0x2c8] sm:$0xf] %vm3832_vm1, %v4847_v46  ;;  %v4850_v54 = vpack.c.bf16 %v2733_v48, %v2733_v48  ;;  %v2189_v56 = vadd.f32 %v6385_v6, %v5459_v52  ;;  %v2732_v58 = vmax.f32 %v2174_v50, 0.0  ;;  %v1543_v59 = vpop.f32.mrf.mxu0 }
 0x13f   : > { %v2183_v60 = vpop.f32.mrf.mxu1  ;;  %3886 = vst.msk [vmem:[%s6040_s26 + $0xd4] sm:$0xf] %vm3832_vm1, %v4722_v53  ;;  %v2607_v61 = vmax.f32 %v1549_v55, 0.0  ;;  %v1544_v63 = vadd.f32 %v6385_v6, %v1543_v59  ;;  %v4721_v1 = vpack.c.bf16 %v2604_v57, %v2604_v57 }
 0x140   : > { %4014 = vst.msk [vmem:[%s6040_s26 + $0x2d4] sm:$0xf] %vm3832_vm1, %v4850_v54  ;;  %v2735_v62 = vmax.f32 %v2189_v56, 0.0  ;;  %v2184_v0 = vadd.f32 %v6385_v6, %v2183_v60  ;;  %v4849_v2 = vpack.c.bf16 %v2732_v58, %v2732_v58  ;;  %v5270_v3 = vpop.f32.mrf.mxu0 }
 0x141   : > { %v5462_v4 = vpop.f32.mrf.mxu1  ;;  %v4724_v7 = vpack.c.bf16 %v2607_v61, %v2607_v61  ;;  %v2606_v8 = vmax.f32 %v1544_v63, 0.0  ;;  %3885 = vst.msk [vmem:[%s6040_s26 + $0xd0] sm:$0xf] %vm3832_vm1, %v4721_v1  ;;  %v1559_v10 = vadd.f32 %v6385_v6, %v5270_v3 }
 0x142   : > { %v4852_v5 = vpack.c.bf16 %v2735_v62, %v2735_v62  ;;  %v2734_v9 = vmax.f32 %v2184_v0, 0.0  ;;  %4013 = vst.msk [vmem:[%s6040_s26 + $0x2d0] sm:$0xf] %vm3832_vm1, %v4849_v2  ;;  %v2199_v11 = vadd.f32 %v6385_v6, %v5462_v4  ;;  %v1553_v12 = vpop.f32.mrf.mxu0 }
 0x143   : > { %v2193_v13 = vpop.f32.mrf.mxu1  ;;  %3888 = vst.msk [vmem:[%s6040_s26 + $0xdc] sm:$0xf] %vm3832_vm1, %v4724_v7  ;;  %v4723_v14 = vpack.c.bf16 %v2606_v8, %v2606_v8  ;;  %v1554_v16 = vadd.f32 %v6385_v6, %v1553_v12  ;;  %v2609_v18 = vmax.f32 %v1559_v10, 0.0 }
 0x144   : > { %4016 = vst.msk [vmem:[%s6040_s26 + $0x2dc] sm:$0xf] %vm3832_vm1, %v4852_v5  ;;  %v4851_v15 = vpack.c.bf16 %v2734_v9, %v2734_v9  ;;  %v2194_v17 = vadd.f32 %v6385_v6, %v2193_v13  ;;  %v2737_v19 = vmax.f32 %v2199_v11, 0.0  ;;  %v5273_v20 = vpop.f32.mrf.mxu0 }
 0x145   : > { %v5465_v21 = vpop.f32.mrf.mxu1  ;;  %3887 = vst.msk [vmem:[%s6040_s26 + $0xd8] sm:$0xf] %vm3832_vm1, %v4723_v14  ;;  %v2608_v22 = vmax.f32 %v1554_v16, 0.0  ;;  %v1569_v24 = vadd.f32 %v6385_v6, %v5273_v20  ;;  %v4726_v26 = vpack.c.bf16 %v2609_v18, %v2609_v18 }
 0x146   : > { %4015 = vst.msk [vmem:[%s6040_s26 + $0x2d8] sm:$0xf] %vm3832_vm1, %v4851_v15  ;;  %v2736_v23 = vmax.f32 %v2194_v17, 0.0  ;;  %v2209_v25 = vadd.f32 %v6385_v6, %v5465_v21  ;;  %v4854_v27 = vpack.c.bf16 %v2737_v19, %v2737_v19  ;;  %v1563_v28 = vpop.f32.mrf.mxu0 }
 0x147   : > { %v2203_v29 = vpop.f32.mrf.mxu1  ;;  %v4725_v30 = vpack.c.bf16 %v2608_v22, %v2608_v22  ;;  %v2611_v32 = vmax.f32 %v1569_v24, 0.0  ;;  %3890 = vst.msk [vmem:[%s6040_s26 + $0xe4] sm:$0xf] %vm3832_vm1, %v4726_v26  ;;  %v1564_v34 = vadd.f32 %v6385_v6, %v1563_v28 }
 0x148   : > { %v4853_v31 = vpack.c.bf16 %v2736_v23, %v2736_v23  ;;  %v2739_v33 = vmax.f32 %v2209_v25, 0.0  ;;  %4018 = vst.msk [vmem:[%s6040_s26 + $0x2e4] sm:$0xf] %vm3832_vm1, %v4854_v27  ;;  %v2204_v35 = vadd.f32 %v6385_v6, %v2203_v29  ;;  %v5276_v36 = vpop.f32.mrf.mxu0 }
 0x149   : > { %v5468_v37 = vpop.f32.mrf.mxu1  ;;  %3889 = vst.msk [vmem:[%s6040_s26 + $0xe0] sm:$0xf] %vm3832_vm1, %v4725_v30  ;;  %v4728_v38 = vpack.c.bf16 %v2611_v32, %v2611_v32  ;;  %v1579_v40 = vadd.f32 %v6385_v6, %v5276_v36  ;;  %v2610_v42 = vmax.f32 %v1564_v34, 0.0 }
 0x14a   : > { %4017 = vst.msk [vmem:[%s6040_s26 + $0x2e0] sm:$0xf] %vm3832_vm1, %v4853_v31  ;;  %v4856_v39 = vpack.c.bf16 %v2739_v33, %v2739_v33  ;;  %v2219_v41 = vadd.f32 %v6385_v6, %v5468_v37  ;;  %v2738_v43 = vmax.f32 %v2204_v35, 0.0  ;;  %v1573_v44 = vpop.f32.mrf.mxu0 }
 0x14b   : > { %v2213_v45 = vpop.f32.mrf.mxu1  ;;  %3892 = vst.msk [vmem:[%s6040_s26 + $0xec] sm:$0xf] %vm3832_vm1, %v4728_v38  ;;  %v2613_v46 = vmax.f32 %v1579_v40, 0.0  ;;  %v1574_v48 = vadd.f32 %v6385_v6, %v1573_v44  ;;  %v4727_v50 = vpack.c.bf16 %v2610_v42, %v2610_v42 }
 0x14c   : > { %4020 = vst.msk [vmem:[%s6040_s26 + $0x2ec] sm:$0xf] %vm3832_vm1, %v4856_v39  ;;  %v2741_v47 = vmax.f32 %v2219_v41, 0.0  ;;  %v2214_v49 = vadd.f32 %v6385_v6, %v2213_v45  ;;  %v4855_v51 = vpack.c.bf16 %v2738_v43, %v2738_v43  ;;  %v5279_v52 = vpop.f32.mrf.mxu0 }
 0x14d   : > { %v5471_v53 = vpop.f32.mrf.mxu1  ;;  %v4730_v54 = vpack.c.bf16 %v2613_v46, %v2613_v46  ;;  %v2612_v56 = vmax.f32 %v1574_v48, 0.0  ;;  %3891 = vst.msk [vmem:[%s6040_s26 + $0xe8] sm:$0xf] %vm3832_vm1, %v4727_v50  ;;  %v1589_v58 = vadd.f32 %v6385_v6, %v5279_v52 }
 0x14e   : > { %v4858_v55 = vpack.c.bf16 %v2741_v47, %v2741_v47  ;;  %v2740_v57 = vmax.f32 %v2214_v49, 0.0  ;;  %4019 = vst.msk [vmem:[%s6040_s26 + $0x2e8] sm:$0xf] %vm3832_vm1, %v4855_v51  ;;  %v2229_v59 = vadd.f32 %v6385_v6, %v5471_v53  ;;  %v1583_v60 = vpop.f32.mrf.mxu0 }
 0x14f   : > { %v2223_v61 = vpop.f32.mrf.mxu1  ;;  %3894 = vst.msk [vmem:[%s6040_s26 + $0xf4] sm:$0xf] %vm3832_vm1, %v4730_v54  ;;  %v4729_v62 = vpack.c.bf16 %v2612_v56, %v2612_v56  ;;  %v1584_v0 = vadd.f32 %v6385_v6, %v1583_v60  ;;  %v2615_v2 = vmax.f32 %v1589_v58, 0.0 }
 0x150   : > { %4022 = vst.msk [vmem:[%s6040_s26 + $0x2f4] sm:$0xf] %vm3832_vm1, %v4858_v55  ;;  %v4857_v63 = vpack.c.bf16 %v2740_v57, %v2740_v57  ;;  %v2224_v1 = vadd.f32 %v6385_v6, %v2223_v61  ;;  %v2743_v3 = vmax.f32 %v2229_v59, 0.0  ;;  %v5282_v4 = vpop.f32.mrf.mxu0 }
 0x151   : > { %v5474_v7 = vpop.f32.mrf.mxu1  ;;  %3893 = vst.msk [vmem:[%s6040_s26 + $0xf0] sm:$0xf] %vm3832_vm1, %v4729_v62  ;;  %v2614_v5 = vmax.f32 %v1584_v0, 0.0  ;;  %v1599_v9 = vadd.f32 %v6385_v6, %v5282_v4  ;;  %v4732_v11 = vpack.c.bf16 %v2615_v2, %v2615_v2 }
 0x152   : > { %4021 = vst.msk [vmem:[%s6040_s26 + $0x2f0] sm:$0xf] %vm3832_vm1, %v4857_v63  ;;  %v2742_v8 = vmax.f32 %v2224_v1, 0.0  ;;  %v2239_v10 = vadd.f32 %v6385_v6, %v5474_v7  ;;  %v4860_v12 = vpack.c.bf16 %v2743_v3, %v2743_v3  ;;  %v1593_v13 = vpop.f32.mrf.mxu0 }
 0x153   : > { %v2233_v14 = vpop.f32.mrf.mxu1  ;;  %v4731_v15 = vpack.c.bf16 %v2614_v5, %v2614_v5  ;;  %v2617_v17 = vmax.f32 %v1599_v9, 0.0  ;;  %3896 = vst.msk [vmem:[%s6040_s26 + $0xfc] sm:$0xf] %vm3832_vm1, %v4732_v11  ;;  %v1594_v19 = vadd.f32 %v6385_v6, %v1593_v13 }
 0x154   : > { %v4859_v16 = vpack.c.bf16 %v2742_v8, %v2742_v8  ;;  %v2745_v18 = vmax.f32 %v2239_v10, 0.0  ;;  %4024 = vst.msk [vmem:[%s6040_s26 + $0x2fc] sm:$0xf] %vm3832_vm1, %v4860_v12  ;;  %v2234_v20 = vadd.f32 %v6385_v6, %v2233_v14  ;;  %v5285_v21 = vpop.f32.mrf.mxu0 }
 0x155   : > { %v5477_v22 = vpop.f32.mrf.mxu1  ;;  %3895 = vst.msk [vmem:[%s6040_s26 + $0xf8] sm:$0xf] %vm3832_vm1, %v4731_v15  ;;  %v4734_v23 = vpack.c.bf16 %v2617_v17, %v2617_v17  ;;  %v1609_v25 = vadd.f32 %v6385_v6, %v5285_v21  ;;  %v2616_v27 = vmax.f32 %v1594_v19, 0.0 }
 0x156   : > { %4023 = vst.msk [vmem:[%s6040_s26 + $0x2f8] sm:$0xf] %vm3832_vm1, %v4859_v16  ;;  %v4862_v24 = vpack.c.bf16 %v2745_v18, %v2745_v18  ;;  %v2249_v26 = vadd.f32 %v6385_v6, %v5477_v22  ;;  %v2744_v28 = vmax.f32 %v2234_v20, 0.0  ;;  %v1603_v29 = vpop.f32.mrf.mxu0 }
 0x157   : > { %v2243_v30 = vpop.f32.mrf.mxu1  ;;  %3898 = vst.msk [vmem:[%s6040_s26 + $0x104] sm:$0xf] %vm3832_vm1, %v4734_v23  ;;  %v2619_v31 = vmax.f32 %v1609_v25, 0.0  ;;  %v1604_v33 = vadd.f32 %v6385_v6, %v1603_v29  ;;  %v4733_v35 = vpack.c.bf16 %v2616_v27, %v2616_v27 }
 0x158   : > { %4026 = vst.msk [vmem:[%s6040_s26 + $0x304] sm:$0xf] %vm3832_vm1, %v4862_v24  ;;  %v2747_v32 = vmax.f32 %v2249_v26, 0.0  ;;  %v2244_v34 = vadd.f32 %v6385_v6, %v2243_v30  ;;  %v4861_v36 = vpack.c.bf16 %v2744_v28, %v2744_v28  ;;  %v5288_v37 = vpop.f32.mrf.mxu0 }
 0x159   : > { %v5480_v38 = vpop.f32.mrf.mxu1  ;;  %v4736_v39 = vpack.c.bf16 %v2619_v31, %v2619_v31  ;;  %v2618_v41 = vmax.f32 %v1604_v33, 0.0  ;;  %3897 = vst.msk [vmem:[%s6040_s26 + $0x100] sm:$0xf] %vm3832_vm1, %v4733_v35  ;;  %v1619_v43 = vadd.f32 %v6385_v6, %v5288_v37 }
 0x15a   : > { %v4864_v40 = vpack.c.bf16 %v2747_v32, %v2747_v32  ;;  %v2746_v42 = vmax.f32 %v2244_v34, 0.0  ;;  %4025 = vst.msk [vmem:[%s6040_s26 + $0x300] sm:$0xf] %vm3832_vm1, %v4861_v36  ;;  %v2259_v44 = vadd.f32 %v6385_v6, %v5480_v38  ;;  %v1613_v45 = vpop.f32.mrf.mxu0 }
 0x15b   : > { %v2253_v46 = vpop.f32.mrf.mxu1  ;;  %3900 = vst.msk [vmem:[%s6040_s26 + $0x10c] sm:$0xf] %vm3832_vm1, %v4736_v39  ;;  %v4735_v47 = vpack.c.bf16 %v2618_v41, %v2618_v41  ;;  %v1614_v49 = vadd.f32 %v6385_v6, %v1613_v45  ;;  %v2621_v51 = vmax.f32 %v1619_v43, 0.0 }
 0x15c   : > { %4028 = vst.msk [vmem:[%s6040_s26 + $0x30c] sm:$0xf] %vm3832_vm1, %v4864_v40  ;;  %v4863_v48 = vpack.c.bf16 %v2746_v42, %v2746_v42  ;;  %v2254_v50 = vadd.f32 %v6385_v6, %v2253_v46  ;;  %v2749_v52 = vmax.f32 %v2259_v44, 0.0  ;;  %v5291_v53 = vpop.f32.mrf.mxu0 }
 0x15d   : > { %v5483_v54 = vpop.f32.mrf.mxu1  ;;  %3899 = vst.msk [vmem:[%s6040_s26 + $0x108] sm:$0xf] %vm3832_vm1, %v4735_v47  ;;  %v2620_v55 = vmax.f32 %v1614_v49, 0.0  ;;  %v1629_v57 = vadd.f32 %v6385_v6, %v5291_v53  ;;  %v4738_v59 = vpack.c.bf16 %v2621_v51, %v2621_v51 }
 0x15e   : > { %4027 = vst.msk [vmem:[%s6040_s26 + $0x308] sm:$0xf] %vm3832_vm1, %v4863_v48  ;;  %v2748_v56 = vmax.f32 %v2254_v50, 0.0  ;;  %v2269_v58 = vadd.f32 %v6385_v6, %v5483_v54  ;;  %v4866_v60 = vpack.c.bf16 %v2749_v52, %v2749_v52  ;;  %v1623_v61 = vpop.f32.mrf.mxu0 }
 0x15f   : > { %v2263_v62 = vpop.f32.mrf.mxu1  ;;  %v4737_v63 = vpack.c.bf16 %v2620_v55, %v2620_v55  ;;  %v2623_v1 = vmax.f32 %v1629_v57, 0.0  ;;  %3902 = vst.msk [vmem:[%s6040_s26 + $0x114] sm:$0xf] %vm3832_vm1, %v4738_v59  ;;  %v1624_v3 = vadd.f32 %v6385_v6, %v1623_v61 }
 0x160   : > { %v4865_v0 = vpack.c.bf16 %v2748_v56, %v2748_v56  ;;  %v2751_v2 = vmax.f32 %v2269_v58, 0.0  ;;  %4030 = vst.msk [vmem:[%s6040_s26 + $0x314] sm:$0xf] %vm3832_vm1, %v4866_v60  ;;  %v2264_v4 = vadd.f32 %v6385_v6, %v2263_v62  ;;  %v5294_v7 = vpop.f32.mrf.mxu0 }
 0x161   : > { %v5486_v5 = vpop.f32.mrf.mxu1  ;;  %3901 = vst.msk [vmem:[%s6040_s26 + $0x110] sm:$0xf] %vm3832_vm1, %v4737_v63  ;;  %v4740_v8 = vpack.c.bf16 %v2623_v1, %v2623_v1  ;;  %v1639_v10 = vadd.f32 %v6385_v6, %v5294_v7  ;;  %v2622_v12 = vmax.f32 %v1624_v3, 0.0 }
 0x162   : > { %4029 = vst.msk [vmem:[%s6040_s26 + $0x310] sm:$0xf] %vm3832_vm1, %v4865_v0  ;;  %v4868_v9 = vpack.c.bf16 %v2751_v2, %v2751_v2  ;;  %v2279_v11 = vadd.f32 %v6385_v6, %v5486_v5  ;;  %v2750_v13 = vmax.f32 %v2264_v4, 0.0  ;;  %v1633_v14 = vpop.f32.mrf.mxu0 }
 0x163   : > { %v2273_v15 = vpop.f32.mrf.mxu1  ;;  %3904 = vst.msk [vmem:[%s6040_s26 + $0x11c] sm:$0xf] %vm3832_vm1, %v4740_v8  ;;  %v2625_v16 = vmax.f32 %v1639_v10, 0.0  ;;  %v1634_v18 = vadd.f32 %v6385_v6, %v1633_v14  ;;  %v4739_v20 = vpack.c.bf16 %v2622_v12, %v2622_v12 }
 0x164   : > { %4032 = vst.msk [vmem:[%s6040_s26 + $0x31c] sm:$0xf] %vm3832_vm1, %v4868_v9  ;;  %v2753_v17 = vmax.f32 %v2279_v11, 0.0  ;;  %v2274_v19 = vadd.f32 %v6385_v6, %v2273_v15  ;;  %v4867_v21 = vpack.c.bf16 %v2750_v13, %v2750_v13  ;;  %v5297_v22 = vpop.f32.mrf.mxu0 }
 0x165   : > { %v5489_v23 = vpop.f32.mrf.mxu1  ;;  %v4742_v24 = vpack.c.bf16 %v2625_v16, %v2625_v16  ;;  %v2624_v26 = vmax.f32 %v1634_v18, 0.0  ;;  %3903 = vst.msk [vmem:[%s6040_s26 + $0x118] sm:$0xf] %vm3832_vm1, %v4739_v20  ;;  %v1649_v28 = vadd.f32 %v6385_v6, %v5297_v22 }
 0x166   : > { %v4870_v25 = vpack.c.bf16 %v2753_v17, %v2753_v17  ;;  %v2752_v27 = vmax.f32 %v2274_v19, 0.0  ;;  %4031 = vst.msk [vmem:[%s6040_s26 + $0x318] sm:$0xf] %vm3832_vm1, %v4867_v21  ;;  %v2289_v29 = vadd.f32 %v6385_v6, %v5489_v23  ;;  %v1643_v30 = vpop.f32.mrf.mxu0 }
 0x167   : > { %v2283_v31 = vpop.f32.mrf.mxu1  ;;  %3906 = vst.msk [vmem:[%s6040_s26 + $0x124] sm:$0xf] %vm3832_vm1, %v4742_v24  ;;  %v4741_v32 = vpack.c.bf16 %v2624_v26, %v2624_v26  ;;  %v1644_v34 = vadd.f32 %v6385_v6, %v1643_v30  ;;  %v2627_v36 = vmax.f32 %v1649_v28, 0.0 }
 0x168   : > { %4034 = vst.msk [vmem:[%s6040_s26 + $0x324] sm:$0xf] %vm3832_vm1, %v4870_v25  ;;  %v4869_v33 = vpack.c.bf16 %v2752_v27, %v2752_v27  ;;  %v2284_v35 = vadd.f32 %v6385_v6, %v2283_v31  ;;  %v2755_v37 = vmax.f32 %v2289_v29, 0.0  ;;  %v5300_v38 = vpop.f32.mrf.mxu0 }
 0x169   : > { %v5492_v39 = vpop.f32.mrf.mxu1  ;;  %3905 = vst.msk [vmem:[%s6040_s26 + $0x120] sm:$0xf] %vm3832_vm1, %v4741_v32  ;;  %v2626_v40 = vmax.f32 %v1644_v34, 0.0  ;;  %v1659_v42 = vadd.f32 %v6385_v6, %v5300_v38  ;;  %v4744_v44 = vpack.c.bf16 %v2627_v36, %v2627_v36 }
 0x16a   : > { %4033 = vst.msk [vmem:[%s6040_s26 + $0x320] sm:$0xf] %vm3832_vm1, %v4869_v33  ;;  %v2754_v41 = vmax.f32 %v2284_v35, 0.0  ;;  %v2299_v43 = vadd.f32 %v6385_v6, %v5492_v39  ;;  %v4872_v45 = vpack.c.bf16 %v2755_v37, %v2755_v37  ;;  %v1653_v46 = vpop.f32.mrf.mxu0 }
 0x16b   : > { %v2293_v47 = vpop.f32.mrf.mxu1  ;;  %v4743_v48 = vpack.c.bf16 %v2626_v40, %v2626_v40  ;;  %v2629_v50 = vmax.f32 %v1659_v42, 0.0  ;;  %3908 = vst.msk [vmem:[%s6040_s26 + $0x12c] sm:$0xf] %vm3832_vm1, %v4744_v44  ;;  %v1654_v52 = vadd.f32 %v6385_v6, %v1653_v46 }
 0x16c   : > { %v4871_v49 = vpack.c.bf16 %v2754_v41, %v2754_v41  ;;  %v2757_v51 = vmax.f32 %v2299_v43, 0.0  ;;  %4036 = vst.msk [vmem:[%s6040_s26 + $0x32c] sm:$0xf] %vm3832_vm1, %v4872_v45  ;;  %v2294_v53 = vadd.f32 %v6385_v6, %v2293_v47  ;;  %v5303_v54 = vpop.f32.mrf.mxu0 }
 0x16d   : > { %v5495_v55 = vpop.f32.mrf.mxu1  ;;  %3907 = vst.msk [vmem:[%s6040_s26 + $0x128] sm:$0xf] %vm3832_vm1, %v4743_v48  ;;  %v4746_v56 = vpack.c.bf16 %v2629_v50, %v2629_v50  ;;  %v1669_v58 = vadd.f32 %v6385_v6, %v5303_v54  ;;  %v2628_v60 = vmax.f32 %v1654_v52, 0.0 }
 0x16e   : > { %4035 = vst.msk [vmem:[%s6040_s26 + $0x328] sm:$0xf] %vm3832_vm1, %v4871_v49  ;;  %v4874_v57 = vpack.c.bf16 %v2757_v51, %v2757_v51  ;;  %v2309_v59 = vadd.f32 %v6385_v6, %v5495_v55  ;;  %v2756_v61 = vmax.f32 %v2294_v53, 0.0  ;;  %v1663_v62 = vpop.f32.mrf.mxu0 }
 0x16f   : > { %v2303_v63 = vpop.f32.mrf.mxu1  ;;  %3910 = vst.msk [vmem:[%s6040_s26 + $0x134] sm:$0xf] %vm3832_vm1, %v4746_v56  ;;  %v2631_v0 = vmax.f32 %v1669_v58, 0.0  ;;  %v1664_v2 = vadd.f32 %v6385_v6, %v1663_v62  ;;  %v4745_v4 = vpack.c.bf16 %v2628_v60, %v2628_v60 }
 0x170   : > { %4038 = vst.msk [vmem:[%s6040_s26 + $0x334] sm:$0xf] %vm3832_vm1, %v4874_v57  ;;  %v2759_v1 = vmax.f32 %v2309_v59, 0.0  ;;  %v2304_v3 = vadd.f32 %v6385_v6, %v2303_v63  ;;  %v4873_v7 = vpack.c.bf16 %v2756_v61, %v2756_v61  ;;  %v5306_v5 = vpop.f32.mrf.mxu0 }
 0x171   : > { %v5498_v8 = vpop.f32.mrf.mxu1  ;;  %v4748_v9 = vpack.c.bf16 %v2631_v0, %v2631_v0  ;;  %v2630_v11 = vmax.f32 %v1664_v2, 0.0  ;;  %3909 = vst.msk [vmem:[%s6040_s26 + $0x130] sm:$0xf] %vm3832_vm1, %v4745_v4  ;;  %v1679_v13 = vadd.f32 %v6385_v6, %v5306_v5 }
 0x172   : > { %v4876_v10 = vpack.c.bf16 %v2759_v1, %v2759_v1  ;;  %v2758_v12 = vmax.f32 %v2304_v3, 0.0  ;;  %4037 = vst.msk [vmem:[%s6040_s26 + $0x330] sm:$0xf] %vm3832_vm1, %v4873_v7  ;;  %v2319_v14 = vadd.f32 %v6385_v6, %v5498_v8  ;;  %v1673_v15 = vpop.f32.mrf.mxu0 }
 0x173   : > { %v2313_v16 = vpop.f32.mrf.mxu1  ;;  %3912 = vst.msk [vmem:[%s6040_s26 + $0x13c] sm:$0xf] %vm3832_vm1, %v4748_v9  ;;  %v4747_v17 = vpack.c.bf16 %v2630_v11, %v2630_v11  ;;  %v1674_v19 = vadd.f32 %v6385_v6, %v1673_v15  ;;  %v2633_v21 = vmax.f32 %v1679_v13, 0.0 }
 0x174   : > { %4040 = vst.msk [vmem:[%s6040_s26 + $0x33c] sm:$0xf] %vm3832_vm1, %v4876_v10  ;;  %v4875_v18 = vpack.c.bf16 %v2758_v12, %v2758_v12  ;;  %v2314_v20 = vadd.f32 %v6385_v6, %v2313_v16  ;;  %v2761_v22 = vmax.f32 %v2319_v14, 0.0  ;;  %v5309_v23 = vpop.f32.mrf.mxu0 }
 0x175   : > { %v5501_v24 = vpop.f32.mrf.mxu1  ;;  %3911 = vst.msk [vmem:[%s6040_s26 + $0x138] sm:$0xf] %vm3832_vm1, %v4747_v17  ;;  %v2632_v25 = vmax.f32 %v1674_v19, 0.0  ;;  %v1689_v27 = vadd.f32 %v6385_v6, %v5309_v23  ;;  %v4750_v29 = vpack.c.bf16 %v2633_v21, %v2633_v21 }
 0x176   : > { %4039 = vst.msk [vmem:[%s6040_s26 + $0x338] sm:$0xf] %vm3832_vm1, %v4875_v18  ;;  %v2760_v26 = vmax.f32 %v2314_v20, 0.0  ;;  %v2329_v28 = vadd.f32 %v6385_v6, %v5501_v24  ;;  %v4878_v30 = vpack.c.bf16 %v2761_v22, %v2761_v22  ;;  %v1683_v31 = vpop.f32.mrf.mxu0 }
 0x177   : > { %v2323_v32 = vpop.f32.mrf.mxu1  ;;  %v4749_v33 = vpack.c.bf16 %v2632_v25, %v2632_v25  ;;  %v2635_v35 = vmax.f32 %v1689_v27, 0.0  ;;  %3914 = vst.msk [vmem:[%s6040_s26 + $0x144] sm:$0xf] %vm3832_vm1, %v4750_v29  ;;  %v1684_v37 = vadd.f32 %v6385_v6, %v1683_v31 }
 0x178   : > { %v4877_v34 = vpack.c.bf16 %v2760_v26, %v2760_v26  ;;  %v2763_v36 = vmax.f32 %v2329_v28, 0.0  ;;  %4042 = vst.msk [vmem:[%s6040_s26 + $0x344] sm:$0xf] %vm3832_vm1, %v4878_v30  ;;  %v2324_v38 = vadd.f32 %v6385_v6, %v2323_v32  ;;  %v5312_v39 = vpop.f32.mrf.mxu0 }
 0x179   : > { %v5504_v40 = vpop.f32.mrf.mxu1  ;;  %3913 = vst.msk [vmem:[%s6040_s26 + $0x140] sm:$0xf] %vm3832_vm1, %v4749_v33  ;;  %v4752_v41 = vpack.c.bf16 %v2635_v35, %v2635_v35  ;;  %v1699_v43 = vadd.f32 %v6385_v6, %v5312_v39  ;;  %v2634_v45 = vmax.f32 %v1684_v37, 0.0 }
 0x17a   : > { %4041 = vst.msk [vmem:[%s6040_s26 + $0x340] sm:$0xf] %vm3832_vm1, %v4877_v34  ;;  %v4880_v42 = vpack.c.bf16 %v2763_v36, %v2763_v36  ;;  %v2339_v44 = vadd.f32 %v6385_v6, %v5504_v40  ;;  %v2762_v46 = vmax.f32 %v2324_v38, 0.0  ;;  %v1693_v47 = vpop.f32.mrf.mxu0 }
 0x17b   : > { %v2333_v48 = vpop.f32.mrf.mxu1  ;;  %3916 = vst.msk [vmem:[%s6040_s26 + $0x14c] sm:$0xf] %vm3832_vm1, %v4752_v41  ;;  %v2637_v49 = vmax.f32 %v1699_v43, 0.0  ;;  %v1694_v51 = vadd.f32 %v6385_v6, %v1693_v47  ;;  %v4751_v53 = vpack.c.bf16 %v2634_v45, %v2634_v45 }
 0x17c   : > { %4044 = vst.msk [vmem:[%s6040_s26 + $0x34c] sm:$0xf] %vm3832_vm1, %v4880_v42  ;;  %v2765_v50 = vmax.f32 %v2339_v44, 0.0  ;;  %v2334_v52 = vadd.f32 %v6385_v6, %v2333_v48  ;;  %v4879_v54 = vpack.c.bf16 %v2762_v46, %v2762_v46  ;;  %v5315_v55 = vpop.f32.mrf.mxu0  ;;  %v6702_v46 = vld [vmem:[%s6933_s2] ss:$0 sm:$0xff] }
 0x17d   : > { %v5507_v56 = vpop.f32.mrf.mxu1  ;;  %v4754_v57 = vpack.c.bf16 %v2637_v49, %v2637_v49  ;;  %v2636_v59 = vmax.f32 %v1694_v51, 0.0  ;;  %3915 = vst.msk [vmem:[%s6040_s26 + $0x148] sm:$0xf] %vm3832_vm1, %v4751_v53  ;;  %v1709_v61 = vadd.f32 %v6385_v6, %v5315_v55 }
 0x17e   : > { %v4882_v58 = vpack.c.bf16 %v2765_v50, %v2765_v50  ;;  %v2764_v60 = vmax.f32 %v2334_v52, 0.0  ;;  %4043 = vst.msk [vmem:[%s6040_s26 + $0x348] sm:$0xf] %vm3832_vm1, %v4879_v54  ;;  %v2349_v62 = vadd.f32 %v6385_v6, %v5507_v56  ;;  %v1703_v63 = vpop.f32.mrf.mxu0 }
 0x17f   : > { %v2343_v0 = vpop.f32.mrf.mxu1  ;;  %3918 = vst.msk [vmem:[%s6040_s26 + $0x154] sm:$0xf] %vm3832_vm1, %v4754_v57  ;;  %v4753_v1 = vpack.c.bf16 %v2636_v59, %v2636_v59  ;;  %v1704_v3 = vadd.f32 %v6385_v6, %v1703_v63  ;;  %v2639_v7 = vmax.f32 %v1709_v61, 0.0 }
 0x180   : > { %4046 = vst.msk [vmem:[%s6040_s26 + $0x354] sm:$0xf] %vm3832_vm1, %v4882_v58  ;;  %v4881_v2 = vpack.c.bf16 %v2764_v60, %v2764_v60  ;;  %v2344_v4 = vadd.f32 %v6385_v6, %v2343_v0  ;;  %v2767_v5 = vmax.f32 %v2349_v62, 0.0  ;;  %v5318_v8 = vpop.f32.mrf.mxu0 }
 0x181   : > { %v5510_v9 = vpop.f32.mrf.mxu1  ;;  %3917 = vst.msk [vmem:[%s6040_s26 + $0x150] sm:$0xf] %vm3832_vm1, %v4753_v1  ;;  %v2638_v10 = vmax.f32 %v1704_v3, 0.0  ;;  %v1719_v12 = vadd.f32 %v6385_v6, %v5318_v8  ;;  %v4756_v14 = vpack.c.bf16 %v2639_v7, %v2639_v7 }
 0x182   : > { %4045 = vst.msk [vmem:[%s6040_s26 + $0x350] sm:$0xf] %vm3832_vm1, %v4881_v2  ;;  %v2766_v11 = vmax.f32 %v2344_v4, 0.0  ;;  %v2359_v13 = vadd.f32 %v6385_v6, %v5510_v9  ;;  %v4884_v15 = vpack.c.bf16 %v2767_v5, %v2767_v5  ;;  %v1713_v16 = vpop.f32.mrf.mxu0 }
 0x183   : > { %v2353_v17 = vpop.f32.mrf.mxu1  ;;  %v4755_v18 = vpack.c.bf16 %v2638_v10, %v2638_v10  ;;  %v2641_v20 = vmax.f32 %v1719_v12, 0.0  ;;  %3920 = vst.msk [vmem:[%s6040_s26 + $0x15c] sm:$0xf] %vm3832_vm1, %v4756_v14  ;;  %v1714_v22 = vadd.f32 %v6385_v6, %v1713_v16 }
 0x184   : > { %v4883_v19 = vpack.c.bf16 %v2766_v11, %v2766_v11  ;;  %v2769_v21 = vmax.f32 %v2359_v13, 0.0  ;;  %4048 = vst.msk [vmem:[%s6040_s26 + $0x35c] sm:$0xf] %vm3832_vm1, %v4884_v15  ;;  %v2354_v23 = vadd.f32 %v6385_v6, %v2353_v17  ;;  %v5321_v24 = vpop.f32.mrf.mxu0 }
 0x185   : > { %v5513_v25 = vpop.f32.mrf.mxu1  ;;  %3919 = vst.msk [vmem:[%s6040_s26 + $0x158] sm:$0xf] %vm3832_vm1, %v4755_v18  ;;  %v4758_v26 = vpack.c.bf16 %v2641_v20, %v2641_v20  ;;  %v1729_v28 = vadd.f32 %v6385_v6, %v5321_v24  ;;  %v2640_v30 = vmax.f32 %v1714_v22, 0.0 }
 0x186   : > { %4047 = vst.msk [vmem:[%s6040_s26 + $0x358] sm:$0xf] %vm3832_vm1, %v4883_v19  ;;  %v4886_v27 = vpack.c.bf16 %v2769_v21, %v2769_v21  ;;  %v2369_v29 = vadd.f32 %v6385_v6, %v5513_v25  ;;  %v2768_v31 = vmax.f32 %v2354_v23, 0.0  ;;  %v1723_v32 = vpop.f32.mrf.mxu0 }
 0x187   : > { %v2363_v33 = vpop.f32.mrf.mxu1  ;;  %3922 = vst.msk [vmem:[%s6040_s26 + $0x164] sm:$0xf] %vm3832_vm1, %v4758_v26  ;;  %v2643_v34 = vmax.f32 %v1729_v28, 0.0  ;;  %v1724_v36 = vadd.f32 %v6385_v6, %v1723_v32  ;;  %v4757_v38 = vpack.c.bf16 %v2640_v30, %v2640_v30 }
 0x188   : > { %4050 = vst.msk [vmem:[%s6040_s26 + $0x364] sm:$0xf] %vm3832_vm1, %v4886_v27  ;;  %v2771_v35 = vmax.f32 %v2369_v29, 0.0  ;;  %v2364_v37 = vadd.f32 %v6385_v6, %v2363_v33  ;;  %v4885_v39 = vpack.c.bf16 %v2768_v31, %v2768_v31  ;;  %v5324_v40 = vpop.f32.mrf.mxu0 }
 0x189   : > { %v5516_v41 = vpop.f32.mrf.mxu1  ;;  %v4760_v42 = vpack.c.bf16 %v2643_v34, %v2643_v34  ;;  %v2642_v44 = vmax.f32 %v1724_v36, 0.0  ;;  %3921 = vst.msk [vmem:[%s6040_s26 + $0x160] sm:$0xf] %vm3832_vm1, %v4757_v38  ;;  %v1739_v6 = vadd.f32 %v6702_v46, %v5324_v40 }
 0x18a   : > { %v4888_v43 = vpack.c.bf16 %v2771_v35, %v2771_v35  ;;  %v2770_v45 = vmax.f32 %v2364_v37, 0.0  ;;  %4049 = vst.msk [vmem:[%s6040_s26 + $0x360] sm:$0xf] %vm3832_vm1, %v4885_v39  ;;  %v2379_v47 = vadd.f32 %v6702_v46, %v5516_v41  ;;  %v1733_v48 = vpop.f32.mrf.mxu0 }
 0x18b   : > { %v2373_v49 = vpop.f32.mrf.mxu1  ;;  %3924 = vst.msk [vmem:[%s6040_s26 + $0x16c] sm:$0xf] %vm3832_vm1, %v4760_v42  ;;  %v4759_v50 = vpack.c.bf16 %v2642_v44, %v2642_v44  ;;  %v1734_v52 = vadd.f32 %v6702_v46, %v1733_v48  ;;  %v2645_v54 = vmax.f32 %v1739_v6, 0.0 }
 0x18c   : > { %4052 = vst.msk [vmem:[%s6040_s26 + $0x36c] sm:$0xf] %vm3832_vm1, %v4888_v43  ;;  %v4887_v51 = vpack.c.bf16 %v2770_v45, %v2770_v45  ;;  %v2374_v53 = vadd.f32 %v6702_v46, %v2373_v49  ;;  %v2773_v55 = vmax.f32 %v2379_v47, 0.0  ;;  %v5327_v56 = vpop.f32.mrf.mxu0 }
 0x18d   : > { %v5519_v57 = vpop.f32.mrf.mxu1  ;;  %3923 = vst.msk [vmem:[%s6040_s26 + $0x168] sm:$0xf] %vm3832_vm1, %v4759_v50  ;;  %v2644_v58 = vmax.f32 %v1734_v52, 0.0  ;;  %v1749_v60 = vadd.f32 %v6702_v46, %v5327_v56  ;;  %v4762_v62 = vpack.c.bf16 %v2645_v54, %v2645_v54 }
 0x18e   : > { %4051 = vst.msk [vmem:[%s6040_s26 + $0x368] sm:$0xf] %vm3832_vm1, %v4887_v51  ;;  %v2772_v59 = vmax.f32 %v2374_v53, 0.0  ;;  %v2389_v61 = vadd.f32 %v6702_v46, %v5519_v57  ;;  %v4890_v63 = vpack.c.bf16 %v2773_v55, %v2773_v55  ;;  %v1743_v0 = vpop.f32.mrf.mxu0 }
 0x18f   : > { %v2383_v1 = vpop.f32.mrf.mxu1  ;;  %v4761_v2 = vpack.c.bf16 %v2644_v58, %v2644_v58  ;;  %v2647_v4 = vmax.f32 %v1749_v60, 0.0  ;;  %3926 = vst.msk [vmem:[%s6040_s26 + $0x174] sm:$0xf] %vm3832_vm1, %v4762_v62  ;;  %v1744_v5 = vadd.f32 %v6702_v46, %v1743_v0 }
 0x190   : > { %v4889_v3 = vpack.c.bf16 %v2772_v59, %v2772_v59  ;;  %v2775_v7 = vmax.f32 %v2389_v61, 0.0  ;;  %4054 = vst.msk [vmem:[%s6040_s26 + $0x374] sm:$0xf] %vm3832_vm1, %v4890_v63  ;;  %v2384_v8 = vadd.f32 %v6702_v46, %v2383_v1  ;;  %v5330_v9 = vpop.f32.mrf.mxu0 }
 0x191   : > { %v5522_v10 = vpop.f32.mrf.mxu1  ;;  %3925 = vst.msk [vmem:[%s6040_s26 + $0x170] sm:$0xf] %vm3832_vm1, %v4761_v2  ;;  %v4764_v11 = vpack.c.bf16 %v2647_v4, %v2647_v4  ;;  %v1759_v13 = vadd.f32 %v6702_v46, %v5330_v9  ;;  %v2646_v15 = vmax.f32 %v1744_v5, 0.0 }
 0x192   : > { %4053 = vst.msk [vmem:[%s6040_s26 + $0x370] sm:$0xf] %vm3832_vm1, %v4889_v3  ;;  %v4892_v12 = vpack.c.bf16 %v2775_v7, %v2775_v7  ;;  %v2399_v14 = vadd.f32 %v6702_v46, %v5522_v10  ;;  %v2774_v16 = vmax.f32 %v2384_v8, 0.0  ;;  %v1753_v17 = vpop.f32.mrf.mxu0 }
 0x193   : > { %v2393_v18 = vpop.f32.mrf.mxu1  ;;  %3928 = vst.msk [vmem:[%s6040_s26 + $0x17c] sm:$0xf] %vm3832_vm1, %v4764_v11  ;;  %v2649_v19 = vmax.f32 %v1759_v13, 0.0  ;;  %v1754_v21 = vadd.f32 %v6702_v46, %v1753_v17  ;;  %v4763_v23 = vpack.c.bf16 %v2646_v15, %v2646_v15 }
 0x194   : > { %4056 = vst.msk [vmem:[%s6040_s26 + $0x37c] sm:$0xf] %vm3832_vm1, %v4892_v12  ;;  %v2777_v20 = vmax.f32 %v2399_v14, 0.0  ;;  %v2394_v22 = vadd.f32 %v6702_v46, %v2393_v18  ;;  %v4891_v24 = vpack.c.bf16 %v2774_v16, %v2774_v16  ;;  %v5333_v25 = vpop.f32.mrf.mxu0 }
 0x195   : > { %v5525_v26 = vpop.f32.mrf.mxu1  ;;  %v4766_v27 = vpack.c.bf16 %v2649_v19, %v2649_v19  ;;  %v2648_v29 = vmax.f32 %v1754_v21, 0.0  ;;  %3927 = vst.msk [vmem:[%s6040_s26 + $0x178] sm:$0xf] %vm3832_vm1, %v4763_v23  ;;  %v1769_v31 = vadd.f32 %v6702_v46, %v5333_v25 }
 0x196   : > { %v4894_v28 = vpack.c.bf16 %v2777_v20, %v2777_v20  ;;  %v2776_v30 = vmax.f32 %v2394_v22, 0.0  ;;  %4055 = vst.msk [vmem:[%s6040_s26 + $0x378] sm:$0xf] %vm3832_vm1, %v4891_v24  ;;  %v2409_v32 = vadd.f32 %v6702_v46, %v5525_v26  ;;  %v1763_v33 = vpop.f32.mrf.mxu0 }
 0x197   : > { %v2403_v34 = vpop.f32.mrf.mxu1  ;;  %3930 = vst.msk [vmem:[%s6040_s26 + $0x184] sm:$0xf] %vm3832_vm1, %v4766_v27  ;;  %v4765_v35 = vpack.c.bf16 %v2648_v29, %v2648_v29  ;;  %v1764_v37 = vadd.f32 %v6702_v46, %v1763_v33  ;;  %v2651_v39 = vmax.f32 %v1769_v31, 0.0 }
 0x198   : > { %4058 = vst.msk [vmem:[%s6040_s26 + $0x384] sm:$0xf] %vm3832_vm1, %v4894_v28  ;;  %v4893_v36 = vpack.c.bf16 %v2776_v30, %v2776_v30  ;;  %v2404_v38 = vadd.f32 %v6702_v46, %v2403_v34  ;;  %v2779_v40 = vmax.f32 %v2409_v32, 0.0  ;;  %v5336_v41 = vpop.f32.mrf.mxu0 }
 0x199   : > { %v5528_v42 = vpop.f32.mrf.mxu1  ;;  %3929 = vst.msk [vmem:[%s6040_s26 + $0x180] sm:$0xf] %vm3832_vm1, %v4765_v35  ;;  %v2650_v43 = vmax.f32 %v1764_v37, 0.0  ;;  %v1779_v45 = vadd.f32 %v6702_v46, %v5336_v41  ;;  %v4768_v47 = vpack.c.bf16 %v2651_v39, %v2651_v39 }
 0x19a   : > { %4057 = vst.msk [vmem:[%s6040_s26 + $0x380] sm:$0xf] %vm3832_vm1, %v4893_v36  ;;  %v2778_v44 = vmax.f32 %v2404_v38, 0.0  ;;  %v2419_v6 = vadd.f32 %v6702_v46, %v5528_v42  ;;  %v4896_v48 = vpack.c.bf16 %v2779_v40, %v2779_v40  ;;  %v1773_v49 = vpop.f32.mrf.mxu0 }
 0x19b   : > { %v2413_v50 = vpop.f32.mrf.mxu1  ;;  %v4767_v51 = vpack.c.bf16 %v2650_v43, %v2650_v43  ;;  %v2653_v53 = vmax.f32 %v1779_v45, 0.0  ;;  %3932 = vst.msk [vmem:[%s6040_s26 + $0x18c] sm:$0xf] %vm3832_vm1, %v4768_v47  ;;  %v1774_v55 = vadd.f32 %v6702_v46, %v1773_v49 }
 0x19c   : > { %v4895_v52 = vpack.c.bf16 %v2778_v44, %v2778_v44  ;;  %v2781_v54 = vmax.f32 %v2419_v6, 0.0  ;;  %4060 = vst.msk [vmem:[%s6040_s26 + $0x38c] sm:$0xf] %vm3832_vm1, %v4896_v48  ;;  %v2414_v56 = vadd.f32 %v6702_v46, %v2413_v50  ;;  %v5339_v57 = vpop.f32.mrf.mxu0 }
 0x19d   : > { %v5531_v58 = vpop.f32.mrf.mxu1  ;;  %3931 = vst.msk [vmem:[%s6040_s26 + $0x188] sm:$0xf] %vm3832_vm1, %v4767_v51  ;;  %v4770_v59 = vpack.c.bf16 %v2653_v53, %v2653_v53  ;;  %v1789_v61 = vadd.f32 %v6702_v46, %v5339_v57  ;;  %v2652_v63 = vmax.f32 %v1774_v55, 0.0 }
 0x19e   : > { %4059 = vst.msk [vmem:[%s6040_s26 + $0x388] sm:$0xf] %vm3832_vm1, %v4895_v52  ;;  %v4898_v60 = vpack.c.bf16 %v2781_v54, %v2781_v54  ;;  %v2429_v62 = vadd.f32 %v6702_v46, %v5531_v58  ;;  %v2780_v0 = vmax.f32 %v2414_v56, 0.0  ;;  %v1783_v1 = vpop.f32.mrf.mxu0 }
 0x19f   : > { %v2423_v2 = vpop.f32.mrf.mxu1  ;;  %3934 = vst.msk [vmem:[%s6040_s26 + $0x194] sm:$0xf] %vm3832_vm1, %v4770_v59  ;;  %v2655_v3 = vmax.f32 %v1789_v61, 0.0  ;;  %v1784_v7 = vadd.f32 %v6702_v46, %v1783_v1  ;;  %v4769_v8 = vpack.c.bf16 %v2652_v63, %v2652_v63 }
 0x1a0   : > { %4062 = vst.msk [vmem:[%s6040_s26 + $0x394] sm:$0xf] %vm3832_vm1, %v4898_v60  ;;  %v2783_v4 = vmax.f32 %v2429_v62, 0.0  ;;  %v2424_v5 = vadd.f32 %v6702_v46, %v2423_v2  ;;  %v4897_v9 = vpack.c.bf16 %v2780_v0, %v2780_v0  ;;  %v5342_v10 = vpop.f32.mrf.mxu0 }
 0x1a1   : > { %v5534_v11 = vpop.f32.mrf.mxu1  ;;  %v4772_v12 = vpack.c.bf16 %v2655_v3, %v2655_v3  ;;  %v2654_v14 = vmax.f32 %v1784_v7, 0.0  ;;  %3933 = vst.msk [vmem:[%s6040_s26 + $0x190] sm:$0xf] %vm3832_vm1, %v4769_v8  ;;  %v1799_v16 = vadd.f32 %v6702_v46, %v5342_v10 }
 0x1a2   : > { %v4900_v13 = vpack.c.bf16 %v2783_v4, %v2783_v4  ;;  %v2782_v15 = vmax.f32 %v2424_v5, 0.0  ;;  %4061 = vst.msk [vmem:[%s6040_s26 + $0x390] sm:$0xf] %vm3832_vm1, %v4897_v9  ;;  %v2439_v17 = vadd.f32 %v6702_v46, %v5534_v11  ;;  %v1793_v18 = vpop.f32.mrf.mxu0 }
 0x1a3   : > { %v2433_v19 = vpop.f32.mrf.mxu1  ;;  %3936 = vst.msk [vmem:[%s6040_s26 + $0x19c] sm:$0xf] %vm3832_vm1, %v4772_v12  ;;  %v4771_v20 = vpack.c.bf16 %v2654_v14, %v2654_v14  ;;  %v1794_v22 = vadd.f32 %v6702_v46, %v1793_v18  ;;  %v2657_v24 = vmax.f32 %v1799_v16, 0.0 }
 0x1a4   : > { %4064 = vst.msk [vmem:[%s6040_s26 + $0x39c] sm:$0xf] %vm3832_vm1, %v4900_v13  ;;  %v4899_v21 = vpack.c.bf16 %v2782_v15, %v2782_v15  ;;  %v2434_v23 = vadd.f32 %v6702_v46, %v2433_v19  ;;  %v2785_v25 = vmax.f32 %v2439_v17, 0.0  ;;  %v5345_v26 = vpop.f32.mrf.mxu0 }
 0x1a5   : > { %v5537_v27 = vpop.f32.mrf.mxu1  ;;  %3935 = vst.msk [vmem:[%s6040_s26 + $0x198] sm:$0xf] %vm3832_vm1, %v4771_v20  ;;  %v2656_v28 = vmax.f32 %v1794_v22, 0.0  ;;  %v1809_v30 = vadd.f32 %v6702_v46, %v5345_v26  ;;  %v4774_v32 = vpack.c.bf16 %v2657_v24, %v2657_v24 }
 0x1a6   : > { %4063 = vst.msk [vmem:[%s6040_s26 + $0x398] sm:$0xf] %vm3832_vm1, %v4899_v21  ;;  %v2784_v29 = vmax.f32 %v2434_v23, 0.0  ;;  %v2449_v31 = vadd.f32 %v6702_v46, %v5537_v27  ;;  %v4902_v33 = vpack.c.bf16 %v2785_v25, %v2785_v25  ;;  %v1803_v34 = vpop.f32.mrf.mxu0 }
 0x1a7   : > { %v2443_v35 = vpop.f32.mrf.mxu1  ;;  %v4773_v36 = vpack.c.bf16 %v2656_v28, %v2656_v28  ;;  %v2659_v38 = vmax.f32 %v1809_v30, 0.0  ;;  %3938 = vst.msk [vmem:[%s6040_s26 + $0x1a4] sm:$0xf] %vm3832_vm1, %v4774_v32  ;;  %v1804_v40 = vadd.f32 %v6702_v46, %v1803_v34 }
 0x1a8   : > { %v4901_v37 = vpack.c.bf16 %v2784_v29, %v2784_v29  ;;  %v2787_v39 = vmax.f32 %v2449_v31, 0.0  ;;  %4066 = vst.msk [vmem:[%s6040_s26 + $0x3a4] sm:$0xf] %vm3832_vm1, %v4902_v33  ;;  %v2444_v41 = vadd.f32 %v6702_v46, %v2443_v35  ;;  %v5348_v42 = vpop.f32.mrf.mxu0 }
 0x1a9   : > { %v5540_v43 = vpop.f32.mrf.mxu1  ;;  %3937 = vst.msk [vmem:[%s6040_s26 + $0x1a0] sm:$0xf] %vm3832_vm1, %v4773_v36  ;;  %v4776_v44 = vpack.c.bf16 %v2659_v38, %v2659_v38  ;;  %v1819_v6 = vadd.f32 %v6702_v46, %v5348_v42  ;;  %v2658_v48 = vmax.f32 %v1804_v40, 0.0 }
 0x1aa   : > { %4065 = vst.msk [vmem:[%s6040_s26 + $0x3a0] sm:$0xf] %vm3832_vm1, %v4901_v37  ;;  %v4904_v45 = vpack.c.bf16 %v2787_v39, %v2787_v39  ;;  %v2459_v47 = vadd.f32 %v6702_v46, %v5540_v43  ;;  %v2786_v49 = vmax.f32 %v2444_v41, 0.0  ;;  %v1813_v50 = vpop.f32.mrf.mxu0 }
 0x1ab   : > { %v2453_v51 = vpop.f32.mrf.mxu1  ;;  %3940 = vst.msk [vmem:[%s6040_s26 + $0x1ac] sm:$0xf] %vm3832_vm1, %v4776_v44  ;;  %v2661_v52 = vmax.f32 %v1819_v6, 0.0  ;;  %v1814_v54 = vadd.f32 %v6702_v46, %v1813_v50  ;;  %v4775_v56 = vpack.c.bf16 %v2658_v48, %v2658_v48 }
 0x1ac   : > { %4068 = vst.msk [vmem:[%s6040_s26 + $0x3ac] sm:$0xf] %vm3832_vm1, %v4904_v45  ;;  %v2789_v53 = vmax.f32 %v2459_v47, 0.0  ;;  %v2454_v55 = vadd.f32 %v6702_v46, %v2453_v51  ;;  %v4903_v57 = vpack.c.bf16 %v2786_v49, %v2786_v49  ;;  %v5351_v58 = vpop.f32.mrf.mxu0 }
 0x1ad   : > { %v5543_v59 = vpop.f32.mrf.mxu1  ;;  %v4778_v60 = vpack.c.bf16 %v2661_v52, %v2661_v52  ;;  %v2660_v62 = vmax.f32 %v1814_v54, 0.0  ;;  %3939 = vst.msk [vmem:[%s6040_s26 + $0x1a8] sm:$0xf] %vm3832_vm1, %v4775_v56  ;;  %v1829_v0 = vadd.f32 %v6702_v46, %v5351_v58 }
 0x1ae   : > { %v4906_v61 = vpack.c.bf16 %v2789_v53, %v2789_v53  ;;  %v2788_v63 = vmax.f32 %v2454_v55, 0.0  ;;  %4067 = vst.msk [vmem:[%s6040_s26 + $0x3a8] sm:$0xf] %vm3832_vm1, %v4903_v57  ;;  %v2469_v1 = vadd.f32 %v6702_v46, %v5543_v59  ;;  %v1823_v2 = vpop.f32.mrf.mxu0 }
 0x1af   : > { %v2463_v3 = vpop.f32.mrf.mxu1  ;;  %3942 = vst.msk [vmem:[%s6040_s26 + $0x1b4] sm:$0xf] %vm3832_vm1, %v4778_v60  ;;  %v4777_v4 = vpack.c.bf16 %v2660_v62, %v2660_v62  ;;  %v1824_v5 = vadd.f32 %v6702_v46, %v1823_v2  ;;  %v2663_v9 = vmax.f32 %v1829_v0, 0.0 }
 0x1b0   : > { %4070 = vst.msk [vmem:[%s6040_s26 + $0x3b4] sm:$0xf] %vm3832_vm1, %v4906_v61  ;;  %v4905_v7 = vpack.c.bf16 %v2788_v63, %v2788_v63  ;;  %v2464_v8 = vadd.f32 %v6702_v46, %v2463_v3  ;;  %v2791_v10 = vmax.f32 %v2469_v1, 0.0  ;;  %v5354_v11 = vpop.f32.mrf.mxu0 }
 0x1b1   : > { %v5546_v12 = vpop.f32.mrf.mxu1  ;;  %3941 = vst.msk [vmem:[%s6040_s26 + $0x1b0] sm:$0xf] %vm3832_vm1, %v4777_v4  ;;  %v2662_v13 = vmax.f32 %v1824_v5, 0.0  ;;  %v1839_v15 = vadd.f32 %v6702_v46, %v5354_v11  ;;  %v4780_v17 = vpack.c.bf16 %v2663_v9, %v2663_v9 }
 0x1b2   : > { %4069 = vst.msk [vmem:[%s6040_s26 + $0x3b0] sm:$0xf] %vm3832_vm1, %v4905_v7  ;;  %v2790_v14 = vmax.f32 %v2464_v8, 0.0  ;;  %v2479_v16 = vadd.f32 %v6702_v46, %v5546_v12  ;;  %v4908_v18 = vpack.c.bf16 %v2791_v10, %v2791_v10  ;;  %v1833_v19 = vpop.f32.mrf.mxu0 }
 0x1b3   : > { %v2473_v20 = vpop.f32.mrf.mxu1  ;;  %v4779_v21 = vpack.c.bf16 %v2662_v13, %v2662_v13  ;;  %v2665_v23 = vmax.f32 %v1839_v15, 0.0  ;;  %3944 = vst.msk [vmem:[%s6040_s26 + $0x1bc] sm:$0xf] %vm3832_vm1, %v4780_v17  ;;  %v1834_v25 = vadd.f32 %v6702_v46, %v1833_v19 }
 0x1b4   : > { %v4907_v22 = vpack.c.bf16 %v2790_v14, %v2790_v14  ;;  %v2793_v24 = vmax.f32 %v2479_v16, 0.0  ;;  %4072 = vst.msk [vmem:[%s6040_s26 + $0x3bc] sm:$0xf] %vm3832_vm1, %v4908_v18  ;;  %v2474_v26 = vadd.f32 %v6702_v46, %v2473_v20  ;;  %v5357_v27 = vpop.f32.mrf.mxu0 }
 0x1b5   : > { %v5549_v28 = vpop.f32.mrf.mxu1  ;;  %3943 = vst.msk [vmem:[%s6040_s26 + $0x1b8] sm:$0xf] %vm3832_vm1, %v4779_v21  ;;  %v4782_v29 = vpack.c.bf16 %v2665_v23, %v2665_v23  ;;  %v1849_v31 = vadd.f32 %v6702_v46, %v5357_v27  ;;  %v2664_v33 = vmax.f32 %v1834_v25, 0.0 }
 0x1b6   : > { %4071 = vst.msk [vmem:[%s6040_s26 + $0x3b8] sm:$0xf] %vm3832_vm1, %v4907_v22  ;;  %v4910_v30 = vpack.c.bf16 %v2793_v24, %v2793_v24  ;;  %v2489_v32 = vadd.f32 %v6702_v46, %v5549_v28  ;;  %v2792_v34 = vmax.f32 %v2474_v26, 0.0  ;;  %v1843_v35 = vpop.f32.mrf.mxu0 }
 0x1b7   : > { %v2483_v36 = vpop.f32.mrf.mxu1  ;;  %3946 = vst.msk [vmem:[%s6040_s26 + $0x1c4] sm:$0xf] %vm3832_vm1, %v4782_v29  ;;  %v2667_v37 = vmax.f32 %v1849_v31, 0.0  ;;  %v1844_v39 = vadd.f32 %v6702_v46, %v1843_v35  ;;  %v4781_v41 = vpack.c.bf16 %v2664_v33, %v2664_v33 }
 0x1b8   : > { %4074 = vst.msk [vmem:[%s6040_s26 + $0x3c4] sm:$0xf] %vm3832_vm1, %v4910_v30  ;;  %v2795_v38 = vmax.f32 %v2489_v32, 0.0  ;;  %v2484_v40 = vadd.f32 %v6702_v46, %v2483_v36  ;;  %v4909_v42 = vpack.c.bf16 %v2792_v34, %v2792_v34  ;;  %v5360_v43 = vpop.f32.mrf.mxu0 }
 0x1b9   : > { %v5552_v44 = vpop.f32.mrf.mxu1  ;;  %v4784_v45 = vpack.c.bf16 %v2667_v37, %v2667_v37  ;;  %v2666_v47 = vmax.f32 %v1844_v39, 0.0  ;;  %3945 = vst.msk [vmem:[%s6040_s26 + $0x1c0] sm:$0xf] %vm3832_vm1, %v4781_v41  ;;  %v1859_v49 = vadd.f32 %v6702_v46, %v5360_v43 }
 0x1ba   : > { %v4912_v6 = vpack.c.bf16 %v2795_v38, %v2795_v38  ;;  %v2794_v48 = vmax.f32 %v2484_v40, 0.0  ;;  %4073 = vst.msk [vmem:[%s6040_s26 + $0x3c0] sm:$0xf] %vm3832_vm1, %v4909_v42  ;;  %v2499_v50 = vadd.f32 %v6702_v46, %v5552_v44  ;;  %v1853_v51 = vpop.f32.mrf.mxu0 }
 0x1bb   : > { %v2493_v52 = vpop.f32.mrf.mxu1  ;;  %3948 = vst.msk [vmem:[%s6040_s26 + $0x1cc] sm:$0xf] %vm3832_vm1, %v4784_v45  ;;  %v4783_v53 = vpack.c.bf16 %v2666_v47, %v2666_v47  ;;  %v1854_v55 = vadd.f32 %v6702_v46, %v1853_v51  ;;  %v2669_v57 = vmax.f32 %v1859_v49, 0.0 }
 0x1bc   : > { %4076 = vst.msk [vmem:[%s6040_s26 + $0x3cc] sm:$0xf] %vm3832_vm1, %v4912_v6  ;;  %v4911_v54 = vpack.c.bf16 %v2794_v48, %v2794_v48  ;;  %v2494_v56 = vadd.f32 %v6702_v46, %v2493_v52  ;;  %v2797_v58 = vmax.f32 %v2499_v50, 0.0  ;;  %v5363_v59 = vpop.f32.mrf.mxu0 }
 0x1bd   : > { %v5555_v60 = vpop.f32.mrf.mxu1  ;;  %3947 = vst.msk [vmem:[%s6040_s26 + $0x1c8] sm:$0xf] %vm3832_vm1, %v4783_v53  ;;  %v2668_v61 = vmax.f32 %v1854_v55, 0.0  ;;  %v1869_v63 = vadd.f32 %v6702_v46, %v5363_v59  ;;  %v4786_v1 = vpack.c.bf16 %v2669_v57, %v2669_v57 }
 0x1be   : > { %4075 = vst.msk [vmem:[%s6040_s26 + $0x3c8] sm:$0xf] %vm3832_vm1, %v4911_v54  ;;  %v2796_v62 = vmax.f32 %v2494_v56, 0.0  ;;  %v2509_v0 = vadd.f32 %v6702_v46, %v5555_v60  ;;  %v4914_v2 = vpack.c.bf16 %v2797_v58, %v2797_v58  ;;  %v1863_v3 = vpop.f32.mrf.mxu0 }
 0x1bf   : > { %v2503_v4 = vpop.f32.mrf.mxu1  ;;  %v4785_v7 = vpack.c.bf16 %v2668_v61, %v2668_v61  ;;  %v2671_v8 = vmax.f32 %v1869_v63, 0.0  ;;  %3950 = vst.msk [vmem:[%s6040_s26 + $0x1d4] sm:$0xf] %vm3832_vm1, %v4786_v1  ;;  %v1864_v10 = vadd.f32 %v6702_v46, %v1863_v3 }
 0x1c0   : > { %v4913_v5 = vpack.c.bf16 %v2796_v62, %v2796_v62  ;;  %v2799_v9 = vmax.f32 %v2509_v0, 0.0  ;;  %4078 = vst.msk [vmem:[%s6040_s26 + $0x3d4] sm:$0xf] %vm3832_vm1, %v4914_v2  ;;  %v2504_v11 = vadd.f32 %v6702_v46, %v2503_v4  ;;  %v5366_v12 = vpop.f32.mrf.mxu0 }
 0x1c1   : > { %v5558_v13 = vpop.f32.mrf.mxu1  ;;  %3949 = vst.msk [vmem:[%s6040_s26 + $0x1d0] sm:$0xf] %vm3832_vm1, %v4785_v7  ;;  %v4788_v14 = vpack.c.bf16 %v2671_v8, %v2671_v8  ;;  %v1879_v16 = vadd.f32 %v6702_v46, %v5366_v12  ;;  %v2670_v18 = vmax.f32 %v1864_v10, 0.0 }
 0x1c2   : > { %4077 = vst.msk [vmem:[%s6040_s26 + $0x3d0] sm:$0xf] %vm3832_vm1, %v4913_v5  ;;  %v4916_v15 = vpack.c.bf16 %v2799_v9, %v2799_v9  ;;  %v2519_v17 = vadd.f32 %v6702_v46, %v5558_v13  ;;  %v2798_v19 = vmax.f32 %v2504_v11, 0.0  ;;  %v1873_v20 = vpop.f32.mrf.mxu0 }
 0x1c3   : > { %v2513_v21 = vpop.f32.mrf.mxu1  ;;  %3952 = vst.msk [vmem:[%s6040_s26 + $0x1dc] sm:$0xf] %vm3832_vm1, %v4788_v14  ;;  %v2673_v22 = vmax.f32 %v1879_v16, 0.0  ;;  %v1874_v24 = vadd.f32 %v6702_v46, %v1873_v20  ;;  %v4787_v26 = vpack.c.bf16 %v2670_v18, %v2670_v18 }
 0x1c4   : > { %4080 = vst.msk [vmem:[%s6040_s26 + $0x3dc] sm:$0xf] %vm3832_vm1, %v4916_v15  ;;  %v2801_v23 = vmax.f32 %v2519_v17, 0.0  ;;  %v2514_v25 = vadd.f32 %v6702_v46, %v2513_v21  ;;  %v4915_v27 = vpack.c.bf16 %v2798_v19, %v2798_v19  ;;  %v5369_v28 = vpop.f32.mrf.mxu0 }
 0x1c5   : > { %v5561_v29 = vpop.f32.mrf.mxu1  ;;  %v4790_v30 = vpack.c.bf16 %v2673_v22, %v2673_v22  ;;  %v2672_v32 = vmax.f32 %v1874_v24, 0.0  ;;  %3951 = vst.msk [vmem:[%s6040_s26 + $0x1d8] sm:$0xf] %vm3832_vm1, %v4787_v26  ;;  %v1889_v34 = vadd.f32 %v6702_v46, %v5369_v28 }
 0x1c6   : > { %v4918_v31 = vpack.c.bf16 %v2801_v23, %v2801_v23  ;;  %v2800_v33 = vmax.f32 %v2514_v25, 0.0  ;;  %4079 = vst.msk [vmem:[%s6040_s26 + $0x3d8] sm:$0xf] %vm3832_vm1, %v4915_v27  ;;  %v2529_v35 = vadd.f32 %v6702_v46, %v5561_v29  ;;  %v1883_v36 = vpop.f32.mrf.mxu0 }
 0x1c7   : > { %v2523_v37 = vpop.f32.mrf.mxu1  ;;  %3954 = vst.msk [vmem:[%s6040_s26 + $0x1e4] sm:$0xf] %vm3832_vm1, %v4790_v30  ;;  %v4789_v38 = vpack.c.bf16 %v2672_v32, %v2672_v32  ;;  %v1884_v40 = vadd.f32 %v6702_v46, %v1883_v36  ;;  %v2675_v42 = vmax.f32 %v1889_v34, 0.0 }
 0x1c8   : > { %4082 = vst.msk [vmem:[%s6040_s26 + $0x3e4] sm:$0xf] %vm3832_vm1, %v4918_v31  ;;  %v4917_v39 = vpack.c.bf16 %v2800_v33, %v2800_v33  ;;  %v2524_v41 = vadd.f32 %v6702_v46, %v2523_v37  ;;  %v2803_v43 = vmax.f32 %v2529_v35, 0.0  ;;  %v5372_v44 = vpop.f32.mrf.mxu0 }
 0x1c9   : > { %v5564_v45 = vpop.f32.mrf.mxu1  ;;  %3953 = vst.msk [vmem:[%s6040_s26 + $0x1e0] sm:$0xf] %vm3832_vm1, %v4789_v38  ;;  %v2674_v6 = vmax.f32 %v1884_v40, 0.0  ;;  %v1899_v48 = vadd.f32 %v6702_v46, %v5372_v44  ;;  %v4792_v50 = vpack.c.bf16 %v2675_v42, %v2675_v42 }
 0x1ca   : > { %4081 = vst.msk [vmem:[%s6040_s26 + $0x3e0] sm:$0xf] %vm3832_vm1, %v4917_v39  ;;  %v2802_v47 = vmax.f32 %v2524_v41, 0.0  ;;  %v2539_v49 = vadd.f32 %v6702_v46, %v5564_v45  ;;  %v4920_v51 = vpack.c.bf16 %v2803_v43, %v2803_v43  ;;  %v1893_v52 = vpop.f32.mrf.mxu0 }
 0x1cb   : > { %v2533_v53 = vpop.f32.mrf.mxu1  ;;  %v4791_v54 = vpack.c.bf16 %v2674_v6, %v2674_v6  ;;  %v2677_v56 = vmax.f32 %v1899_v48, 0.0  ;;  %3956 = vst.msk [vmem:[%s6040_s26 + $0x1ec] sm:$0xf] %vm3832_vm1, %v4792_v50  ;;  %v1894_v58 = vadd.f32 %v6702_v46, %v1893_v52 }
 0x1cc   : > { %v4919_v55 = vpack.c.bf16 %v2802_v47, %v2802_v47  ;;  %v2805_v57 = vmax.f32 %v2539_v49, 0.0  ;;  %4084 = vst.msk [vmem:[%s6040_s26 + $0x3ec] sm:$0xf] %vm3832_vm1, %v4920_v51  ;;  %v2534_v59 = vadd.f32 %v6702_v46, %v2533_v53  ;;  %v5375_v60 = vpop.f32.mrf.mxu0 }
 0x1cd   : > { %v5567_v61 = vpop.f32.mrf.mxu1  ;;  %3955 = vst.msk [vmem:[%s6040_s26 + $0x1e8] sm:$0xf] %vm3832_vm1, %v4791_v54  ;;  %v4794_v62 = vpack.c.bf16 %v2677_v56, %v2677_v56  ;;  %v1909_v0 = vadd.f32 %v6702_v46, %v5375_v60  ;;  %v2676_v2 = vmax.f32 %v1894_v58, 0.0 }
 0x1ce   : > { %4083 = vst.msk [vmem:[%s6040_s26 + $0x3e8] sm:$0xf] %vm3832_vm1, %v4919_v55  ;;  %v4922_v63 = vpack.c.bf16 %v2805_v57, %v2805_v57  ;;  %v2549_v1 = vadd.f32 %v6702_v46, %v5567_v61  ;;  %v2804_v3 = vmax.f32 %v2534_v59, 0.0  ;;  %v1903_v4 = vpop.f32.mrf.mxu0 }
 0x1cf   : > { %v2543_v7 = vpop.f32.mrf.mxu1  ;;  %3958 = vst.msk [vmem:[%s6040_s26 + $0x1f4] sm:$0xf] %vm3832_vm1, %v4794_v62  ;;  %v2679_v5 = vmax.f32 %v1909_v0, 0.0  ;;  %v1904_v9 = vadd.f32 %v6702_v46, %v1903_v4  ;;  %v4793_v11 = vpack.c.bf16 %v2676_v2, %v2676_v2 }
 0x1d0   : > { %4086 = vst.msk [vmem:[%s6040_s26 + $0x3f4] sm:$0xf] %vm3832_vm1, %v4922_v63  ;;  %v2807_v8 = vmax.f32 %v2549_v1, 0.0  ;;  %v2544_v10 = vadd.f32 %v6702_v46, %v2543_v7  ;;  %v4921_v12 = vpack.c.bf16 %v2804_v3, %v2804_v3 }
 0x1d1   : > { %v4796_v13 = vpack.c.bf16 %v2679_v5, %v2679_v5  ;;  %v2678_v15 = vmax.f32 %v1904_v9, 0.0  ;;  %3957 = vst.msk [vmem:[%s6040_s26 + $0x1f0] sm:$0xf] %vm3832_vm1, %v4793_v11 }
 0x1d2   : > { %v4924_v14 = vpack.c.bf16 %v2807_v8, %v2807_v8  ;;  %v2806_v16 = vmax.f32 %v2544_v10, 0.0  ;;  %4085 = vst.msk [vmem:[%s6040_s26 + $0x3f0] sm:$0xf] %vm3832_vm1, %v4921_v12 }
 0x1d3   : > { %3960 = vst.msk [vmem:[%s6040_s26 + $0x1fc] sm:$0xf] %vm3832_vm1, %v4796_v13  ;;  %v4795_v17 = vpack.c.bf16 %v2678_v15, %v2678_v15 }
 0x1d4   : > { %4088 = vst.msk [vmem:[%s6040_s26 + $0x3fc] sm:$0xf] %vm3832_vm1, %v4924_v14  ;;  %v4923_v18 = vpack.c.bf16 %v2806_v16, %v2806_v16 }
 0x1d5   : > { %3959 = vst.msk [vmem:[%s6040_s26 + $0x1f8] sm:$0xf] %vm3832_vm1, %v4795_v17 }
 0x1d6   : > { %4087 = vst.msk [vmem:[%s6040_s26 + $0x3f8] sm:$0xf] %vm3832_vm1, %v4923_v18 }
 0x1d7 PF: > { %s13_s12 = sadd.s32 1, %s5586_s12  }
 0x1d8   : > { %p10_p4 = scmp.ge.s32.totalorder %s13_s12, 4  }
 0x1da   :  { %12 = sbr.rel (!%p10_p4) target bundleno = 1 (0x1), region = 62 }

// kernel: fire_forward.3
= control target key start
LH: loop header
LB: loop body
LE: loop exit
PB: predicated region body
PF: predicated region fallthrough
CT: control target
= control target key end

     0   :  { %8 = vsyncpa [#allocation3], 0  ;;  %s16073_s0 = inlined_call_operand.vmem [shape: bf16[2,10,256,144], index: 0, kind: input, shape index: {}]   ;;  %s16074_s1 = inlined_call_operand.vmem [shape: bf16[3,144,64], index: 1, kind: input, shape index: {}]   ;;  %s16075_s2 = inlined_call_operand.vmem [shape: f32[1,64], index: 2, kind: input, shape index: {}]   ;;  %s16076_s3 = inlined_call_operand.hbm [shape: f32[16,256,64], index: 3, kind: output, shape index: {}]  }
   0x1   :  { %10 = vsyncpa [#allocation3 + $0x1], 0  ;;  %s13018_s12 = smov 0   ;;  %s13020_s13 = smov 0  }
   0x2   :  { %s13022_s14 = smov 0   ;;  %s13024_s15 = smov 0  }
   0x3 LB: > { %s13039_s16 = sadd.s32 4294967295, %s12992_s15   ;;  %s10048_s17 = sadd.s32 4294967294, %s12992_s15   ;;  %s12992_s15 = sphi %s13024_s15, %s16502_s15   ;;  %s12988_s14 = sphi %s13022_s14, %s16501_s14   ;;  %s12984_s13 = sphi %s13020_s13, %s16500_s13   ;;  %s12980_s12 = sphi %s13018_s12, %s16499_s12  }
   0x4   : > { %s13043_s18 = sadd.s32 1, %s12992_s15   ;;  %s91_s19 = sadd.s32 1, %s12988_s14 }
   0x5   : > { %s88_s20 = ssub.s32 %s12992_s15, %s13043_s18  ;;  %p101_p0 = scmp.ne.s32.totalorder %s12988_s14, %s12984_s13 }
   0x6   : > { %p89_p1 = scmp.eq.s32.totalorder %s88_s20, 0  ;;  %p102_p2 = scmp.eq.s32.totalorder %s13039_s16, 1 }
   0x7   : > { %p107_p3 = scmp.ne.s32.totalorder %s12984_s13, %s12980_s12  ;;  %p108_p4 = scmp.eq.s32.totalorder %s10048_s17, 1 }
   0x8   : > { %s13054_s21 = scalar_select %p89_p1, %s12988_s14, %s91_s19  }
   0x9   : > { %p13056_p5 = por %p102_p2, %p101_p0  ;;  %p13060_p6 = por %p108_p4, %p107_p3 }
   0xa   : > { %p10051_p7 = scmp.ge.s32.totalorder %s12992_s15, 1  ;;  %p140_p8 = scmp.lt.s32.totalorder %s12992_s15, 3 }
   0xc   : > { %p141_p9 = pnand %p10051_p7, %p140_p8 }
   0xe   : > { %144 = sbr.rel (%p141_p9) target bundleno = 1803 (0x70b), region = 32 }
  0x13   : > { %v11851_v0 = vld [vmem:[%s16074_s1 + $0x80] sm:$0xff]   ;;  %v12994_v1 = vmov 0   ;;  %p164_p10 = scmp.lt.s32.totalorder %s13039_s16, 1  ;;  %v11852_v2 = vld [vmem:[%s16074_s1 + $0x78] sm:$0xff]   ;;  %v11853_v3 = vld [vmem:[%s16074_s1 + $0x70] sm:$0xff]   ;;  %vm1927_vm0 = vcmask 130048  }
  0x14   : > { %2312 = vmatprep.subr.bf16.mxu0 %v12994_v1  ;;  %11790 = vmatprep.subr.bf16.mxu1 %v12994_v1  ;;  %v11854_v4 = vld [vmem:[%s16074_s1 + $0x68] sm:$0xff]   ;;  %v11855_v7 = vld [vmem:[%s16074_s1 + $0x60] sm:$0xff]   ;;  %v11856_v8 = vld [vmem:[%s16074_s1 + $0x58] sm:$0xff]   ;;  %s161_s4 = sand.u32 1, %s12984_s13   ;;  %vm9714_vm1 = vcmask 523264   ;;  %s11789_s30 = sshll.u32 %s13039_s16, 15 }
  0x15   : > { %2313 = vmatpush1.bf16.msra.mxu0 %v11851_v0  ;;  %11799 = vmatpush1.bf16.msra.mxu1 %v11851_v0  ;;  %s165_s28 = scalar_select %p164_p10, %s13039_s16, 1  ;;  %v11857_v9 = vld [vmem:[%s16074_s1 + $0x50] sm:$0xff]   ;;  %v11858_v10 = vld [vmem:[%s16074_s1 + $0x48] sm:$0xff]   ;;  %v11866_v14 = vld [vmem:[%s16074_s1 + $0x38] sm:$0xff]  }
  0x16   : > { %2314 = vmatprep.subr.bf16.mxu0 %v12994_v1  ;;  %11791 = vmatprep.subr.bf16.mxu1 %v12994_v1  ;;  %v11859_v11 = vld [vmem:[%s16074_s1 + $0x88] sm:$0xff]   ;;  %v11910_v18 = vld [vmem:[%s16074_s1 + $0x30] sm:$0xff]   ;;  %v11911_v19 = vld [vmem:[%s16074_s1 + $0xc0] sm:$0xff]   ;;  %s10052_s8 = sshll.u32 %s161_s4, 11  ;;  %s16025_s10 = scalar_lea.hbm %s16076_s3, %s11789_s30 }
  0x17   : > { %s11808_s29 = smul.u32 2560, %s165_s28  ;;  %v11867_v15 = vld [vmem:[%s16074_s1 + $0xc8] sm:$0xff]   ;;  %v11955_v29 = vld [vmem:[%s16074_s1 + $0xb8] sm:$0xff]   ;;  %v11998_v42 = vld [vmem:[%s16074_s1 + $0x20] sm:$0xff]   ;;  %s14257_s9 = scalar_lea.vmem [#allocation2], %s10052_s8 }
  0x18   : > { %v11954_v28 = vld [vmem:[%s16074_s1 + $0x28] sm:$0xff]   ;;  %v11999_v43 = vld [vmem:[%s16074_s1 + $0xb0] sm:$0xff]   ;;  %s9986_s5 = sshll.u32 %s14257_s9, 4  ;;  %s16033_s16 = scalar_lea.sflag [#allocation3], %s161_s4  ;;  %s16027_s5 = int_to_ptr.vmem [resolvable:$true] %s9986_s5 }
  0x19   : > { %2315 = vmatpush1.bf16.msra.mxu0 %v11852_v2  ;;  %11800 = vmatpush1.bf16.msra.mxu1 %v11852_v2  ;;  %s13086_s7 = scalar_lea.vmem %s16073_s0, %s11808_s29  ;;  %s12932_s11 = scalar_lea.vmem %s16027_s5, 32768 }
  0x1a   : > { %2316 = vmatprep.subr.bf16.mxu0 %v12994_v1  ;;  %11792 = vmatprep.subr.bf16.mxu1 %v12994_v1  ;;  %v11862_v5 = vld [vmem:[%s13086_s7 + $0x104] ss:$8 sps:$4 sm:$0xff]   ;;  %v11860_v12 = vld [vmem:[%s13086_s7 + $0x100] ss:$8 sps:$4 sm:$0xff]   ;;  %v11868_v16 = vld [vmem:[%s13086_s7 + $0x114] ss:$8 sps:$4 sm:$0xff]   ;;  %p12933_p11 = scmp.ne.s32.totalorder %s16027_s5, %s12932_s11 }
  0x1b   : > { %v11865_v6 = vld [vmem:[%s13086_s7 + $0x504] ss:$8 sps:$4 sm:$0xff]   ;;  %10593 = vmatprep.mubr.msk.bf16.mxu0 %vm1927_vm0, %v11862_v5  ;;  %v11863_v13 = vld [vmem:[%s13086_s7 + $0x500] ss:$8 sps:$4 sm:$0xff]   ;;  %v11870_v17 = vld [vmem:[%s13086_s7 + $0x514] ss:$8 sps:$4 sm:$0xff]  }
  0x1c   : > { %10657 = vmatprep.mubr.msk.bf16.mxu1 %vm1927_vm0, %v11865_v6  ;;  %v11872_v20 = vld [vmem:[%s13086_s7 + $0x110] ss:$8 sps:$4 sm:$0xff]   ;;  %v11874_v22 = vld [vmem:[%s13086_s7 + $0x124] ss:$8 sps:$4 sm:$0xff]   ;;  %v11878_v24 = vld [vmem:[%s13086_s7 + $0x120] ss:$8 sps:$4 sm:$0xff]   ;;  %p12934_p12 = pnand %p12933_p11, %p13056_p5 }
  0x1d   : > { %2317 = vmatpush1.bf16.msra.mxu0 %v11853_v3  ;;  %11801 = vmatpush1.bf16.msra.mxu1 %v11853_v3  ;;  %v11873_v21 = vld [vmem:[%s13086_s7 + $0x510] ss:$8 sps:$4 sm:$0xff]   ;;  %v11876_v23 = vld [vmem:[%s13086_s7 + $0x524] ss:$8 sps:$4 sm:$0xff]   ;;  %v11879_v25 = vld [vmem:[%s13086_s7 + $0x520] ss:$8 sps:$4 sm:$0xff]  }
  0x1e   : > { %2318 = vmatprep.subr.bf16.mxu0 %v12994_v1  ;;  %11793 = vmatprep.subr.bf16.mxu1 %v12994_v1  ;;  %v11880_v26 = vld [vmem:[%s13086_s7 + $0x134] ss:$8 sps:$4 sm:$0xff]   ;;  %v11884_v30 = vld [vmem:[%s13086_s7 + $0x130] ss:$8 sps:$4 sm:$0xff]   ;;  %v11886_v32 = vld [vmem:[%s13086_s7 + $0x144] ss:$8 sps:$4 sm:$0xff]   ;;  %p12935_p13 = pneg %p12934_p12 }
  0x1f   : > { %v11882_v27 = vld [vmem:[%s13086_s7 + $0x534] ss:$8 sps:$4 sm:$0xff]   ;;  %v11885_v31 = vld [vmem:[%s13086_s7 + $0x530] ss:$8 sps:$4 sm:$0xff]   ;;  %v11888_v33 = vld [vmem:[%s13086_s7 + $0x544] ss:$8 sps:$4 sm:$0xff]  }
  0x20   : > { %v11890_v34 = vld [vmem:[%s13086_s7 + $0x140] ss:$8 sps:$4 sm:$0xff]   ;;  %v11892_v36 = vld [vmem:[%s13086_s7 + $0x154] ss:$8 sps:$4 sm:$0xff]   ;;  %v11896_v38 = vld [vmem:[%s13086_s7 + $0x150] ss:$8 sps:$4 sm:$0xff]  }
  0x21   : > { %2319 = vmatpush1.bf16.msra.mxu0 %v11854_v4  ;;  %11802 = vmatpush1.bf16.msra.mxu1 %v11854_v4  ;;  %v11891_v35 = vld [vmem:[%s13086_s7 + $0x540] ss:$8 sps:$4 sm:$0xff]   ;;  %v11894_v37 = vld [vmem:[%s13086_s7 + $0x554] ss:$8 sps:$4 sm:$0xff]   ;;  %v11897_v39 = vld [vmem:[%s13086_s7 + $0x550] ss:$8 sps:$4 sm:$0xff]  }
  0x22   : > { %2320 = vmatprep.subr.bf16.mxu0 %v12994_v1  ;;  %11794 = vmatprep.subr.bf16.mxu1 %v12994_v1  ;;  %v11898_v40 = vld [vmem:[%s13086_s7 + $0x164] ss:$8 sps:$4 sm:$0xff]   ;;  %v11902_v44 = vld [vmem:[%s13086_s7 + $0x160] ss:$8 sps:$4 sm:$0xff]   ;;  %v11904_v46 = vld [vmem:[%s13086_s7 + $0x174] ss:$8 sps:$4 sm:$0xff]  }
  0x23   : > { %v11900_v41 = vld [vmem:[%s13086_s7 + $0x564] ss:$8 sps:$4 sm:$0xff]   ;;  %v11903_v45 = vld [vmem:[%s13086_s7 + $0x560] ss:$8 sps:$4 sm:$0xff]   ;;  %v11906_v47 = vld [vmem:[%s13086_s7 + $0x574] ss:$8 sps:$4 sm:$0xff]  }
  0x24   : > { %v11908_v48 = vld [vmem:[%s13086_s7 + $0x170] ss:$8 sps:$4 sm:$0xff]   ;;  %v11912_v50 = vld [vmem:[%s13086_s7 + $0x184] ss:$8 sps:$4 sm:$0xff]   ;;  %v11916_v52 = vld [vmem:[%s13086_s7 + $0x180] ss:$8 sps:$4 sm:$0xff]  }
  0x25   : > { %2321 = vmatpush1.bf16.msra.mxu0 %v11855_v7  ;;  %11803 = vmatpush1.bf16.msra.mxu1 %v11855_v7  ;;  %v11909_v49 = vld [vmem:[%s13086_s7 + $0x570] ss:$8 sps:$4 sm:$0xff]   ;;  %v11914_v51 = vld [vmem:[%s13086_s7 + $0x584] ss:$8 sps:$4 sm:$0xff]   ;;  %v11917_v53 = vld [vmem:[%s13086_s7 + $0x580] ss:$8 sps:$4 sm:$0xff]  }
  0x26   : > { %2322 = vmatprep.subr.bf16.mxu0 %v12994_v1  ;;  %11795 = vmatprep.subr.bf16.mxu1 %v12994_v1  ;;  %v11918_v54 = vld [vmem:[%s13086_s7 + $0x194] ss:$8 sps:$4 sm:$0xff]   ;;  %v11922_v56 = vld [vmem:[%s13086_s7 + $0x190] ss:$8 sps:$4 sm:$0xff]   ;;  %v11924_v58 = vld [vmem:[%s13086_s7 + $0x1a4] ss:$8 sps:$4 sm:$0xff]  }
  0x27   : > { %v11920_v55 = vld [vmem:[%s13086_s7 + $0x594] ss:$8 sps:$4 sm:$0xff]   ;;  %v11923_v57 = vld [vmem:[%s13086_s7 + $0x590] ss:$8 sps:$4 sm:$0xff]   ;;  %v11926_v59 = vld [vmem:[%s13086_s7 + $0x5a4] ss:$8 sps:$4 sm:$0xff]  }
  0x28   : > { %v11928_v60 = vld [vmem:[%s13086_s7 + $0x1a0] ss:$8 sps:$4 sm:$0xff]   ;;  %v11930_v62 = vld [vmem:[%s13086_s7 + $0x1b4] ss:$8 sps:$4 sm:$0xff]   ;;  %v11934_v0 = vld [vmem:[%s13086_s7 + $0x1b0] ss:$8 sps:$4 sm:$0xff]  }
  0x29   : > { %2323 = vmatpush1.bf16.msra.mxu0 %v11856_v8  ;;  %11804 = vmatpush1.bf16.msra.mxu1 %v11856_v8  ;;  %v11929_v61 = vld [vmem:[%s13086_s7 + $0x5a0] ss:$8 sps:$4 sm:$0xff]   ;;  %v11932_v63 = vld [vmem:[%s13086_s7 + $0x5b4] ss:$8 sps:$4 sm:$0xff]   ;;  %v11935_v2 = vld [vmem:[%s13086_s7 + $0x5b0] ss:$8 sps:$4 sm:$0xff]  }
  0x2a   : > { %2324 = vmatprep.subr.bf16.mxu0 %v12994_v1  ;;  %11796 = vmatprep.subr.bf16.mxu1 %v12994_v1  ;;  %v11936_v3 = vld [vmem:[%s13086_s7 + $0x1c4] ss:$8 sps:$4 sm:$0xff]   ;;  %v11940_v5 = vld [vmem:[%s13086_s7 + $0x1c0] ss:$8 sps:$4 sm:$0xff]   ;;  %v11942_v7 = vld [vmem:[%s13086_s7 + $0x1d4] ss:$8 sps:$4 sm:$0xff]  }
  0x2b   : > { %v11938_v4 = vld [vmem:[%s13086_s7 + $0x5c4] ss:$8 sps:$4 sm:$0xff]   ;;  %v11941_v6 = vld [vmem:[%s13086_s7 + $0x5c0] ss:$8 sps:$4 sm:$0xff]   ;;  %v11944_v8 = vld [vmem:[%s13086_s7 + $0x5d4] ss:$8 sps:$4 sm:$0xff]  }
  0x2c   : > { %s12995_s17 = smov [#allocation2]  }
  0x2d   : > { %2325 = vmatpush1.bf16.msra.mxu0 %v11857_v9  ;;  %11805 = vmatpush1.bf16.msra.mxu1 %v11857_v9  ;;  %v11946_v9 = vld [vmem:[%s13086_s7 + $0x1d0] ss:$8 sps:$4 sm:$0xff]   ;;  %s12936_s19 = sshll.u32 %s12995_s17, 4  ;;  %s12937_s19 = int_to_ptr.vmem [resolvable:$false] %s12936_s19 }
  0x2e   : > { %2326 = vmatprep.subr.bf16.mxu0 %v12994_v1  ;;  %11797 = vmatprep.subr.bf16.mxu1 %v12994_v1  ;;  %s12938_s20 = scalar_lea.vmem %s12937_s19, 65536  ;;  %p12939_p0 = scmp.lt.s32.totalorder %s16027_s5, %s12937_s19 }
  0x2f   : > { %p12940_p1 = scmp.lt.s32.totalorder %s12938_s20, %s12932_s11 }
  0x31   : > { %2327 = vmatpush1.bf16.msra.mxu0 %v11858_v10  ;;  %11806 = vmatpush1.bf16.msra.mxu1 %v11858_v10  ;;  %v11947_v10 = vld [vmem:[%s13086_s7 + $0x5d0] ss:$8 sps:$4 sm:$0xff]   ;;  %p12941_p2 = por %p12940_p1, %p12939_p0 }
  0x32   : > { %2342 = vmatprep.subr.bf16.mxu0 %v12994_v1  ;;  %11798 = vmatprep.subr.bf16.mxu1 %v12994_v1 }
  0x33   : > { %p12942_p3 = pnand %p12941_p2, %p12935_p13 }
  0x35   : > { %2343 = vmatpush2.bf16.msra.mxu0 %v11859_v11  ;;  %11807 = vmatpush2.bf16.msra.mxu1 %v11859_v11  ;;  %v12042_v11 = vld [vmem:[%s16074_s1 + $0x18] sm:$0xff]  }
  0x36   : > { %4959 = vmatprep.subr.bf16.mxu1 %v12994_v1  ;;  %7882 = vmatprep.subr.bf16.mxu0 %v12994_v1 }
  0x38   : > { %2345 = vmatmul.mubr.bf16.vlgmr.msra.gmra.mxu0 %v11860_v12  ;;  %2857 = vmatmul.mubr.bf16.vlgmr.msra.gmra.mxu1 %v11863_v13  ;;  %v11948_v12 = vld [vmem:[%s13086_s7 + $0x1e4] ss:$8 sps:$4 sm:$0xff]  }
  0x39   : > { %4960 = vmatpush1.bf16.msra.mxu1 %v11866_v14  ;;  %7883 = vmatpush1.bf16.msra.mxu0 %v11867_v15  ;;  %v11950_v13 = vld [vmem:[%s13086_s7 + $0x5e4] ss:$8 sps:$4 sm:$0xff]   ;;  %v11952_v15 = vld [vmem:[%s13086_s7 + $0x1e0] ss:$8 sps:$4 sm:$0xff]  }
  0x3a   : > { %10594 = vmatprep.mubr.msk.bf16.mxu0 %vm1927_vm0, %v11868_v16  ;;  %10658 = vmatprep.mubr.msk.bf16.mxu1 %vm1927_vm0, %v11870_v17  ;;  %v12047_v14 = vld [vmem:[%s16074_s1 + $0xa8] sm:$0xff]   ;;  %v11956_v17 = vld [vmem:[%s13086_s7 + $0x1f4] ss:$8 sps:$4 sm:$0xff]  }
  0x3b   : > { %4961 = vmatprep.subr.bf16.mxu1 %v12994_v1  ;;  %7884 = vmatprep.subr.bf16.mxu0 %v12994_v1  ;;  %v11953_v16 = vld [vmem:[%s13086_s7 + $0x5e0] ss:$8 sps:$4 sm:$0xff]  }
  0x3d   : > { %4962 = vmatpush1.bf16.msra.mxu1 %v11910_v18  ;;  %7885 = vmatpush1.bf16.msra.mxu0 %v11911_v19  ;;  %v11958_v18 = vld [vmem:[%s13086_s7 + $0x5f4] ss:$8 sps:$4 sm:$0xff]   ;;  %v11960_v19 = vld [vmem:[%s13086_s7 + $0x1f0] ss:$8 sps:$4 sm:$0xff]  }
  0x3e   : > { %4963 = vmatprep.subr.bf16.mxu1 %v12994_v1  ;;  %7886 = vmatprep.subr.bf16.mxu0 %v12994_v1 }
  0x40   : > { %2353 = vmatmul.mubr.bf16.gmra.mxu0 %v11872_v20  ;;  %2865 = vmatmul.mubr.bf16.gmra.mxu1 %v11873_v21  ;;  %v11961_v20 = vld [vmem:[%s13086_s7 + $0x5f0] ss:$8 sps:$4 sm:$0xff]   ;;  %v11962_v21 = vld [vmem:[%s13086_s7 + $0x204] ss:$8 sps:$4 sm:$0xff]  }
  0x41   : > { %10595 = vmatprep.mubr.msk.bf16.mxu0 %vm1927_vm0, %v11874_v22  ;;  %10659 = vmatprep.mubr.msk.bf16.mxu1 %vm1927_vm0, %v11876_v23  ;;  %v11964_v22 = vld [vmem:[%s13086_s7 + $0x604] ss:$8 sps:$4 sm:$0xff]   ;;  %v11966_v23 = vld [vmem:[%s13086_s7 + $0x200] ss:$8 sps:$4 sm:$0xff]  }
  0x42   : > { %4964 = vmatpush1.bf16.msra.mxu1 %v11954_v28  ;;  %7887 = vmatpush1.bf16.msra.mxu0 %v11955_v29  ;;  %v11973_v28 = vld [vmem:[%s13086_s7 + $0x610] ss:$8 sps:$4 sm:$0xff]   ;;  %v11974_v29 = vld [vmem:[%s13086_s7 + $0x224] ss:$8 sps:$4 sm:$0xff]  }
  0x43   : > { %4965 = vmatprep.subr.bf16.mxu1 %v12994_v1  ;;  %7888 = vmatprep.subr.bf16.mxu0 %v12994_v1 }
  0x46   : > { %4966 = vmatpush1.bf16.msra.mxu1 %v11998_v42  ;;  %7889 = vmatpush1.bf16.msra.mxu0 %v11999_v43  ;;  %v11994_v42 = vld [vmem:[%s13086_s7 + $0x654] ss:$8 sps:$4 sm:$0xff]  }
  0x47   : > { %4967 = vmatprep.subr.bf16.mxu1 %v12994_v1  ;;  %7890 = vmatprep.subr.bf16.mxu0 %v12994_v1  ;;  %v12086_v43 = vld [vmem:[%s16074_s1 + $0x10] sm:$0xff]  }
  0x48   : > { %2361 = vmatmul.mubr.bf16.gmra.mxu0 %v11878_v24  ;;  %2873 = vmatmul.mubr.bf16.gmra.mxu1 %v11879_v25  ;;  %v11967_v24 = vld [vmem:[%s13086_s7 + $0x600] ss:$8 sps:$4 sm:$0xff]   ;;  %v11968_v25 = vld [vmem:[%s13086_s7 + $0x214] ss:$8 sps:$4 sm:$0xff]  }
  0x49   : > { %10596 = vmatprep.mubr.msk.bf16.mxu0 %vm1927_vm0, %v11880_v26  ;;  %10660 = vmatprep.mubr.msk.bf16.mxu1 %vm1927_vm0, %v11882_v27  ;;  %v11970_v26 = vld [vmem:[%s13086_s7 + $0x614] ss:$8 sps:$4 sm:$0xff]   ;;  %v11972_v27 = vld [vmem:[%s13086_s7 + $0x210] ss:$8 sps:$4 sm:$0xff]  }
  0x4a   : > { %4968 = vmatpush1.bf16.msra.mxu1 %v12042_v11  ;;  %7891 = vmatpush1.bf16.msra.mxu0 %v12047_v14  ;;  %v12028_v14 = vld [vmem:[%s13086_s7 + $0x2a0] ss:$8 sps:$4 sm:$0xff]  }
  0x4b   : > { %4969 = vmatprep.subr.bf16.mxu1 %v12994_v1  ;;  %7892 = vmatprep.subr.bf16.mxu0 %v12994_v1 }
  0x4e   : > { %4970 = vmatpush1.bf16.msra.mxu1 %v12086_v43 }
  0x4f   : > { %4971 = vmatprep.subr.bf16.mxu1 %v12994_v1 }
  0x50   : > { %2369 = vmatmul.mubr.bf16.gmra.mxu0 %v11884_v30  ;;  %2881 = vmatmul.mubr.bf16.gmra.mxu1 %v11885_v31  ;;  %v11976_v30 = vld [vmem:[%s13086_s7 + $0x624] ss:$8 sps:$4 sm:$0xff]   ;;  %v11978_v31 = vld [vmem:[%s13086_s7 + $0x220] ss:$8 sps:$4 sm:$0xff]  }
  0x51   : > { %10597 = vmatprep.mubr.msk.bf16.mxu0 %vm1927_vm0, %v11886_v32  ;;  %10661 = vmatprep.mubr.msk.bf16.mxu1 %vm1927_vm0, %v11888_v33  ;;  %v11979_v32 = vld [vmem:[%s13086_s7 + $0x620] ss:$8 sps:$4 sm:$0xff]   ;;  %v11980_v33 = vld [vmem:[%s13086_s7 + $0x234] ss:$8 sps:$4 sm:$0xff]  }
  0x58   : > { %2377 = vmatmul.mubr.bf16.gmra.mxu0 %v11890_v34  ;;  %2889 = vmatmul.mubr.bf16.gmra.mxu1 %v11891_v35  ;;  %v11982_v34 = vld [vmem:[%s13086_s7 + $0x634] ss:$8 sps:$4 sm:$0xff]   ;;  %v11984_v35 = vld [vmem:[%s13086_s7 + $0x230] ss:$8 sps:$4 sm:$0xff]  }
  0x59   : > { %10598 = vmatprep.mubr.msk.bf16.mxu0 %vm1927_vm0, %v11892_v36  ;;  %10662 = vmatprep.mubr.msk.bf16.mxu1 %vm1927_vm0, %v11894_v37  ;;  %v11985_v36 = vld [vmem:[%s13086_s7 + $0x630] ss:$8 sps:$4 sm:$0xff]   ;;  %v11986_v37 = vld [vmem:[%s13086_s7 + $0x244] ss:$8 sps:$4 sm:$0xff]  }
  0x60   : > { %2385 = vmatmul.mubr.bf16.gmra.mxu0 %v11896_v38  ;;  %2897 = vmatmul.mubr.bf16.gmra.mxu1 %v11897_v39  ;;  %v11988_v38 = vld [vmem:[%s13086_s7 + $0x644] ss:$8 sps:$4 sm:$0xff]   ;;  %v11990_v39 = vld [vmem:[%s13086_s7 + $0x240] ss:$8 sps:$4 sm:$0xff]  }
  0x61   : > { %10599 = vmatprep.mubr.msk.bf16.mxu0 %vm1927_vm0, %v11898_v40  ;;  %10663 = vmatprep.mubr.msk.bf16.mxu1 %vm1927_vm0, %v11900_v41  ;;  %v11991_v40 = vld [vmem:[%s13086_s7 + $0x640] ss:$8 sps:$4 sm:$0xff]   ;;  %v11992_v41 = vld [vmem:[%s13086_s7 + $0x254] ss:$8 sps:$4 sm:$0xff]  }
  0x68   : > { %2393 = vmatmul.mubr.bf16.gmra.mxu0 %v11902_v44  ;;  %2905 = vmatmul.mubr.bf16.gmra.mxu1 %v11903_v45  ;;  %v12093_v44 = vld [vmem:[%s16074_s1 + $0xa0] sm:$0xff]   ;;  %v11996_v45 = vld [vmem:[%s13086_s7 + $0x250] ss:$8 sps:$4 sm:$0xff]  }
  0x69   : > { %10600 = vmatprep.mubr.msk.bf16.mxu0 %vm1927_vm0, %v11904_v46  ;;  %10664 = vmatprep.mubr.msk.bf16.mxu1 %vm1927_vm0, %v11906_v47  ;;  %v11997_v46 = vld [vmem:[%s13086_s7 + $0x650] ss:$8 sps:$4 sm:$0xff]   ;;  %v12000_v47 = vld [vmem:[%s13086_s7 + $0x264] ss:$8 sps:$4 sm:$0xff]  }
  0x6a   : > { %7893 = vmatpush1.bf16.msra.mxu0 %v12093_v44  ;;  %v12043_v44 = vld [vmem:[%s13086_s7 + $0x2d4] ss:$8 sps:$4 sm:$0xff]  }
  0x6b   : > { %7894 = vmatprep.subr.bf16.mxu0 %v12994_v1 }
  0x70   : > { %2401 = vmatmul.mubr.bf16.gmra.mxu0 %v11908_v48  ;;  %2913 = vmatmul.mubr.bf16.gmra.mxu1 %v11909_v49  ;;  %v12002_v48 = vld [vmem:[%s13086_s7 + $0x664] ss:$8 sps:$4 sm:$0xff]   ;;  %v12004_v49 = vld [vmem:[%s13086_s7 + $0x260] ss:$8 sps:$4 sm:$0xff]  }
  0x71   : > { %10601 = vmatprep.mubr.msk.bf16.mxu0 %vm1927_vm0, %v11912_v50  ;;  %10665 = vmatprep.mubr.msk.bf16.mxu1 %vm1927_vm0, %v11914_v51  ;;  %v12005_v50 = vld [vmem:[%s13086_s7 + $0x660] ss:$8 sps:$4 sm:$0xff]   ;;  %v12006_v51 = vld [vmem:[%s13086_s7 + $0x274] ss:$8 sps:$4 sm:$0xff]  }
  0x78   : > { %2409 = vmatmul.mubr.bf16.gmra.mxu0 %v11916_v52  ;;  %2921 = vmatmul.mubr.bf16.gmra.mxu1 %v11917_v53  ;;  %v12008_v52 = vld [vmem:[%s13086_s7 + $0x674] ss:$8 sps:$4 sm:$0xff]   ;;  %v12010_v53 = vld [vmem:[%s13086_s7 + $0x270] ss:$8 sps:$4 sm:$0xff]  }
  0x79   : > { %10602 = vmatprep.mubr.msk.bf16.mxu0 %vm1927_vm0, %v11918_v54  ;;  %10666 = vmatprep.mubr.msk.bf16.mxu1 %vm1927_vm0, %v11920_v55  ;;  %v12011_v54 = vld [vmem:[%s13086_s7 + $0x670] ss:$8 sps:$4 sm:$0xff]   ;;  %v12012_v55 = vld [vmem:[%s13086_s7 + $0x284] ss:$8 sps:$4 sm:$0xff]  }
  0x80   : > { %2417 = vmatmul.mubr.bf16.gmra.mxu0 %v11922_v56  ;;  %2929 = vmatmul.mubr.bf16.gmra.mxu1 %v11923_v57  ;;  %v12014_v56 = vld [vmem:[%s13086_s7 + $0x684] ss:$8 sps:$4 sm:$0xff]   ;;  %v12016_v57 = vld [vmem:[%s13086_s7 + $0x280] ss:$8 sps:$4 sm:$0xff]  }
  0x81   : > { %10603 = vmatprep.mubr.msk.bf16.mxu0 %vm1927_vm0, %v11924_v58  ;;  %10667 = vmatprep.mubr.msk.bf16.mxu1 %vm1927_vm0, %v11926_v59  ;;  %v12017_v58 = vld [vmem:[%s13086_s7 + $0x680] ss:$8 sps:$4 sm:$0xff]   ;;  %v12018_v59 = vld [vmem:[%s13086_s7 + $0x294] ss:$8 sps:$4 sm:$0xff]  }
  0x88   : > { %2425 = vmatmul.mubr.bf16.gmra.mxu0 %v11928_v60  ;;  %2937 = vmatmul.mubr.bf16.gmra.mxu1 %v11929_v61  ;;  %v12020_v60 = vld [vmem:[%s13086_s7 + $0x694] ss:$8 sps:$4 sm:$0xff]  }
  0x89   : > { %10604 = vmatprep.mubr.msk.bf16.mxu0 %vm1927_vm0, %v11930_v62  ;;  %10668 = vmatprep.mubr.msk.bf16.mxu1 %vm1927_vm0, %v11932_v63 }
  0x90   : > { %2433 = vmatmul.mubr.bf16.gmra.mxu0 %v11934_v0  ;;  %2945 = vmatmul.mubr.bf16.gmra.mxu1 %v11935_v2  ;;  %v12022_v2 = vld [vmem:[%s13086_s7 + $0x290] ss:$8 sps:$4 sm:$0xff]  }
  0x91   : > { %10605 = vmatprep.mubr.msk.bf16.mxu0 %vm1927_vm0, %v11936_v3  ;;  %10669 = vmatprep.mubr.msk.bf16.mxu1 %vm1927_vm0, %v11938_v4  ;;  %v12023_v3 = vld [vmem:[%s13086_s7 + $0x690] ss:$8 sps:$4 sm:$0xff]  }
  0x98   : > { %2441 = vmatmul.mubr.bf16.gmra.mxu0 %v11940_v5  ;;  %2953 = vmatmul.mubr.bf16.gmra.mxu1 %v11941_v6  ;;  %v12024_v6 = vld [vmem:[%s13086_s7 + $0x2a4] ss:$8 sps:$4 sm:$0xff]  }
  0x99   : > { %10606 = vmatprep.mubr.msk.bf16.mxu0 %vm1927_vm0, %v11942_v7  ;;  %10670 = vmatprep.mubr.msk.bf16.mxu1 %vm1927_vm0, %v11944_v8  ;;  %v12026_v7 = vld [vmem:[%s13086_s7 + $0x6a4] ss:$8 sps:$4 sm:$0xff]  }
  0xa0   : > { %2449 = vmatmul.mubr.bf16.gmra.mxu0 %v11946_v9  ;;  %2961 = vmatmul.mubr.bf16.gmra.mxu1 %v11947_v10 }
  0xa1   : > { %10607 = vmatprep.mubr.msk.bf16.mxu0 %vm1927_vm0, %v11948_v12  ;;  %10671 = vmatprep.mubr.msk.bf16.mxu1 %vm1927_vm0, %v11950_v13 }
  0xa8   : > { %2457 = vmatmul.mubr.bf16.gmra.mxu0 %v11952_v15  ;;  %2969 = vmatmul.mubr.bf16.gmra.mxu1 %v11953_v16  ;;  %v12029_v15 = vld [vmem:[%s13086_s7 + $0x6a0] ss:$8 sps:$4 sm:$0xff]  }
  0xa9   : > { %10608 = vmatprep.mubr.msk.bf16.mxu0 %vm1927_vm0, %v11956_v17  ;;  %10672 = vmatprep.mubr.msk.bf16.mxu1 %vm1927_vm0, %v11958_v18  ;;  %v12030_v18 = vld [vmem:[%s13086_s7 + $0x2b4] ss:$8 sps:$4 sm:$0xff]  }
  0xb0   : > { %2465 = vmatmul.mubr.bf16.gmra.mxu0 %v11960_v19  ;;  %2977 = vmatmul.mubr.bf16.gmra.mxu1 %v11961_v20  ;;  %v12032_v19 = vld [vmem:[%s13086_s7 + $0x6b4] ss:$8 sps:$4 sm:$0xff]  }
  0xb1   : > { %10609 = vmatprep.mubr.msk.bf16.mxu0 %vm1927_vm0, %v11962_v21  ;;  %10673 = vmatprep.mubr.msk.bf16.mxu1 %vm1927_vm0, %v11964_v22 }
  0xb8   : > { %2473 = vmatmul.mubr.bf16.gmra.mxu0 %v11966_v23  ;;  %2985 = vmatmul.mubr.bf16.gmra.mxu1 %v11967_v24 }
  0xb9   : > { %10610 = vmatprep.mubr.msk.bf16.mxu0 %vm1927_vm0, %v11968_v25  ;;  %10674 = vmatprep.mubr.msk.bf16.mxu1 %vm1927_vm0, %v11970_v26  ;;  %v12034_v26 = vld [vmem:[%s13086_s7 + $0x2b0] ss:$8 sps:$4 sm:$0xff]  }
  0xc0   : > { %2481 = vmatmul.mubr.bf16.gmra.mxu0 %v11972_v27  ;;  %2993 = vmatmul.mubr.bf16.gmra.mxu1 %v11973_v28  ;;  %v12035_v27 = vld [vmem:[%s13086_s7 + $0x6b0] ss:$8 sps:$4 sm:$0xff]  }
  0xc1   : > { %10611 = vmatprep.mubr.msk.bf16.mxu0 %vm1927_vm0, %v11974_v29  ;;  %10675 = vmatprep.mubr.msk.bf16.mxu1 %vm1927_vm0, %v11976_v30  ;;  %v12036_v30 = vld [vmem:[%s13086_s7 + $0x2c4] ss:$8 sps:$4 sm:$0xff]  }
  0xc8   : > { %2489 = vmatmul.mubr.bf16.gmra.mxu0 %v11978_v31  ;;  %3001 = vmatmul.mubr.bf16.gmra.mxu1 %v11979_v32  ;;  %v12038_v31 = vld [vmem:[%s13086_s7 + $0x6c4] ss:$8 sps:$4 sm:$0xff]  }
  0xc9   : > { %10612 = vmatprep.mubr.msk.bf16.mxu0 %vm1927_vm0, %v11980_v33  ;;  %10676 = vmatprep.mubr.msk.bf16.mxu1 %vm1927_vm0, %v11982_v34  ;;  %v12134_v34 = vld [vmem:[%s16074_s1 + $0x8] sm:$0xff]  }
  0xca   : > { %4972 = vmatpush1.bf16.msra.mxu1 %v12134_v34 }
  0xcb   : > { %4973 = vmatprep.subr.bf16.mxu1 %v12994_v1 }
  0xd0   : > { %2497 = vmatmul.mubr.bf16.gmra.mxu0 %v11984_v35  ;;  %3009 = vmatmul.mubr.bf16.gmra.mxu1 %v11985_v36 }
  0xd1   : > { %10613 = vmatprep.mubr.msk.bf16.mxu0 %vm1927_vm0, %v11986_v37  ;;  %10677 = vmatprep.mubr.msk.bf16.mxu1 %vm1927_vm0, %v11988_v38  ;;  %v12137_v37 = vld [vmem:[%s16074_s1 + $0x98] sm:$0xff]  }
  0xd2   : > { %7895 = vmatpush1.bf16.msra.mxu0 %v12137_v37 }
  0xd3   : > { %7896 = vmatprep.subr.bf16.mxu0 %v12994_v1 }
  0xd8   : > { %2505 = vmatmul.mubr.bf16.gmra.mxu0 %v11990_v39  ;;  %3017 = vmatmul.mubr.bf16.gmra.mxu1 %v11991_v40  ;;  %v12040_v40 = vld [vmem:[%s13086_s7 + $0x2c0] ss:$8 sps:$4 sm:$0xff]  }
  0xd9   : > { %10614 = vmatprep.mubr.msk.bf16.mxu0 %vm1927_vm0, %v11992_v41  ;;  %10678 = vmatprep.mubr.msk.bf16.mxu1 %vm1927_vm0, %v11994_v42  ;;  %v12041_v41 = vld [vmem:[%s13086_s7 + $0x6c0] ss:$8 sps:$4 sm:$0xff]  }
  0xe0   : > { %2513 = vmatmul.mubr.bf16.gmra.mxu0 %v11996_v45  ;;  %3025 = vmatmul.mubr.bf16.gmra.mxu1 %v11997_v46  ;;  %v12045_v45 = vld [vmem:[%s13086_s7 + $0x6d4] ss:$8 sps:$4 sm:$0xff]  }
  0xe1   : > { %10615 = vmatprep.mubr.msk.bf16.mxu0 %vm1927_vm0, %v12000_v47  ;;  %10679 = vmatprep.mubr.msk.bf16.mxu1 %vm1927_vm0, %v12002_v48 }
  0xe8   : > { %2521 = vmatmul.mubr.bf16.gmra.mxu0 %v12004_v49  ;;  %3033 = vmatmul.mubr.bf16.gmra.mxu1 %v12005_v50 }
  0xe9   : > { %10616 = vmatprep.mubr.msk.bf16.mxu0 %vm1927_vm0, %v12006_v51  ;;  %10680 = vmatprep.mubr.msk.bf16.mxu1 %vm1927_vm0, %v12008_v52  ;;  %v12048_v52 = vld [vmem:[%s13086_s7 + $0x2d0] ss:$8 sps:$4 sm:$0xff]  }
  0xf0   : > { %2529 = vmatmul.mubr.bf16.gmra.mxu0 %v12010_v53  ;;  %3041 = vmatmul.mubr.bf16.gmra.mxu1 %v12011_v54  ;;  %v12049_v53 = vld [vmem:[%s13086_s7 + $0x6d0] ss:$8 sps:$4 sm:$0xff]  }
  0xf1   : > { %10617 = vmatprep.mubr.msk.bf16.mxu0 %vm1927_vm0, %v12012_v55  ;;  %10681 = vmatprep.mubr.msk.bf16.mxu1 %vm1927_vm0, %v12014_v56  ;;  %v12050_v56 = vld [vmem:[%s13086_s7 + $0x2e4] ss:$8 sps:$4 sm:$0xff]  }
  0xf8   : > { %v13320_v61 = vpop.f32.mrf.mxu0  ;;  %2537 = vmatmul.mubr.bf16.gmra.mxu0 %v12016_v57  ;;  %v13322_v62 = vpop.f32.mrf.mxu1  ;;  %3049 = vmatmul.mubr.bf16.gmra.mxu1 %v12017_v58  ;;  %v12052_v57 = vld [vmem:[%s13086_s7 + $0x6e4] ss:$8 sps:$4 sm:$0xff]  }
  0xf9   : > { %16079 = vst [vmem:[#allocation5_spill] sm:$0xff] %v13322_v62  ;;  %10618 = vmatprep.mubr.msk.bf16.mxu0 %vm1927_vm0, %v12018_v59  ;;  %10682 = vmatprep.mubr.msk.bf16.mxu1 %vm1927_vm0, %v12020_v60 }
  0xfa   : > { %v2348_v63 = vpop.f32.mrf.mxu0  ;;  %v2860_v0 = vpop.f32.mrf.mxu1 }
  0xfc   : > { %v13328_v4 = vpop.f32.mrf.mxu0  ;;  %v13330_v5 = vpop.f32.mrf.mxu1 }
  0xfd   : > { %16080 = vst [vmem:[#allocation6_spill] sm:$0xff] %v13330_v5  ;;  %v12178_v5 = vld [vmem:[%s13086_s7 + $0x420] ss:$8 sps:$4 sm:$0xff]  }
  0xfe   : > { %v2351_v8 = vpop.f32.mrf.mxu0  ;;  %v2863_v9 = vpop.f32.mrf.mxu1 }
  0xff   : > { %v12055_v8 = vld [vmem:[%s13086_s7 + $0x6e0] ss:$8 sps:$4 sm:$0xff]   ;;  %v12056_v9 = vld [vmem:[%s13086_s7 + $0x2f4] ss:$8 sps:$4 sm:$0xff]  }
 0x100   : > { %v13334_v10 = vpop.f32.mrf.mxu0  ;;  %2545 = vmatmul.mubr.bf16.gmra.mxu0 %v12022_v2  ;;  %v13336_v11 = vpop.f32.mrf.mxu1  ;;  %3057 = vmatmul.mubr.bf16.gmra.mxu1 %v12023_v3  ;;  %v12054_v3 = vld [vmem:[%s13086_s7 + $0x2e0] ss:$8 sps:$4 sm:$0xff]  }
 0x101   : > { %16081 = vst [vmem:[#allocation7_spill] sm:$0xff] %v13336_v11  ;;  %10619 = vmatprep.mubr.msk.bf16.mxu0 %vm1927_vm0, %v12024_v6  ;;  %10683 = vmatprep.mubr.msk.bf16.mxu1 %vm1927_vm0, %v12026_v7 }
 0x102   : > { %v2356_v12 = vpop.f32.mrf.mxu0  ;;  %v2868_v13 = vpop.f32.mrf.mxu1 }
 0x103   : > { %v12058_v12 = vld [vmem:[%s13086_s7 + $0x6f4] ss:$8 sps:$4 sm:$0xff]  }
 0x104   : > { %v13342_v16 = vpop.f32.mrf.mxu0  ;;  %v13344_v17 = vpop.f32.mrf.mxu1 }
 0x105   : > { %16082 = vst [vmem:[#allocation8_spill] sm:$0xff] %v13344_v17  ;;  %v12172_v17 = vld [vmem:[%s13086_s7 + $0x410] ss:$8 sps:$4 sm:$0xff]  }
 0x106   : > { %v2359_v20 = vpop.f32.mrf.mxu0  ;;  %v2871_v21 = vpop.f32.mrf.mxu1 }
 0x108   : > { %v13348_v22 = vpop.f32.mrf.mxu0  ;;  %2553 = vmatmul.mubr.bf16.gmra.mxu0 %v12028_v14  ;;  %v13350_v23 = vpop.f32.mrf.mxu1  ;;  %3065 = vmatmul.mubr.bf16.gmra.mxu1 %v12029_v15 }
 0x109   : > { %16083 = vst [vmem:[#allocation9_spill] sm:$0xff] %v13350_v23  ;;  %10620 = vmatprep.mubr.msk.bf16.mxu0 %vm1927_vm0, %v12030_v18  ;;  %10684 = vmatprep.mubr.msk.bf16.mxu1 %vm1927_vm0, %v12032_v19 }
 0x10a   : > { %v2364_v24 = vpop.f32.mrf.mxu0  ;;  %v2876_v25 = vpop.f32.mrf.mxu1 }
 0x10b   : > { %v12060_v25 = vld [vmem:[%s13086_s7 + $0x2f0] ss:$8 sps:$4 sm:$0xff]  }
 0x10c   : > { %v13356_v28 = vpop.f32.mrf.mxu0  ;;  %v13358_v29 = vpop.f32.mrf.mxu1 }
 0x10d   : > { %16084 = vst [vmem:[#allocation10_spill] sm:$0xff] %v13358_v29  ;;  %v12166_v29 = vld [vmem:[%s13086_s7 + $0x400] ss:$8 sps:$4 sm:$0xff]  }
 0x10e   : > { %v2367_v32 = vpop.f32.mrf.mxu0  ;;  %v2879_v33 = vpop.f32.mrf.mxu1 }
 0x110   : > { %v13365_v35 = vpop.f32.mrf.mxu0  ;;  %2561 = vmatmul.mubr.bf16.gmra.mxu0 %v12034_v26  ;;  %v13367_v36 = vpop.f32.mrf.mxu1  ;;  %3073 = vmatmul.mubr.bf16.gmra.mxu1 %v12035_v27  ;;  %v12061_v26 = vld [vmem:[%s13086_s7 + $0x6f0] ss:$8 sps:$4 sm:$0xff]   ;;  %v12062_v27 = vld [vmem:[%s13086_s7 + $0x304] ss:$8 sps:$4 sm:$0xff]  }
 0x111   : > { %16085 = vst [vmem:[#allocation11_spill] sm:$0xff] %v13367_v36  ;;  %10621 = vmatprep.mubr.msk.bf16.mxu0 %vm1927_vm0, %v12036_v30  ;;  %10685 = vmatprep.mubr.msk.bf16.mxu1 %vm1927_vm0, %v12038_v31  ;;  %v12064_v30 = vld [vmem:[%s13086_s7 + $0x704] ss:$8 sps:$4 sm:$0xff]  }
 0x112   : > { %v2372_v38 = vpop.f32.mrf.mxu0  ;;  %v2884_v39 = vpop.f32.mrf.mxu1 }
 0x114   : > { %v13378_v42 = vpop.f32.mrf.mxu0  ;;  %v13380_v43 = vpop.f32.mrf.mxu1 }
 0x115   : > { %16086 = vst [vmem:[#allocation12_spill] sm:$0xff] %v13380_v43  ;;  %v12160_v43 = vld [vmem:[%s13086_s7 + $0x3f0] ss:$8 sps:$4 sm:$0xff]  }
 0x116   : > { %v2375_v46 = vpop.f32.mrf.mxu0  ;;  %v2887_v47 = vpop.f32.mrf.mxu1 }
 0x117   : > { %v12070_v46 = vld [vmem:[%s13086_s7 + $0x714] ss:$8 sps:$4 sm:$0xff]  }
 0x118   : > { %v13384_v48 = vpop.f32.mrf.mxu0  ;;  %2569 = vmatmul.mubr.bf16.gmra.mxu0 %v12040_v40  ;;  %v13386_v49 = vpop.f32.mrf.mxu1  ;;  %3081 = vmatmul.mubr.bf16.gmra.mxu1 %v12041_v41  ;;  %v12066_v41 = vld [vmem:[%s13086_s7 + $0x300] ss:$8 sps:$4 sm:$0xff]  }
 0x119   : > { %16087 = vst [vmem:[#allocation13_spill] sm:$0xff] %v13386_v49  ;;  %10622 = vmatprep.mubr.msk.bf16.mxu0 %vm1927_vm0, %v12043_v44  ;;  %10686 = vmatprep.mubr.msk.bf16.mxu1 %vm1927_vm0, %v12045_v45  ;;  %v12067_v44 = vld [vmem:[%s13086_s7 + $0x700] ss:$8 sps:$4 sm:$0xff]   ;;  %v12068_v45 = vld [vmem:[%s13086_s7 + $0x314] ss:$8 sps:$4 sm:$0xff]  }
 0x11a   : > { %v2380_v50 = vpop.f32.mrf.mxu0  ;;  %v2892_v51 = vpop.f32.mrf.mxu1 }
 0x11c   : > { %v13392_v54 = vpop.f32.mrf.mxu0  ;;  %v13394_v55 = vpop.f32.mrf.mxu1 }
 0x11d   : > { %16088 = vst [vmem:[#allocation14_spill] sm:$0xff] %v13394_v55  ;;  %v12154_v55 = vld [vmem:[%s13086_s7 + $0x3e0] ss:$8 sps:$4 sm:$0xff]  }
 0x11e   : > { %v2383_v58 = vpop.f32.mrf.mxu0  ;;  %v2895_v59 = vpop.f32.mrf.mxu1 }
 0x11f   : > { %v12072_v59 = vld [vmem:[%s13086_s7 + $0x310] ss:$8 sps:$4 sm:$0xff]  }
 0x120   : > { %v13398_v60 = vpop.f32.mrf.mxu0  ;;  %2577 = vmatmul.mubr.bf16.gmra.mxu0 %v12048_v52  ;;  %v13400_v63 = vpop.f32.mrf.mxu1  ;;  %3089 = vmatmul.mubr.bf16.gmra.mxu1 %v12049_v53 }
 0x121   : > { %16089 = vst [vmem:[#allocation15_spill] sm:$0xff] %v13400_v63  ;;  %10623 = vmatprep.mubr.msk.bf16.mxu0 %vm1927_vm0, %v12050_v56  ;;  %10687 = vmatprep.mubr.msk.bf16.mxu1 %vm1927_vm0, %v12052_v57 }
 0x122   : > { %v2388_v0 = vpop.f32.mrf.mxu0  ;;  %v2900_v2 = vpop.f32.mrf.mxu1 }
 0x123   : > { %v12073_v0 = vld [vmem:[%s13086_s7 + $0x710] ss:$8 sps:$4 sm:$0xff]   ;;  %v12074_v2 = vld [vmem:[%s13086_s7 + $0x324] ss:$8 sps:$4 sm:$0xff]  }
 0x124   : > { %v13405_v6 = vpop.f32.mrf.mxu0  ;;  %v13407_v7 = vpop.f32.mrf.mxu1 }
 0x125   : > { %16090 = vst [vmem:[#allocation16_spill] sm:$0xff] %v13407_v7  ;;  %v12148_v7 = vld [vmem:[%s13086_s7 + $0x3d0] ss:$8 sps:$4 sm:$0xff]  }
 0x126   : > { %v2391_v13 = vpop.f32.mrf.mxu0  ;;  %v2903_v14 = vpop.f32.mrf.mxu1 }
 0x128   : > { %v13412_v15 = vpop.f32.mrf.mxu0  ;;  %2585 = vmatmul.mubr.bf16.gmra.mxu0 %v12054_v3  ;;  %v13414_v18 = vpop.f32.mrf.mxu1  ;;  %3097 = vmatmul.mubr.bf16.gmra.mxu1 %v12055_v8  ;;  %v12076_v3 = vld [vmem:[%s13086_s7 + $0x724] ss:$8 sps:$4 sm:$0xff]  }
 0x129   : > { %16091 = vst [vmem:[#allocation17_spill] sm:$0xff] %v13414_v18  ;;  %10624 = vmatprep.mubr.msk.bf16.mxu0 %vm1927_vm0, %v12056_v9  ;;  %10688 = vmatprep.mubr.msk.bf16.mxu1 %vm1927_vm0, %v12058_v12 }
 0x12a   : > { %v2396_v19 = vpop.f32.mrf.mxu0  ;;  %v2908_v20 = vpop.f32.mrf.mxu1 }
 0x12c   : > { %v13418_v21 = vpop.f32.mrf.mxu0  ;;  %v13420_v24 = vpop.f32.mrf.mxu1 }
 0x12d   : > { %16092 = vst [vmem:[#allocation18_spill] sm:$0xff] %v13420_v24  ;;  %v12142_v24 = vld [vmem:[%s13086_s7 + $0x3c0] ss:$8 sps:$4 sm:$0xff]  }
 0x12e   : > { %v2399_v31 = vpop.f32.mrf.mxu0  ;;  %v2911_v32 = vpop.f32.mrf.mxu1 }
 0x12f   : > { %v12082_v31 = vld [vmem:[%s13086_s7 + $0x734] ss:$8 sps:$4 sm:$0xff]  }
 0x130   : > { %v13426_v33 = vpop.f32.mrf.mxu0  ;;  %2593 = vmatmul.mubr.bf16.gmra.mxu0 %v12060_v25  ;;  %v13428_v34 = vpop.f32.mrf.mxu1  ;;  %3105 = vmatmul.mubr.bf16.gmra.mxu1 %v12061_v26  ;;  %v12078_v26 = vld [vmem:[%s13086_s7 + $0x320] ss:$8 sps:$4 sm:$0xff]  }
 0x131   : > { %16093 = vst [vmem:[#allocation19_spill] sm:$0xff] %v13428_v34  ;;  %10625 = vmatprep.mubr.msk.bf16.mxu0 %vm1927_vm0, %v12062_v27  ;;  %10689 = vmatprep.mubr.msk.bf16.mxu1 %vm1927_vm0, %v12064_v30  ;;  %v12079_v27 = vld [vmem:[%s13086_s7 + $0x720] ss:$8 sps:$4 sm:$0xff]   ;;  %v12080_v30 = vld [vmem:[%s13086_s7 + $0x334] ss:$8 sps:$4 sm:$0xff]  }
 0x132   : > { %v2404_v37 = vpop.f32.mrf.mxu0  ;;  %v2916_v38 = vpop.f32.mrf.mxu1 }
 0x134   : > { %v13432_v39 = vpop.f32.mrf.mxu0  ;;  %v13434_v40 = vpop.f32.mrf.mxu1 }
 0x135   : > { %16094 = vst [vmem:[#allocation20_spill] sm:$0xff] %v13434_v40  ;;  %v12135_v40 = vld [vmem:[%s13086_s7 + $0x3b0] ss:$8 sps:$4 sm:$0xff]  }
 0x136   : > { %v2407_v47 = vpop.f32.mrf.mxu0  ;;  %v2919_v50 = vpop.f32.mrf.mxu1 }
 0x137   : > { %v12181_v47 = vld [vmem:[%s16074_s1 + $0x90] sm:$0xff]  }
 0x138   : > { %v13440_v51 = vpop.f32.mrf.mxu0  ;;  %2601 = vmatmul.mubr.bf16.gmra.mxu0 %v12066_v41  ;;  %v13442_v52 = vpop.f32.mrf.mxu1  ;;  %3113 = vmatmul.mubr.bf16.gmra.mxu1 %v12067_v44  ;;  %v12180_v44 = vld [vmem:[%s16074_s1] sm:$0xff]  }
 0x139   : > { %16095 = vst [vmem:[#allocation21_spill] sm:$0xff] %v13442_v52  ;;  %10626 = vmatprep.mubr.msk.bf16.mxu0 %vm1927_vm0, %v12068_v45  ;;  %10690 = vmatprep.mubr.msk.bf16.mxu1 %vm1927_vm0, %v12070_v46 }
 0x13a   : > { %v2412_v53 = vpop.f32.mrf.mxu0  ;;  %v2924_v56 = vpop.f32.mrf.mxu1  ;;  %4974 = vmatpush1.bf16.msra.mxu1 %v12180_v44  ;;  %7897 = vmatpush1.bf16.msra.mxu0 %v12181_v47 }
 0x13b   : > { %4989 = vmatprep.subr.bf16.mxu1 %v12994_v1  ;;  %v12084_v56 = vld [vmem:[%s13086_s7 + $0x330] ss:$8 sps:$4 sm:$0xff]   ;;  %7912 = vmatprep.subr.bf16.mxu0 %v12994_v1  ;;  %v12091_v1 = vld [vmem:[%s13086_s7 + $0x340] ss:$8 sps:$4 sm:$0xff]  }
 0x13c   : > { %v13446_v57 = vpop.f32.mrf.mxu0  ;;  %v13448_v58 = vpop.f32.mrf.mxu1 }
 0x13d   : > { %16096 = vst [vmem:[#allocation22_spill] sm:$0xff] %v13448_v58 }
 0x13e   : > { %v2415_v8 = vpop.f32.mrf.mxu0  ;;  %v2927_v9 = vpop.f32.mrf.mxu1 }
 0x140   : > { %v13454_v12 = vpop.f32.mrf.mxu0  ;;  %2609 = vmatmul.mubr.bf16.gmra.mxu0 %v12072_v59  ;;  %v13456_v13 = vpop.f32.mrf.mxu1  ;;  %3121 = vmatmul.mubr.bf16.gmra.mxu1 %v12073_v0  ;;  %v12085_v59 = vld [vmem:[%s13086_s7 + $0x730] ss:$8 sps:$4 sm:$0xff]   ;;  %v12087_v0 = vld [vmem:[%s13086_s7 + $0x344] ss:$8 sps:$4 sm:$0xff]  }
 0x141   : > { %16097 = vst [vmem:[#allocation23_spill] sm:$0xff] %v13456_v13  ;;  %10627 = vmatprep.mubr.msk.bf16.mxu0 %vm1927_vm0, %v12074_v2  ;;  %10691 = vmatprep.mubr.msk.bf16.mxu1 %vm1927_vm0, %v12076_v3  ;;  %v12089_v2 = vld [vmem:[%s13086_s7 + $0x744] ss:$8 sps:$4 sm:$0xff]   ;;  %v12123_v13 = vld [vmem:[%s13086_s7 + $0x790] ss:$8 sps:$4 sm:$0xff]  }
 0x142   : > { %v2420_v14 = vpop.f32.mrf.mxu0  ;;  %v2932_v19 = vpop.f32.mrf.mxu1 }
 0x144   : > { %v13460_v20 = vpop.f32.mrf.mxu0  ;;  %v13462_v25 = vpop.f32.mrf.mxu1 }
 0x145   : > { %16098 = vst [vmem:[#allocation24_spill] sm:$0xff] %v13462_v25  ;;  %v12122_v25 = vld [vmem:[%s13086_s7 + $0x390] ss:$8 sps:$4 sm:$0xff]  }
 0x146   : > { %v2423_v32 = vpop.f32.mrf.mxu0  ;;  %v2935_v37 = vpop.f32.mrf.mxu1 }
 0x147   : > { %v12094_v32 = vld [vmem:[%s13086_s7 + $0x354] ss:$8 sps:$4 sm:$0xff]  }
 0x148   : > { %v13468_v38 = vpop.f32.mrf.mxu0  ;;  %2617 = vmatmul.mubr.bf16.gmra.mxu0 %v12078_v26  ;;  %v13470_v41 = vpop.f32.mrf.mxu1  ;;  %3129 = vmatmul.mubr.bf16.gmra.mxu1 %v12079_v27  ;;  %v12096_v37 = vld [vmem:[%s13086_s7 + $0x754] ss:$8 sps:$4 sm:$0xff]  }
 0x149   : > { %16099 = vst [vmem:[#allocation25_spill] sm:$0xff] %v13470_v41  ;;  %10628 = vmatprep.mubr.msk.bf16.mxu0 %vm1927_vm0, %v12080_v30  ;;  %10692 = vmatprep.mubr.msk.bf16.mxu1 %vm1927_vm0, %v12082_v31  ;;  %v12092_v31 = vld [vmem:[%s13086_s7 + $0x740] ss:$8 sps:$4 sm:$0xff]  }
 0x14a   : > { %v2428_v45 = vpop.f32.mrf.mxu0  ;;  %v2940_v46 = vpop.f32.mrf.mxu1 }
 0x14c   : > { %v13481_v50 = vpop.f32.mrf.mxu0  ;;  %v13483_v53 = vpop.f32.mrf.mxu1 }
 0x14d   : > { %16100 = vst [vmem:[#allocation26_spill] sm:$0xff] %v13483_v53  ;;  %v12116_v53 = vld [vmem:[%s13086_s7 + $0x380] ss:$8 sps:$4 sm:$0xff]  }
 0x14e   : > { %v2431_v3 = vpop.f32.mrf.mxu0  ;;  %v2943_v8 = vpop.f32.mrf.mxu1 }
 0x14f   : > { %v12098_v3 = vld [vmem:[%s13086_s7 + $0x350] ss:$8 sps:$4 sm:$0xff]  }
 0x150   : > { %v13490_v9 = vpop.f32.mrf.mxu0  ;;  %2625 = vmatmul.mubr.bf16.gmra.mxu0 %v12084_v56  ;;  %v13492_v14 = vpop.f32.mrf.mxu1  ;;  %3137 = vmatmul.mubr.bf16.gmra.mxu1 %v12085_v59  ;;  %v12099_v8 = vld [vmem:[%s13086_s7 + $0x750] ss:$8 sps:$4 sm:$0xff]  }
 0x151   : > { %16101 = vst [vmem:[#allocation27_spill] sm:$0xff] %v13492_v14  ;;  %10629 = vmatprep.mubr.msk.bf16.mxu0 %vm1927_vm0, %v12087_v0  ;;  %10693 = vmatprep.mubr.msk.bf16.mxu1 %vm1927_vm0, %v12089_v2 }
 0x152   : > { %v2436_v19 = vpop.f32.mrf.mxu0  ;;  %v2948_v26 = vpop.f32.mrf.mxu1 }
 0x153   : > { %v12100_v19 = vld [vmem:[%s13086_s7 + $0x364] ss:$8 sps:$4 sm:$0xff]  }
 0x154   : > { %v13496_v27 = vpop.f32.mrf.mxu0  ;;  %v13498_v30 = vpop.f32.mrf.mxu1  ;;  %v12102_v26 = vld [vmem:[%s13086_s7 + $0x764] ss:$8 sps:$4 sm:$0xff]  }
 0x155   : > { %16102 = vst [vmem:[#allocation28_spill] sm:$0xff] %v13498_v30  ;;  %v12110_v30 = vld [vmem:[%s13086_s7 + $0x370] ss:$8 sps:$4 sm:$0xff]  }
 0x156   : > { %v2439_v44 = vpop.f32.mrf.mxu0  ;;  %v2951_v45 = vpop.f32.mrf.mxu1 }
 0x158   : > { %v13504_v46 = vpop.f32.mrf.mxu0  ;;  %2633 = vmatmul.mubr.bf16.gmra.mxu0 %v12091_v1  ;;  %v13506_v47 = vpop.f32.mrf.mxu1  ;;  %3145 = vmatmul.mubr.bf16.gmra.mxu1 %v12092_v31 }
 0x159   : > { %16103 = vst [vmem:[#allocation29_spill] sm:$0xff] %v13506_v47  ;;  %10630 = vmatprep.mubr.msk.bf16.mxu0 %vm1927_vm0, %v12094_v32  ;;  %10694 = vmatprep.mubr.msk.bf16.mxu1 %vm1927_vm0, %v12096_v37 }
 0x15a   : > { %v2444_v56 = vpop.f32.mrf.mxu0  ;;  %v2956_v59 = vpop.f32.mrf.mxu1 }
 0x15c   : > { %v13510_v0 = vpop.f32.mrf.mxu0  ;;  %v13512_v2 = vpop.f32.mrf.mxu1 }
 0x15d   : > { %16104 = vst [vmem:[#allocation30_spill] sm:$0xff] %v13512_v2  ;;  %v12104_v2 = vld [vmem:[%s13086_s7 + $0x360] ss:$8 sps:$4 sm:$0xff]  }
 0x15e   : > { %v2447_v1 = vpop.f32.mrf.mxu0  ;;  %v2959_v31 = vpop.f32.mrf.mxu1 }
 0x15f   : > { %v12105_v1 = vld [vmem:[%s13086_s7 + $0x760] ss:$8 sps:$4 sm:$0xff]   ;;  %v12106_v31 = vld [vmem:[%s13086_s7 + $0x374] ss:$8 sps:$4 sm:$0xff]  }
 0x160   : > { %v13518_v44 = vpop.f32.mrf.mxu0  ;;  %2641 = vmatmul.mubr.bf16.gmra.mxu0 %v12098_v3  ;;  %v13520_v32 = vpop.f32.mrf.mxu1  ;;  %3153 = vmatmul.mubr.bf16.gmra.mxu1 %v12099_v8  ;;  %v12108_v3 = vld [vmem:[%s13086_s7 + $0x774] ss:$8 sps:$4 sm:$0xff]  }
 0x161   : > { %16105 = vst [vmem:[#allocation31_spill] sm:$0xff] %v13520_v32  ;;  %10631 = vmatprep.mubr.msk.bf16.mxu0 %vm1927_vm0, %v12100_v19  ;;  %10695 = vmatprep.mubr.msk.bf16.mxu1 %vm1927_vm0, %v12102_v26 }
 0x162   : > { %v2452_v37 = vpop.f32.mrf.mxu0  ;;  %v2964_v45 = vpop.f32.mrf.mxu1 }
 0x164   : > { %v13524_v56 = vpop.f32.mrf.mxu0  ;;  %v13526_v59 = vpop.f32.mrf.mxu1 }
 0x165   : > { %16106 = vst [vmem:[#allocation32_spill] sm:$0xff] %v13526_v59 }
 0x166   : > { %v2455_v32 = vpop.f32.mrf.mxu0  ;;  %v2967_v8 = vpop.f32.mrf.mxu1 }
 0x167   : > { %v12111_v32 = vld [vmem:[%s13086_s7 + $0x770] ss:$8 sps:$4 sm:$0xff]   ;;  %v12112_v8 = vld [vmem:[%s13086_s7 + $0x384] ss:$8 sps:$4 sm:$0xff]  }
 0x168   : > { %v13532_v47 = vpop.f32.mrf.mxu0  ;;  %2649 = vmatmul.mubr.bf16.gmra.mxu0 %v12104_v2  ;;  %v13534_v19 = vpop.f32.mrf.mxu1  ;;  %3161 = vmatmul.mubr.bf16.gmra.mxu1 %v12105_v1  ;;  %v12114_v2 = vld [vmem:[%s13086_s7 + $0x784] ss:$8 sps:$4 sm:$0xff]  }
 0x169   : > { %16107 = vst [vmem:[#allocation33_spill] sm:$0xff] %v13534_v19  ;;  %10632 = vmatprep.mubr.msk.bf16.mxu0 %vm1927_vm0, %v12106_v31  ;;  %10696 = vmatprep.mubr.msk.bf16.mxu1 %vm1927_vm0, %v12108_v3 }
 0x16a   : > { %v2460_v26 = vpop.f32.mrf.mxu0  ;;  %v2972_v37 = vpop.f32.mrf.mxu1 }
 0x16c   : > { %v13538_v45 = vpop.f32.mrf.mxu0  ;;  %v13540_v59 = vpop.f32.mrf.mxu1 }
 0x16d   : > { %16108 = vst [vmem:[#allocation34_spill] sm:$0xff] %v13540_v59 }
 0x16e   : > { %v2463_v19 = vpop.f32.mrf.mxu0  ;;  %v2975_v1 = vpop.f32.mrf.mxu1 }
 0x16f   : > { %v12117_v19 = vld [vmem:[%s13086_s7 + $0x780] ss:$8 sps:$4 sm:$0xff]   ;;  %v12118_v1 = vld [vmem:[%s13086_s7 + $0x394] ss:$8 sps:$4 sm:$0xff]  }
 0x170   : > { %v13546_v14 = vpop.f32.mrf.mxu0  ;;  %2657 = vmatmul.mubr.bf16.gmra.mxu0 %v12110_v30  ;;  %v13548_v31 = vpop.f32.mrf.mxu1  ;;  %3169 = vmatmul.mubr.bf16.gmra.mxu1 %v12111_v32  ;;  %v12120_v30 = vld [vmem:[%s13086_s7 + $0x794] ss:$8 sps:$4 sm:$0xff]  }
 0x171   : > { %16109 = vst [vmem:[#allocation35_spill] sm:$0xff] %v13548_v31  ;;  %10633 = vmatprep.mubr.msk.bf16.mxu0 %vm1927_vm0, %v12112_v8  ;;  %10697 = vmatprep.mubr.msk.bf16.mxu1 %vm1927_vm0, %v12114_v2 }
 0x172   : > { %v2468_v3 = vpop.f32.mrf.mxu0  ;;  %v2980_v26 = vpop.f32.mrf.mxu1 }
 0x174   : > { %v13552_v37 = vpop.f32.mrf.mxu0  ;;  %v13554_v59 = vpop.f32.mrf.mxu1 }
 0x175   : > { %16110 = vst [vmem:[#allocation36_spill] sm:$0xff] %v13554_v59 }
 0x176   : > { %v2471_v31 = vpop.f32.mrf.mxu0  ;;  %v2983_v32 = vpop.f32.mrf.mxu1 }
 0x177   : > { %v12124_v31 = vld [vmem:[%s13086_s7 + $0x3a4] ss:$8 sps:$4 sm:$0xff]  }
 0x178   : > { %v13560_v41 = vpop.f32.mrf.mxu0  ;;  %2665 = vmatmul.mubr.bf16.gmra.mxu0 %v12116_v53  ;;  %v13562_v8 = vpop.f32.mrf.mxu1  ;;  %3177 = vmatmul.mubr.bf16.gmra.mxu1 %v12117_v19  ;;  %v12126_v32 = vld [vmem:[%s13086_s7 + $0x7a4] ss:$8 sps:$4 sm:$0xff]  }
 0x179   : > { %16111 = vst [vmem:[#allocation37_spill] sm:$0xff] %v13562_v8  ;;  %10634 = vmatprep.mubr.msk.bf16.mxu0 %vm1927_vm0, %v12118_v1  ;;  %10698 = vmatprep.mubr.msk.bf16.mxu1 %vm1927_vm0, %v12120_v30  ;;  %v12224_v1 = vld [vmem:[%s16074_s1 + $0x40] sm:$0xff]  }
 0x17a   : > { %v2476_v2 = vpop.f32.mrf.mxu0  ;;  %v2988_v3 = vpop.f32.mrf.mxu1  ;;  %4990 = vmatpush2.bf16.msra.mxu1 %v12224_v1 }
 0x17b   : > { %v12225_v2 = vld [vmem:[%s16074_s1 + $0xd0] sm:$0xff]  }
 0x17c   : > { %v13566_v26 = vpop.f32.mrf.mxu0  ;;  %v13568_v59 = vpop.f32.mrf.mxu1  ;;  %7913 = vmatpush2.bf16.msra.mxu0 %v12225_v2 }
 0x17d   : > { %16112 = vst [vmem:[#allocation38_spill] sm:$0xff] %v13568_v59 }
 0x17e   : > { %v2479_v58 = vpop.f32.mrf.mxu0  ;;  %v2991_v53 = vpop.f32.mrf.mxu1 }
 0x17f   : > { %v12129_v53 = vld [vmem:[%s13086_s7 + $0x7a0] ss:$8 sps:$4 sm:$0xff]  }
 0x180   : > { %v13574_v8 = vpop.f32.mrf.mxu0  ;;  %2673 = vmatmul.mubr.bf16.gmra.mxu0 %v12122_v25  ;;  %v13576_v19 = vpop.f32.mrf.mxu1  ;;  %3185 = vmatmul.mubr.bf16.gmra.mxu1 %v12123_v13  ;;  %v12128_v13 = vld [vmem:[%s13086_s7 + $0x3a0] ss:$8 sps:$4 sm:$0xff]  }
 0x181   : > { %16113 = vst [vmem:[#allocation39_spill] sm:$0xff] %v13576_v19  ;;  %10635 = vmatprep.mubr.msk.bf16.mxu0 %vm1927_vm0, %v12124_v31  ;;  %10699 = vmatprep.mubr.msk.bf16.mxu1 %vm1927_vm0, %v12126_v32  ;;  %v12130_v19 = vld [vmem:[%s13086_s7 + $0x3b4] ss:$8 sps:$4 sm:$0xff]  }
 0x182   : > { %v2484_v30 = vpop.f32.mrf.mxu0  ;;  %v2996_v58 = vpop.f32.mrf.mxu1  ;;  %v12132_v31 = vld [vmem:[%s13086_s7 + $0x7b4] ss:$8 sps:$4 sm:$0xff]  }
 0x184   : > { %v13586_v25 = vpop.f32.mrf.mxu0  ;;  %v13588_v3 = vpop.f32.mrf.mxu1 }
 0x185   : > { %16114 = vst [vmem:[#allocation40_spill] sm:$0xff] %v13588_v3 }
 0x186   : > { %v2487_v32 = vpop.f32.mrf.mxu0  ;;  %v2999_v30 = vpop.f32.mrf.mxu1 }
 0x187   : > { %v12136_v32 = vld [vmem:[%s13086_s7 + $0x7b0] ss:$8 sps:$4 sm:$0xff]   ;;  %v12138_v30 = vld [vmem:[%s13086_s7 + $0x3c4] ss:$8 sps:$4 sm:$0xff]  }
 0x188   : > { %v13594_v1 = vpop.f32.mrf.mxu0  ;;  %2681 = vmatmul.mubr.bf16.gmra.mxu0 %v12128_v13  ;;  %v13596_v58 = vpop.f32.mrf.mxu1  ;;  %3193 = vmatmul.mubr.bf16.gmra.mxu1 %v12129_v53  ;;  %v12140_v13 = vld [vmem:[%s13086_s7 + $0x7c4] ss:$8 sps:$4 sm:$0xff]  }
 0x189   : > { %16115 = vst [vmem:[#allocation41_spill] sm:$0xff] %v13596_v58  ;;  %10636 = vmatprep.mubr.msk.bf16.mxu0 %vm1927_vm0, %v12130_v19  ;;  %10700 = vmatprep.mubr.msk.bf16.mxu1 %vm1927_vm0, %v12132_v31 }
 0x18a   : > { %v2492_v3 = vpop.f32.mrf.mxu0  ;;  %v3004_v59 = vpop.f32.mrf.mxu1 }
 0x18c   : > { %v13600_v2 = vpop.f32.mrf.mxu0  ;;  %v13602_v52 = vpop.f32.mrf.mxu1 }
 0x18d   : > { %16116 = vst [vmem:[#allocation42_spill] sm:$0xff] %v13602_v52 }
 0x18e   : > { %v2495_v58 = vpop.f32.mrf.mxu0  ;;  %v3007_v53 = vpop.f32.mrf.mxu1 }
 0x18f   : > { %v12143_v58 = vld [vmem:[%s13086_s7 + $0x7c0] ss:$8 sps:$4 sm:$0xff]   ;;  %v12144_v53 = vld [vmem:[%s13086_s7 + $0x3d4] ss:$8 sps:$4 sm:$0xff]  }
 0x190   : > { %v13608_v34 = vpop.f32.mrf.mxu0  ;;  %2689 = vmatmul.mubr.bf16.gmra.mxu0 %v12135_v40  ;;  %v13610_v19 = vpop.f32.mrf.mxu1  ;;  %3201 = vmatmul.mubr.bf16.gmra.mxu1 %v12136_v32  ;;  %v12146_v40 = vld [vmem:[%s13086_s7 + $0x7d4] ss:$8 sps:$4 sm:$0xff]  }
 0x191   : > { %16117 = vst [vmem:[#allocation43_spill] sm:$0xff] %v13610_v19  ;;  %10637 = vmatprep.mubr.msk.bf16.mxu0 %vm1927_vm0, %v12138_v30  ;;  %10701 = vmatprep.mubr.msk.bf16.mxu1 %vm1927_vm0, %v12140_v13 }
 0x192   : > { %v2500_v59 = vpop.f32.mrf.mxu0  ;;  %v3012_v3 = vpop.f32.mrf.mxu1 }
 0x194   : > { %v13614_v31 = vpop.f32.mrf.mxu0  ;;  %v13616_v52 = vpop.f32.mrf.mxu1 }
 0x195   : > { %16118 = vst [vmem:[#allocation44_spill] sm:$0xff] %v13616_v52 }
 0x196   : > { %v2503_v19 = vpop.f32.mrf.mxu0  ;;  %v3015_v32 = vpop.f32.mrf.mxu1 }
 0x197   : > { %v12149_v19 = vld [vmem:[%s13086_s7 + $0x7d0] ss:$8 sps:$4 sm:$0xff]   ;;  %v12150_v32 = vld [vmem:[%s13086_s7 + $0x3e4] ss:$8 sps:$4 sm:$0xff]  }
 0x198   : > { %v13622_v18 = vpop.f32.mrf.mxu0  ;;  %2697 = vmatmul.mubr.bf16.gmra.mxu0 %v12142_v24  ;;  %v13624_v30 = vpop.f32.mrf.mxu1  ;;  %3209 = vmatmul.mubr.bf16.gmra.mxu1 %v12143_v58  ;;  %v12152_v24 = vld [vmem:[%s13086_s7 + $0x7e4] ss:$8 sps:$4 sm:$0xff]  }
 0x199   : > { %16119 = vst [vmem:[#allocation45_spill] sm:$0xff] %v13624_v30  ;;  %10638 = vmatprep.mubr.msk.bf16.mxu0 %vm1927_vm0, %v12144_v53  ;;  %10702 = vmatprep.mubr.msk.bf16.mxu1 %vm1927_vm0, %v12146_v40 }
 0x19a   : > { %v2508_v13 = vpop.f32.mrf.mxu0  ;;  %v3020_v59 = vpop.f32.mrf.mxu1 }
 0x19c   : > { %v13628_v3 = vpop.f32.mrf.mxu0  ;;  %v13630_v52 = vpop.f32.mrf.mxu1 }
 0x19d   : > { %16120 = vst [vmem:[#allocation46_spill] sm:$0xff] %v13630_v52 }
 0x19e   : > { %v2511_v30 = vpop.f32.mrf.mxu0  ;;  %v3023_v58 = vpop.f32.mrf.mxu1 }
 0x19f   : > { %v12155_v30 = vld [vmem:[%s13086_s7 + $0x7e0] ss:$8 sps:$4 sm:$0xff]   ;;  %v12156_v58 = vld [vmem:[%s13086_s7 + $0x3f4] ss:$8 sps:$4 sm:$0xff]  }
 0x1a0   : > { %v13636_v63 = vpop.f32.mrf.mxu0  ;;  %2705 = vmatmul.mubr.bf16.gmra.mxu0 %v12148_v7  ;;  %v13638_v53 = vpop.f32.mrf.mxu1  ;;  %3217 = vmatmul.mubr.bf16.gmra.mxu1 %v12149_v19  ;;  %v12158_v7 = vld [vmem:[%s13086_s7 + $0x7f4] ss:$8 sps:$4 sm:$0xff]  }
 0x1a1   : > { %16121 = vst [vmem:[#allocation47_spill] sm:$0xff] %v13638_v53  ;;  %10639 = vmatprep.mubr.msk.bf16.mxu0 %vm1927_vm0, %v12150_v32  ;;  %10703 = vmatprep.mubr.msk.bf16.mxu1 %vm1927_vm0, %v12152_v24 }
 0x1a2   : > { %v2516_v40 = vpop.f32.mrf.mxu0  ;;  %v3028_v13 = vpop.f32.mrf.mxu1 }
 0x1a4   : > { %v13642_v59 = vpop.f32.mrf.mxu0  ;;  %v13644_v52 = vpop.f32.mrf.mxu1 }
 0x1a5   : > { %16122 = vst [vmem:[#allocation48_spill] sm:$0xff] %v13644_v52 }
 0x1a6   : > { %v2519_v53 = vpop.f32.mrf.mxu0  ;;  %v3031_v19 = vpop.f32.mrf.mxu1 }
 0x1a7   : > { %v12161_v53 = vld [vmem:[%s13086_s7 + $0x7f0] ss:$8 sps:$4 sm:$0xff]   ;;  %v12162_v19 = vld [vmem:[%s13086_s7 + $0x404] ss:$8 sps:$4 sm:$0xff]  }
 0x1a8   : > { %v13650_v49 = vpop.f32.mrf.mxu0  ;;  %2713 = vmatmul.mubr.bf16.gmra.mxu0 %v12154_v55  ;;  %v13652_v32 = vpop.f32.mrf.mxu1  ;;  %3225 = vmatmul.mubr.bf16.gmra.mxu1 %v12155_v30  ;;  %v12164_v55 = vld [vmem:[%s13086_s7 + $0x804] ss:$8 sps:$4 sm:$0xff]  }
 0x1a9   : > { %16123 = vst [vmem:[#allocation49_spill] sm:$0xff] %v13652_v32  ;;  %10640 = vmatprep.mubr.msk.bf16.mxu0 %vm1927_vm0, %v12156_v58  ;;  %10704 = vmatprep.mubr.msk.bf16.mxu1 %vm1927_vm0, %v12158_v7 }
 0x1aa   : > { %v2524_v24 = vpop.f32.mrf.mxu0  ;;  %v3036_v40 = vpop.f32.mrf.mxu1 }
 0x1ac   : > { %v13656_v13 = vpop.f32.mrf.mxu0  ;;  %v13658_v52 = vpop.f32.mrf.mxu1 }
 0x1ad   : > { %16124 = vst [vmem:[#allocation50_spill] sm:$0xff] %v13658_v52 }
 0x1ae   : > { %v2527_v32 = vpop.f32.mrf.mxu0  ;;  %v3039_v30 = vpop.f32.mrf.mxu1 }
 0x1af   : > { %v12167_v32 = vld [vmem:[%s13086_s7 + $0x800] ss:$8 sps:$4 sm:$0xff]   ;;  %v12168_v30 = vld [vmem:[%s13086_s7 + $0x414] ss:$8 sps:$4 sm:$0xff]  }
 0x1b0   : > { %v13664_v36 = vpop.f32.mrf.mxu0  ;;  %2721 = vmatmul.mubr.bf16.gmra.mxu0 %v12160_v43  ;;  %v13666_v58 = vpop.f32.mrf.mxu1  ;;  %3233 = vmatmul.mubr.bf16.gmra.mxu1 %v12161_v53  ;;  %v12170_v43 = vld [vmem:[%s13086_s7 + $0x814] ss:$8 sps:$4 sm:$0xff]  }
 0x1b1   : > { %16125 = vst [vmem:[#allocation51_spill] sm:$0xff] %v13664_v36  ;;  %16126 = vst [vmem:[#allocation52_spill] sm:$0xff] %v13666_v58  ;;  %10641 = vmatprep.mubr.msk.bf16.mxu0 %vm1927_vm0, %v12162_v19  ;;  %10705 = vmatprep.mubr.msk.bf16.mxu1 %vm1927_vm0, %v12164_v55 }
 0x1b2   : > { %v2532_v7 = vpop.f32.mrf.mxu0  ;;  %v3044_v24 = vpop.f32.mrf.mxu1 }
 0x1b4   : > { %v13670_v40 = vpop.f32.mrf.mxu0  ;;  %v13672_v52 = vpop.f32.mrf.mxu1 }
 0x1b5   : > { %16127 = vst [vmem:[#allocation53_spill] sm:$0xff] %v13670_v40  ;;  %16128 = vst [vmem:[#allocation54_spill] sm:$0xff] %v13672_v52 }
 0x1b6   : > { %v2535_v58 = vpop.f32.mrf.mxu0  ;;  %v3047_v53 = vpop.f32.mrf.mxu1 }
 0x1b7   : > { %v12173_v58 = vld [vmem:[%s13086_s7 + $0x810] ss:$8 sps:$4 sm:$0xff]   ;;  %v12174_v53 = vld [vmem:[%s13086_s7 + $0x424] ss:$8 sps:$4 sm:$0xff]  }
 0x1b8   : > { %v13678_v23 = vpop.f32.mrf.mxu0  ;;  %2729 = vmatmul.mubr.bf16.gmra.mxu0 %v12166_v29  ;;  %v13680_v19 = vpop.f32.mrf.mxu1  ;;  %3241 = vmatmul.mubr.bf16.gmra.mxu1 %v12167_v32  ;;  %v12176_v29 = vld [vmem:[%s13086_s7 + $0x824] ss:$8 sps:$4 sm:$0xff]  }
 0x1b9   : > { %16129 = vst [vmem:[#allocation55_spill] sm:$0xff] %v13678_v23  ;;  %16130 = vst [vmem:[#allocation56_spill] sm:$0xff] %v13680_v19  ;;  %10642 = vmatprep.mubr.msk.bf16.mxu0 %vm1927_vm0, %v12168_v30  ;;  %10706 = vmatprep.mubr.msk.bf16.mxu1 %vm1927_vm0, %v12170_v43 }
 0x1ba   : > { %v2540_v55 = vpop.f32.mrf.mxu0  ;;  %v3052_v7 = vpop.f32.mrf.mxu1 }
 0x1bc   : > { %v13684_v24 = vpop.f32.mrf.mxu0  ;;  %v13686_v52 = vpop.f32.mrf.mxu1 }
 0x1bd   : > { %16131 = vst [vmem:[#allocation57_spill] sm:$0xff] %v13684_v24  ;;  %16132 = vst [vmem:[#allocation58_spill] sm:$0xff] %v13686_v52  ;;  %v12416_v24 = vld [vmem:[%s13086_s7 + $0x1a4] ss:$8 sps:$4 sm:$0xff]  }
 0x1be   : > { %v2543_v19 = vpop.f32.mrf.mxu0  ;;  %v3055_v32 = vpop.f32.mrf.mxu1 }
 0x1bf   : > { %v12179_v19 = vld [vmem:[%s13086_s7 + $0x820] ss:$8 sps:$4 sm:$0xff]   ;;  %v12182_v32 = vld [vmem:[%s13086_s7 + $0x434] ss:$8 sps:$4 sm:$0xff]  }
 0x1c0   : > { %v13692_v11 = vpop.f32.mrf.mxu0  ;;  %2737 = vmatmul.mubr.bf16.gmra.mxu0 %v12172_v17  ;;  %v13694_v30 = vpop.f32.mrf.mxu1  ;;  %3249 = vmatmul.mubr.bf16.gmra.mxu1 %v12173_v58  ;;  %v12184_v17 = vld [vmem:[%s13086_s7 + $0x834] ss:$8 sps:$4 sm:$0xff]  }
 0x1c1   : > { %16133 = vst [vmem:[#allocation59_spill] sm:$0xff] %v13692_v11  ;;  %16134 = vst [vmem:[#allocation60_spill] sm:$0xff] %v13694_v30  ;;  %10643 = vmatprep.mubr.msk.bf16.mxu0 %vm1927_vm0, %v12174_v53  ;;  %10707 = vmatprep.mubr.msk.bf16.mxu1 %vm1927_vm0, %v12176_v29 }
 0x1c2   : > { %v2548_v43 = vpop.f32.mrf.mxu0  ;;  %v3060_v55 = vpop.f32.mrf.mxu1 }
 0x1c4   : > { %v13698_v7 = vpop.f32.mrf.mxu0  ;;  %v13700_v52 = vpop.f32.mrf.mxu1 }
 0x1c5   : > { %16135 = vst [vmem:[#allocation61_spill] sm:$0xff] %v13698_v7  ;;  %16136 = vst [vmem:[#allocation62_spill] sm:$0xff] %v13700_v52  ;;  %v12186_v7 = vld [vmem:[%s13086_s7 + $0x430] ss:$8 sps:$4 sm:$0xff]  }
 0x1c6   : > { %v2551_v30 = vpop.f32.mrf.mxu0  ;;  %v3063_v58 = vpop.f32.mrf.mxu1 }
 0x1c7   : > { %v12187_v30 = vld [vmem:[%s13086_s7 + $0x830] ss:$8 sps:$4 sm:$0xff]   ;;  %v12188_v58 = vld [vmem:[%s13086_s7 + $0x444] ss:$8 sps:$4 sm:$0xff]  }
 0x1c8   : > { %v13706_v62 = vpop.f32.mrf.mxu0  ;;  %2745 = vmatmul.mubr.bf16.gmra.mxu0 %v12178_v5  ;;  %v13708_v53 = vpop.f32.mrf.mxu1  ;;  %3257 = vmatmul.mubr.bf16.gmra.mxu1 %v12179_v19  ;;  %v12190_v5 = vld [vmem:[%s13086_s7 + $0x844] ss:$8 sps:$4 sm:$0xff]  }
 0x1c9   : > { %16137 = vst [vmem:[#allocation63_spill] sm:$0xff] %v13706_v62  ;;  %16138 = vst [vmem:[#allocation64_spill] sm:$0xff] %v13708_v53  ;;  %10644 = vmatprep.mubr.msk.bf16.mxu0 %vm1927_vm0, %v12182_v32  ;;  %10708 = vmatprep.mubr.msk.bf16.mxu1 %vm1927_vm0, %v12184_v17 }
 0x1ca   : > { %v2556_v29 = vpop.f32.mrf.mxu0  ;;  %v3068_v43 = vpop.f32.mrf.mxu1 }
 0x1cc   : > { %v13712_v55 = vpop.f32.mrf.mxu0  ;;  %v13714_v52 = vpop.f32.mrf.mxu1 }
 0x1cd   : > { %16139 = vst [vmem:[#allocation65_spill] sm:$0xff] %v13712_v55  ;;  %16140 = vst [vmem:[#allocation66_spill] sm:$0xff] %v13714_v52  ;;  %v12192_v55 = vld [vmem:[%s13086_s7 + $0x440] ss:$8 sps:$4 sm:$0xff]  }
 0x1ce   : > { %v2559_v53 = vpop.f32.mrf.mxu0  ;;  %v3071_v19 = vpop.f32.mrf.mxu1 }
 0x1cf   : > { %v12193_v53 = vld [vmem:[%s13086_s7 + $0x840] ss:$8 sps:$4 sm:$0xff]   ;;  %v12194_v19 = vld [vmem:[%s13086_s7 + $0x454] ss:$8 sps:$4 sm:$0xff]  }
 0x1d0   : > { %v13720_v62 = vpop.f32.mrf.mxu0  ;;  %2753 = vmatmul.mubr.bf16.gmra.mxu0 %v12186_v7  ;;  %v13722_v32 = vpop.f32.mrf.mxu1  ;;  %3265 = vmatmul.mubr.bf16.gmra.mxu1 %v12187_v30  ;;  %v12196_v7 = vld [vmem:[%s13086_s7 + $0x854] ss:$8 sps:$4 sm:$0xff]  }
 0x1d1   : > { %16141 = vst [vmem:[#allocation67_spill] sm:$0xff] %v13720_v62  ;;  %16142 = vst [vmem:[#allocation68_spill] sm:$0xff] %v13722_v32  ;;  %10645 = vmatprep.mubr.msk.bf16.mxu0 %vm1927_vm0, %v12188_v58  ;;  %10709 = vmatprep.mubr.msk.bf16.mxu1 %vm1927_vm0, %v12190_v5 }
 0x1d2   : > { %v2564_v17 = vpop.f32.mrf.mxu0  ;;  %v3076_v29 = vpop.f32.mrf.mxu1 }
 0x1d4   : > { %v13726_v43 = vpop.f32.mrf.mxu0  ;;  %v13728_v52 = vpop.f32.mrf.mxu1 }
 0x1d5   : > { %16143 = vst [vmem:[#allocation69_spill] sm:$0xff] %v13726_v43  ;;  %16144 = vst [vmem:[#allocation70_spill] sm:$0xff] %v13728_v52  ;;  %v12198_v43 = vld [vmem:[%s13086_s7 + $0x450] ss:$8 sps:$4 sm:$0xff]  }
 0x1d6   : > { %v2567_v32 = vpop.f32.mrf.mxu0  ;;  %v3079_v30 = vpop.f32.mrf.mxu1 }
 0x1d7   : > { %v12199_v32 = vld [vmem:[%s13086_s7 + $0x850] ss:$8 sps:$4 sm:$0xff]   ;;  %v12200_v30 = vld [vmem:[%s13086_s7 + $0x464] ss:$8 sps:$4 sm:$0xff]  }
 0x1d8   : > { %v13734_v62 = vpop.f32.mrf.mxu0  ;;  %2761 = vmatmul.mubr.bf16.gmra.mxu0 %v12192_v55  ;;  %v13736_v58 = vpop.f32.mrf.mxu1  ;;  %3273 = vmatmul.mubr.bf16.gmra.mxu1 %v12193_v53  ;;  %v12202_v55 = vld [vmem:[%s13086_s7 + $0x864] ss:$8 sps:$4 sm:$0xff]  }
 0x1d9   : > { %16145 = vst [vmem:[#allocation71_spill] sm:$0xff] %v13734_v62  ;;  %16146 = vst [vmem:[#allocation72_spill] sm:$0xff] %v13736_v58  ;;  %10646 = vmatprep.mubr.msk.bf16.mxu0 %vm1927_vm0, %v12194_v19  ;;  %10710 = vmatprep.mubr.msk.bf16.mxu1 %vm1927_vm0, %v12196_v7 }
 0x1da   : > { %v2572_v5 = vpop.f32.mrf.mxu0  ;;  %v3084_v17 = vpop.f32.mrf.mxu1 }
 0x1dc   : > { %v13740_v29 = vpop.f32.mrf.mxu0  ;;  %v13742_v52 = vpop.f32.mrf.mxu1 }
 0x1dd   : > { %16147 = vst [vmem:[#allocation73_spill] sm:$0xff] %v13740_v29  ;;  %16148 = vst [vmem:[#allocation74_spill] sm:$0xff] %v13742_v52  ;;  %v12204_v29 = vld [vmem:[%s13086_s7 + $0x460] ss:$8 sps:$4 sm:$0xff]  }
 0x1de   : > { %v2575_v58 = vpop.f32.mrf.mxu0  ;;  %v3087_v53 = vpop.f32.mrf.mxu1 }
 0x1df   : > { %v12205_v58 = vld [vmem:[%s13086_s7 + $0x860] ss:$8 sps:$4 sm:$0xff]   ;;  %v12206_v53 = vld [vmem:[%s13086_s7 + $0x474] ss:$8 sps:$4 sm:$0xff]  }
 0x1e0   : > { %v13748_v62 = vpop.f32.mrf.mxu0  ;;  %2769 = vmatmul.mubr.bf16.gmra.mxu0 %v12198_v43  ;;  %v13750_v19 = vpop.f32.mrf.mxu1  ;;  %3281 = vmatmul.mubr.bf16.gmra.mxu1 %v12199_v32  ;;  %v12208_v43 = vld [vmem:[%s13086_s7 + $0x874] ss:$8 sps:$4 sm:$0xff]  }
 0x1e1   : > { %16149 = vst [vmem:[#allocation75_spill] sm:$0xff] %v13748_v62  ;;  %16150 = vst [vmem:[#allocation76_spill] sm:$0xff] %v13750_v19  ;;  %10647 = vmatprep.mubr.msk.bf16.mxu0 %vm1927_vm0, %v12200_v30  ;;  %10711 = vmatprep.mubr.msk.bf16.mxu1 %vm1927_vm0, %v12202_v55 }
 0x1e2   : > { %v2580_v7 = vpop.f32.mrf.mxu0  ;;  %v3092_v5 = vpop.f32.mrf.mxu1 }
 0x1e4   : > { %v13754_v17 = vpop.f32.mrf.mxu0  ;;  %v13756_v52 = vpop.f32.mrf.mxu1 }
 0x1e5   : > { %16151 = vst [vmem:[#allocation77_spill] sm:$0xff] %v13754_v17  ;;  %16152 = vst [vmem:[#allocation78_spill] sm:$0xff] %v13756_v52  ;;  %v12210_v17 = vld [vmem:[%s13086_s7 + $0x470] ss:$8 sps:$4 sm:$0xff]  }
 0x1e6   : > { %v2583_v19 = vpop.f32.mrf.mxu0  ;;  %v3095_v32 = vpop.f32.mrf.mxu1 }
 0x1e7   : > { %v12211_v19 = vld [vmem:[%s13086_s7 + $0x870] ss:$8 sps:$4 sm:$0xff]   ;;  %v12212_v32 = vld [vmem:[%s13086_s7 + $0x484] ss:$8 sps:$4 sm:$0xff]  }
 0x1e8   : > { %v13762_v62 = vpop.f32.mrf.mxu0  ;;  %2777 = vmatmul.mubr.bf16.gmra.mxu0 %v12204_v29  ;;  %v13764_v30 = vpop.f32.mrf.mxu1  ;;  %3289 = vmatmul.mubr.bf16.gmra.mxu1 %v12205_v58  ;;  %v12214_v29 = vld [vmem:[%s13086_s7 + $0x884] ss:$8 sps:$4 sm:$0xff]  }
 0x1e9   : > { %16153 = vst [vmem:[#allocation79_spill] sm:$0xff] %v13762_v62  ;;  %16154 = vst [vmem:[#allocation80_spill] sm:$0xff] %v13764_v30  ;;  %10648 = vmatprep.mubr.msk.bf16.mxu0 %vm1927_vm0, %v12206_v53  ;;  %10712 = vmatprep.mubr.msk.bf16.mxu1 %vm1927_vm0, %v12208_v43 }
 0x1ea   : > { %v2588_v55 = vpop.f32.mrf.mxu0  ;;  %v3100_v7 = vpop.f32.mrf.mxu1 }
 0x1ec   : > { %v13768_v5 = vpop.f32.mrf.mxu0  ;;  %v13770_v52 = vpop.f32.mrf.mxu1 }
 0x1ed   : > { %16155 = vst [vmem:[#allocation81_spill] sm:$0xff] %v13768_v5  ;;  %16156 = vst [vmem:[#allocation82_spill] sm:$0xff] %v13770_v52  ;;  %v12216_v5 = vld [vmem:[%s13086_s7 + $0x480] ss:$8 sps:$4 sm:$0xff]  }
 0x1ee   : > { %v2591_v30 = vpop.f32.mrf.mxu0  ;;  %v3103_v58 = vpop.f32.mrf.mxu1 }
 0x1ef   : > { %v12217_v30 = vld [vmem:[%s13086_s7 + $0x880] ss:$8 sps:$4 sm:$0xff]   ;;  %v12218_v58 = vld [vmem:[%s13086_s7 + $0x494] ss:$8 sps:$4 sm:$0xff]  }
 0x1f0   : > { %v13776_v62 = vpop.f32.mrf.mxu0  ;;  %2785 = vmatmul.mubr.bf16.gmra.mxu0 %v12210_v17  ;;  %v13778_v53 = vpop.f32.mrf.mxu1  ;;  %3297 = vmatmul.mubr.bf16.gmra.mxu1 %v12211_v19  ;;  %v12220_v17 = vld [vmem:[%s13086_s7 + $0x894] ss:$8 sps:$4 sm:$0xff]  }
 0x1f1   : > { %16157 = vst [vmem:[#allocation83_spill] sm:$0xff] %v13776_v62  ;;  %16158 = vst [vmem:[#allocation84_spill] sm:$0xff] %v13778_v53  ;;  %10649 = vmatprep.mubr.msk.bf16.mxu0 %vm1927_vm0, %v12212_v32  ;;  %10713 = vmatprep.mubr.msk.bf16.mxu1 %vm1927_vm0, %v12214_v29 }
 0x1f2   : > { %v2596_v43 = vpop.f32.mrf.mxu0  ;;  %v3108_v55 = vpop.f32.mrf.mxu1 }
 0x1f4   : > { %v13782_v7 = vpop.f32.mrf.mxu0  ;;  %v13784_v52 = vpop.f32.mrf.mxu1 }
 0x1f5   : > { %16159 = vst [vmem:[#allocation85_spill] sm:$0xff] %v13782_v7  ;;  %16160 = vst [vmem:[#allocation86_spill] sm:$0xff] %v13784_v52  ;;  %v12222_v7 = vld [vmem:[%s13086_s7 + $0x490] ss:$8 sps:$4 sm:$0xff]  }
 0x1f6   : > { %v2599_v53 = vpop.f32.mrf.mxu0  ;;  %v3111_v19 = vpop.f32.mrf.mxu1 }
 0x1f7   : > { %v12223_v53 = vld [vmem:[%s13086_s7 + $0x890] ss:$8 sps:$4 sm:$0xff]   ;;  %v12226_v19 = vld [vmem:[%s13086_s7 + $0x4a4] ss:$8 sps:$4 sm:$0xff]  }
 0x1f8   : > { %v13790_v62 = vpop.f32.mrf.mxu0  ;;  %2793 = vmatmul.mubr.bf16.gmra.mxu0 %v12216_v5  ;;  %v13792_v32 = vpop.f32.mrf.mxu1  ;;  %3305 = vmatmul.mubr.bf16.gmra.mxu1 %v12217_v30  ;;  %v12228_v5 = vld [vmem:[%s13086_s7 + $0x8a4] ss:$8 sps:$4 sm:$0xff]  }
 0x1f9   : > { %16161 = vst [vmem:[#allocation87_spill] sm:$0xff] %v13790_v62  ;;  %16162 = vst [vmem:[#allocation88_spill] sm:$0xff] %v13792_v32  ;;  %10650 = vmatprep.mubr.msk.bf16.mxu0 %vm1927_vm0, %v12218_v58  ;;  %10714 = vmatprep.mubr.msk.bf16.mxu1 %vm1927_vm0, %v12220_v17 }
 0x1fa   : > { %v2604_v29 = vpop.f32.mrf.mxu0  ;;  %v3116_v43 = vpop.f32.mrf.mxu1 }
 0x1fc   : > { %v13796_v55 = vpop.f32.mrf.mxu0  ;;  %v13798_v52 = vpop.f32.mrf.mxu1 }
 0x1fd   : > { %16163 = vst [vmem:[#allocation89_spill] sm:$0xff] %v13796_v55  ;;  %16164 = vst [vmem:[#allocation90_spill] sm:$0xff] %v13798_v52  ;;  %v12230_v55 = vld [vmem:[%s13086_s7 + $0x4a0] ss:$8 sps:$4 sm:$0xff]  }
 0x1fe   : > { %v2607_v32 = vpop.f32.mrf.mxu0  ;;  %v3119_v30 = vpop.f32.mrf.mxu1 }
 0x1ff   : > { %v12231_v32 = vld [vmem:[%s13086_s7 + $0x8a0] ss:$8 sps:$4 sm:$0xff]   ;;  %v12232_v30 = vld [vmem:[%s13086_s7 + $0x4b4] ss:$8 sps:$4 sm:$0xff]  }
 0x200   : > { %v13804_v62 = vpop.f32.mrf.mxu0  ;;  %2801 = vmatmul.mubr.bf16.gmra.mxu0 %v12222_v7  ;;  %v13806_v58 = vpop.f32.mrf.mxu1  ;;  %3313 = vmatmul.mubr.bf16.gmra.mxu1 %v12223_v53  ;;  %v12234_v7 = vld [vmem:[%s13086_s7 + $0x8b4] ss:$8 sps:$4 sm:$0xff]  }
 0x201   : > { %16165 = vst [vmem:[#allocation91_spill] sm:$0xff] %v13804_v62  ;;  %16166 = vst [vmem:[#allocation92_spill] sm:$0xff] %v13806_v58  ;;  %10651 = vmatprep.mubr.msk.bf16.mxu0 %vm1927_vm0, %v12226_v19  ;;  %10715 = vmatprep.mubr.msk.bf16.mxu1 %vm1927_vm0, %v12228_v5 }
 0x202   : > { %v2612_v17 = vpop.f32.mrf.mxu0  ;;  %v3124_v29 = vpop.f32.mrf.mxu1 }
 0x204   : > { %v13810_v43 = vpop.f32.mrf.mxu0  ;;  %v13812_v52 = vpop.f32.mrf.mxu1 }
 0x205   : > { %16167 = vst [vmem:[#allocation93_spill] sm:$0xff] %v13810_v43  ;;  %16168 = vst [vmem:[#allocation94_spill] sm:$0xff] %v13812_v52  ;;  %v12236_v43 = vld [vmem:[%s13086_s7 + $0x4b0] ss:$8 sps:$4 sm:$0xff]  }
 0x206   : > { %v2615_v58 = vpop.f32.mrf.mxu0  ;;  %v3127_v53 = vpop.f32.mrf.mxu1 }
 0x207   : > { %v12237_v58 = vld [vmem:[%s13086_s7 + $0x8b0] ss:$8 sps:$4 sm:$0xff]   ;;  %v12238_v53 = vld [vmem:[%s13086_s7 + $0x4c4] ss:$8 sps:$4 sm:$0xff]  }
 0x208   : > { %v13818_v62 = vpop.f32.mrf.mxu0  ;;  %2809 = vmatmul.mubr.bf16.gmra.mxu0 %v12230_v55  ;;  %v13820_v19 = vpop.f32.mrf.mxu1  ;;  %3321 = vmatmul.mubr.bf16.gmra.mxu1 %v12231_v32  ;;  %v12240_v55 = vld [vmem:[%s13086_s7 + $0x8c4] ss:$8 sps:$4 sm:$0xff]  }
 0x209   : > { %16169 = vst [vmem:[#allocation95_spill] sm:$0xff] %v13818_v62  ;;  %16170 = vst [vmem:[#allocation96_spill] sm:$0xff] %v13820_v19  ;;  %10652 = vmatprep.mubr.msk.bf16.mxu0 %vm1927_vm0, %v12232_v30  ;;  %10716 = vmatprep.mubr.msk.bf16.mxu1 %vm1927_vm0, %v12234_v7 }
 0x20a   : > { %v2620_v5 = vpop.f32.mrf.mxu0  ;;  %v3132_v17 = vpop.f32.mrf.mxu1 }
 0x20c   : > { %v13824_v29 = vpop.f32.mrf.mxu0  ;;  %v13826_v52 = vpop.f32.mrf.mxu1 }
 0x20d   : > { %16171 = vst [vmem:[#allocation97_spill] sm:$0xff] %v13824_v29  ;;  %16172 = vst [vmem:[#allocation98_spill] sm:$0xff] %v13826_v52  ;;  %v12242_v29 = vld [vmem:[%s13086_s7 + $0x4c0] ss:$8 sps:$4 sm:$0xff]  }
 0x20e   : > { %v2623_v19 = vpop.f32.mrf.mxu0  ;;  %v3135_v32 = vpop.f32.mrf.mxu1 }
 0x20f   : > { %v12243_v19 = vld [vmem:[%s13086_s7 + $0x8c0] ss:$8 sps:$4 sm:$0xff]   ;;  %v12244_v32 = vld [vmem:[%s13086_s7 + $0x4d4] ss:$8 sps:$4 sm:$0xff]  }
 0x210   : > { %v13832_v62 = vpop.f32.mrf.mxu0  ;;  %2817 = vmatmul.mubr.bf16.gmra.mxu0 %v12236_v43  ;;  %v13834_v30 = vpop.f32.mrf.mxu1  ;;  %3329 = vmatmul.mubr.bf16.gmra.mxu1 %v12237_v58  ;;  %v12246_v43 = vld [vmem:[%s13086_s7 + $0x8d4] ss:$8 sps:$4 sm:$0xff]  }
 0x211   : > { %16173 = vst [vmem:[#allocation99_spill] sm:$0xff] %v13832_v62  ;;  %16174 = vst [vmem:[#allocation100_spill] sm:$0xff] %v13834_v30  ;;  %10653 = vmatprep.mubr.msk.bf16.mxu0 %vm1927_vm0, %v12238_v53  ;;  %10717 = vmatprep.mubr.msk.bf16.mxu1 %vm1927_vm0, %v12240_v55 }
 0x212   : > { %v2628_v7 = vpop.f32.mrf.mxu0  ;;  %v3140_v5 = vpop.f32.mrf.mxu1 }
 0x214   : > { %v13838_v17 = vpop.f32.mrf.mxu0  ;;  %v13840_v52 = vpop.f32.mrf.mxu1 }
 0x215   : > { %16175 = vst [vmem:[#allocation101_spill] sm:$0xff] %v13838_v17  ;;  %16176 = vst [vmem:[#allocation102_spill] sm:$0xff] %v13840_v52  ;;  %v12248_v17 = vld [vmem:[%s13086_s7 + $0x4d0] ss:$8 sps:$4 sm:$0xff]  }
 0x216   : > { %v2631_v30 = vpop.f32.mrf.mxu0  ;;  %v3143_v58 = vpop.f32.mrf.mxu1 }
 0x217   : > { %v12249_v30 = vld [vmem:[%s13086_s7 + $0x8d0] ss:$8 sps:$4 sm:$0xff]   ;;  %v12250_v58 = vld [vmem:[%s13086_s7 + $0x4e4] ss:$8 sps:$4 sm:$0xff]  }
 0x218   : > { %v13846_v62 = vpop.f32.mrf.mxu0  ;;  %2825 = vmatmul.mubr.bf16.gmra.mxu0 %v12242_v29  ;;  %v13848_v53 = vpop.f32.mrf.mxu1  ;;  %3337 = vmatmul.mubr.bf16.gmra.mxu1 %v12243_v19  ;;  %v12252_v29 = vld [vmem:[%s13086_s7 + $0x8e4] ss:$8 sps:$4 sm:$0xff]  }
 0x219   : > { %16177 = vst [vmem:[#allocation103_spill] sm:$0xff] %v13846_v62  ;;  %16178 = vst [vmem:[#allocation104_spill] sm:$0xff] %v13848_v53  ;;  %10654 = vmatprep.mubr.msk.bf16.mxu0 %vm1927_vm0, %v12244_v32  ;;  %10718 = vmatprep.mubr.msk.bf16.mxu1 %vm1927_vm0, %v12246_v43 }
 0x21a   : > { %v2636_v55 = vpop.f32.mrf.mxu0  ;;  %v3148_v7 = vpop.f32.mrf.mxu1 }
 0x21c   : > { %v13852_v5 = vpop.f32.mrf.mxu0  ;;  %v13854_v52 = vpop.f32.mrf.mxu1 }
 0x21d   : > { %16179 = vst [vmem:[#allocation105_spill] sm:$0xff] %v13852_v5  ;;  %16180 = vst [vmem:[#allocation106_spill] sm:$0xff] %v13854_v52  ;;  %v12254_v5 = vld [vmem:[%s13086_s7 + $0x4e0] ss:$8 sps:$4 sm:$0xff]  }
 0x21e   : > { %v2639_v53 = vpop.f32.mrf.mxu0  ;;  %v3151_v19 = vpop.f32.mrf.mxu1 }
 0x21f   : > { %v12255_v53 = vld [vmem:[%s13086_s7 + $0x8e0] ss:$8 sps:$4 sm:$0xff]   ;;  %v12256_v19 = vld [vmem:[%s13086_s7 + $0x4f4] ss:$8 sps:$4 sm:$0xff]  }
 0x220   : > { %v13860_v62 = vpop.f32.mrf.mxu0  ;;  %2833 = vmatmul.mubr.bf16.gmra.mxu0 %v12248_v17  ;;  %v13862_v32 = vpop.f32.mrf.mxu1  ;;  %3345 = vmatmul.mubr.bf16.gmra.mxu1 %v12249_v30  ;;  %v12258_v17 = vld [vmem:[%s13086_s7 + $0x8f4] ss:$8 sps:$4 sm:$0xff]  }
 0x221   : > { %16181 = vst [vmem:[#allocation107_spill] sm:$0xff] %v13860_v62  ;;  %16182 = vst [vmem:[#allocation108_spill] sm:$0xff] %v13862_v32  ;;  %10655 = vmatprep.mubr.msk.bf16.mxu0 %vm1927_vm0, %v12250_v58  ;;  %10719 = vmatprep.mubr.msk.bf16.mxu1 %vm1927_vm0, %v12252_v29 }
 0x222   : > { %v2644_v43 = vpop.f32.mrf.mxu0  ;;  %v3156_v55 = vpop.f32.mrf.mxu1 }
 0x224   : > { %v13866_v7 = vpop.f32.mrf.mxu0  ;;  %v13868_v52 = vpop.f32.mrf.mxu1 }
 0x225   : > { %16183 = vst [vmem:[#allocation109_spill] sm:$0xff] %v13866_v7  ;;  %16184 = vst [vmem:[#allocation110_spill] sm:$0xff] %v13868_v52  ;;  %v12260_v7 = vld [vmem:[%s13086_s7 + $0x4f0] ss:$8 sps:$4 sm:$0xff]  }
 0x226   : > { %v2647_v32 = vpop.f32.mrf.mxu0  ;;  %v3159_v30 = vpop.f32.mrf.mxu1 }
 0x227   : > { %v12261_v32 = vld [vmem:[%s13086_s7 + $0x8f0] ss:$8 sps:$4 sm:$0xff]   ;;  %v12264_v30 = vld [vmem:[%s13086_s7 + $0x4] ss:$8 sps:$4 sm:$0xff]  }
 0x228   : > { %v13874_v62 = vpop.f32.mrf.mxu0  ;;  %2841 = vmatmul.mubr.bf16.gmra.mxu0 %v12254_v5  ;;  %v13876_v58 = vpop.f32.mrf.mxu1  ;;  %3353 = vmatmul.mubr.bf16.gmra.mxu1 %v12255_v53  ;;  %v12267_v5 = vld [vmem:[%s13086_s7 + $0x204] ss:$8 sps:$4 sm:$0xff]  }
 0x229   : > { %16185 = vst [vmem:[#allocation111_spill] sm:$0xff] %v13874_v62  ;;  %16186 = vst [vmem:[#allocation112_spill] sm:$0xff] %v13876_v58  ;;  %10656 = vmatprep.mubr.msk.bf16.mxu0 %vm1927_vm0, %v12256_v19  ;;  %10720 = vmatprep.mubr.msk.bf16.mxu1 %vm1927_vm0, %v12258_v17 }
 0x22a   : > { %v2652_v29 = vpop.f32.mrf.mxu0  ;;  %v3164_v43 = vpop.f32.mrf.mxu1 }
 0x22c   : > { %v13880_v55 = vpop.f32.mrf.mxu0  ;;  %v13882_v52 = vpop.f32.mrf.mxu1 }
 0x22d   : > { %16187 = vst [vmem:[#allocation113_spill] sm:$0xff] %v13880_v55  ;;  %16188 = vst [vmem:[#allocation114_spill] sm:$0xff] %v13882_v52  ;;  %v12262_v55 = vld [vmem:[%s13086_s7] ss:$8 sps:$4 sm:$0xff]  }
 0x22e   : > { %v2655_v58 = vpop.f32.mrf.mxu0  ;;  %v3167_v53 = vpop.f32.mrf.mxu1 }
 0x22f   : > { %v12265_v58 = vld [vmem:[%s13086_s7 + $0x200] ss:$8 sps:$4 sm:$0xff]   ;;  %v12268_v53 = vld [vmem:[%s13086_s7 + $0x14] ss:$8 sps:$4 sm:$0xff]  }
 0x230   : > { %v13888_v62 = vpop.f32.mrf.mxu0  ;;  %2849 = vmatmul.mubr.bf16.gmra.mxu0 %v12260_v7  ;;  %v13890_v19 = vpop.f32.mrf.mxu1  ;;  %3361 = vmatmul.mubr.bf16.gmra.mxu1 %v12261_v32  ;;  %v12270_v7 = vld [vmem:[%s13086_s7 + $0x214] ss:$8 sps:$4 sm:$0xff]  }
 0x231   : > { %16189 = vst [vmem:[#allocation115_spill] sm:$0xff] %v13888_v62  ;;  %16190 = vst [vmem:[#allocation116_spill] sm:$0xff] %v13890_v19  ;;  %10986 = vmatprep.mubr.msk.bf16.mxu1 %vm1927_vm0, %v12264_v30  ;;  %11653 = vmatprep.mubr.msk.bf16.mxu0 %vm1927_vm0, %v12267_v5 }
 0x232   : > { %v2660_v17 = vpop.f32.mrf.mxu0  ;;  %v3172_v29 = vpop.f32.mrf.mxu1 }
 0x234   : > { %v13894_v43 = vpop.f32.mrf.mxu0  ;;  %v13896_v52 = vpop.f32.mrf.mxu1 }
 0x235   : > { %16191 = vst [vmem:[#allocation117_spill] sm:$0xff] %v13894_v43  ;;  %16192 = vst [vmem:[#allocation118_spill] sm:$0xff] %v13896_v52  ;;  %v12272_v43 = vld [vmem:[%s13086_s7 + $0x10] ss:$8 sps:$4 sm:$0xff]  }
 0x236   : > { %v2663_v19 = vpop.f32.mrf.mxu0  ;;  %v3175_v32 = vpop.f32.mrf.mxu1 }
 0x237   : > { %v12273_v19 = vld [vmem:[%s13086_s7 + $0x210] ss:$8 sps:$4 sm:$0xff]   ;;  %v12274_v32 = vld [vmem:[%s13086_s7 + $0x24] ss:$8 sps:$4 sm:$0xff]  }
 0x238   : > { %v13902_v62 = vpop.f32.mrf.mxu0  ;;  %v13904_v30 = vpop.f32.mrf.mxu1  ;;  %4992 = vmatmul.mubr.bf16.vlgmr.msra.gmra.mxu1 %v12262_v55  ;;  %7915 = vmatmul.mubr.bf16.vlgmr.msra.gmra.mxu0 %v12265_v58 }
 0x239   : > { %16193 = vst [vmem:[#allocation119_spill] sm:$0xff] %v13902_v62  ;;  %16194 = vst [vmem:[#allocation120_spill] sm:$0xff] %v13904_v30  ;;  %10987 = vmatprep.mubr.msk.bf16.mxu1 %vm1927_vm0, %v12268_v53  ;;  %11654 = vmatprep.mubr.msk.bf16.mxu0 %vm1927_vm0, %v12270_v7  ;;  %v12276_v62 = vld [vmem:[%s13086_s7 + $0x224] ss:$8 sps:$4 sm:$0xff]  }
 0x23a   : > { %v2668_v5 = vpop.f32.mrf.mxu0  ;;  %v3180_v17 = vpop.f32.mrf.mxu1 }
 0x23c   : > { %v13908_v29 = vpop.f32.mrf.mxu0  ;;  %v13910_v52 = vpop.f32.mrf.mxu1 }
 0x23d   : > { %16195 = vst [vmem:[#allocation121_spill] sm:$0xff] %v13908_v29  ;;  %16196 = vst [vmem:[#allocation122_spill] sm:$0xff] %v13910_v52  ;;  %v12278_v29 = vld [vmem:[%s13086_s7 + $0x20] ss:$8 sps:$4 sm:$0xff]  }
 0x23e   : > { %v2671_v55 = vpop.f32.mrf.mxu0  ;;  %v3183_v58 = vpop.f32.mrf.mxu1 }
 0x23f   : > { %v12279_v55 = vld [vmem:[%s13086_s7 + $0x220] ss:$8 sps:$4 sm:$0xff]   ;;  %v12280_v58 = vld [vmem:[%s13086_s7 + $0x34] ss:$8 sps:$4 sm:$0xff]  }
 0x240   : > { %v13916_v30 = vpop.f32.mrf.mxu0  ;;  %v13918_v53 = vpop.f32.mrf.mxu1  ;;  %5000 = vmatmul.mubr.bf16.gmra.mxu1 %v12272_v43  ;;  %7923 = vmatmul.mubr.bf16.gmra.mxu0 %v12273_v19 }
 0x241   : > { %16197 = vst [vmem:[#allocation123_spill] sm:$0xff] %v13916_v30  ;;  %16198 = vst [vmem:[#allocation124_spill] sm:$0xff] %v13918_v53  ;;  %10988 = vmatprep.mubr.msk.bf16.mxu1 %vm1927_vm0, %v12274_v32  ;;  %11655 = vmatprep.mubr.msk.bf16.mxu0 %vm1927_vm0, %v12276_v62  ;;  %v12282_v30 = vld [vmem:[%s13086_s7 + $0x234] ss:$8 sps:$4 sm:$0xff]  }
 0x242   : > { %v2676_v7 = vpop.f32.mrf.mxu0  ;;  %v3188_v5 = vpop.f32.mrf.mxu1 }
 0x244   : > { %v13922_v17 = vpop.f32.mrf.mxu0  ;;  %v13924_v52 = vpop.f32.mrf.mxu1 }
 0x245   : > { %16199 = vst [vmem:[#allocation125_spill] sm:$0xff] %v13922_v17  ;;  %16200 = vst [vmem:[#allocation126_spill] sm:$0xff] %v13924_v52  ;;  %v12284_v17 = vld [vmem:[%s13086_s7 + $0x30] ss:$8 sps:$4 sm:$0xff]  }
 0x246   : > { %v2679_v43 = vpop.f32.mrf.mxu0  ;;  %v3191_v19 = vpop.f32.mrf.mxu1 }
 0x247   : > { %v12285_v43 = vld [vmem:[%s13086_s7 + $0x230] ss:$8 sps:$4 sm:$0xff]   ;;  %v12286_v19 = vld [vmem:[%s13086_s7 + $0x44] ss:$8 sps:$4 sm:$0xff]  }
 0x248   : > { %v13930_v53 = vpop.f32.mrf.mxu0  ;;  %v13932_v32 = vpop.f32.mrf.mxu1  ;;  %5008 = vmatmul.mubr.bf16.gmra.mxu1 %v12278_v29  ;;  %7931 = vmatmul.mubr.bf16.gmra.mxu0 %v12279_v55 }
 0x249   : > { %16201 = vst [vmem:[#allocation127_spill] sm:$0xff] %v13930_v53  ;;  %16202 = vst [vmem:[#allocation128_spill] sm:$0xff] %v13932_v32  ;;  %10989 = vmatprep.mubr.msk.bf16.mxu1 %vm1927_vm0, %v12280_v58  ;;  %11656 = vmatprep.mubr.msk.bf16.mxu0 %vm1927_vm0, %v12282_v30  ;;  %v12288_v53 = vld [vmem:[%s13086_s7 + $0x244] ss:$8 sps:$4 sm:$0xff]  }
 0x24a   : > { %v2684_v62 = vpop.f32.mrf.mxu0  ;;  %v3196_v7 = vpop.f32.mrf.mxu1 }
 0x24c   : > { %v13936_v5 = vpop.f32.mrf.mxu0  ;;  %v13938_v52 = vpop.f32.mrf.mxu1 }
 0x24d   : > { %16203 = vst [vmem:[#allocation129_spill] sm:$0xff] %v13936_v5  ;;  %16204 = vst [vmem:[#allocation130_spill] sm:$0xff] %v13938_v52  ;;  %v12290_v5 = vld [vmem:[%s13086_s7 + $0x40] ss:$8 sps:$4 sm:$0xff]  }
 0x24e   : > { %v2687_v29 = vpop.f32.mrf.mxu0  ;;  %v3199_v55 = vpop.f32.mrf.mxu1 }
 0x24f   : > { %v12291_v29 = vld [vmem:[%s13086_s7 + $0x240] ss:$8 sps:$4 sm:$0xff]   ;;  %v12292_v55 = vld [vmem:[%s13086_s7 + $0x54] ss:$8 sps:$4 sm:$0xff]  }
 0x250   : > { %v13944_v32 = vpop.f32.mrf.mxu0  ;;  %v13946_v58 = vpop.f32.mrf.mxu1  ;;  %5016 = vmatmul.mubr.bf16.gmra.mxu1 %v12284_v17  ;;  %7939 = vmatmul.mubr.bf16.gmra.mxu0 %v12285_v43 }
 0x251   : > { %16205 = vst [vmem:[#allocation131_spill] sm:$0xff] %v13944_v32  ;;  %16206 = vst [vmem:[#allocation132_spill] sm:$0xff] %v13946_v58  ;;  %10990 = vmatprep.mubr.msk.bf16.mxu1 %vm1927_vm0, %v12286_v19  ;;  %11657 = vmatprep.mubr.msk.bf16.mxu0 %vm1927_vm0, %v12288_v53  ;;  %v12294_v32 = vld [vmem:[%s13086_s7 + $0x254] ss:$8 sps:$4 sm:$0xff]  }
 0x252   : > { %v2692_v30 = vpop.f32.mrf.mxu0  ;;  %v3204_v62 = vpop.f32.mrf.mxu1 }
 0x254   : > { %v13950_v7 = vpop.f32.mrf.mxu0  ;;  %v13952_v52 = vpop.f32.mrf.mxu1 }
 0x255   : > { %16207 = vst [vmem:[#allocation133_spill] sm:$0xff] %v13950_v7  ;;  %16208 = vst [vmem:[#allocation134_spill] sm:$0xff] %v13952_v52  ;;  %v12296_v7 = vld [vmem:[%s13086_s7 + $0x50] ss:$8 sps:$4 sm:$0xff]  }
 0x256   : > { %v2695_v17 = vpop.f32.mrf.mxu0  ;;  %v3207_v43 = vpop.f32.mrf.mxu1 }
 0x257   : > { %v12297_v17 = vld [vmem:[%s13086_s7 + $0x250] ss:$8 sps:$4 sm:$0xff]   ;;  %v12298_v43 = vld [vmem:[%s13086_s7 + $0x64] ss:$8 sps:$4 sm:$0xff]  }
 0x258   : > { %v13958_v58 = vpop.f32.mrf.mxu0  ;;  %v13960_v19 = vpop.f32.mrf.mxu1  ;;  %5024 = vmatmul.mubr.bf16.gmra.mxu1 %v12290_v5  ;;  %7947 = vmatmul.mubr.bf16.gmra.mxu0 %v12291_v29 }
 0x259   : > { %16209 = vst [vmem:[#allocation135_spill] sm:$0xff] %v13958_v58  ;;  %16210 = vst [vmem:[#allocation136_spill] sm:$0xff] %v13960_v19  ;;  %10991 = vmatprep.mubr.msk.bf16.mxu1 %vm1927_vm0, %v12292_v55  ;;  %11658 = vmatprep.mubr.msk.bf16.mxu0 %vm1927_vm0, %v12294_v32  ;;  %v12300_v58 = vld [vmem:[%s13086_s7 + $0x264] ss:$8 sps:$4 sm:$0xff]  }
 0x25a   : > { %v2700_v53 = vpop.f32.mrf.mxu0  ;;  %v3212_v30 = vpop.f32.mrf.mxu1 }
 0x25c   : > { %v13964_v62 = vpop.f32.mrf.mxu0  ;;  %v13966_v52 = vpop.f32.mrf.mxu1 }
 0x25d   : > { %16211 = vst [vmem:[#allocation137_spill] sm:$0xff] %v13964_v62  ;;  %16212 = vst [vmem:[#allocation138_spill] sm:$0xff] %v13966_v52  ;;  %v12302_v62 = vld [vmem:[%s13086_s7 + $0x60] ss:$8 sps:$4 sm:$0xff]  }
 0x25e   : > { %v2703_v5 = vpop.f32.mrf.mxu0  ;;  %v3215_v29 = vpop.f32.mrf.mxu1 }
 0x25f   : > { %v12303_v5 = vld [vmem:[%s13086_s7 + $0x260] ss:$8 sps:$4 sm:$0xff]   ;;  %v12304_v29 = vld [vmem:[%s13086_s7 + $0x74] ss:$8 sps:$4 sm:$0xff]  }
 0x260   : > { %v13972_v19 = vpop.f32.mrf.mxu0  ;;  %v13974_v55 = vpop.f32.mrf.mxu1  ;;  %5032 = vmatmul.mubr.bf16.gmra.mxu1 %v12296_v7  ;;  %7955 = vmatmul.mubr.bf16.gmra.mxu0 %v12297_v17 }
 0x261   : > { %16213 = vst [vmem:[#allocation139_spill] sm:$0xff] %v13972_v19  ;;  %16214 = vst [vmem:[#allocation140_spill] sm:$0xff] %v13974_v55  ;;  %10992 = vmatprep.mubr.msk.bf16.mxu1 %vm1927_vm0, %v12298_v43  ;;  %11659 = vmatprep.mubr.msk.bf16.mxu0 %vm1927_vm0, %v12300_v58  ;;  %v12306_v19 = vld [vmem:[%s13086_s7 + $0x274] ss:$8 sps:$4 sm:$0xff]  }
 0x262   : > { %v2708_v32 = vpop.f32.mrf.mxu0  ;;  %v3220_v53 = vpop.f32.mrf.mxu1 }
 0x264   : > { %v13978_v30 = vpop.f32.mrf.mxu0  ;;  %v13980_v52 = vpop.f32.mrf.mxu1 }
 0x265   : > { %16215 = vst [vmem:[#allocation141_spill] sm:$0xff] %v13978_v30  ;;  %16216 = vst [vmem:[#allocation142_spill] sm:$0xff] %v13980_v52  ;;  %v12308_v30 = vld [vmem:[%s13086_s7 + $0x70] ss:$8 sps:$4 sm:$0xff]  }
 0x266   : > { %v2711_v7 = vpop.f32.mrf.mxu0  ;;  %v3223_v17 = vpop.f32.mrf.mxu1 }
 0x267   : > { %v12309_v7 = vld [vmem:[%s13086_s7 + $0x270] ss:$8 sps:$4 sm:$0xff]   ;;  %v12310_v17 = vld [vmem:[%s13086_s7 + $0x84] ss:$8 sps:$4 sm:$0xff]  }
 0x268   : > { %v13986_v55 = vpop.f32.mrf.mxu0  ;;  %v13988_v43 = vpop.f32.mrf.mxu1  ;;  %5040 = vmatmul.mubr.bf16.gmra.mxu1 %v12302_v62  ;;  %7963 = vmatmul.mubr.bf16.gmra.mxu0 %v12303_v5 }
 0x269   : > { %16217 = vst [vmem:[#allocation143_spill] sm:$0xff] %v13986_v55  ;;  %16218 = vst [vmem:[#allocation144_spill] sm:$0xff] %v13988_v43  ;;  %10993 = vmatprep.mubr.msk.bf16.mxu1 %vm1927_vm0, %v12304_v29  ;;  %11660 = vmatprep.mubr.msk.bf16.mxu0 %vm1927_vm0, %v12306_v19  ;;  %v12312_v55 = vld [vmem:[%s13086_s7 + $0x284] ss:$8 sps:$4 sm:$0xff]  }
 0x26a   : > { %v2716_v58 = vpop.f32.mrf.mxu0  ;;  %v3228_v32 = vpop.f32.mrf.mxu1 }
 0x26c   : > { %v13992_v53 = vpop.f32.mrf.mxu0  ;;  %v13994_v52 = vpop.f32.mrf.mxu1 }
 0x26d   : > { %16219 = vst [vmem:[#allocation145_spill] sm:$0xff] %v13992_v53  ;;  %16220 = vst [vmem:[#allocation146_spill] sm:$0xff] %v13994_v52  ;;  %v12314_v53 = vld [vmem:[%s13086_s7 + $0x80] ss:$8 sps:$4 sm:$0xff]  }
 0x26e   : > { %v2719_v62 = vpop.f32.mrf.mxu0  ;;  %v3231_v5 = vpop.f32.mrf.mxu1 }
 0x26f   : > { %v12315_v62 = vld [vmem:[%s13086_s7 + $0x280] ss:$8 sps:$4 sm:$0xff]   ;;  %v12316_v5 = vld [vmem:[%s13086_s7 + $0x94] ss:$8 sps:$4 sm:$0xff]  }
 0x270   : > { %v14000_v43 = vpop.f32.mrf.mxu0  ;;  %v14002_v29 = vpop.f32.mrf.mxu1  ;;  %5048 = vmatmul.mubr.bf16.gmra.mxu1 %v12308_v30  ;;  %7971 = vmatmul.mubr.bf16.gmra.mxu0 %v12309_v7 }
 0x271   : > { %16221 = vst [vmem:[#allocation147_spill] sm:$0xff] %v14000_v43  ;;  %16222 = vst [vmem:[#allocation148_spill] sm:$0xff] %v14002_v29  ;;  %10994 = vmatprep.mubr.msk.bf16.mxu1 %vm1927_vm0, %v12310_v17  ;;  %11661 = vmatprep.mubr.msk.bf16.mxu0 %vm1927_vm0, %v12312_v55  ;;  %v12318_v43 = vld [vmem:[%s13086_s7 + $0x294] ss:$8 sps:$4 sm:$0xff]  }
 0x272   : > { %v2724_v19 = vpop.f32.mrf.mxu0  ;;  %v3236_v58 = vpop.f32.mrf.mxu1 }
 0x274   : > { %v14006_v32 = vpop.f32.mrf.mxu0  ;;  %v14008_v52 = vpop.f32.mrf.mxu1 }
 0x275   : > { %16223 = vst [vmem:[#allocation149_spill] sm:$0xff] %v14006_v32  ;;  %16224 = vst [vmem:[#allocation150_spill] sm:$0xff] %v14008_v52  ;;  %v12320_v32 = vld [vmem:[%s13086_s7 + $0x90] ss:$8 sps:$4 sm:$0xff]  }
 0x276   : > { %v2727_v30 = vpop.f32.mrf.mxu0  ;;  %v3239_v7 = vpop.f32.mrf.mxu1 }
 0x277   : > { %v12321_v30 = vld [vmem:[%s13086_s7 + $0x290] ss:$8 sps:$4 sm:$0xff]   ;;  %v12322_v7 = vld [vmem:[%s13086_s7 + $0xa4] ss:$8 sps:$4 sm:$0xff]  }
 0x278   : > { %v14014_v29 = vpop.f32.mrf.mxu0  ;;  %v14016_v17 = vpop.f32.mrf.mxu1  ;;  %5056 = vmatmul.mubr.bf16.gmra.mxu1 %v12314_v53  ;;  %7979 = vmatmul.mubr.bf16.gmra.mxu0 %v12315_v62 }
 0x279   : > { %16225 = vst [vmem:[#allocation151_spill] sm:$0xff] %v14014_v29  ;;  %16226 = vst [vmem:[#allocation152_spill] sm:$0xff] %v14016_v17  ;;  %10995 = vmatprep.mubr.msk.bf16.mxu1 %vm1927_vm0, %v12316_v5  ;;  %11662 = vmatprep.mubr.msk.bf16.mxu0 %vm1927_vm0, %v12318_v43  ;;  %v12324_v29 = vld [vmem:[%s13086_s7 + $0x2a4] ss:$8 sps:$4 sm:$0xff]  }
 0x27a   : > { %v2732_v55 = vpop.f32.mrf.mxu0  ;;  %v3244_v19 = vpop.f32.mrf.mxu1 }
 0x27c   : > { %v14020_v58 = vpop.f32.mrf.mxu0  ;;  %v14022_v52 = vpop.f32.mrf.mxu1 }
 0x27d   : > { %16227 = vst [vmem:[#allocation153_spill] sm:$0xff] %v14020_v58  ;;  %16228 = vst [vmem:[#allocation154_spill] sm:$0xff] %v14022_v52  ;;  %v12326_v58 = vld [vmem:[%s13086_s7 + $0xa0] ss:$8 sps:$4 sm:$0xff]  }
 0x27e   : > { %v2735_v53 = vpop.f32.mrf.mxu0  ;;  %v3247_v62 = vpop.f32.mrf.mxu1 }
 0x27f   : > { %v12327_v53 = vld [vmem:[%s13086_s7 + $0x2a0] ss:$8 sps:$4 sm:$0xff]   ;;  %v12328_v62 = vld [vmem:[%s13086_s7 + $0xb4] ss:$8 sps:$4 sm:$0xff]  }
 0x280   : > { %v14028_v17 = vpop.f32.mrf.mxu0  ;;  %v14030_v5 = vpop.f32.mrf.mxu1  ;;  %5064 = vmatmul.mubr.bf16.gmra.mxu1 %v12320_v32  ;;  %7987 = vmatmul.mubr.bf16.gmra.mxu0 %v12321_v30 }
 0x281   : > { %16229 = vst [vmem:[#allocation155_spill] sm:$0xff] %v14028_v17  ;;  %16230 = vst [vmem:[#allocation156_spill] sm:$0xff] %v14030_v5  ;;  %10996 = vmatprep.mubr.msk.bf16.mxu1 %vm1927_vm0, %v12322_v7  ;;  %11663 = vmatprep.mubr.msk.bf16.mxu0 %vm1927_vm0, %v12324_v29  ;;  %v12330_v17 = vld [vmem:[%s13086_s7 + $0x2b4] ss:$8 sps:$4 sm:$0xff]  }
 0x282   : > { %v2740_v43 = vpop.f32.mrf.mxu0  ;;  %v3252_v55 = vpop.f32.mrf.mxu1 }
 0x284   : > { %v14034_v19 = vpop.f32.mrf.mxu0  ;;  %v14036_v52 = vpop.f32.mrf.mxu1 }
 0x285   : > { %16231 = vst [vmem:[#allocation157_spill] sm:$0xff] %v14034_v19  ;;  %16232 = vst [vmem:[#allocation158_spill] sm:$0xff] %v14036_v52  ;;  %v12332_v19 = vld [vmem:[%s13086_s7 + $0xb0] ss:$8 sps:$4 sm:$0xff]  }
 0x286   : > { %v2743_v32 = vpop.f32.mrf.mxu0  ;;  %v3255_v30 = vpop.f32.mrf.mxu1 }
 0x287   : > { %v12333_v32 = vld [vmem:[%s13086_s7 + $0x2b0] ss:$8 sps:$4 sm:$0xff]   ;;  %v12334_v30 = vld [vmem:[%s13086_s7 + $0xc4] ss:$8 sps:$4 sm:$0xff]  }
 0x288   : > { %v14042_v5 = vpop.f32.mrf.mxu0  ;;  %v14044_v7 = vpop.f32.mrf.mxu1  ;;  %5072 = vmatmul.mubr.bf16.gmra.mxu1 %v12326_v58  ;;  %7995 = vmatmul.mubr.bf16.gmra.mxu0 %v12327_v53 }
 0x289   : > { %16233 = vst [vmem:[#allocation159_spill] sm:$0xff] %v14042_v5  ;;  %16234 = vst [vmem:[#allocation160_spill] sm:$0xff] %v14044_v7  ;;  %10997 = vmatprep.mubr.msk.bf16.mxu1 %vm1927_vm0, %v12328_v62  ;;  %11664 = vmatprep.mubr.msk.bf16.mxu0 %vm1927_vm0, %v12330_v17  ;;  %v12336_v5 = vld [vmem:[%s13086_s7 + $0x2c4] ss:$8 sps:$4 sm:$0xff]  }
 0x28a   : > { %v2748_v29 = vpop.f32.mrf.mxu0  ;;  %v3260_v43 = vpop.f32.mrf.mxu1 }
 0x28c   : > { %v14048_v55 = vpop.f32.mrf.mxu0  ;;  %v14050_v52 = vpop.f32.mrf.mxu1 }
 0x28d   : > { %16235 = vst [vmem:[#allocation161_spill] sm:$0xff] %v14048_v55  ;;  %16236 = vst [vmem:[#allocation162_spill] sm:$0xff] %v14050_v52  ;;  %v12338_v55 = vld [vmem:[%s13086_s7 + $0xc0] ss:$8 sps:$4 sm:$0xff]  }
 0x28e   : > { %v2751_v58 = vpop.f32.mrf.mxu0  ;;  %v3263_v53 = vpop.f32.mrf.mxu1 }
 0x28f   : > { %v12339_v58 = vld [vmem:[%s13086_s7 + $0x2c0] ss:$8 sps:$4 sm:$0xff]   ;;  %v12340_v53 = vld [vmem:[%s13086_s7 + $0xd4] ss:$8 sps:$4 sm:$0xff]  }
 0x290   : > { %v14056_v7 = vpop.f32.mrf.mxu0  ;;  %v14058_v62 = vpop.f32.mrf.mxu1  ;;  %5080 = vmatmul.mubr.bf16.gmra.mxu1 %v12332_v19  ;;  %8003 = vmatmul.mubr.bf16.gmra.mxu0 %v12333_v32 }
 0x291   : > { %16237 = vst [vmem:[#allocation163_spill] sm:$0xff] %v14056_v7  ;;  %16238 = vst [vmem:[#allocation164_spill] sm:$0xff] %v14058_v62  ;;  %10998 = vmatprep.mubr.msk.bf16.mxu1 %vm1927_vm0, %v12334_v30  ;;  %11665 = vmatprep.mubr.msk.bf16.mxu0 %vm1927_vm0, %v12336_v5  ;;  %v12342_v7 = vld [vmem:[%s13086_s7 + $0x2d4] ss:$8 sps:$4 sm:$0xff]  }
 0x292   : > { %v2756_v17 = vpop.f32.mrf.mxu0  ;;  %v3268_v29 = vpop.f32.mrf.mxu1 }
 0x294   : > { %v14062_v43 = vpop.f32.mrf.mxu0  ;;  %v14064_v52 = vpop.f32.mrf.mxu1 }
 0x295   : > { %16239 = vst [vmem:[#allocation165_spill] sm:$0xff] %v14062_v43  ;;  %16240 = vst [vmem:[#allocation166_spill] sm:$0xff] %v14064_v52  ;;  %v12344_v43 = vld [vmem:[%s13086_s7 + $0xd0] ss:$8 sps:$4 sm:$0xff]  }
 0x296   : > { %v2759_v19 = vpop.f32.mrf.mxu0  ;;  %v3271_v32 = vpop.f32.mrf.mxu1 }
 0x297   : > { %v12345_v19 = vld [vmem:[%s13086_s7 + $0x2d0] ss:$8 sps:$4 sm:$0xff]   ;;  %v12346_v32 = vld [vmem:[%s13086_s7 + $0xe4] ss:$8 sps:$4 sm:$0xff]  }
 0x298   : > { %v14070_v62 = vpop.f32.mrf.mxu0  ;;  %v14072_v30 = vpop.f32.mrf.mxu1  ;;  %5088 = vmatmul.mubr.bf16.gmra.mxu1 %v12338_v55  ;;  %8011 = vmatmul.mubr.bf16.gmra.mxu0 %v12339_v58 }
 0x299   : > { %16241 = vst [vmem:[#allocation167_spill] sm:$0xff] %v14070_v62  ;;  %16242 = vst [vmem:[#allocation168_spill] sm:$0xff] %v14072_v30  ;;  %10999 = vmatprep.mubr.msk.bf16.mxu1 %vm1927_vm0, %v12340_v53  ;;  %11666 = vmatprep.mubr.msk.bf16.mxu0 %vm1927_vm0, %v12342_v7  ;;  %v12348_v62 = vld [vmem:[%s13086_s7 + $0x2e4] ss:$8 sps:$4 sm:$0xff]  }
 0x29a   : > { %v2764_v5 = vpop.f32.mrf.mxu0  ;;  %v3276_v17 = vpop.f32.mrf.mxu1 }
 0x29c   : > { %v14076_v29 = vpop.f32.mrf.mxu0  ;;  %v14078_v52 = vpop.f32.mrf.mxu1 }
 0x29d   : > { %16243 = vst [vmem:[#allocation169_spill] sm:$0xff] %v14076_v29  ;;  %16244 = vst [vmem:[#allocation170_spill] sm:$0xff] %v14078_v52  ;;  %v12350_v29 = vld [vmem:[%s13086_s7 + $0xe0] ss:$8 sps:$4 sm:$0xff]  }
 0x29e   : > { %v2767_v55 = vpop.f32.mrf.mxu0  ;;  %v3279_v58 = vpop.f32.mrf.mxu1 }
 0x29f   : > { %v12351_v55 = vld [vmem:[%s13086_s7 + $0x2e0] ss:$8 sps:$4 sm:$0xff]   ;;  %v12352_v58 = vld [vmem:[%s13086_s7 + $0xf4] ss:$8 sps:$4 sm:$0xff]  }
 0x2a0   : > { %v14084_v30 = vpop.f32.mrf.mxu0  ;;  %v14086_v53 = vpop.f32.mrf.mxu1  ;;  %5096 = vmatmul.mubr.bf16.gmra.mxu1 %v12344_v43  ;;  %8019 = vmatmul.mubr.bf16.gmra.mxu0 %v12345_v19 }
 0x2a1   : > { %16245 = vst [vmem:[#allocation171_spill] sm:$0xff] %v14084_v30  ;;  %16246 = vst [vmem:[#allocation172_spill] sm:$0xff] %v14086_v53  ;;  %11000 = vmatprep.mubr.msk.bf16.mxu1 %vm1927_vm0, %v12346_v32  ;;  %11667 = vmatprep.mubr.msk.bf16.mxu0 %vm1927_vm0, %v12348_v62  ;;  %v12354_v30 = vld [vmem:[%s13086_s7 + $0x2f4] ss:$8 sps:$4 sm:$0xff]  }
 0x2a2   : > { %v2772_v7 = vpop.f32.mrf.mxu0  ;;  %v3284_v5 = vpop.f32.mrf.mxu1 }
 0x2a4   : > { %v14090_v17 = vpop.f32.mrf.mxu0  ;;  %v14092_v52 = vpop.f32.mrf.mxu1 }
 0x2a5   : > { %16247 = vst [vmem:[#allocation173_spill] sm:$0xff] %v14090_v17  ;;  %16248 = vst [vmem:[#allocation174_spill] sm:$0xff] %v14092_v52  ;;  %v12356_v17 = vld [vmem:[%s13086_s7 + $0xf0] ss:$8 sps:$4 sm:$0xff]  }
 0x2a6   : > { %v2775_v43 = vpop.f32.mrf.mxu0  ;;  %v3287_v19 = vpop.f32.mrf.mxu1 }
 0x2a7   : > { %v12357_v43 = vld [vmem:[%s13086_s7 + $0x2f0] ss:$8 sps:$4 sm:$0xff]   ;;  %v12358_v19 = vld [vmem:[%s13086_s7 + $0x104] ss:$8 sps:$4 sm:$0xff]  }
 0x2a8   : > { %v14098_v53 = vpop.f32.mrf.mxu0  ;;  %v14100_v32 = vpop.f32.mrf.mxu1  ;;  %5104 = vmatmul.mubr.bf16.gmra.mxu1 %v12350_v29  ;;  %8027 = vmatmul.mubr.bf16.gmra.mxu0 %v12351_v55 }
 0x2a9   : > { %16249 = vst [vmem:[#allocation175_spill] sm:$0xff] %v14098_v53  ;;  %16250 = vst [vmem:[#allocation176_spill] sm:$0xff] %v14100_v32  ;;  %11001 = vmatprep.mubr.msk.bf16.mxu1 %vm1927_vm0, %v12352_v58  ;;  %11668 = vmatprep.mubr.msk.bf16.mxu0 %vm1927_vm0, %v12354_v30  ;;  %v12360_v53 = vld [vmem:[%s13086_s7 + $0x304] ss:$8 sps:$4 sm:$0xff]  }
 0x2aa   : > { %v2780_v62 = vpop.f32.mrf.mxu0  ;;  %v3292_v7 = vpop.f32.mrf.mxu1 }
 0x2ac   : > { %v14104_v5 = vpop.f32.mrf.mxu0  ;;  %v14106_v52 = vpop.f32.mrf.mxu1 }
 0x2ad   : > { %16251 = vst [vmem:[#allocation177_spill] sm:$0xff] %v14104_v5  ;;  %16252 = vst [vmem:[#allocation178_spill] sm:$0xff] %v14106_v52  ;;  %v12362_v5 = vld [vmem:[%s13086_s7 + $0x100] ss:$8 sps:$4 sm:$0xff]  }
 0x2ae   : > { %v2783_v29 = vpop.f32.mrf.mxu0  ;;  %v3295_v55 = vpop.f32.mrf.mxu1 }
 0x2af   : > { %v12363_v29 = vld [vmem:[%s13086_s7 + $0x300] ss:$8 sps:$4 sm:$0xff]   ;;  %v12364_v55 = vld [vmem:[%s13086_s7 + $0x114] ss:$8 sps:$4 sm:$0xff]  }
 0x2b0   : > { %v14112_v32 = vpop.f32.mrf.mxu0  ;;  %v14114_v58 = vpop.f32.mrf.mxu1  ;;  %5112 = vmatmul.mubr.bf16.gmra.mxu1 %v12356_v17  ;;  %8035 = vmatmul.mubr.bf16.gmra.mxu0 %v12357_v43 }
 0x2b1   : > { %16253 = vst [vmem:[#allocation179_spill] sm:$0xff] %v14112_v32  ;;  %16254 = vst [vmem:[#allocation180_spill] sm:$0xff] %v14114_v58  ;;  %11002 = vmatprep.mubr.msk.bf16.mxu1 %vm1927_vm0, %v12358_v19  ;;  %11669 = vmatprep.mubr.msk.bf16.mxu0 %vm1927_vm0, %v12360_v53  ;;  %v12366_v32 = vld [vmem:[%s13086_s7 + $0x314] ss:$8 sps:$4 sm:$0xff]  }
 0x2b2   : > { %v2788_v30 = vpop.f32.mrf.mxu0  ;;  %v3300_v62 = vpop.f32.mrf.mxu1 }
 0x2b4   : > { %v14118_v7 = vpop.f32.mrf.mxu0  ;;  %v14120_v52 = vpop.f32.mrf.mxu1 }
 0x2b5   : > { %16255 = vst [vmem:[#allocation181_spill] sm:$0xff] %v14118_v7  ;;  %16256 = vst [vmem:[#allocation182_spill] sm:$0xff] %v14120_v52  ;;  %v12368_v7 = vld [vmem:[%s13086_s7 + $0x110] ss:$8 sps:$4 sm:$0xff]  }
 0x2b6   : > { %v2791_v17 = vpop.f32.mrf.mxu0  ;;  %v3303_v43 = vpop.f32.mrf.mxu1 }
 0x2b7   : > { %v12369_v17 = vld [vmem:[%s13086_s7 + $0x310] ss:$8 sps:$4 sm:$0xff]   ;;  %v12370_v43 = vld [vmem:[%s13086_s7 + $0x124] ss:$8 sps:$4 sm:$0xff]  }
 0x2b8   : > { %v14126_v58 = vpop.f32.mrf.mxu0  ;;  %v14128_v19 = vpop.f32.mrf.mxu1  ;;  %5120 = vmatmul.mubr.bf16.gmra.mxu1 %v12362_v5  ;;  %8043 = vmatmul.mubr.bf16.gmra.mxu0 %v12363_v29 }
 0x2b9   : > { %16257 = vst [vmem:[#allocation183_spill] sm:$0xff] %v14126_v58  ;;  %16258 = vst [vmem:[#allocation184_spill] sm:$0xff] %v14128_v19  ;;  %11003 = vmatprep.mubr.msk.bf16.mxu1 %vm1927_vm0, %v12364_v55  ;;  %11670 = vmatprep.mubr.msk.bf16.mxu0 %vm1927_vm0, %v12366_v32  ;;  %v12372_v58 = vld [vmem:[%s13086_s7 + $0x324] ss:$8 sps:$4 sm:$0xff]  }
 0x2ba   : > { %v2796_v53 = vpop.f32.mrf.mxu0  ;;  %v3308_v30 = vpop.f32.mrf.mxu1 }
 0x2bc   : > { %v14132_v62 = vpop.f32.mrf.mxu0  ;;  %v14134_v52 = vpop.f32.mrf.mxu1 }
 0x2bd   : > { %16259 = vst [vmem:[#allocation185_spill] sm:$0xff] %v14132_v62  ;;  %16260 = vst [vmem:[#allocation186_spill] sm:$0xff] %v14134_v52  ;;  %v12374_v62 = vld [vmem:[%s13086_s7 + $0x120] ss:$8 sps:$4 sm:$0xff]  }
 0x2be   : > { %v2799_v5 = vpop.f32.mrf.mxu0  ;;  %v3311_v29 = vpop.f32.mrf.mxu1 }
 0x2bf   : > { %v12375_v5 = vld [vmem:[%s13086_s7 + $0x320] ss:$8 sps:$4 sm:$0xff]   ;;  %v12376_v29 = vld [vmem:[%s13086_s7 + $0x134] ss:$8 sps:$4 sm:$0xff]  }
 0x2c0   : > { %v14140_v19 = vpop.f32.mrf.mxu0  ;;  %v14142_v55 = vpop.f32.mrf.mxu1  ;;  %5128 = vmatmul.mubr.bf16.gmra.mxu1 %v12368_v7  ;;  %8051 = vmatmul.mubr.bf16.gmra.mxu0 %v12369_v17 }
 0x2c1   : > { %16261 = vst [vmem:[#allocation187_spill] sm:$0xff] %v14140_v19  ;;  %16262 = vst [vmem:[#allocation188_spill] sm:$0xff] %v14142_v55  ;;  %11004 = vmatprep.mubr.msk.bf16.mxu1 %vm1927_vm0, %v12370_v43  ;;  %11671 = vmatprep.mubr.msk.bf16.mxu0 %vm1927_vm0, %v12372_v58  ;;  %v12378_v19 = vld [vmem:[%s13086_s7 + $0x334] ss:$8 sps:$4 sm:$0xff]  }
 0x2c2   : > { %v2804_v32 = vpop.f32.mrf.mxu0  ;;  %v3316_v53 = vpop.f32.mrf.mxu1 }
 0x2c4   : > { %v14146_v30 = vpop.f32.mrf.mxu0  ;;  %v14148_v52 = vpop.f32.mrf.mxu1 }
 0x2c5   : > { %16263 = vst [vmem:[#allocation189_spill] sm:$0xff] %v14146_v30  ;;  %16264 = vst [vmem:[#allocation190_spill] sm:$0xff] %v14148_v52  ;;  %v12380_v30 = vld [vmem:[%s13086_s7 + $0x130] ss:$8 sps:$4 sm:$0xff]  }
 0x2c6   : > { %v2807_v7 = vpop.f32.mrf.mxu0  ;;  %v3319_v17 = vpop.f32.mrf.mxu1 }
 0x2c7   : > { %v12381_v7 = vld [vmem:[%s13086_s7 + $0x330] ss:$8 sps:$4 sm:$0xff]   ;;  %v12382_v17 = vld [vmem:[%s13086_s7 + $0x144] ss:$8 sps:$4 sm:$0xff]  }
 0x2c8   : > { %v14154_v55 = vpop.f32.mrf.mxu0  ;;  %v14156_v43 = vpop.f32.mrf.mxu1  ;;  %5136 = vmatmul.mubr.bf16.gmra.mxu1 %v12374_v62  ;;  %8059 = vmatmul.mubr.bf16.gmra.mxu0 %v12375_v5 }
 0x2c9   : > { %16265 = vst [vmem:[#allocation191_spill] sm:$0xff] %v14154_v55  ;;  %16266 = vst [vmem:[#allocation192_spill] sm:$0xff] %v14156_v43  ;;  %11005 = vmatprep.mubr.msk.bf16.mxu1 %vm1927_vm0, %v12376_v29  ;;  %11672 = vmatprep.mubr.msk.bf16.mxu0 %vm1927_vm0, %v12378_v19  ;;  %v12384_v55 = vld [vmem:[%s13086_s7 + $0x344] ss:$8 sps:$4 sm:$0xff]  }
 0x2ca   : > { %v2812_v58 = vpop.f32.mrf.mxu0  ;;  %v3324_v32 = vpop.f32.mrf.mxu1 }
 0x2cc   : > { %v14160_v53 = vpop.f32.mrf.mxu0  ;;  %v14162_v52 = vpop.f32.mrf.mxu1 }
 0x2cd   : > { %16267 = vst [vmem:[#allocation193_spill] sm:$0xff] %v14160_v53  ;;  %16268 = vst [vmem:[#allocation194_spill] sm:$0xff] %v14162_v52  ;;  %v12386_v53 = vld [vmem:[%s13086_s7 + $0x140] ss:$8 sps:$4 sm:$0xff]  }
 0x2ce   : > { %v2815_v62 = vpop.f32.mrf.mxu0  ;;  %v3327_v5 = vpop.f32.mrf.mxu1 }
 0x2cf   : > { %v12387_v62 = vld [vmem:[%s13086_s7 + $0x340] ss:$8 sps:$4 sm:$0xff]   ;;  %v12388_v5 = vld [vmem:[%s13086_s7 + $0x154] ss:$8 sps:$4 sm:$0xff]  }
 0x2d0   : > { %v14168_v43 = vpop.f32.mrf.mxu0  ;;  %v14170_v29 = vpop.f32.mrf.mxu1  ;;  %5144 = vmatmul.mubr.bf16.gmra.mxu1 %v12380_v30  ;;  %8067 = vmatmul.mubr.bf16.gmra.mxu0 %v12381_v7 }
 0x2d1   : > { %16269 = vst [vmem:[#allocation195_spill] sm:$0xff] %v14168_v43  ;;  %16270 = vst [vmem:[#allocation196_spill] sm:$0xff] %v14170_v29  ;;  %11006 = vmatprep.mubr.msk.bf16.mxu1 %vm1927_vm0, %v12382_v17  ;;  %11673 = vmatprep.mubr.msk.bf16.mxu0 %vm1927_vm0, %v12384_v55  ;;  %v12390_v43 = vld [vmem:[%s13086_s7 + $0x354] ss:$8 sps:$4 sm:$0xff]  }
 0x2d2   : > { %v2820_v19 = vpop.f32.mrf.mxu0  ;;  %v3332_v58 = vpop.f32.mrf.mxu1 }
 0x2d4   : > { %v14174_v32 = vpop.f32.mrf.mxu0  ;;  %v14176_v52 = vpop.f32.mrf.mxu1 }
 0x2d5   : > { %16271 = vst [vmem:[#allocation197_spill] sm:$0xff] %v14174_v32  ;;  %16272 = vst [vmem:[#allocation198_spill] sm:$0xff] %v14176_v52  ;;  %v12392_v32 = vld [vmem:[%s13086_s7 + $0x150] ss:$8 sps:$4 sm:$0xff]  }
 0x2d6   : > { %v2823_v30 = vpop.f32.mrf.mxu0  ;;  %v3335_v7 = vpop.f32.mrf.mxu1 }
 0x2d7   : > { %v12393_v30 = vld [vmem:[%s13086_s7 + $0x350] ss:$8 sps:$4 sm:$0xff]   ;;  %v12394_v7 = vld [vmem:[%s13086_s7 + $0x164] ss:$8 sps:$4 sm:$0xff]  }
 0x2d8   : > { %v14182_v29 = vpop.f32.mrf.mxu0  ;;  %v14184_v17 = vpop.f32.mrf.mxu1  ;;  %5152 = vmatmul.mubr.bf16.gmra.mxu1 %v12386_v53  ;;  %8075 = vmatmul.mubr.bf16.gmra.mxu0 %v12387_v62 }
 0x2d9   : > { %16273 = vst [vmem:[#allocation199_spill] sm:$0xff] %v14182_v29  ;;  %16274 = vst [vmem:[#allocation200_spill] sm:$0xff] %v14184_v17  ;;  %11007 = vmatprep.mubr.msk.bf16.mxu1 %vm1927_vm0, %v12388_v5  ;;  %11674 = vmatprep.mubr.msk.bf16.mxu0 %vm1927_vm0, %v12390_v43  ;;  %v12396_v29 = vld [vmem:[%s13086_s7 + $0x364] ss:$8 sps:$4 sm:$0xff]  }
 0x2da   : > { %v2828_v55 = vpop.f32.mrf.mxu0  ;;  %v3340_v19 = vpop.f32.mrf.mxu1 }
 0x2dc   : > { %v14188_v58 = vpop.f32.mrf.mxu0  ;;  %v14190_v52 = vpop.f32.mrf.mxu1 }
 0x2dd   : > { %16275 = vst [vmem:[#allocation201_spill] sm:$0xff] %v14188_v58  ;;  %16276 = vst [vmem:[#allocation202_spill] sm:$0xff] %v14190_v52  ;;  %v12398_v58 = vld [vmem:[%s13086_s7 + $0x160] ss:$8 sps:$4 sm:$0xff]  }
 0x2de   : > { %v2831_v53 = vpop.f32.mrf.mxu0  ;;  %v3343_v62 = vpop.f32.mrf.mxu1 }
 0x2df   : > { %v12399_v53 = vld [vmem:[%s13086_s7 + $0x360] ss:$8 sps:$4 sm:$0xff]   ;;  %v12400_v62 = vld [vmem:[%s13086_s7 + $0x174] ss:$8 sps:$4 sm:$0xff]  }
 0x2e0   : > { %v14196_v17 = vpop.f32.mrf.mxu0  ;;  %v14198_v5 = vpop.f32.mrf.mxu1  ;;  %5160 = vmatmul.mubr.bf16.gmra.mxu1 %v12392_v32  ;;  %8083 = vmatmul.mubr.bf16.gmra.mxu0 %v12393_v30 }
 0x2e1   : > { %16277 = vst [vmem:[#allocation203_spill] sm:$0xff] %v14196_v17  ;;  %16278 = vst [vmem:[#allocation204_spill] sm:$0xff] %v14198_v5  ;;  %11008 = vmatprep.mubr.msk.bf16.mxu1 %vm1927_vm0, %v12394_v7  ;;  %11675 = vmatprep.mubr.msk.bf16.mxu0 %vm1927_vm0, %v12396_v29  ;;  %v12402_v17 = vld [vmem:[%s13086_s7 + $0x374] ss:$8 sps:$4 sm:$0xff]  }
 0x2e2   : > { %v2836_v43 = vpop.f32.mrf.mxu0  ;;  %v3348_v55 = vpop.f32.mrf.mxu1 }
 0x2e4   : > { %v14202_v19 = vpop.f32.mrf.mxu0  ;;  %v14204_v52 = vpop.f32.mrf.mxu1 }
 0x2e5   : > { %16279 = vst [vmem:[#allocation205_spill] sm:$0xff] %v14202_v19  ;;  %16280 = vst [vmem:[#allocation206_spill] sm:$0xff] %v14204_v52  ;;  %v12406_v19 = vld [vmem:[%s13086_s7 + $0x184] ss:$8 sps:$4 sm:$0xff]  }
 0x2e6   : > { %v2839_v32 = vpop.f32.mrf.mxu0  ;;  %v3351_v30 = vpop.f32.mrf.mxu1 }
 0x2e7   : > { %v12404_v32 = vld [vmem:[%s13086_s7 + $0x170] ss:$8 sps:$4 sm:$0xff]  }
 0x2e8   : > { %v14210_v5 = vpop.f32.mrf.mxu0  ;;  %v14212_v7 = vpop.f32.mrf.mxu1  ;;  %5168 = vmatmul.mubr.bf16.gmra.mxu1 %v12398_v58  ;;  %8091 = vmatmul.mubr.bf16.gmra.mxu0 %v12399_v53  ;;  %v12405_v30 = vld [vmem:[%s13086_s7 + $0x370] ss:$8 sps:$4 sm:$0xff]  }
 0x2e9   : > { %16281 = vst [vmem:[#allocation207_spill] sm:$0xff] %v14210_v5  ;;  %16282 = vst [vmem:[#allocation208_spill] sm:$0xff] %v14212_v7  ;;  %11009 = vmatprep.mubr.msk.bf16.mxu1 %vm1927_vm0, %v12400_v62  ;;  %11676 = vmatprep.mubr.msk.bf16.mxu0 %vm1927_vm0, %v12402_v17  ;;  %v12408_v5 = vld [vmem:[%s13086_s7 + $0x384] ss:$8 sps:$4 sm:$0xff]  }
 0x2ea   : > { %v2844_v29 = vpop.f32.mrf.mxu0  ;;  %v3356_v43 = vpop.f32.mrf.mxu1  ;;  %v11162_v62 = vld [vmem:[%s13086_s7 + $0x380] sm:$0xff] }
 0x2eb   : > { %v11163_v29 = vld [vmem:[%s13086_s7 + $0x388] sm:$0xff] }
 0x2ec   : > { %v14216_v55 = vpop.f32.mrf.mxu0  ;;  %v14218_v52 = vpop.f32.mrf.mxu1 }
 0x2ed   : > { %16283 = vst [vmem:[#allocation209_spill] sm:$0xff] %v14216_v55  ;;  %16284 = vst [vmem:[#allocation210_spill] sm:$0xff] %v14218_v52  ;;  %v11436_v55 = vcombine.low %v11162_v62, %v11163_v29  ;;  %v14248_v62 = vld [vmem:[%s16075_s2] ss:$0 sm:$0xff] }
 0x2ee   : > { %v2847_v7 = vpop.f32.mrf.mxu0  ;;  %v3359_v58 = vpop.f32.mrf.mxu1 }
 0x2f0   : > { %v14224_v53 = vpop.f32.mrf.mxu0  ;;  %v14226_v17 = vpop.f32.mrf.mxu1  ;;  %5176 = vmatmul.mubr.bf16.gmra.mxu1 %v12404_v32  ;;  %8099 = vmatmul.mubr.bf16.gmra.mxu0 %v12405_v30  ;;  %v12413_v32 = vld [vmem:[%s13086_s7 + $0x394] ss:$8 sps:$4 sm:$0xff]  }
 0x2f1   : > { %16285 = vst [vmem:[#allocation211_spill] sm:$0xff] %v14224_v53  ;;  %16286 = vst [vmem:[#allocation212_spill] sm:$0xff] %v14226_v17  ;;  %11010 = vmatprep.mubr.msk.bf16.mxu1 %vm1927_vm0, %v12406_v19  ;;  %11677 = vmatprep.mubr.msk.bf16.mxu0 %vm1927_vm0, %v12408_v5  ;;  %v12410_v53 = vld [vmem:[%s13086_s7 + $0x180] ss:$8 sps:$4 sm:$0xff]   ;;  %v12411_v17 = vld [vmem:[%s13086_s7 + $0x194] ss:$8 sps:$4 sm:$0xff]  }
 0x2f2   : > { %v2852_v43 = vpop.f32.mrf.mxu0  ;;  %v3364_v52 = vpop.f32.mrf.mxu1 }
 0x2f3   : > { %v11164_v43 = vld [vmem:[%s13086_s7 + $0x390] sm:$0xff] }
 0x2f4   : > { %v14232_v7 = vpop.f32.mrf.mxu0  ;;  %v14234_v58 = vpop.f32.mrf.mxu1 }
 0x2f5   : > { %16287 = vst [vmem:[#allocation213_spill] sm:$0xff] %v14232_v7  ;;  %16288 = vst [vmem:[#allocation214_spill] sm:$0xff] %v14234_v58  ;;  %v11165_v58 = vld [vmem:[%s13086_s7 + $0x398] sm:$0xff] }
 0x2f6   : > { %v2855_v30 = vpop.f32.mrf.mxu0  ;;  %v3367_v19 = vpop.f32.mrf.mxu1 }
 0x2f7   : > { %v11438_v19 = vcombine.low %v11164_v43, %v11165_v58 }
 0x2f8   : > { %v4993_v11 = vpop.f32.mrf.mxu1  ;;  %5184 = vmatmul.mubr.bf16.gmra.mxu1 %v12410_v53  ;;  %v7916_v5 = vpop.f32.mrf.mxu0  ;;  %8107 = vmatmul.mubr.bf16.gmra.mxu0 %v11436_v55 }
 0x2f9   : > { %v4994_v52 = vadd.f32 %v4993_v11, %v13320_v61  ;;  %11011 = vmatprep.mubr.msk.bf16.mxu1 %vm1927_vm0, %v12411_v17  ;;  %11678 = vmatprep.mubr.msk.bf16.mxu0 %vm1927_vm0, %v12413_v32  ;;  %v12415_v11 = vld [vmem:[%s13086_s7 + $0x190] ss:$8 sps:$4 sm:$0xff]   ;;  %v12418_v32 = vld [vmem:[%s13086_s7 + $0x3a4] ss:$8 sps:$4 sm:$0xff]  }
 0x2fa   : > { %v4995_v53 = vpop.f32.mrf.mxu1  ;;  %v7918_v29 = vpop.f32.mrf.mxu0 }
 0x2fb   : > { %v8939_v55 = vadd.f32 %v7916_v5, %v4994_v52 }
 0x2fc   : > { %v4996_v30 = vpop.f32.mrf.mxu1  ;;  %v7919_v61 = vpop.f32.mrf.mxu0 }
 0x2fd   : > { %v9202_v17 = vadd.f32 %v14248_v62, %v8939_v55  ;;  %v4997_v7 = vadd.f32 %v4996_v30, %v13328_v4 }
 0x2fe   : > { %v4998_v23 = vpop.f32.mrf.mxu1  ;;  %v7921_v40 = vpop.f32.mrf.mxu0 }
 0x2ff   : > { %v9458_v53 = vmax.f32 %v9202_v17, 0.0  ;;  %v8940_v29 = vadd.f32 %v7919_v61, %v4997_v7  ;;  %v11166_v23 = vld [vmem:[%s13086_s7 + $0x3a0] sm:$0xff]  ;;  %v11167_v40 = vld [vmem:[%s13086_s7 + $0x3a8] sm:$0xff]  ;;  %v12423_v17 = vld [vmem:[%s13086_s7 + $0x3b4] ss:$8 sps:$4 sm:$0xff]  }
 0x300   : > { %v5001_v36 = vpop.f32.mrf.mxu1  ;;  %5192 = vmatmul.mubr.bf16.gmra.mxu1 %v12415_v11  ;;  %v7924_v5 = vpop.f32.mrf.mxu0  ;;  %8115 = vmatmul.mubr.bf16.gmra.mxu0 %v11438_v19  ;;  %v12420_v11 = vld [vmem:[%s13086_s7 + $0x1a0] ss:$8 sps:$4 sm:$0xff]   ;;  %v11440_v19 = vcombine.low %v11166_v23, %v11167_v40 }
 0x301   : > { %9715 = vst.msk [vmem:[%s14257_s9] sm:$0xff] %vm9714_vm1, %v9458_v53  ;;  %v9203_v4 = vadd.f32 %v14248_v62, %v8940_v29  ;;  %v5002_v58 = vadd.f32 %v5001_v36, %v13334_v10  ;;  %11012 = vmatprep.mubr.msk.bf16.mxu1 %vm1927_vm0, %v12416_v24  ;;  %11679 = vmatprep.mubr.msk.bf16.mxu0 %vm1927_vm0, %v12418_v32  ;;  %v12421_v24 = vld [vmem:[%s13086_s7 + $0x1b4] ss:$8 sps:$4 sm:$0xff]  }
 0x302   : > { %v5003_v7 = vpop.f32.mrf.mxu1  ;;  %v7926_v52 = vpop.f32.mrf.mxu0 }
 0x303   : > { %v9459_v43 = vmax.f32 %v9203_v4, 0.0  ;;  %v8941_v55 = vadd.f32 %v7924_v5, %v5002_v58  ;;  %v11169_v7 = vld [vmem:[%s13086_s7 + $0x3b8] sm:$0xff] }
 0x304   : > { %v5004_v30 = vpop.f32.mrf.mxu1  ;;  %v7927_v61 = vpop.f32.mrf.mxu0 }
 0x305   : > { %9716 = vst.msk [vmem:[%s14257_s9 + $0x8] sm:$0xff] %vm9714_vm1, %v9459_v43  ;;  %v9204_v10 = vadd.f32 %v14248_v62, %v8941_v55  ;;  %v5005_v36 = vadd.f32 %v5004_v30, %v13342_v16  ;;  %v11168_v16 = vld [vmem:[%s13086_s7 + $0x3b0] sm:$0xff] }
 0x306   : > { %v5006_v32 = vpop.f32.mrf.mxu1  ;;  %v7929_v53 = vpop.f32.mrf.mxu0 }
 0x307   : > { %v9460_v29 = vmax.f32 %v9204_v10, 0.0  ;;  %v8942_v4 = vadd.f32 %v7927_v61, %v5005_v36  ;;  %v11442_v10 = vcombine.low %v11168_v16, %v11169_v7  ;;  %v12428_v32 = vld [vmem:[%s13086_s7 + $0x3c4] ss:$8 sps:$4 sm:$0xff]  }
 0x308   : > { %v5009_v5 = vpop.f32.mrf.mxu1  ;;  %5200 = vmatmul.mubr.bf16.gmra.mxu1 %v12420_v11  ;;  %v7932_v58 = vpop.f32.mrf.mxu0  ;;  %8123 = vmatmul.mubr.bf16.gmra.mxu0 %v11440_v19  ;;  %v12425_v19 = vld [vmem:[%s13086_s7 + $0x1b0] ss:$8 sps:$4 sm:$0xff]   ;;  %v11171_v16 = vld [vmem:[%s13086_s7 + $0x3c8] sm:$0xff] }
 0x309   : > { %9717 = vst.msk [vmem:[%s14257_s9 + $0x10] sm:$0xff] %vm9714_vm1, %v9460_v29  ;;  %v9205_v23 = vadd.f32 %v14248_v62, %v8942_v4  ;;  %v5010_v40 = vadd.f32 %v5009_v5, %v13348_v22  ;;  %11013 = vmatprep.mubr.msk.bf16.mxu1 %vm1927_vm0, %v12421_v24  ;;  %11680 = vmatprep.mubr.msk.bf16.mxu0 %vm1927_vm0, %v12423_v17  ;;  %v12426_v24 = vld [vmem:[%s13086_s7 + $0x1c4] ss:$8 sps:$4 sm:$0xff]  }
 0x30a   : > { %v5011_v52 = vpop.f32.mrf.mxu1  ;;  %v7934_v43 = vpop.f32.mrf.mxu0 }
 0x30b   : > { %v9461_v55 = vmax.f32 %v9205_v23, 0.0  ;;  %v8943_v30 = vadd.f32 %v7932_v58, %v5010_v40 }
 0x30c   : > { %v5012_v61 = vpop.f32.mrf.mxu1  ;;  %v7935_v11 = vpop.f32.mrf.mxu0 }
 0x30d   : > { %9718 = vst.msk [vmem:[%s14257_s9 + $0x18] sm:$0xff] %vm9714_vm1, %v9461_v55  ;;  %v9206_v22 = vadd.f32 %v14248_v62, %v8943_v30  ;;  %v5013_v36 = vadd.f32 %v5012_v61, %v13356_v28  ;;  %v11170_v28 = vld [vmem:[%s13086_s7 + $0x3c0] sm:$0xff] }
 0x30e   : > { %v5014_v17 = vpop.f32.mrf.mxu1  ;;  %v7937_v53 = vpop.f32.mrf.mxu0 }
 0x30f   : > { %v9462_v29 = vmax.f32 %v9206_v22, 0.0  ;;  %v8944_v4 = vadd.f32 %v7935_v11, %v5013_v36  ;;  %v12430_v11 = vld [vmem:[%s13086_s7 + $0x1c0] ss:$8 sps:$4 sm:$0xff]   ;;  %v12431_v22 = vld [vmem:[%s13086_s7 + $0x1d4] ss:$8 sps:$4 sm:$0xff]  }
 0x310   : > { %v5017_v5 = vpop.f32.mrf.mxu1  ;;  %5208 = vmatmul.mubr.bf16.gmra.mxu1 %v12425_v19  ;;  %v7940_v58 = vpop.f32.mrf.mxu0  ;;  %8131 = vmatmul.mubr.bf16.gmra.mxu0 %v11442_v10  ;;  %v11444_v19 = vcombine.low %v11170_v28, %v11171_v16  ;;  %v12433_v36 = vld [vmem:[%s13086_s7 + $0x3d4] ss:$8 sps:$4 sm:$0xff]  }
 0x311   : > { %9719 = vst.msk [vmem:[%s14257_s9 + $0x20] sm:$0xff] %vm9714_vm1, %v9462_v29  ;;  %v9207_v23 = vadd.f32 %v14248_v62, %v8944_v4  ;;  %v5018_v40 = vadd.f32 %v5017_v5, %v13365_v35  ;;  %11014 = vmatprep.mubr.msk.bf16.mxu1 %vm1927_vm0, %v12426_v24  ;;  %11681 = vmatprep.mubr.msk.bf16.mxu0 %vm1927_vm0, %v12428_v32 }
 0x312   : > { %v5019_v7 = vpop.f32.mrf.mxu1  ;;  %v7942_v52 = vpop.f32.mrf.mxu0 }
 0x313   : > { %v9463_v43 = vmax.f32 %v9207_v23, 0.0  ;;  %v8945_v55 = vadd.f32 %v7940_v58, %v5018_v40  ;;  %v11173_v23 = vld [vmem:[%s13086_s7 + $0x3d8] sm:$0xff] }
 0x314   : > { %v5020_v30 = vpop.f32.mrf.mxu1  ;;  %v7943_v61 = vpop.f32.mrf.mxu0 }
 0x315   : > { %9720 = vst.msk [vmem:[%s14257_s9 + $0x28] sm:$0xff] %vm9714_vm1, %v9463_v43  ;;  %v9208_v35 = vadd.f32 %v14248_v62, %v8945_v55  ;;  %v5021_v10 = vadd.f32 %v5020_v30, %v13378_v42  ;;  %v11172_v42 = vld [vmem:[%s13086_s7 + $0x3d0] sm:$0xff] }
 0x316   : > { %v5022_v24 = vpop.f32.mrf.mxu1  ;;  %v7945_v32 = vpop.f32.mrf.mxu0  ;;  %v12435_v55 = vld [vmem:[%s13086_s7 + $0x1d0] ss:$8 sps:$4 sm:$0xff]   ;;  %v11446_v30 = vcombine.low %v11172_v42, %v11173_v23 }
 0x317   : > { %v9464_v17 = vmax.f32 %v9208_v35, 0.0  ;;  %v8946_v53 = vadd.f32 %v7943_v61, %v5021_v10 }
 0x318   : > { %v5025_v29 = vpop.f32.mrf.mxu1  ;;  %5216 = vmatmul.mubr.bf16.gmra.mxu1 %v12430_v11  ;;  %v7948_v4 = vpop.f32.mrf.mxu0  ;;  %8139 = vmatmul.mubr.bf16.gmra.mxu0 %v11444_v19  ;;  %v12436_v11 = vld [vmem:[%s13086_s7 + $0x1e4] ss:$8 sps:$4 sm:$0xff]  }
 0x319   : > { %9721 = vst.msk [vmem:[%s14257_s9 + $0x30] sm:$0xff] %vm9714_vm1, %v9464_v17  ;;  %v9209_v5 = vadd.f32 %v14248_v62, %v8946_v53  ;;  %v5026_v58 = vadd.f32 %v5025_v29, %v13384_v48  ;;  %11015 = vmatprep.mubr.msk.bf16.mxu1 %vm1927_vm0, %v12431_v22  ;;  %11682 = vmatprep.mubr.msk.bf16.mxu0 %vm1927_vm0, %v12433_v36  ;;  %v12438_v19 = vld [vmem:[%s13086_s7 + $0x3e4] ss:$8 sps:$4 sm:$0xff]  }
 0x31a   : > { %v5027_v40 = vpop.f32.mrf.mxu1  ;;  %v7950_v28 = vpop.f32.mrf.mxu0  ;;  %v11175_v29 = vld [vmem:[%s13086_s7 + $0x3e8] sm:$0xff] }
 0x31b   : > { %v9465_v16 = vmax.f32 %v9209_v5, 0.0  ;;  %v8947_v7 = vadd.f32 %v7948_v4, %v5026_v58  ;;  %v12440_v28 = vld [vmem:[%s13086_s7 + $0x1e0] ss:$8 sps:$4 sm:$0xff]  }
 0x31c   : > { %v5028_v52 = vpop.f32.mrf.mxu1  ;;  %v7951_v43 = vpop.f32.mrf.mxu0 }
 0x31d   : > { %9722 = vst.msk [vmem:[%s14257_s9 + $0x38] sm:$0xff] %vm9714_vm1, %v9465_v16  ;;  %v9210_v48 = vadd.f32 %v14248_v62, %v8947_v7  ;;  %v5029_v61 = vadd.f32 %v5028_v52, %v13392_v54  ;;  %v11174_v54 = vld [vmem:[%s13086_s7 + $0x3e0] sm:$0xff]  ;;  %v12441_v52 = vld [vmem:[%s13086_s7 + $0x1f4] ss:$8 sps:$4 sm:$0xff]  }
 0x31e   : > { %v5030_v35 = vpop.f32.mrf.mxu1  ;;  %v7953_v10 = vpop.f32.mrf.mxu0  ;;  %v11448_v16 = vcombine.low %v11174_v54, %v11175_v29  ;;  %v12445_v29 = vld [vmem:[%s13086_s7 + $0x1f0] ss:$8 sps:$4 sm:$0xff]  }
 0x31f   : > { %v9466_v22 = vmax.f32 %v9210_v48, 0.0  ;;  %v8948_v36 = vadd.f32 %v7951_v43, %v5029_v61  ;;  %v12443_v43 = vld [vmem:[%s13086_s7 + $0x3f4] ss:$8 sps:$4 sm:$0xff]  }
 0x320   : > { %v5033_v24 = vpop.f32.mrf.mxu1  ;;  %5224 = vmatmul.mubr.bf16.gmra.mxu1 %v12435_v55  ;;  %v7956_v32 = vpop.f32.mrf.mxu0  ;;  %8147 = vmatmul.mubr.bf16.gmra.mxu0 %v11446_v30 }
 0x321   : > { %9723 = vst.msk [vmem:[%s14257_s9 + $0x40] sm:$0xff] %vm9714_vm1, %v9466_v22  ;;  %v9211_v17 = vadd.f32 %v14248_v62, %v8948_v36  ;;  %v5034_v53 = vadd.f32 %v5033_v24, %v13398_v60  ;;  %11016 = vmatprep.mubr.msk.bf16.mxu1 %vm1927_vm0, %v12436_v11  ;;  %11683 = vmatprep.mubr.msk.bf16.mxu0 %vm1927_vm0, %v12438_v19  ;;  %v11177_v22 = vld [vmem:[%s13086_s7 + $0x3f8] sm:$0xff] }
 0x322   : > { %v5035_v4 = vpop.f32.mrf.mxu1  ;;  %v7958_v5 = vpop.f32.mrf.mxu0 }
 0x323   : > { %v9467_v58 = vmax.f32 %v9211_v17, 0.0  ;;  %v8949_v42 = vadd.f32 %v7956_v32, %v5034_v53 }
 0x324   : > { %v5036_v23 = vpop.f32.mrf.mxu1  ;;  %v7959_v40 = vpop.f32.mrf.mxu0 }
 0x325   : > { %9724 = vst.msk [vmem:[%s14257_s9 + $0x48] sm:$0xff] %vm9714_vm1, %v9467_v58  ;;  %v9212_v60 = vadd.f32 %v14248_v62, %v8949_v42  ;;  %v5037_v7 = vadd.f32 %v5036_v23, %v13405_v6  ;;  %v11176_v6 = vld [vmem:[%s13086_s7 + $0x3f0] sm:$0xff]  ;;  %v12446_v58 = vld [vmem:[%s13086_s7 + $0x204] ss:$8 sps:$4 sm:$0xff]  }
 0x326   : > { %v5038_v55 = vpop.f32.mrf.mxu1  ;;  %v7961_v30 = vpop.f32.mrf.mxu0  ;;  %v11450_v4 = vcombine.low %v11176_v6, %v11177_v22  ;;  %v12448_v42 = vld [vmem:[%s13086_s7 + $0x404] ss:$8 sps:$4 sm:$0xff]  }
 0x327   : > { %v9468_v48 = vmax.f32 %v9212_v60, 0.0  ;;  %v8950_v61 = vadd.f32 %v7959_v40, %v5037_v7  ;;  %v11179_v55 = vld [vmem:[%s13086_s7 + $0x408] sm:$0xff] }
 0x328   : > { %v5041_v11 = vpop.f32.mrf.mxu1  ;;  %5232 = vmatmul.mubr.bf16.gmra.mxu1 %v12440_v28  ;;  %v7964_v19 = vpop.f32.mrf.mxu0  ;;  %8155 = vmatmul.mubr.bf16.gmra.mxu0 %v11448_v16 }
 0x329   : > { %9725 = vst.msk [vmem:[%s14257_s9 + $0x50] sm:$0xff] %vm9714_vm1, %v9468_v48  ;;  %v9213_v35 = vadd.f32 %v14248_v62, %v8950_v61  ;;  %v5042_v10 = vadd.f32 %v5041_v11, %v13412_v15  ;;  %11017 = vmatprep.mubr.msk.bf16.mxu1 %vm1927_vm0, %v12441_v52  ;;  %11684 = vmatprep.mubr.msk.bf16.mxu0 %vm1927_vm0, %v12443_v43 }
 0x32a   : > { %v5043_v36 = vpop.f32.mrf.mxu1  ;;  %v7966_v24 = vpop.f32.mrf.mxu0 }
 0x32b   : > { %v9469_v32 = vmax.f32 %v9213_v35, 0.0  ;;  %v8951_v17 = vadd.f32 %v7964_v19, %v5042_v10  ;;  %v12450_v10 = vld [vmem:[%s13086_s7 + $0x200] ss:$8 sps:$4 sm:$0xff]   ;;  %v12451_v36 = vld [vmem:[%s13086_s7 + $0x214] ss:$8 sps:$4 sm:$0xff]  }
 0x32c   : > { %v5044_v53 = vpop.f32.mrf.mxu1  ;;  %v7967_v54 = vpop.f32.mrf.mxu0  ;;  %v12453_v24 = vld [vmem:[%s13086_s7 + $0x414] ss:$8 sps:$4 sm:$0xff]  }
 0x32d   : > { %9726 = vst.msk [vmem:[%s14257_s9 + $0x58] sm:$0xff] %vm9714_vm1, %v9469_v32  ;;  %v9214_v15 = vadd.f32 %v14248_v62, %v8951_v17  ;;  %v5045_v5 = vadd.f32 %v5044_v53, %v13418_v21  ;;  %v11178_v21 = vld [vmem:[%s13086_s7 + $0x400] sm:$0xff] }
 0x32e   : > { %v5046_v23 = vpop.f32.mrf.mxu1  ;;  %v7969_v40 = vpop.f32.mrf.mxu0  ;;  %v11452_v6 = vcombine.low %v11178_v21, %v11179_v55  ;;  %v12456_v21 = vld [vmem:[%s13086_s7 + $0x224] ss:$8 sps:$4 sm:$0xff]  }
 0x32f   : > { %v9470_v28 = vmax.f32 %v9214_v15, 0.0  ;;  %v8952_v16 = vadd.f32 %v7967_v54, %v5045_v5  ;;  %v12458_v55 = vld [vmem:[%s13086_s7 + $0x424] ss:$8 sps:$4 sm:$0xff]  }
 0x330   : > { %v5049_v60 = vpop.f32.mrf.mxu1  ;;  %5240 = vmatmul.mubr.bf16.gmra.mxu1 %v12445_v29  ;;  %v7972_v7 = vpop.f32.mrf.mxu0  ;;  %8163 = vmatmul.mubr.bf16.gmra.mxu0 %v11450_v4 }
 0x331   : > { %9727 = vst.msk [vmem:[%s14257_s9 + $0x60] sm:$0xff] %vm9714_vm1, %v9470_v28  ;;  %v9215_v52 = vadd.f32 %v14248_v62, %v8952_v16  ;;  %v5050_v43 = vadd.f32 %v5049_v60, %v13426_v33  ;;  %11018 = vmatprep.mubr.msk.bf16.mxu1 %vm1927_vm0, %v12446_v58  ;;  %11685 = vmatprep.mubr.msk.bf16.mxu0 %vm1927_vm0, %v12448_v42  ;;  %v11181_v58 = vld [vmem:[%s13086_s7 + $0x418] sm:$0xff] }
 0x332   : > { %v5051_v30 = vpop.f32.mrf.mxu1  ;;  %v7974_v48 = vpop.f32.mrf.mxu0 }
 0x333   : > { %v9471_v61 = vmax.f32 %v9215_v52, 0.0  ;;  %v8953_v11 = vadd.f32 %v7972_v7, %v5050_v43  ;;  %v12455_v7 = vld [vmem:[%s13086_s7 + $0x210] ss:$8 sps:$4 sm:$0xff]  }
 0x334   : > { %v5052_v19 = vpop.f32.mrf.mxu1  ;;  %v7975_v35 = vpop.f32.mrf.mxu0 }
 0x335   : > { %9728 = vst.msk [vmem:[%s14257_s9 + $0x68] sm:$0xff] %vm9714_vm1, %v9471_v61  ;;  %v9216_v33 = vadd.f32 %v14248_v62, %v8953_v11  ;;  %v5053_v22 = vadd.f32 %v5052_v19, %v13432_v39  ;;  %v11180_v39 = vld [vmem:[%s13086_s7 + $0x410] sm:$0xff] }
 0x336   : > { %v5054_v32 = vpop.f32.mrf.mxu1  ;;  %v7977_v17 = vpop.f32.mrf.mxu0  ;;  %v11454_v52 = vcombine.low %v11180_v39, %v11181_v58 }
 0x337   : > { %v9472_v53 = vmax.f32 %v9216_v33, 0.0  ;;  %v8954_v54 = vadd.f32 %v7975_v35, %v5053_v22  ;;  %v11183_v33 = vld [vmem:[%s13086_s7 + $0x428] sm:$0xff] }
 0x338   : > { %v5057_v29 = vpop.f32.mrf.mxu1  ;;  %5248 = vmatmul.mubr.bf16.gmra.mxu1 %v12450_v10  ;;  %v7980_v4 = vpop.f32.mrf.mxu0  ;;  %8171 = vmatmul.mubr.bf16.gmra.mxu0 %v11452_v6 }
 0x339   : > { %9729 = vst.msk [vmem:[%s14257_s9 + $0x70] sm:$0xff] %vm9714_vm1, %v9472_v53  ;;  %v9217_v15 = vadd.f32 %v14248_v62, %v8954_v54  ;;  %v5058_v5 = vadd.f32 %v5057_v29, %v13440_v51  ;;  %11019 = vmatprep.mubr.msk.bf16.mxu1 %vm1927_vm0, %v12451_v36  ;;  %11686 = vmatprep.mubr.msk.bf16.mxu0 %vm1927_vm0, %v12453_v24  ;;  %v12460_v54 = vld [vmem:[%s13086_s7 + $0x220] ss:$8 sps:$4 sm:$0xff]  }
 0x33a   : > { %v5059_v42 = vpop.f32.mrf.mxu1  ;;  %v7982_v23 = vpop.f32.mrf.mxu0 }
 0x33b   : > { %v9473_v40 = vmax.f32 %v9217_v15, 0.0  ;;  %v8955_v28 = vadd.f32 %v7980_v4, %v5058_v5  ;;  %v12461_v15 = vld [vmem:[%s13086_s7 + $0x234] ss:$8 sps:$4 sm:$0xff]  }
 0x33c   : > { %v5060_v16 = vpop.f32.mrf.mxu1  ;;  %v7983_v60 = vpop.f32.mrf.mxu0  ;;  %v12463_v5 = vld [vmem:[%s13086_s7 + $0x434] ss:$8 sps:$4 sm:$0xff]  }
 0x33d   : > { %9730 = vst.msk [vmem:[%s14257_s9 + $0x78] sm:$0xff] %vm9714_vm1, %v9473_v40  ;;  %v9218_v51 = vadd.f32 %v14248_v62, %v8955_v28  ;;  %v5061_v43 = vadd.f32 %v5060_v16, %v13446_v57  ;;  %v11182_v57 = vld [vmem:[%s13086_s7 + $0x420] sm:$0xff] }
 0x33e   : > { %v5062_v30 = vpop.f32.mrf.mxu1  ;;  %v7985_v48 = vpop.f32.mrf.mxu0  ;;  %v11456_v29 = vcombine.low %v11182_v57, %v11183_v33 }
 0x33f   : > { %v9474_v61 = vmax.f32 %v9218_v51, 0.0  ;;  %v8956_v11 = vadd.f32 %v7983_v60, %v5061_v43  ;;  %v12465_v48 = vld [vmem:[%s13086_s7 + $0x230] ss:$8 sps:$4 sm:$0xff]  }
 0x340   : > { %v5065_v19 = vpop.f32.mrf.mxu1  ;;  %5256 = vmatmul.mubr.bf16.gmra.mxu1 %v12455_v7  ;;  %v7988_v35 = vpop.f32.mrf.mxu0  ;;  %8179 = vmatmul.mubr.bf16.gmra.mxu0 %v11454_v52  ;;  %v11185_v7 = vld [vmem:[%s13086_s7 + $0x438] sm:$0xff] }
 0x341   : > { %9731 = vst.msk [vmem:[%s14257_s9 + $0x80] sm:$0xff] %vm9714_vm1, %v9474_v61  ;;  %v9219_v10 = vadd.f32 %v14248_v62, %v8956_v11  ;;  %v5066_v6 = vadd.f32 %v5065_v19, %v13454_v12  ;;  %11020 = vmatprep.mubr.msk.bf16.mxu1 %vm1927_vm0, %v12456_v21  ;;  %11687 = vmatprep.mubr.msk.bf16.mxu0 %vm1927_vm0, %v12458_v55  ;;  %v12466_v19 = vld [vmem:[%s13086_s7 + $0x244] ss:$8 sps:$4 sm:$0xff]  }
 0x342   : > { %v5067_v22 = vpop.f32.mrf.mxu1  ;;  %v7990_v36 = vpop.f32.mrf.mxu0 }
 0x343   : > { %v9475_v24 = vmax.f32 %v9219_v10, 0.0  ;;  %v8957_v32 = vadd.f32 %v7988_v35, %v5066_v6  ;;  %v12468_v35 = vld [vmem:[%s13086_s7 + $0x444] ss:$8 sps:$4 sm:$0xff]  }
 0x344   : > { %v5068_v17 = vpop.f32.mrf.mxu1  ;;  %v7991_v53 = vpop.f32.mrf.mxu0 }
 0x345   : > { %9732 = vst.msk [vmem:[%s14257_s9 + $0x88] sm:$0xff] %vm9714_vm1, %v9475_v24  ;;  %v9220_v12 = vadd.f32 %v14248_v62, %v8957_v32  ;;  %v5069_v4 = vadd.f32 %v5068_v17, %v13460_v20  ;;  %v11184_v20 = vld [vmem:[%s13086_s7 + $0x430] sm:$0xff]  ;;  %v11187_v17 = vld [vmem:[%s13086_s7 + $0x448] sm:$0xff] }
 0x346   : > { %v5070_v39 = vpop.f32.mrf.mxu1  ;;  %v7993_v58 = vpop.f32.mrf.mxu0  ;;  %v11458_v61 = vcombine.low %v11184_v20, %v11185_v7 }
 0x347   : > { %v9476_v42 = vmax.f32 %v9220_v12, 0.0  ;;  %v8958_v23 = vadd.f32 %v7991_v53, %v5069_v4 }
 0x348   : > { %v5073_v40 = vpop.f32.mrf.mxu1  ;;  %5264 = vmatmul.mubr.bf16.gmra.mxu1 %v12460_v54  ;;  %v7996_v28 = vpop.f32.mrf.mxu0  ;;  %8187 = vmatmul.mubr.bf16.gmra.mxu0 %v11456_v29 }
 0x349   : > { %9733 = vst.msk [vmem:[%s14257_s9 + $0x90] sm:$0xff] %vm9714_vm1, %v9476_v42  ;;  %v9221_v16 = vadd.f32 %v14248_v62, %v8958_v23  ;;  %v5074_v60 = vadd.f32 %v5073_v40, %v13468_v38  ;;  %11021 = vmatprep.mubr.msk.bf16.mxu1 %vm1927_vm0, %v12461_v15  ;;  %11688 = vmatprep.mubr.msk.bf16.mxu0 %vm1927_vm0, %v12463_v5  ;;  %v12470_v5 = vld [vmem:[%s13086_s7 + $0x240] ss:$8 sps:$4 sm:$0xff]   ;;  %v12471_v42 = vld [vmem:[%s13086_s7 + $0x254] ss:$8 sps:$4 sm:$0xff]  }
 0x34a   : > { %v5075_v52 = vpop.f32.mrf.mxu1  ;;  %v7998_v51 = vpop.f32.mrf.mxu0  ;;  %v12473_v23 = vld [vmem:[%s13086_s7 + $0x454] ss:$8 sps:$4 sm:$0xff]  }
 0x34b   : > { %v9477_v43 = vmax.f32 %v9221_v16, 0.0  ;;  %v8959_v21 = vadd.f32 %v7996_v28, %v5074_v60 }
 0x34c   : > { %v5076_v55 = vpop.f32.mrf.mxu1  ;;  %v7999_v30 = vpop.f32.mrf.mxu0 }
 0x34d   : > { %9734 = vst.msk [vmem:[%s14257_s9 + $0x98] sm:$0xff] %vm9714_vm1, %v9477_v43  ;;  %v9222_v38 = vadd.f32 %v14248_v62, %v8959_v21  ;;  %v5077_v11 = vadd.f32 %v5076_v55, %v13481_v50  ;;  %v11186_v50 = vld [vmem:[%s13086_s7 + $0x440] sm:$0xff]  ;;  %v11189_v43 = vld [vmem:[%s13086_s7 + $0x458] sm:$0xff] }
 0x34e   : > { %v5078_v10 = vpop.f32.mrf.mxu1  ;;  %v8001_v6 = vpop.f32.mrf.mxu0  ;;  %v11460_v39 = vcombine.low %v11186_v50, %v11187_v17 }
 0x34f   : > { %v9478_v57 = vmax.f32 %v9222_v38, 0.0  ;;  %v8960_v33 = vadd.f32 %v7999_v30, %v5077_v11  ;;  %v12475_v11 = vld [vmem:[%s13086_s7 + $0x250] ss:$8 sps:$4 sm:$0xff]   ;;  %v12476_v10 = vld [vmem:[%s13086_s7 + $0x264] ss:$8 sps:$4 sm:$0xff]  }
 0x350   : > { %v5081_v22 = vpop.f32.mrf.mxu1  ;;  %5272 = vmatmul.mubr.bf16.gmra.mxu1 %v12465_v48  ;;  %v8004_v36 = vpop.f32.mrf.mxu0  ;;  %8195 = vmatmul.mubr.bf16.gmra.mxu0 %v11458_v61  ;;  %v12478_v6 = vld [vmem:[%s13086_s7 + $0x464] ss:$8 sps:$4 sm:$0xff]  }
 0x351   : > { %9735 = vst.msk [vmem:[%s14257_s9 + $0xa0] sm:$0xff] %vm9714_vm1, %v9478_v57  ;;  %v9223_v24 = vadd.f32 %v14248_v62, %v8960_v33  ;;  %v5082_v32 = vadd.f32 %v5081_v22, %v13490_v9  ;;  %11022 = vmatprep.mubr.msk.bf16.mxu1 %vm1927_vm0, %v12466_v19  ;;  %11689 = vmatprep.mubr.msk.bf16.mxu0 %vm1927_vm0, %v12468_v35 }
 0x352   : > { %v5083_v53 = vpop.f32.mrf.mxu1  ;;  %v8006_v54 = vpop.f32.mrf.mxu0 }
 0x353   : > { %v9479_v29 = vmax.f32 %v9223_v24, 0.0  ;;  %v8961_v12 = vadd.f32 %v8004_v36, %v5082_v32  ;;  %v11191_v53 = vld [vmem:[%s13086_s7 + $0x468] sm:$0xff] }
 0x354   : > { %v5084_v4 = vpop.f32.mrf.mxu1  ;;  %v8007_v15 = vpop.f32.mrf.mxu0 }
 0x355   : > { %9736 = vst.msk [vmem:[%s14257_s9 + $0xa8] sm:$0xff] %vm9714_vm1, %v9479_v29  ;;  %v9224_v9 = vadd.f32 %v14248_v62, %v8961_v12  ;;  %v5085_v58 = vadd.f32 %v5084_v4, %v13496_v27  ;;  %v11188_v27 = vld [vmem:[%s13086_s7 + $0x450] sm:$0xff] }
 0x356   : > { %v5086_v40 = vpop.f32.mrf.mxu1  ;;  %v8009_v28 = vpop.f32.mrf.mxu0  ;;  %v11462_v19 = vcombine.low %v11188_v27, %v11189_v43  ;;  %v11193_v27 = vld [vmem:[%s13086_s7 + $0x478] sm:$0xff] }
 0x357   : > { %v9480_v16 = vmax.f32 %v9224_v9, 0.0  ;;  %v8962_v60 = vadd.f32 %v8007_v15, %v5085_v58 }
 0x358   : > { %v5089_v20 = vpop.f32.mrf.mxu1  ;;  %5280 = vmatmul.mubr.bf16.gmra.mxu1 %v12470_v5  ;;  %v8012_v7 = vpop.f32.mrf.mxu0  ;;  %8203 = vmatmul.mubr.bf16.gmra.mxu0 %v11460_v39  ;;  %v12480_v39 = vld [vmem:[%s13086_s7 + $0x260] ss:$8 sps:$4 sm:$0xff]  }
 0x359   : > { %9737 = vst.msk [vmem:[%s14257_s9 + $0xb0] sm:$0xff] %vm9714_vm1, %v9480_v16  ;;  %v9225_v52 = vadd.f32 %v14248_v62, %v8962_v60  ;;  %v5090_v51 = vadd.f32 %v5089_v20, %v13504_v46  ;;  %11023 = vmatprep.mubr.msk.bf16.mxu1 %vm1927_vm0, %v12471_v42  ;;  %11690 = vmatprep.mubr.msk.bf16.mxu0 %vm1927_vm0, %v12473_v23  ;;  %v12481_v42 = vld [vmem:[%s13086_s7 + $0x274] ss:$8 sps:$4 sm:$0xff]  }
 0x35a   : > { %v5091_v21 = vpop.f32.mrf.mxu1  ;;  %v8014_v55 = vpop.f32.mrf.mxu0  ;;  %v12483_v23 = vld [vmem:[%s13086_s7 + $0x474] ss:$8 sps:$4 sm:$0xff]  }
 0x35b   : > { %v9481_v30 = vmax.f32 %v9225_v52, 0.0  ;;  %v8963_v48 = vadd.f32 %v8012_v7, %v5090_v51 }
 0x35c   : > { %v5092_v61 = vpop.f32.mrf.mxu1  ;;  %v8015_v38 = vpop.f32.mrf.mxu0 }
 0x35d   : > { %9738 = vst.msk [vmem:[%s14257_s9 + $0xb8] sm:$0xff] %vm9714_vm1, %v9481_v30  ;;  %v9226_v46 = vadd.f32 %v14248_v62, %v8963_v48  ;;  %v5093_v35 = vadd.f32 %v5092_v61, %v13510_v0  ;;  %v11190_v0 = vld [vmem:[%s13086_s7 + $0x460] sm:$0xff] }
 0x35e   : > { %v5094_v57 = vpop.f32.mrf.mxu1  ;;  %v8017_v33 = vpop.f32.mrf.mxu0  ;;  %v11464_v9 = vcombine.low %v11190_v0, %v11191_v53 }
 0x35f   : > { %v9482_v22 = vmax.f32 %v9226_v46, 0.0  ;;  %v8964_v36 = vadd.f32 %v8015_v38, %v5093_v35  ;;  %v12485_v38 = vld [vmem:[%s13086_s7 + $0x270] ss:$8 sps:$4 sm:$0xff]   ;;  %v12486_v46 = vld [vmem:[%s13086_s7 + $0x284] ss:$8 sps:$4 sm:$0xff]  }
 0x360   : > { %v5097_v24 = vpop.f32.mrf.mxu1  ;;  %5288 = vmatmul.mubr.bf16.gmra.mxu1 %v12475_v11  ;;  %v8020_v32 = vpop.f32.mrf.mxu0  ;;  %8211 = vmatmul.mubr.bf16.gmra.mxu0 %v11462_v19  ;;  %v12488_v35 = vld [vmem:[%s13086_s7 + $0x484] ss:$8 sps:$4 sm:$0xff]  }
 0x361   : > { %9739 = vst.msk [vmem:[%s14257_s9 + $0xc0] sm:$0xff] %vm9714_vm1, %v9482_v22  ;;  %v9227_v50 = vadd.f32 %v14248_v62, %v8964_v36  ;;  %v5098_v17 = vadd.f32 %v5097_v24, %v13518_v44  ;;  %11024 = vmatprep.mubr.msk.bf16.mxu1 %vm1927_vm0, %v12476_v10  ;;  %11691 = vmatprep.mubr.msk.bf16.mxu0 %vm1927_vm0, %v12478_v6 }
 0x362   : > { %v5099_v54 = vpop.f32.mrf.mxu1  ;;  %v8022_v29 = vpop.f32.mrf.mxu0 }
 0x363   : > { %v9483_v12 = vmax.f32 %v9227_v50, 0.0  ;;  %v8965_v4 = vadd.f32 %v8020_v32, %v5098_v17  ;;  %v11195_v50 = vld [vmem:[%s13086_s7 + $0x488] sm:$0xff] }
 0x364   : > { %v5100_v15 = vpop.f32.mrf.mxu1  ;;  %v8023_v5 = vpop.f32.mrf.mxu0 }
 0x365   : > { %9740 = vst.msk [vmem:[%s14257_s9 + $0xc8] sm:$0xff] %vm9714_vm1, %v9483_v12  ;;  %v9228_v44 = vadd.f32 %v14248_v62, %v8965_v4  ;;  %v5101_v58 = vadd.f32 %v5100_v15, %v13524_v56  ;;  %v11192_v56 = vld [vmem:[%s13086_s7 + $0x470] sm:$0xff]  ;;  %v12490_v4 = vld [vmem:[%s13086_s7 + $0x280] ss:$8 sps:$4 sm:$0xff]  }
 0x366   : > { %v5102_v40 = vpop.f32.mrf.mxu1  ;;  %v8025_v28 = vpop.f32.mrf.mxu0  ;;  %v11466_v11 = vcombine.low %v11192_v56, %v11193_v27 }
 0x367   : > { %v9484_v16 = vmax.f32 %v9228_v44, 0.0  ;;  %v8966_v60 = vadd.f32 %v8023_v5, %v5101_v58 }
 0x368   : > { %v5105_v20 = vpop.f32.mrf.mxu1  ;;  %5296 = vmatmul.mubr.bf16.gmra.mxu1 %v12480_v39  ;;  %v8028_v7 = vpop.f32.mrf.mxu0  ;;  %8219 = vmatmul.mubr.bf16.gmra.mxu0 %v11464_v9  ;;  %v12491_v39 = vld [vmem:[%s13086_s7 + $0x294] ss:$8 sps:$4 sm:$0xff]  }
 0x369   : > { %9741 = vst.msk [vmem:[%s14257_s9 + $0xd0] sm:$0xff] %vm9714_vm1, %v9484_v16  ;;  %v9229_v52 = vadd.f32 %v14248_v62, %v8966_v60  ;;  %v5106_v51 = vadd.f32 %v5105_v20, %v13532_v47  ;;  %11025 = vmatprep.mubr.msk.bf16.mxu1 %vm1927_vm0, %v12481_v42  ;;  %11692 = vmatprep.mubr.msk.bf16.mxu0 %vm1927_vm0, %v12483_v23  ;;  %v12493_v9 = vld [vmem:[%s13086_s7 + $0x494] ss:$8 sps:$4 sm:$0xff]  }
 0x36a   : > { %v5107_v43 = vpop.f32.mrf.mxu1  ;;  %v8030_v21 = vpop.f32.mrf.mxu0  ;;  %v11197_v20 = vld [vmem:[%s13086_s7 + $0x498] sm:$0xff] }
 0x36b   : > { %v9485_v55 = vmax.f32 %v9229_v52, 0.0  ;;  %v8967_v30 = vadd.f32 %v8028_v7, %v5106_v51  ;;  %v12495_v21 = vld [vmem:[%s13086_s7 + $0x290] ss:$8 sps:$4 sm:$0xff]  }
 0x36c   : > { %v5108_v48 = vpop.f32.mrf.mxu1  ;;  %v8031_v61 = vpop.f32.mrf.mxu0 }
 0x36d   : > { %9742 = vst.msk [vmem:[%s14257_s9 + $0xd8] sm:$0xff] %vm9714_vm1, %v9485_v55  ;;  %v9230_v47 = vadd.f32 %v14248_v62, %v8967_v30  ;;  %v5109_v19 = vadd.f32 %v5108_v48, %v13538_v45  ;;  %v11194_v45 = vld [vmem:[%s13086_s7 + $0x480] sm:$0xff] }
 0x36e   : > { %v5110_v10 = vpop.f32.mrf.mxu1  ;;  %v8033_v6 = vpop.f32.mrf.mxu0  ;;  %v11468_v15 = vcombine.low %v11194_v45, %v11195_v50  ;;  %v12496_v48 = vld [vmem:[%s13086_s7 + $0x2a4] ss:$8 sps:$4 sm:$0xff]   ;;  %v12500_v50 = vld [vmem:[%s13086_s7 + $0x2a0] ss:$8 sps:$4 sm:$0xff]  }
 0x36f   : > { %v9486_v57 = vmax.f32 %v9230_v47, 0.0  ;;  %v8968_v33 = vadd.f32 %v8031_v61, %v5109_v19  ;;  %v12498_v61 = vld [vmem:[%s13086_s7 + $0x4a4] ss:$8 sps:$4 sm:$0xff]  }
 0x370   : > { %v5113_v22 = vpop.f32.mrf.mxu1  ;;  %5304 = vmatmul.mubr.bf16.gmra.mxu1 %v12485_v38  ;;  %v8036_v36 = vpop.f32.mrf.mxu0  ;;  %8227 = vmatmul.mubr.bf16.gmra.mxu0 %v11466_v11 }
 0x371   : > { %9743 = vst.msk [vmem:[%s14257_s9 + $0xe0] sm:$0xff] %vm9714_vm1, %v9486_v57  ;;  %v9231_v24 = vadd.f32 %v14248_v62, %v8968_v33  ;;  %v5114_v32 = vadd.f32 %v5113_v22, %v13546_v14  ;;  %11026 = vmatprep.mubr.msk.bf16.mxu1 %vm1927_vm0, %v12486_v46  ;;  %11693 = vmatprep.mubr.msk.bf16.mxu0 %vm1927_vm0, %v12488_v35  ;;  %v11199_v57 = vld [vmem:[%s13086_s7 + $0x4a8] sm:$0xff] }
 0x372   : > { %v5115_v17 = vpop.f32.mrf.mxu1  ;;  %v8038_v0 = vpop.f32.mrf.mxu0 }
 0x373   : > { %v9487_v53 = vmax.f32 %v9231_v24, 0.0  ;;  %v8969_v54 = vadd.f32 %v8036_v36, %v5114_v32 }
 0x374   : > { %v5116_v29 = vpop.f32.mrf.mxu1  ;;  %v8039_v12 = vpop.f32.mrf.mxu0 }
 0x375   : > { %9744 = vst.msk [vmem:[%s14257_s9 + $0xe8] sm:$0xff] %vm9714_vm1, %v9487_v53  ;;  %v9232_v14 = vadd.f32 %v14248_v62, %v8969_v54  ;;  %v5117_v5 = vadd.f32 %v5116_v29, %v13552_v37  ;;  %v11196_v37 = vld [vmem:[%s13086_s7 + $0x490] sm:$0xff] }
 0x376   : > { %v5118_v44 = vpop.f32.mrf.mxu1  ;;  %v8041_v58 = vpop.f32.mrf.mxu0  ;;  %v11470_v55 = vcombine.low %v11196_v37, %v11197_v20  ;;  %v12501_v53 = vld [vmem:[%s13086_s7 + $0x2b4] ss:$8 sps:$4 sm:$0xff]  }
 0x377   : > { %v9488_v42 = vmax.f32 %v9232_v14, 0.0  ;;  %v8970_v23 = vadd.f32 %v8039_v12, %v5117_v5  ;;  %v12503_v54 = vld [vmem:[%s13086_s7 + $0x4b4] ss:$8 sps:$4 sm:$0xff]  }
 0x378   : > { %v5121_v40 = vpop.f32.mrf.mxu1  ;;  %5312 = vmatmul.mubr.bf16.gmra.mxu1 %v12490_v4  ;;  %v8044_v28 = vpop.f32.mrf.mxu0  ;;  %8235 = vmatmul.mubr.bf16.gmra.mxu0 %v11468_v15  ;;  %v11201_v44 = vld [vmem:[%s13086_s7 + $0x4b8] sm:$0xff] }
 0x379   : > { %9745 = vst.msk [vmem:[%s14257_s9 + $0xf0] sm:$0xff] %vm9714_vm1, %v9488_v42  ;;  %v9233_v16 = vadd.f32 %v14248_v62, %v8970_v23  ;;  %v5122_v60 = vadd.f32 %v5121_v40, %v13560_v41  ;;  %11027 = vmatprep.mubr.msk.bf16.mxu1 %vm1927_vm0, %v12491_v39  ;;  %11694 = vmatprep.mubr.msk.bf16.mxu0 %vm1927_vm0, %v12493_v9 }
 0x37a   : > { %v5123_v7 = vpop.f32.mrf.mxu1  ;;  %v8046_v52 = vpop.f32.mrf.mxu0 }
 0x37b   : > { %v9489_v51 = vmax.f32 %v9233_v16, 0.0  ;;  %v8971_v56 = vadd.f32 %v8044_v28, %v5122_v60  ;;  %v12505_v60 = vld [vmem:[%s13086_s7 + $0x2b0] ss:$8 sps:$4 sm:$0xff]   ;;  %v12506_v7 = vld [vmem:[%s13086_s7 + $0x2c4] ss:$8 sps:$4 sm:$0xff]  }
 0x37c   : > { %v5124_v27 = vpop.f32.mrf.mxu1  ;;  %v8047_v43 = vpop.f32.mrf.mxu0  ;;  %v12508_v52 = vld [vmem:[%s13086_s7 + $0x4c4] ss:$8 sps:$4 sm:$0xff]  }
 0x37d   : > { %9746 = vst.msk [vmem:[%s14257_s9 + $0xf8] sm:$0xff] %vm9714_vm1, %v9489_v51  ;;  %v9234_v41 = vadd.f32 %v14248_v62, %v8971_v56  ;;  %v5125_v30 = vadd.f32 %v5124_v27, %v13566_v26  ;;  %v11198_v26 = vld [vmem:[%s13086_s7 + $0x4a0] sm:$0xff] }
 0x37e   : > { %v5126_v38 = vpop.f32.mrf.mxu1  ;;  %v8049_v11 = vpop.f32.mrf.mxu0  ;;  %v11472_v17 = vcombine.low %v11198_v26, %v11199_v57  ;;  %v12511_v26 = vld [vmem:[%s13086_s7 + $0x2d4] ss:$8 sps:$4 sm:$0xff]  }
 0x37f   : > { %v9490_v47 = vmax.f32 %v9234_v41, 0.0  ;;  %v8972_v19 = vadd.f32 %v8047_v43, %v5125_v30  ;;  %v12513_v57 = vld [vmem:[%s13086_s7 + $0x4d4] ss:$8 sps:$4 sm:$0xff]  }
 0x380   : > { %v5129_v46 = vpop.f32.mrf.mxu1  ;;  %5320 = vmatmul.mubr.bf16.gmra.mxu1 %v12495_v21  ;;  %v8052_v35 = vpop.f32.mrf.mxu0  ;;  %8243 = vmatmul.mubr.bf16.gmra.mxu0 %v11470_v55 }
 0x381   : > { %9747 = vst.msk [vmem:[%s14257_s9 + $0x100] sm:$0xff] %vm9714_vm1, %v9490_v47  ;;  %v9235_v10 = vadd.f32 %v14248_v62, %v8972_v19  ;;  %v5130_v6 = vadd.f32 %v5129_v46, %v13574_v8  ;;  %11028 = vmatprep.mubr.msk.bf16.mxu1 %vm1927_vm0, %v12496_v48  ;;  %11695 = vmatprep.mubr.msk.bf16.mxu0 %vm1927_vm0, %v12498_v61  ;;  %v11203_v48 = vld [vmem:[%s13086_s7 + $0x4c8] sm:$0xff] }
 0x382   : > { %v5131_v33 = vpop.f32.mrf.mxu1  ;;  %v8054_v22 = vpop.f32.mrf.mxu0 }
 0x383   : > { %v9491_v36 = vmax.f32 %v9235_v10, 0.0  ;;  %v8973_v24 = vadd.f32 %v8052_v35, %v5130_v6  ;;  %v12510_v35 = vld [vmem:[%s13086_s7 + $0x2c0] ss:$8 sps:$4 sm:$0xff]  }
 0x384   : > { %v5132_v32 = vpop.f32.mrf.mxu1  ;;  %v8055_v45 = vpop.f32.mrf.mxu0 }
 0x385   : > { %9748 = vst.msk [vmem:[%s14257_s9 + $0x108] sm:$0xff] %vm9714_vm1, %v9491_v36  ;;  %v9236_v8 = vadd.f32 %v14248_v62, %v8973_v24  ;;  %v5133_v0 = vadd.f32 %v5132_v32, %v13586_v25  ;;  %v11200_v25 = vld [vmem:[%s13086_s7 + $0x4b0] sm:$0xff] }
 0x386   : > { %v5134_v29 = vpop.f32.mrf.mxu1  ;;  %v8057_v12 = vpop.f32.mrf.mxu0  ;;  %v11474_v37 = vcombine.low %v11200_v25, %v11201_v44 }
 0x387   : > { %v9492_v4 = vmax.f32 %v9236_v8, 0.0  ;;  %v8974_v15 = vadd.f32 %v8055_v45, %v5133_v0  ;;  %v11205_v8 = vld [vmem:[%s13086_s7 + $0x4d8] sm:$0xff] }
 0x388   : > { %v5137_v14 = vpop.f32.mrf.mxu1  ;;  %5328 = vmatmul.mubr.bf16.gmra.mxu1 %v12500_v50  ;;  %v8060_v5 = vpop.f32.mrf.mxu0  ;;  %8251 = vmatmul.mubr.bf16.gmra.mxu0 %v11472_v17 }
 0x389   : > { %9749 = vst.msk [vmem:[%s14257_s9 + $0x110] sm:$0xff] %vm9714_vm1, %v9492_v4  ;;  %v9237_v39 = vadd.f32 %v14248_v62, %v8974_v15  ;;  %v5138_v9 = vadd.f32 %v5137_v14, %v13594_v1  ;;  %11029 = vmatprep.mubr.msk.bf16.mxu1 %vm1927_vm0, %v12501_v53  ;;  %11696 = vmatprep.mubr.msk.bf16.mxu0 %vm1927_vm0, %v12503_v54  ;;  %v14528_v1 = vld [vmem:[%s16075_s2] ss:$0 sm:$0xff]  ;;  %v12515_v15 = vld [vmem:[%s13086_s7 + $0x2d0] ss:$8 sps:$4 sm:$0xff]  }
 0x38a   : > { %v5139_v58 = vpop.f32.mrf.mxu1  ;;  %v8062_v42 = vpop.f32.mrf.mxu0 }
 0x38b   : > { %v9493_v23 = vmax.f32 %v9237_v39, 0.0  ;;  %v8975_v40 = vadd.f32 %v8060_v5, %v5138_v9  ;;  %v12516_v39 = vld [vmem:[%s13086_s7 + $0x2e4] ss:$8 sps:$4 sm:$0xff]  }
 0x38c   : > { %v5140_v28 = vpop.f32.mrf.mxu1  ;;  %v8063_v16 = vpop.f32.mrf.mxu0  ;;  %v12518_v9 = vld [vmem:[%s13086_s7 + $0x4e4] ss:$8 sps:$4 sm:$0xff]  }
 0x38d   : > { %9750 = vst.msk [vmem:[%s14257_s9 + $0x118] sm:$0xff] %vm9714_vm1, %v9493_v23  ;;  %v9238_v62 = vadd.f32 %v14528_v1, %v8975_v40  ;;  %v5141_v20 = vadd.f32 %v5140_v28, %v13600_v2  ;;  %v11202_v2 = vld [vmem:[%s13086_s7 + $0x4c0] sm:$0xff] }
 0x38e   : > { %v5142_v51 = vpop.f32.mrf.mxu1  ;;  %v8065_v56 = vpop.f32.mrf.mxu0  ;;  %v11476_v10 = vcombine.low %v11202_v2, %v11203_v48 }
 0x38f   : > { %v9494_v27 = vmax.f32 %v9238_v62, 0.0  ;;  %v8976_v43 = vadd.f32 %v8063_v16, %v5141_v20  ;;  %v12520_v56 = vld [vmem:[%s13086_s7 + $0x2e0] ss:$8 sps:$4 sm:$0xff]  }
 0x390   : > { %v5145_v21 = vpop.f32.mrf.mxu1  ;;  %5336 = vmatmul.mubr.bf16.gmra.mxu1 %v12505_v60  ;;  %v8068_v55 = vpop.f32.mrf.mxu0  ;;  %8259 = vmatmul.mubr.bf16.gmra.mxu0 %v11474_v37  ;;  %v11207_v60 = vld [vmem:[%s13086_s7 + $0x4e8] sm:$0xff] }
 0x391   : > { %9751 = vst.msk [vmem:[%s14257_s9 + $0x120] sm:$0xff] %vm9714_vm1, %v9494_v27  ;;  %v9239_v41 = vadd.f32 %v14528_v1, %v8976_v43  ;;  %v5146_v30 = vadd.f32 %v5145_v21, %v13608_v34  ;;  %11030 = vmatprep.mubr.msk.bf16.mxu1 %vm1927_vm0, %v12506_v7  ;;  %11697 = vmatprep.mubr.msk.bf16.mxu0 %vm1927_vm0, %v12508_v52  ;;  %v12521_v21 = vld [vmem:[%s13086_s7 + $0x2f4] ss:$8 sps:$4 sm:$0xff]  }
 0x392   : > { %v5147_v61 = vpop.f32.mrf.mxu1  ;;  %v8070_v38 = vpop.f32.mrf.mxu0 }
 0x393   : > { %v9495_v11 = vmax.f32 %v9239_v41, 0.0  ;;  %v8977_v47 = vadd.f32 %v8068_v55, %v5146_v30  ;;  %v12523_v55 = vld [vmem:[%s13086_s7 + $0x4f4] ss:$8 sps:$4 sm:$0xff]  }
 0x394   : > { %v5148_v19 = vpop.f32.mrf.mxu1  ;;  %v8071_v46 = vpop.f32.mrf.mxu0 }
 0x395   : > { %9752 = vst.msk [vmem:[%s14257_s9 + $0x128] sm:$0xff] %vm9714_vm1, %v9495_v11  ;;  %v9240_v34 = vadd.f32 %v14528_v1, %v8977_v47  ;;  %v5149_v6 = vadd.f32 %v5148_v19, %v13614_v31  ;;  %v11204_v31 = vld [vmem:[%s13086_s7 + $0x4d0] sm:$0xff]  ;;  %v11209_v19 = vld [vmem:[%s13086_s7 + $0x4f8] sm:$0xff] }
 0x396   : > { %v5150_v33 = vpop.f32.mrf.mxu1  ;;  %v8073_v22 = vpop.f32.mrf.mxu0  ;;  %v11478_v14 = vcombine.low %v11204_v31, %v11205_v8 }
 0x397   : > { %v9496_v36 = vmax.f32 %v9240_v34, 0.0  ;;  %v8978_v24 = vadd.f32 %v8071_v46, %v5149_v6 }
 0x398   : > { %v5153_v32 = vpop.f32.mrf.mxu1  ;;  %5344 = vmatmul.mubr.bf16.gmra.mxu1 %v12510_v35  ;;  %v8076_v45 = vpop.f32.mrf.mxu0  ;;  %8267 = vmatmul.mubr.bf16.gmra.mxu0 %v11476_v10 }
 0x399   : > { %9753 = vst.msk [vmem:[%s14257_s9 + $0x130] sm:$0xff] %vm9714_vm1, %v9496_v36  ;;  %v9241_v50 = vadd.f32 %v14528_v1, %v8978_v24  ;;  %v5154_v17 = vadd.f32 %v5153_v32, %v13622_v18  ;;  %11031 = vmatprep.mubr.msk.bf16.mxu1 %vm1927_vm0, %v12511_v26  ;;  %11698 = vmatprep.mubr.msk.bf16.mxu0 %vm1927_vm0, %v12513_v57  ;;  %v12525_v57 = vld [vmem:[%s13086_s7 + $0x2f0] ss:$8 sps:$4 sm:$0xff]   ;;  %v12526_v36 = vld [vmem:[%s13086_s7 + $0x304] ss:$8 sps:$4 sm:$0xff]  }
 0x39a   : > { %v5155_v0 = vpop.f32.mrf.mxu1  ;;  %v8078_v53 = vpop.f32.mrf.mxu0  ;;  %v12528_v24 = vld [vmem:[%s13086_s7 + $0x504] ss:$8 sps:$4 sm:$0xff]  }
 0x39b   : > { %v9497_v54 = vmax.f32 %v9241_v50, 0.0  ;;  %v8979_v29 = vadd.f32 %v8076_v45, %v5154_v17  ;;  %v16289_v53 = vld [vmem:[#allocation51_spill] sm:$0xff] }
 0x39c   : > { %v5156_v12 = vpop.f32.mrf.mxu1  ;;  %v8079_v4 = vpop.f32.mrf.mxu0 }
 0x39d   : > { %9754 = vst.msk [vmem:[%s14257_s9 + $0x138] sm:$0xff] %vm9714_vm1, %v9497_v54  ;;  %v9242_v18 = vadd.f32 %v14528_v1, %v8979_v29  ;;  %v5157_v5 = vadd.f32 %v5156_v12, %v13628_v3  ;;  %v11206_v3 = vld [vmem:[%s13086_s7 + $0x4e0] sm:$0xff]  ;;  %v11211_v29 = vld [vmem:[%s13086_s7 + $0x508] sm:$0xff] }
 0x39e   : > { %v5158_v25 = vpop.f32.mrf.mxu1  ;;  %v8081_v44 = vpop.f32.mrf.mxu0  ;;  %v11480_v27 = vcombine.low %v11206_v3, %v11207_v60 }
 0x39f   : > { %v9498_v58 = vmax.f32 %v9242_v18, 0.0  ;;  %v8980_v42 = vadd.f32 %v8079_v4, %v5157_v5  ;;  %v16290_v44 = vld [vmem:[#allocation53_spill] sm:$0xff] }
 0x3a0   : > { %v5161_v23 = vpop.f32.mrf.mxu1  ;;  %5352 = vmatmul.mubr.bf16.gmra.mxu1 %v12515_v15  ;;  %v8084_v40 = vpop.f32.mrf.mxu0  ;;  %8275 = vmatmul.mubr.bf16.gmra.mxu0 %v11478_v14 }
 0x3a1   : > { %9755 = vst.msk [vmem:[%s14257_s9 + $0x140] sm:$0xff] %vm9714_vm1, %v9498_v58  ;;  %v9243_v28 = vadd.f32 %v14528_v1, %v8980_v42  ;;  %v5162_v16 = vadd.f32 %v5161_v23, %v13636_v63  ;;  %11032 = vmatprep.mubr.msk.bf16.mxu1 %vm1927_vm0, %v12516_v39  ;;  %11699 = vmatprep.mubr.msk.bf16.mxu0 %vm1927_vm0, %v12518_v9  ;;  %v12530_v39 = vld [vmem:[%s13086_s7 + $0x300] ss:$8 sps:$4 sm:$0xff]   ;;  %v12531_v42 = vld [vmem:[%s13086_s7 + $0x314] ss:$8 sps:$4 sm:$0xff]  }
 0x3a2   : > { %v5163_v37 = vpop.f32.mrf.mxu1  ;;  %v8086_v62 = vpop.f32.mrf.mxu0  ;;  %v12533_v23 = vld [vmem:[%s13086_s7 + $0x514] ss:$8 sps:$4 sm:$0xff]  }
 0x3a3   : > { %v9499_v20 = vmax.f32 %v9243_v28, 0.0  ;;  %v8981_v7 = vadd.f32 %v8084_v40, %v5162_v16 }
 0x3a4   : > { %v5164_v52 = vpop.f32.mrf.mxu1  ;;  %v8087_v51 = vpop.f32.mrf.mxu0 }
 0x3a5   : > { %9756 = vst.msk [vmem:[%s14257_s9 + $0x148] sm:$0xff] %vm9714_vm1, %v9499_v20  ;;  %v9244_v63 = vadd.f32 %v14528_v1, %v8981_v7  ;;  %v5165_v43 = vadd.f32 %v5164_v52, %v13642_v59  ;;  %v11208_v59 = vld [vmem:[%s13086_s7 + $0x4f0] sm:$0xff] }
 0x3a6   : > { %v5166_v41 = vpop.f32.mrf.mxu1  ;;  %v8089_v30 = vpop.f32.mrf.mxu0  ;;  %v11482_v33 = vcombine.low %v11208_v59, %v11209_v19  ;;  %v16291_v20 = vld [vmem:[#allocation55_spill] sm:$0xff] }
 0x3a7   : > { %v9500_v2 = vmax.f32 %v9244_v63, 0.0  ;;  %v8982_v48 = vadd.f32 %v8087_v51, %v5165_v43  ;;  %v11212_v52 = vld [vmem:[%s13086_s7 + $0x510] sm:$0xff]  ;;  %v11213_v51 = vld [vmem:[%s13086_s7 + $0x518] sm:$0xff] }
 0x3a8   : > { %v5169_v61 = vpop.f32.mrf.mxu1  ;;  %5360 = vmatmul.mubr.bf16.gmra.mxu1 %v12520_v56  ;;  %v8092_v38 = vpop.f32.mrf.mxu0  ;;  %8283 = vmatmul.mubr.bf16.gmra.mxu0 %v11480_v27  ;;  %v12535_v41 = vld [vmem:[%s13086_s7 + $0x310] ss:$8 sps:$4 sm:$0xff]   ;;  %v11486_v30 = vcombine.low %v11212_v52, %v11213_v51 }
 0x3a9   : > { %9757 = vst.msk [vmem:[%s14257_s9 + $0x150] sm:$0xff] %vm9714_vm1, %v9500_v2  ;;  %v9245_v11 = vadd.f32 %v14528_v1, %v8982_v48  ;;  %v5170_v47 = vadd.f32 %v5169_v61, %v13650_v49  ;;  %11033 = vmatprep.mubr.msk.bf16.mxu1 %vm1927_vm0, %v12521_v21  ;;  %11700 = vmatprep.mubr.msk.bf16.mxu0 %vm1927_vm0, %v12523_v55  ;;  %v16292_v48 = vld [vmem:[#allocation57_spill] sm:$0xff] }
 0x3aa   : > { %v5171_v46 = vpop.f32.mrf.mxu1  ;;  %v8094_v35 = vpop.f32.mrf.mxu0 }
 0x3ab   : > { %v9501_v10 = vmax.f32 %v9245_v11, 0.0  ;;  %v8983_v34 = vadd.f32 %v8092_v38, %v5170_v47  ;;  %v12536_v38 = vld [vmem:[%s13086_s7 + $0x324] ss:$8 sps:$4 sm:$0xff]  }
 0x3ac   : > { %v5172_v6 = vpop.f32.mrf.mxu1  ;;  %v8095_v26 = vpop.f32.mrf.mxu0  ;;  %v12538_v11 = vld [vmem:[%s13086_s7 + $0x524] ss:$8 sps:$4 sm:$0xff]  }
 0x3ad   : > { %9758 = vst.msk [vmem:[%s14257_s9 + $0x158] sm:$0xff] %vm9714_vm1, %v9501_v10  ;;  %v9246_v49 = vadd.f32 %v14528_v1, %v8983_v34  ;;  %v5173_v22 = vadd.f32 %v5172_v6, %v13656_v13  ;;  %v11210_v13 = vld [vmem:[%s13086_s7 + $0x500] sm:$0xff]  ;;  %v16293_v6 = vld [vmem:[#allocation59_spill] sm:$0xff] }
 0x3ae   : > { %v5174_v32 = vpop.f32.mrf.mxu1  ;;  %v8097_v45 = vpop.f32.mrf.mxu0  ;;  %v11484_v9 = vcombine.low %v11210_v13, %v11211_v29 }
 0x3af   : > { %v9502_v50 = vmax.f32 %v9246_v49, 0.0  ;;  %v8984_v17 = vadd.f32 %v8095_v26, %v5173_v22 }
 0x3b0   : > { %v5177_v31 = vpop.f32.mrf.mxu1  ;;  %5368 = vmatmul.mubr.bf16.gmra.mxu1 %v12525_v57  ;;  %v8100_v8 = vpop.f32.mrf.mxu0  ;;  %8291 = vmatmul.mubr.bf16.gmra.mxu0 %v11482_v33  ;;  %v11214_v57 = vld [vmem:[%s13086_s7 + $0x520] sm:$0xff]  ;;  %v11215_v33 = vld [vmem:[%s13086_s7 + $0x528] sm:$0xff] }
 0x3b1   : > { %9759 = vst.msk [vmem:[%s14257_s9 + $0x160] sm:$0xff] %vm9714_vm1, %v9502_v50  ;;  %v9247_v0 = vadd.f32 %v14528_v1, %v8984_v17  ;;  %v5178_v54 = vadd.f32 %v5177_v31, %v16289_v53  ;;  %11034 = vmatprep.mubr.msk.bf16.mxu1 %vm1927_vm0, %v12526_v36  ;;  %11701 = vmatprep.mubr.msk.bf16.mxu0 %vm1927_vm0, %v12528_v24  ;;  %v12540_v50 = vld [vmem:[%s13086_s7 + $0x320] ss:$8 sps:$4 sm:$0xff]   ;;  %v12541_v53 = vld [vmem:[%s13086_s7 + $0x334] ss:$8 sps:$4 sm:$0xff]  }
 0x3b2   : > { %v5179_v12 = vpop.f32.mrf.mxu1  ;;  %v8102_v4 = vpop.f32.mrf.mxu0  ;;  %v11488_v17 = vcombine.low %v11214_v57, %v11215_v33 }
 0x3b3   : > { %v9503_v15 = vmax.f32 %v9247_v0, 0.0  ;;  %v8985_v14 = vadd.f32 %v8100_v8, %v5178_v54  ;;  %v16294_v8 = vld [vmem:[#allocation61_spill] sm:$0xff]  ;;  %v12543_v54 = vld [vmem:[%s13086_s7 + $0x534] ss:$8 sps:$4 sm:$0xff]  }
 0x3b4   : > { %v5180_v18 = vpop.f32.mrf.mxu1  ;;  %v8103_v5 = vpop.f32.mrf.mxu0 }
 0x3b5   : > { %9760 = vst.msk [vmem:[%s14257_s9 + $0x168] sm:$0xff] %vm9714_vm1, %v9503_v15  ;;  %v9248_v25 = vadd.f32 %v14528_v1, %v8985_v14  ;;  %v5181_v58 = vadd.f32 %v5180_v18, %v16290_v44 }
 0x3b6   : > { %v5182_v40 = vpop.f32.mrf.mxu1  ;;  %v8105_v28 = vpop.f32.mrf.mxu0 }
 0x3b7   : > { %v9504_v16 = vmax.f32 %v9248_v25, 0.0  ;;  %v8986_v3 = vadd.f32 %v8103_v5, %v5181_v58  ;;  %v16295_v5 = vld [vmem:[#allocation63_spill] sm:$0xff]  ;;  %v11217_v25 = vld [vmem:[%s13086_s7 + $0x538] sm:$0xff] }
 0x3b8   : > { %v5185_v60 = vpop.f32.mrf.mxu1  ;;  %5376 = vmatmul.mubr.bf16.gmra.mxu1 %v12530_v39  ;;  %v8108_v37 = vpop.f32.mrf.mxu0  ;;  %8299 = vmatmul.mubr.bf16.gmra.mxu0 %v11484_v9  ;;  %v11216_v9 = vld [vmem:[%s13086_s7 + $0x530] sm:$0xff] }
 0x3b9   : > { %9761 = vst.msk [vmem:[%s14257_s9 + $0x170] sm:$0xff] %vm9714_vm1, %v9504_v16  ;;  %v9249_v62 = vadd.f32 %v14528_v1, %v8986_v3  ;;  %v5186_v7 = vadd.f32 %v5185_v60, %v16291_v20  ;;  %11035 = vmatprep.mubr.msk.bf16.mxu1 %vm1927_vm0, %v12531_v42  ;;  %11702 = vmatprep.mubr.msk.bf16.mxu0 %vm1927_vm0, %v12533_v23  ;;  %v12545_v16 = vld [vmem:[%s13086_s7 + $0x330] ss:$8 sps:$4 sm:$0xff]   ;;  %v12546_v20 = vld [vmem:[%s13086_s7 + $0x344] ss:$8 sps:$4 sm:$0xff]  }
 0x3ba   : > { %v5187_v56 = vpop.f32.mrf.mxu1  ;;  %v8110_v27 = vpop.f32.mrf.mxu0  ;;  %v11490_v3 = vcombine.low %v11216_v9, %v11217_v25 }
 0x3bb   : > { %v9505_v63 = vmax.f32 %v9249_v62, 0.0  ;;  %v8987_v43 = vadd.f32 %v8108_v37, %v5186_v7  ;;  %v16296_v37 = vld [vmem:[#allocation65_spill] sm:$0xff] }
 0x3bc   : > { %v5188_v21 = vpop.f32.mrf.mxu1  ;;  %v8111_v55 = vpop.f32.mrf.mxu0  ;;  %v12548_v7 = vld [vmem:[%s13086_s7 + $0x544] ss:$8 sps:$4 sm:$0xff]  }
 0x3bd   : > { %9762 = vst.msk [vmem:[%s14257_s9 + $0x178] sm:$0xff] %vm9714_vm1, %v9505_v63  ;;  %v9250_v2 = vadd.f32 %v14528_v1, %v8987_v43  ;;  %v5189_v61 = vadd.f32 %v5188_v21, %v16292_v48 }
 0x3be   : > { %v5190_v47 = vpop.f32.mrf.mxu1  ;;  %v8113_v59 = vpop.f32.mrf.mxu0 }
 0x3bf   : > { %v9506_v19 = vmax.f32 %v9250_v2, 0.0  ;;  %v8988_v46 = vadd.f32 %v8111_v55, %v5189_v61  ;;  %v16297_v55 = vld [vmem:[#allocation67_spill] sm:$0xff]  ;;  %v11219_v2 = vld [vmem:[%s13086_s7 + $0x548] sm:$0xff] }
 0x3c0   : > { %v5193_v35 = vpop.f32.mrf.mxu1  ;;  %5384 = vmatmul.mubr.bf16.gmra.mxu1 %v12535_v41  ;;  %v8116_v10 = vpop.f32.mrf.mxu0  ;;  %8307 = vmatmul.mubr.bf16.gmra.mxu0 %v11486_v30  ;;  %v11218_v30 = vld [vmem:[%s13086_s7 + $0x540] sm:$0xff] }
 0x3c1   : > { %9763 = vst.msk [vmem:[%s14257_s9 + $0x180] sm:$0xff] %vm9714_vm1, %v9506_v19  ;;  %v9251_v34 = vadd.f32 %v14528_v1, %v8988_v46  ;;  %v5194_v26 = vadd.f32 %v5193_v35, %v16293_v6  ;;  %11036 = vmatprep.mubr.msk.bf16.mxu1 %vm1927_vm0, %v12536_v38  ;;  %11703 = vmatprep.mubr.msk.bf16.mxu0 %vm1927_vm0, %v12538_v11  ;;  %v12550_v19 = vld [vmem:[%s13086_s7 + $0x340] ss:$8 sps:$4 sm:$0xff]   ;;  %v12551_v6 = vld [vmem:[%s13086_s7 + $0x354] ss:$8 sps:$4 sm:$0xff]  }
 0x3c2   : > { %v5195_v49 = vpop.f32.mrf.mxu1  ;;  %v8118_v22 = vpop.f32.mrf.mxu0  ;;  %v11492_v46 = vcombine.low %v11218_v30, %v11219_v2 }
 0x3c3   : > { %v9507_v36 = vmax.f32 %v9251_v34, 0.0  ;;  %v8989_v24 = vadd.f32 %v8116_v10, %v5194_v26  ;;  %v16298_v10 = vld [vmem:[#allocation69_spill] sm:$0xff]  ;;  %v12553_v26 = vld [vmem:[%s13086_s7 + $0x554] ss:$8 sps:$4 sm:$0xff]  }
 0x3c4   : > { %v5196_v32 = vpop.f32.mrf.mxu1  ;;  %v8119_v45 = vpop.f32.mrf.mxu0 }
 0x3c5   : > { %9764 = vst.msk [vmem:[%s14257_s9 + $0x188] sm:$0xff] %vm9714_vm1, %v9507_v36  ;;  %v9252_v31 = vadd.f32 %v14528_v1, %v8989_v24  ;;  %v5197_v0 = vadd.f32 %v5196_v32, %v16294_v8 }
 0x3c6   : > { %v5198_v13 = vpop.f32.mrf.mxu1  ;;  %v8121_v29 = vpop.f32.mrf.mxu0 }
 0x3c7   : > { %v9508_v12 = vmax.f32 %v9252_v31, 0.0  ;;  %v8990_v4 = vadd.f32 %v8119_v45, %v5197_v0  ;;  %v16299_v45 = vld [vmem:[#allocation71_spill] sm:$0xff]  ;;  %v11221_v31 = vld [vmem:[%s13086_s7 + $0x558] sm:$0xff] }
 0x3c8   : > { %v5201_v15 = vpop.f32.mrf.mxu1  ;;  %5392 = vmatmul.mubr.bf16.gmra.mxu1 %v12540_v50  ;;  %v8124_v14 = vpop.f32.mrf.mxu0  ;;  %8315 = vmatmul.mubr.bf16.gmra.mxu0 %v11488_v17  ;;  %v11220_v17 = vld [vmem:[%s13086_s7 + $0x550] sm:$0xff] }
 0x3c9   : > { %9765 = vst.msk [vmem:[%s14257_s9 + $0x190] sm:$0xff] %vm9714_vm1, %v9508_v12  ;;  %v9253_v18 = vadd.f32 %v14528_v1, %v8990_v4  ;;  %v5202_v39 = vadd.f32 %v5201_v15, %v16295_v5  ;;  %11037 = vmatprep.mubr.msk.bf16.mxu1 %vm1927_vm0, %v12541_v53  ;;  %11704 = vmatprep.mubr.msk.bf16.mxu0 %vm1927_vm0, %v12543_v54  ;;  %v12555_v12 = vld [vmem:[%s13086_s7 + $0x350] ss:$8 sps:$4 sm:$0xff]   ;;  %v12556_v5 = vld [vmem:[%s13086_s7 + $0x364] ss:$8 sps:$4 sm:$0xff]  }
 0x3ca   : > { %v5203_v44 = vpop.f32.mrf.mxu1  ;;  %v8126_v58 = vpop.f32.mrf.mxu0  ;;  %v11494_v4 = vcombine.low %v11220_v17, %v11221_v31 }
 0x3cb   : > { %v9509_v42 = vmax.f32 %v9253_v18, 0.0  ;;  %v8991_v23 = vadd.f32 %v8124_v14, %v5202_v39  ;;  %v16300_v14 = vld [vmem:[#allocation73_spill] sm:$0xff] }
 0x3cc   : > { %v5204_v40 = vpop.f32.mrf.mxu1  ;;  %v8127_v28 = vpop.f32.mrf.mxu0  ;;  %v12558_v39 = vld [vmem:[%s13086_s7 + $0x564] ss:$8 sps:$4 sm:$0xff]  }
 0x3cd   : > { %9766 = vst.msk [vmem:[%s14257_s9 + $0x198] sm:$0xff] %vm9714_vm1, %v9509_v42  ;;  %v9254_v60 = vadd.f32 %v14528_v1, %v8991_v23  ;;  %v5205_v62 = vadd.f32 %v5204_v40, %v16296_v37 }
 0x3ce   : > { %v5206_v52 = vpop.f32.mrf.mxu1  ;;  %v8129_v51 = vpop.f32.mrf.mxu0 }
 0x3cf   : > { %v9510_v56 = vmax.f32 %v9254_v60, 0.0  ;;  %v8992_v27 = vadd.f32 %v8127_v28, %v5205_v62  ;;  %v16301_v28 = vld [vmem:[#allocation75_spill] sm:$0xff]  ;;  %v11223_v60 = vld [vmem:[%s13086_s7 + $0x568] sm:$0xff] }
 0x3d0   : > { %v5209_v63 = vpop.f32.mrf.mxu1  ;;  %5400 = vmatmul.mubr.bf16.gmra.mxu1 %v12545_v16  ;;  %v8132_v43 = vpop.f32.mrf.mxu0  ;;  %8323 = vmatmul.mubr.bf16.gmra.mxu0 %v11490_v3  ;;  %v11222_v3 = vld [vmem:[%s13086_s7 + $0x560] sm:$0xff] }
 0x3d1   : > { %9767 = vst.msk [vmem:[%s14257_s9 + $0x1a0] sm:$0xff] %vm9714_vm1, %v9510_v56  ;;  %v9255_v21 = vadd.f32 %v14528_v1, %v8992_v27  ;;  %v5210_v41 = vadd.f32 %v5209_v63, %v16297_v55  ;;  %11038 = vmatprep.mubr.msk.bf16.mxu1 %vm1927_vm0, %v12546_v20  ;;  %11705 = vmatprep.mubr.msk.bf16.mxu0 %vm1927_vm0, %v12548_v7  ;;  %v12560_v56 = vld [vmem:[%s13086_s7 + $0x360] ss:$8 sps:$4 sm:$0xff]   ;;  %v12561_v55 = vld [vmem:[%s13086_s7 + $0x374] ss:$8 sps:$4 sm:$0xff]  }
 0x3d2   : > { %v5211_v48 = vpop.f32.mrf.mxu1  ;;  %v8134_v61 = vpop.f32.mrf.mxu0  ;;  %v11496_v27 = vcombine.low %v11222_v3, %v11223_v60 }
 0x3d3   : > { %v9511_v38 = vmax.f32 %v9255_v21, 0.0  ;;  %v8993_v11 = vadd.f32 %v8132_v43, %v5210_v41  ;;  %v16302_v43 = vld [vmem:[#allocation77_spill] sm:$0xff]  ;;  %v12563_v41 = vld [vmem:[%s13086_s7 + $0x574] ss:$8 sps:$4 sm:$0xff]  }
 0x3d4   : > { %v5212_v47 = vpop.f32.mrf.mxu1  ;;  %v8135_v59 = vpop.f32.mrf.mxu0 }
 0x3d5   : > { %9768 = vst.msk [vmem:[%s14257_s9 + $0x1a8] sm:$0xff] %vm9714_vm1, %v9511_v38  ;;  %v9256_v35 = vadd.f32 %v14528_v1, %v8993_v11  ;;  %v5213_v34 = vadd.f32 %v5212_v47, %v16298_v10 }
 0x3d6   : > { %v5214_v57 = vpop.f32.mrf.mxu1  ;;  %v8137_v33 = vpop.f32.mrf.mxu0 }
 0x3d7   : > { %v9512_v49 = vmax.f32 %v9256_v35, 0.0  ;;  %v8994_v22 = vadd.f32 %v8135_v59, %v5213_v34  ;;  %v16303_v59 = vld [vmem:[#allocation79_spill] sm:$0xff]  ;;  %v11225_v35 = vld [vmem:[%s13086_s7 + $0x578] sm:$0xff] }
 0x3d8   : > { %v5217_v36 = vpop.f32.mrf.mxu1  ;;  %5408 = vmatmul.mubr.bf16.gmra.mxu1 %v12550_v19  ;;  %v8140_v24 = vpop.f32.mrf.mxu0  ;;  %8331 = vmatmul.mubr.bf16.gmra.mxu0 %v11492_v46  ;;  %v11224_v46 = vld [vmem:[%s13086_s7 + $0x570] sm:$0xff] }
 0x3d9   : > { %9769 = vst.msk [vmem:[%s14257_s9 + $0x1b0] sm:$0xff] %vm9714_vm1, %v9512_v49  ;;  %v9257_v32 = vadd.f32 %v14528_v1, %v8994_v22  ;;  %v5218_v50 = vadd.f32 %v5217_v36, %v16299_v45  ;;  %11039 = vmatprep.mubr.msk.bf16.mxu1 %vm1927_vm0, %v12551_v6  ;;  %11706 = vmatprep.mubr.msk.bf16.mxu0 %vm1927_vm0, %v12553_v26  ;;  %v12565_v49 = vld [vmem:[%s13086_s7 + $0x370] ss:$8 sps:$4 sm:$0xff]   ;;  %v12566_v45 = vld [vmem:[%s13086_s7 + $0x384] ss:$8 sps:$4 sm:$0xff]  }
 0x3da   : > { %v5219_v8 = vpop.f32.mrf.mxu1  ;;  %v8142_v0 = vpop.f32.mrf.mxu0  ;;  %v11498_v22 = vcombine.low %v11224_v46, %v11225_v35 }
 0x3db   : > { %v9513_v53 = vmax.f32 %v9257_v32, 0.0  ;;  %v8995_v54 = vadd.f32 %v8140_v24, %v5218_v50  ;;  %v16304_v24 = vld [vmem:[#allocation81_spill] sm:$0xff] }
 0x3dc   : > { %v5220_v13 = vpop.f32.mrf.mxu1  ;;  %v8143_v29 = vpop.f32.mrf.mxu0  ;;  %v12568_v50 = vld [vmem:[%s13086_s7 + $0x584] ss:$8 sps:$4 sm:$0xff]  }
 0x3dd   : > { %9770 = vst.msk [vmem:[%s14257_s9 + $0x1b8] sm:$0xff] %vm9714_vm1, %v9513_v53  ;;  %v9258_v15 = vadd.f32 %v14528_v1, %v8995_v54  ;;  %v5221_v18 = vadd.f32 %v5220_v13, %v16300_v14 }
 0x3de   : > { %v5222_v9 = vpop.f32.mrf.mxu1  ;;  %v8145_v25 = vpop.f32.mrf.mxu0 }
 0x3df   : > { %v9514_v44 = vmax.f32 %v9258_v15, 0.0  ;;  %v8996_v58 = vadd.f32 %v8143_v29, %v5221_v18  ;;  %v16305_v29 = vld [vmem:[#allocation83_spill] sm:$0xff]  ;;  %v11227_v15 = vld [vmem:[%s13086_s7 + $0x588] sm:$0xff] }
 0x3e0   : > { %v5225_v42 = vpop.f32.mrf.mxu1  ;;  %5416 = vmatmul.mubr.bf16.gmra.mxu1 %v12555_v12  ;;  %v8148_v23 = vpop.f32.mrf.mxu0  ;;  %8339 = vmatmul.mubr.bf16.gmra.mxu0 %v11494_v4  ;;  %v11226_v4 = vld [vmem:[%s13086_s7 + $0x580] sm:$0xff] }
 0x3e1   : > { %9771 = vst.msk [vmem:[%s14257_s9 + $0x1c0] sm:$0xff] %vm9714_vm1, %v9514_v44  ;;  %v9259_v40 = vadd.f32 %v14528_v1, %v8996_v58  ;;  %v5226_v16 = vadd.f32 %v5225_v42, %v16301_v28  ;;  %11040 = vmatprep.mubr.msk.bf16.mxu1 %vm1927_vm0, %v12556_v5  ;;  %11707 = vmatprep.mubr.msk.bf16.mxu0 %vm1927_vm0, %v12558_v39  ;;  %v12570_v44 = vld [vmem:[%s13086_s7 + $0x380] ss:$8 sps:$4 sm:$0xff]   ;;  %v12571_v28 = vld [vmem:[%s13086_s7 + $0x394] ss:$8 sps:$4 sm:$0xff]  }
 0x3e2   : > { %v5227_v37 = vpop.f32.mrf.mxu1  ;;  %v8150_v62 = vpop.f32.mrf.mxu0  ;;  %v11500_v58 = vcombine.low %v11226_v4, %v11227_v15 }
 0x3e3   : > { %v9515_v20 = vmax.f32 %v9259_v40, 0.0  ;;  %v8997_v7 = vadd.f32 %v8148_v23, %v5226_v16  ;;  %v16306_v23 = vld [vmem:[#allocation85_spill] sm:$0xff]  ;;  %v12573_v16 = vld [vmem:[%s13086_s7 + $0x594] ss:$8 sps:$4 sm:$0xff]  }
 0x3e4   : > { %v5228_v52 = vpop.f32.mrf.mxu1  ;;  %v8151_v51 = vpop.f32.mrf.mxu0 }
 0x3e5   : > { %9772 = vst.msk [vmem:[%s14257_s9 + $0x1c8] sm:$0xff] %vm9714_vm1, %v9515_v20  ;;  %v9260_v63 = vadd.f32 %v14528_v1, %v8997_v7  ;;  %v5229_v21 = vadd.f32 %v5228_v52, %v16302_v43 }
 0x3e6   : > { %v5230_v30 = vpop.f32.mrf.mxu1  ;;  %v8153_v2 = vpop.f32.mrf.mxu0 }
 0x3e7   : > { %v9516_v48 = vmax.f32 %v9260_v63, 0.0  ;;  %v8998_v61 = vadd.f32 %v8151_v51, %v5229_v21  ;;  %v16307_v51 = vld [vmem:[#allocation87_spill] sm:$0xff]  ;;  %v11229_v63 = vld [vmem:[%s13086_s7 + $0x598] sm:$0xff] }
 0x3e8   : > { %v5233_v38 = vpop.f32.mrf.mxu1  ;;  %5424 = vmatmul.mubr.bf16.gmra.mxu1 %v12560_v56  ;;  %v8156_v11 = vpop.f32.mrf.mxu0  ;;  %8347 = vmatmul.mubr.bf16.gmra.mxu0 %v11496_v27  ;;  %v11228_v27 = vld [vmem:[%s13086_s7 + $0x590] sm:$0xff] }
 0x3e9   : > { %9773 = vst.msk [vmem:[%s14257_s9 + $0x1d0] sm:$0xff] %vm9714_vm1, %v9516_v48  ;;  %v9261_v47 = vadd.f32 %v14528_v1, %v8998_v61  ;;  %v5234_v19 = vadd.f32 %v5233_v38, %v16303_v59  ;;  %11041 = vmatprep.mubr.msk.bf16.mxu1 %vm1927_vm0, %v12561_v55  ;;  %11708 = vmatprep.mubr.msk.bf16.mxu0 %vm1927_vm0, %v12563_v41  ;;  %v12575_v48 = vld [vmem:[%s13086_s7 + $0x390] ss:$8 sps:$4 sm:$0xff]   ;;  %v12576_v59 = vld [vmem:[%s13086_s7 + $0x3a4] ss:$8 sps:$4 sm:$0xff]  }
 0x3ea   : > { %v5235_v10 = vpop.f32.mrf.mxu1  ;;  %v8158_v34 = vpop.f32.mrf.mxu0  ;;  %v11502_v61 = vcombine.low %v11228_v27, %v11229_v63 }
 0x3eb   : > { %v9517_v6 = vmax.f32 %v9261_v47, 0.0  ;;  %v8999_v26 = vadd.f32 %v8156_v11, %v5234_v19  ;;  %v16308_v11 = vld [vmem:[#allocation89_spill] sm:$0xff] }
 0x3ec   : > { %v5236_v57 = vpop.f32.mrf.mxu1  ;;  %v8159_v33 = vpop.f32.mrf.mxu0  ;;  %v12578_v19 = vld [vmem:[%s13086_s7 + $0x5a4] ss:$8 sps:$4 sm:$0xff]  }
 0x3ed   : > { %9774 = vst.msk [vmem:[%s14257_s9 + $0x1d8] sm:$0xff] %vm9714_vm1, %v9517_v6  ;;  %v9262_v36 = vadd.f32 %v14528_v1, %v8999_v26  ;;  %v5237_v32 = vadd.f32 %v5236_v57, %v16304_v24 }
 0x3ee   : > { %v5238_v17 = vpop.f32.mrf.mxu1  ;;  %v8161_v31 = vpop.f32.mrf.mxu0 }
 0x3ef   : > { %v9518_v8 = vmax.f32 %v9262_v36, 0.0  ;;  %v9000_v0 = vadd.f32 %v8159_v33, %v5237_v32  ;;  %v16309_v33 = vld [vmem:[#allocation91_spill] sm:$0xff]  ;;  %v11231_v36 = vld [vmem:[%s13086_s7 + $0x5a8] sm:$0xff] }
 0x3f0   : > { %v5241_v53 = vpop.f32.mrf.mxu1  ;;  %5432 = vmatmul.mubr.bf16.gmra.mxu1 %v12565_v49  ;;  %v8164_v54 = vpop.f32.mrf.mxu0  ;;  %8355 = vmatmul.mubr.bf16.gmra.mxu0 %v11498_v22  ;;  %v11230_v22 = vld [vmem:[%s13086_s7 + $0x5a0] sm:$0xff] }
 0x3f1   : > { %9775 = vst.msk [vmem:[%s14257_s9 + $0x1e0] sm:$0xff] %vm9714_vm1, %v9518_v8  ;;  %v9263_v13 = vadd.f32 %v14528_v1, %v9000_v0  ;;  %v5242_v12 = vadd.f32 %v5241_v53, %v16305_v29  ;;  %11042 = vmatprep.mubr.msk.bf16.mxu1 %vm1927_vm0, %v12566_v45  ;;  %11709 = vmatprep.mubr.msk.bf16.mxu0 %vm1927_vm0, %v12568_v50  ;;  %v12580_v8 = vld [vmem:[%s13086_s7 + $0x3a0] ss:$8 sps:$4 sm:$0xff]   ;;  %v12581_v29 = vld [vmem:[%s13086_s7 + $0x3b4] ss:$8 sps:$4 sm:$0xff]  }
 0x3f2   : > { %v5243_v14 = vpop.f32.mrf.mxu1  ;;  %v8166_v18 = vpop.f32.mrf.mxu0  ;;  %v11504_v0 = vcombine.low %v11230_v22, %v11231_v36 }
 0x3f3   : > { %v9519_v5 = vmax.f32 %v9263_v13, 0.0  ;;  %v9001_v39 = vadd.f32 %v8164_v54, %v5242_v12  ;;  %v16310_v54 = vld [vmem:[#allocation93_spill] sm:$0xff]  ;;  %v12583_v12 = vld [vmem:[%s13086_s7 + $0x5b4] ss:$8 sps:$4 sm:$0xff]  }
 0x3f4   : > { %v5244_v9 = vpop.f32.mrf.mxu1  ;;  %v8167_v25 = vpop.f32.mrf.mxu0 }
 0x3f5   : > { %9776 = vst.msk [vmem:[%s14257_s9 + $0x1e8] sm:$0xff] %vm9714_vm1, %v9519_v5  ;;  %v9264_v42 = vadd.f32 %v14528_v1, %v9001_v39  ;;  %v5245_v40 = vadd.f32 %v5244_v9, %v16306_v23 }
 0x3f6   : > { %v5246_v3 = vpop.f32.mrf.mxu1  ;;  %v8169_v60 = vpop.f32.mrf.mxu0 }
 0x3f7   : > { %v9520_v37 = vmax.f32 %v9264_v42, 0.0  ;;  %v9002_v62 = vadd.f32 %v8167_v25, %v5245_v40  ;;  %v16311_v25 = vld [vmem:[#allocation95_spill] sm:$0xff]  ;;  %v11233_v42 = vld [vmem:[%s13086_s7 + $0x5b8] sm:$0xff] }
 0x3f8   : > { %v5249_v20 = vpop.f32.mrf.mxu1  ;;  %5440 = vmatmul.mubr.bf16.gmra.mxu1 %v12570_v44  ;;  %v8172_v7 = vpop.f32.mrf.mxu0  ;;  %8363 = vmatmul.mubr.bf16.gmra.mxu0 %v11500_v58  ;;  %v11232_v58 = vld [vmem:[%s13086_s7 + $0x5b0] sm:$0xff] }
 0x3f9   : > { %9777 = vst.msk [vmem:[%s14257_s9 + $0x1f0] sm:$0xff] %vm9714_vm1, %v9520_v37  ;;  %v9265_v52 = vadd.f32 %v14528_v1, %v9002_v62  ;;  %v5250_v56 = vadd.f32 %v5249_v20, %v16307_v51  ;;  %11043 = vmatprep.mubr.msk.bf16.mxu1 %vm1927_vm0, %v12571_v28  ;;  %11710 = vmatprep.mubr.msk.bf16.mxu0 %vm1927_vm0, %v12573_v16  ;;  %v12585_v37 = vld [vmem:[%s13086_s7 + $0x3b0] ss:$8 sps:$4 sm:$0xff]   ;;  %v12586_v51 = vld [vmem:[%s13086_s7 + $0x3c4] ss:$8 sps:$4 sm:$0xff]  }
 0x3fa   : > { %v5251_v43 = vpop.f32.mrf.mxu1  ;;  %v8174_v21 = vpop.f32.mrf.mxu0  ;;  %v11506_v62 = vcombine.low %v11232_v58, %v11233_v42 }
 0x3fb   : > { %v9521_v55 = vmax.f32 %v9265_v52, 0.0  ;;  %v9003_v41 = vadd.f32 %v8172_v7, %v5250_v56  ;;  %v16312_v7 = vld [vmem:[#allocation97_spill] sm:$0xff] }
 0x3fc   : > { %v5252_v30 = vpop.f32.mrf.mxu1  ;;  %v8175_v2 = vpop.f32.mrf.mxu0  ;;  %v12588_v56 = vld [vmem:[%s13086_s7 + $0x5c4] ss:$8 sps:$4 sm:$0xff]  }
 0x3fd   : > { %9778 = vst.msk [vmem:[%s14257_s9 + $0x1f8] sm:$0xff] %vm9714_vm1, %v9521_v55  ;;  %v9266_v38 = vadd.f32 %v14528_v1, %v9003_v41  ;;  %v5253_v47 = vadd.f32 %v5252_v30, %v16308_v11 }
 0x3fe   : > { %v5254_v46 = vpop.f32.mrf.mxu1  ;;  %v8177_v35 = vpop.f32.mrf.mxu0 }
 0x3ff   : > { %v9522_v10 = vmax.f32 %v9266_v38, 0.0  ;;  %v9004_v34 = vadd.f32 %v8175_v2, %v5253_v47  ;;  %v16313_v2 = vld [vmem:[#allocation99_spill] sm:$0xff]  ;;  %v11235_v38 = vld [vmem:[%s13086_s7 + $0x5c8] sm:$0xff] }
 0x400   : > { %v5257_v6 = vpop.f32.mrf.mxu1  ;;  %5448 = vmatmul.mubr.bf16.gmra.mxu1 %v12575_v48  ;;  %v8180_v26 = vpop.f32.mrf.mxu0  ;;  %8371 = vmatmul.mubr.bf16.gmra.mxu0 %v11502_v61  ;;  %v11234_v61 = vld [vmem:[%s13086_s7 + $0x5c0] sm:$0xff] }
 0x401   : > { %9779 = vst.msk [vmem:[%s14257_s9 + $0x200] sm:$0xff] %vm9714_vm1, %v9522_v10  ;;  %v9267_v57 = vadd.f32 %v14528_v1, %v9004_v34  ;;  %v5258_v49 = vadd.f32 %v5257_v6, %v16309_v33  ;;  %11044 = vmatprep.mubr.msk.bf16.mxu1 %vm1927_vm0, %v12576_v59  ;;  %11711 = vmatprep.mubr.msk.bf16.mxu0 %vm1927_vm0, %v12578_v19  ;;  %v12590_v10 = vld [vmem:[%s13086_s7 + $0x3c0] ss:$8 sps:$4 sm:$0xff]   ;;  %v12591_v33 = vld [vmem:[%s13086_s7 + $0x3d4] ss:$8 sps:$4 sm:$0xff]  }
 0x402   : > { %v5259_v24 = vpop.f32.mrf.mxu1  ;;  %v8182_v32 = vpop.f32.mrf.mxu0  ;;  %v11508_v34 = vcombine.low %v11234_v61, %v11235_v38 }
 0x403   : > { %v9523_v45 = vmax.f32 %v9267_v57, 0.0  ;;  %v9005_v50 = vadd.f32 %v8180_v26, %v5258_v49  ;;  %v16314_v26 = vld [vmem:[#allocation101_spill] sm:$0xff]  ;;  %v12593_v49 = vld [vmem:[%s13086_s7 + $0x5d4] ss:$8 sps:$4 sm:$0xff]  }
 0x404   : > { %v5260_v17 = vpop.f32.mrf.mxu1  ;;  %v8183_v31 = vpop.f32.mrf.mxu0 }
 0x405   : > { %9780 = vst.msk [vmem:[%s14257_s9 + $0x208] sm:$0xff] %vm9714_vm1, %v9523_v45  ;;  %v9268_v53 = vadd.f32 %v14528_v1, %v9005_v50  ;;  %v5261_v13 = vadd.f32 %v5260_v17, %v16310_v54 }
 0x406   : > { %v5262_v4 = vpop.f32.mrf.mxu1  ;;  %v8185_v15 = vpop.f32.mrf.mxu0 }
 0x407   : > { %v9524_v14 = vmax.f32 %v9268_v53, 0.0  ;;  %v9006_v18 = vadd.f32 %v8183_v31, %v5261_v13  ;;  %v16315_v31 = vld [vmem:[#allocation103_spill] sm:$0xff]  ;;  %v11237_v53 = vld [vmem:[%s13086_s7 + $0x5d8] sm:$0xff] }
 0x408   : > { %v5265_v5 = vpop.f32.mrf.mxu1  ;;  %5456 = vmatmul.mubr.bf16.gmra.mxu1 %v12580_v8  ;;  %v8188_v39 = vpop.f32.mrf.mxu0  ;;  %8379 = vmatmul.mubr.bf16.gmra.mxu0 %v11504_v0  ;;  %v11236_v0 = vld [vmem:[%s13086_s7 + $0x5d0] sm:$0xff] }
 0x409   : > { %9781 = vst.msk [vmem:[%s14257_s9 + $0x210] sm:$0xff] %vm9714_vm1, %v9524_v14  ;;  %v9269_v9 = vadd.f32 %v14528_v1, %v9006_v18  ;;  %v5266_v44 = vadd.f32 %v5265_v5, %v16311_v25  ;;  %11045 = vmatprep.mubr.msk.bf16.mxu1 %vm1927_vm0, %v12581_v29  ;;  %11712 = vmatprep.mubr.msk.bf16.mxu0 %vm1927_vm0, %v12583_v12  ;;  %v12595_v14 = vld [vmem:[%s13086_s7 + $0x3d0] ss:$8 sps:$4 sm:$0xff]   ;;  %v12596_v25 = vld [vmem:[%s13086_s7 + $0x3e4] ss:$8 sps:$4 sm:$0xff]  }
 0x40a   : > { %v5267_v23 = vpop.f32.mrf.mxu1  ;;  %v8190_v40 = vpop.f32.mrf.mxu0  ;;  %v11510_v18 = vcombine.low %v11236_v0, %v11237_v53 }
 0x40b   : > { %v9525_v28 = vmax.f32 %v9269_v9, 0.0  ;;  %v9007_v16 = vadd.f32 %v8188_v39, %v5266_v44  ;;  %v16316_v39 = vld [vmem:[#allocation105_spill] sm:$0xff] }
 0x40c   : > { %v5268_v3 = vpop.f32.mrf.mxu1  ;;  %v8191_v60 = vpop.f32.mrf.mxu0  ;;  %v12598_v44 = vld [vmem:[%s13086_s7 + $0x5e4] ss:$8 sps:$4 sm:$0xff]  }
 0x40d   : > { %9782 = vst.msk [vmem:[%s14257_s9 + $0x218] sm:$0xff] %vm9714_vm1, %v9525_v28  ;;  %v9270_v20 = vadd.f32 %v14528_v1, %v9007_v16  ;;  %v5269_v52 = vadd.f32 %v5268_v3, %v16312_v7 }
 0x40e   : > { %v5270_v27 = vpop.f32.mrf.mxu1  ;;  %v8193_v63 = vpop.f32.mrf.mxu0 }
 0x40f   : > { %v9526_v43 = vmax.f32 %v9270_v20, 0.0  ;;  %v9008_v21 = vadd.f32 %v8191_v60, %v5269_v52  ;;  %v16317_v60 = vld [vmem:[#allocation107_spill] sm:$0xff]  ;;  %v11239_v20 = vld [vmem:[%s13086_s7 + $0x5e8] sm:$0xff] }
 0x410   : > { %v5273_v55 = vpop.f32.mrf.mxu1  ;;  %5464 = vmatmul.mubr.bf16.gmra.mxu1 %v12585_v37  ;;  %v8196_v41 = vpop.f32.mrf.mxu0  ;;  %8387 = vmatmul.mubr.bf16.gmra.mxu0 %v11506_v62  ;;  %v11238_v62 = vld [vmem:[%s13086_s7 + $0x5e0] sm:$0xff] }
 0x411   : > { %9783 = vst.msk [vmem:[%s14257_s9 + $0x220] sm:$0xff] %vm9714_vm1, %v9526_v43  ;;  %v9271_v30 = vadd.f32 %v14528_v1, %v9008_v21  ;;  %v5274_v48 = vadd.f32 %v5273_v55, %v16313_v2  ;;  %11046 = vmatprep.mubr.msk.bf16.mxu1 %vm1927_vm0, %v12586_v51  ;;  %11713 = vmatprep.mubr.msk.bf16.mxu0 %vm1927_vm0, %v12588_v56  ;;  %v12600_v43 = vld [vmem:[%s13086_s7 + $0x3e0] ss:$8 sps:$4 sm:$0xff]   ;;  %v12601_v2 = vld [vmem:[%s13086_s7 + $0x3f4] ss:$8 sps:$4 sm:$0xff]  }
 0x412   : > { %v5275_v11 = vpop.f32.mrf.mxu1  ;;  %v8198_v47 = vpop.f32.mrf.mxu0  ;;  %v11512_v21 = vcombine.low %v11238_v62, %v11239_v20 }
 0x413   : > { %v9527_v59 = vmax.f32 %v9271_v30, 0.0  ;;  %v9009_v19 = vadd.f32 %v8196_v41, %v5274_v48  ;;  %v16318_v41 = vld [vmem:[#allocation109_spill] sm:$0xff]  ;;  %v12603_v48 = vld [vmem:[%s13086_s7 + $0x5f4] ss:$8 sps:$4 sm:$0xff]  }
 0x414   : > { %v5276_v46 = vpop.f32.mrf.mxu1  ;;  %v8199_v35 = vpop.f32.mrf.mxu0 }
 0x415   : > { %9784 = vst.msk [vmem:[%s14257_s9 + $0x228] sm:$0xff] %vm9714_vm1, %v9527_v59  ;;  %v9272_v6 = vadd.f32 %v14528_v1, %v9009_v19  ;;  %v5277_v57 = vadd.f32 %v5276_v46, %v16314_v26 }
 0x416   : > { %v5278_v22 = vpop.f32.mrf.mxu1  ;;  %v8201_v36 = vpop.f32.mrf.mxu0 }
 0x417   : > { %v9528_v24 = vmax.f32 %v9272_v6, 0.0  ;;  %v9010_v32 = vadd.f32 %v8199_v35, %v5277_v57  ;;  %v16319_v35 = vld [vmem:[#allocation111_spill] sm:$0xff]  ;;  %v11241_v6 = vld [vmem:[%s13086_s7 + $0x5f8] sm:$0xff] }
 0x418   : > { %v5281_v45 = vpop.f32.mrf.mxu1  ;;  %5472 = vmatmul.mubr.bf16.gmra.mxu1 %v12590_v10  ;;  %v8204_v50 = vpop.f32.mrf.mxu0  ;;  %8395 = vmatmul.mubr.bf16.gmra.mxu0 %v11508_v34  ;;  %v11240_v34 = vld [vmem:[%s13086_s7 + $0x5f0] sm:$0xff] }
 0x419   : > { %9785 = vst.msk [vmem:[%s14257_s9 + $0x230] sm:$0xff] %vm9714_vm1, %v9528_v24  ;;  %v9273_v17 = vadd.f32 %v14528_v1, %v9010_v32  ;;  %v5282_v8 = vadd.f32 %v5281_v45, %v16315_v31  ;;  %11047 = vmatprep.mubr.msk.bf16.mxu1 %vm1927_vm0, %v12591_v33  ;;  %11714 = vmatprep.mubr.msk.bf16.mxu0 %vm1927_vm0, %v12593_v49  ;;  %v12605_v24 = vld [vmem:[%s13086_s7 + $0x3f0] ss:$8 sps:$4 sm:$0xff]   ;;  %v12606_v31 = vld [vmem:[%s13086_s7 + $0x404] ss:$8 sps:$4 sm:$0xff]  }
 0x41a   : > { %v5283_v54 = vpop.f32.mrf.mxu1  ;;  %v8206_v13 = vpop.f32.mrf.mxu0  ;;  %v11514_v32 = vcombine.low %v11240_v34, %v11241_v6 }
 0x41b   : > { %v9529_v29 = vmax.f32 %v9273_v17, 0.0  ;;  %v9011_v12 = vadd.f32 %v8204_v50, %v5282_v8  ;;  %v16320_v50 = vld [vmem:[#allocation113_spill] sm:$0xff] }
 0x41c   : > { %v5284_v4 = vpop.f32.mrf.mxu1  ;;  %v8207_v15 = vpop.f32.mrf.mxu0  ;;  %v12608_v8 = vld [vmem:[%s13086_s7 + $0x604] ss:$8 sps:$4 sm:$0xff]  }
 0x41d   : > { %9786 = vst.msk [vmem:[%s14257_s9 + $0x238] sm:$0xff] %vm9714_vm1, %v9529_v29  ;;  %v9274_v5 = vadd.f32 %v14528_v1, %v9011_v12  ;;  %v5285_v9 = vadd.f32 %v5284_v4, %v16316_v39  ;;  %v14809_v1 = vld [vmem:[%s16075_s2] ss:$0 sm:$0xff] }
 0x41e   : > { %v5286_v58 = vpop.f32.mrf.mxu1  ;;  %v8209_v42 = vpop.f32.mrf.mxu0 }
 0x41f   : > { %v9530_v23 = vmax.f32 %v9274_v5, 0.0  ;;  %v9012_v40 = vadd.f32 %v8207_v15, %v5285_v9  ;;  %v16321_v15 = vld [vmem:[#allocation115_spill] sm:$0xff]  ;;  %v11243_v5 = vld [vmem:[%s13086_s7 + $0x608] sm:$0xff] }
 0x420   : > { %v5289_v28 = vpop.f32.mrf.mxu1  ;;  %5480 = vmatmul.mubr.bf16.gmra.mxu1 %v12595_v14  ;;  %v8212_v16 = vpop.f32.mrf.mxu0  ;;  %8403 = vmatmul.mubr.bf16.gmra.mxu0 %v11510_v18  ;;  %v11242_v18 = vld [vmem:[%s13086_s7 + $0x600] sm:$0xff] }
 0x421   : > { %9787 = vst.msk [vmem:[%s14257_s9 + $0x240] sm:$0xff] %vm9714_vm1, %v9530_v23  ;;  %v9275_v3 = vadd.f32 %v14809_v1, %v9012_v40  ;;  %v5290_v37 = vadd.f32 %v5289_v28, %v16317_v60  ;;  %11048 = vmatprep.mubr.msk.bf16.mxu1 %vm1927_vm0, %v12596_v25  ;;  %11715 = vmatprep.mubr.msk.bf16.mxu0 %vm1927_vm0, %v12598_v44  ;;  %v12610_v23 = vld [vmem:[%s13086_s7 + $0x400] ss:$8 sps:$4 sm:$0xff]   ;;  %v12611_v60 = vld [vmem:[%s13086_s7 + $0x414] ss:$8 sps:$4 sm:$0xff]  }
 0x422   : > { %v5291_v7 = vpop.f32.mrf.mxu1  ;;  %v8214_v52 = vpop.f32.mrf.mxu0  ;;  %v11516_v40 = vcombine.low %v11242_v18, %v11243_v5 }
 0x423   : > { %v9531_v51 = vmax.f32 %v9275_v3, 0.0  ;;  %v9013_v56 = vadd.f32 %v8212_v16, %v5290_v37  ;;  %v16322_v16 = vld [vmem:[#allocation117_spill] sm:$0xff]  ;;  %v12613_v37 = vld [vmem:[%s13086_s7 + $0x614] ss:$8 sps:$4 sm:$0xff]  }
 0x424   : > { %v5292_v27 = vpop.f32.mrf.mxu1  ;;  %v8215_v63 = vpop.f32.mrf.mxu0 }
 0x425   : > { %9788 = vst.msk [vmem:[%s14257_s9 + $0x248] sm:$0xff] %vm9714_vm1, %v9531_v51  ;;  %v9276_v55 = vadd.f32 %v14809_v1, %v9013_v56  ;;  %v5293_v30 = vadd.f32 %v5292_v27, %v16318_v41 }
 0x426   : > { %v5294_v61 = vpop.f32.mrf.mxu1  ;;  %v8217_v38 = vpop.f32.mrf.mxu0 }
 0x427   : > { %v9532_v11 = vmax.f32 %v9276_v55, 0.0  ;;  %v9014_v47 = vadd.f32 %v8215_v63, %v5293_v30  ;;  %v16323_v63 = vld [vmem:[#allocation119_spill] sm:$0xff]  ;;  %v11245_v55 = vld [vmem:[%s13086_s7 + $0x618] sm:$0xff] }
 0x428   : > { %v5297_v59 = vpop.f32.mrf.mxu1  ;;  %5488 = vmatmul.mubr.bf16.gmra.mxu1 %v12600_v43  ;;  %v8220_v19 = vpop.f32.mrf.mxu0  ;;  %8411 = vmatmul.mubr.bf16.gmra.mxu0 %v11512_v21  ;;  %v11244_v21 = vld [vmem:[%s13086_s7 + $0x610] sm:$0xff] }
 0x429   : > { %9789 = vst.msk [vmem:[%s14257_s9 + $0x250] sm:$0xff] %vm9714_vm1, %v9532_v11  ;;  %v9277_v46 = vadd.f32 %v14809_v1, %v9014_v47  ;;  %v5298_v10 = vadd.f32 %v5297_v59, %v16319_v35  ;;  %11049 = vmatprep.mubr.msk.bf16.mxu1 %vm1927_vm0, %v12601_v2  ;;  %11716 = vmatprep.mubr.msk.bf16.mxu0 %vm1927_vm0, %v12603_v48  ;;  %v12615_v11 = vld [vmem:[%s13086_s7 + $0x410] ss:$8 sps:$4 sm:$0xff]   ;;  %v12616_v35 = vld [vmem:[%s13086_s7 + $0x424] ss:$8 sps:$4 sm:$0xff]  }
 0x42a   : > { %v5299_v26 = vpop.f32.mrf.mxu1  ;;  %v8222_v57 = vpop.f32.mrf.mxu0  ;;  %v11518_v47 = vcombine.low %v11244_v21, %v11245_v55 }
 0x42b   : > { %v9533_v33 = vmax.f32 %v9277_v46, 0.0  ;;  %v9015_v49 = vadd.f32 %v8220_v19, %v5298_v10  ;;  %v16324_v19 = vld [vmem:[#allocation121_spill] sm:$0xff] }
 0x42c   : > { %v5300_v22 = vpop.f32.mrf.mxu1  ;;  %v8223_v36 = vpop.f32.mrf.mxu0  ;;  %v12618_v10 = vld [vmem:[%s13086_s7 + $0x624] ss:$8 sps:$4 sm:$0xff]  }
 0x42d   : > { %9790 = vst.msk [vmem:[%s14257_s9 + $0x258] sm:$0xff] %vm9714_vm1, %v9533_v33  ;;  %v9278_v45 = vadd.f32 %v14809_v1, %v9015_v49  ;;  %v5301_v17 = vadd.f32 %v5300_v22, %v16320_v50 }
 0x42e   : > { %v5302_v0 = vpop.f32.mrf.mxu1  ;;  %v8225_v53 = vpop.f32.mrf.mxu0 }
 0x42f   : > { %v9534_v54 = vmax.f32 %v9278_v45, 0.0  ;;  %v9016_v13 = vadd.f32 %v8223_v36, %v5301_v17  ;;  %v16325_v36 = vld [vmem:[#allocation123_spill] sm:$0xff]  ;;  %v11247_v45 = vld [vmem:[%s13086_s7 + $0x628] sm:$0xff] }
 0x430   : > { %v5305_v29 = vpop.f32.mrf.mxu1  ;;  %5496 = vmatmul.mubr.bf16.gmra.mxu1 %v12605_v24  ;;  %v8228_v12 = vpop.f32.mrf.mxu0  ;;  %8419 = vmatmul.mubr.bf16.gmra.mxu0 %v11514_v32  ;;  %v11246_v32 = vld [vmem:[%s13086_s7 + $0x620] sm:$0xff] }
 0x431   : > { %9791 = vst.msk [vmem:[%s14257_s9 + $0x260] sm:$0xff] %vm9714_vm1, %v9534_v54  ;;  %v9279_v4 = vadd.f32 %v14809_v1, %v9016_v13  ;;  %v5306_v14 = vadd.f32 %v5305_v29, %v16321_v15  ;;  %11050 = vmatprep.mubr.msk.bf16.mxu1 %vm1927_vm0, %v12606_v31  ;;  %11717 = vmatprep.mubr.msk.bf16.mxu0 %vm1927_vm0, %v12608_v8  ;;  %v12620_v54 = vld [vmem:[%s13086_s7 + $0x420] ss:$8 sps:$4 sm:$0xff]   ;;  %v12621_v15 = vld [vmem:[%s13086_s7 + $0x434] ss:$8 sps:$4 sm:$0xff]  }
 0x432   : > { %v5307_v39 = vpop.f32.mrf.mxu1  ;;  %v8230_v9 = vpop.f32.mrf.mxu0  ;;  %v11520_v13 = vcombine.low %v11246_v32, %v11247_v45 }
 0x433   : > { %v9535_v25 = vmax.f32 %v9279_v4, 0.0  ;;  %v9017_v44 = vadd.f32 %v8228_v12, %v5306_v14  ;;  %v16326_v12 = vld [vmem:[#allocation125_spill] sm:$0xff]  ;;  %v12623_v14 = vld [vmem:[%s13086_s7 + $0x634] ss:$8 sps:$4 sm:$0xff]  }
 0x434   : > { %v5308_v58 = vpop.f32.mrf.mxu1  ;;  %v8231_v42 = vpop.f32.mrf.mxu0 }
 0x435   : > { %9792 = vst.msk [vmem:[%s14257_s9 + $0x268] sm:$0xff] %vm9714_vm1, %v9535_v25  ;;  %v9280_v28 = vadd.f32 %v14809_v1, %v9017_v44  ;;  %v5309_v3 = vadd.f32 %v5308_v58, %v16322_v16 }
 0x436   : > { %v5310_v62 = vpop.f32.mrf.mxu1  ;;  %v8233_v20 = vpop.f32.mrf.mxu0 }
 0x437   : > { %v9536_v7 = vmax.f32 %v9280_v28, 0.0  ;;  %v9018_v52 = vadd.f32 %v8231_v42, %v5309_v3  ;;  %v16327_v42 = vld [vmem:[#allocation127_spill] sm:$0xff]  ;;  %v11249_v28 = vld [vmem:[%s13086_s7 + $0x638] sm:$0xff] }
 0x438   : > { %v5313_v51 = vpop.f32.mrf.mxu1  ;;  %5504 = vmatmul.mubr.bf16.gmra.mxu1 %v12610_v23  ;;  %v8236_v56 = vpop.f32.mrf.mxu0  ;;  %8427 = vmatmul.mubr.bf16.gmra.mxu0 %v11516_v40  ;;  %v11248_v40 = vld [vmem:[%s13086_s7 + $0x630] sm:$0xff] }
 0x439   : > { %9793 = vst.msk [vmem:[%s14257_s9 + $0x270] sm:$0xff] %vm9714_vm1, %v9536_v7  ;;  %v9281_v27 = vadd.f32 %v14809_v1, %v9018_v52  ;;  %v5314_v43 = vadd.f32 %v5313_v51, %v16323_v63  ;;  %11051 = vmatprep.mubr.msk.bf16.mxu1 %vm1927_vm0, %v12611_v60  ;;  %11718 = vmatprep.mubr.msk.bf16.mxu0 %vm1927_vm0, %v12613_v37  ;;  %v12625_v7 = vld [vmem:[%s13086_s7 + $0x430] ss:$8 sps:$4 sm:$0xff]   ;;  %v12626_v63 = vld [vmem:[%s13086_s7 + $0x444] ss:$8 sps:$4 sm:$0xff]  }
 0x43a   : > { %v5315_v41 = vpop.f32.mrf.mxu1  ;;  %v8238_v30 = vpop.f32.mrf.mxu0  ;;  %v11522_v52 = vcombine.low %v11248_v40, %v11249_v28 }
 0x43b   : > { %v9537_v2 = vmax.f32 %v9281_v27, 0.0  ;;  %v9019_v48 = vadd.f32 %v8236_v56, %v5314_v43  ;;  %v16328_v56 = vld [vmem:[#allocation129_spill] sm:$0xff] }
 0x43c   : > { %v5316_v61 = vpop.f32.mrf.mxu1  ;;  %v8239_v38 = vpop.f32.mrf.mxu0  ;;  %v12628_v43 = vld [vmem:[%s13086_s7 + $0x644] ss:$8 sps:$4 sm:$0xff]  }
 0x43d   : > { %9794 = vst.msk [vmem:[%s14257_s9 + $0x278] sm:$0xff] %vm9714_vm1, %v9537_v2  ;;  %v9282_v59 = vadd.f32 %v14809_v1, %v9019_v48  ;;  %v5317_v46 = vadd.f32 %v5316_v61, %v16324_v19 }
 0x43e   : > { %v5318_v34 = vpop.f32.mrf.mxu1  ;;  %v8241_v6 = vpop.f32.mrf.mxu0 }
 0x43f   : > { %v9538_v26 = vmax.f32 %v9282_v59, 0.0  ;;  %v9020_v57 = vadd.f32 %v8239_v38, %v5317_v46  ;;  %v16329_v38 = vld [vmem:[#allocation131_spill] sm:$0xff]  ;;  %v11251_v59 = vld [vmem:[%s13086_s7 + $0x648] sm:$0xff] }
 0x440   : > { %v5321_v33 = vpop.f32.mrf.mxu1  ;;  %5512 = vmatmul.mubr.bf16.gmra.mxu1 %v12615_v11  ;;  %v8244_v49 = vpop.f32.mrf.mxu0  ;;  %8435 = vmatmul.mubr.bf16.gmra.mxu0 %v11518_v47  ;;  %v11250_v47 = vld [vmem:[%s13086_s7 + $0x640] sm:$0xff] }
 0x441   : > { %9795 = vst.msk [vmem:[%s14257_s9 + $0x280] sm:$0xff] %vm9714_vm1, %v9538_v26  ;;  %v9283_v22 = vadd.f32 %v14809_v1, %v9020_v57  ;;  %v5322_v24 = vadd.f32 %v5321_v33, %v16325_v36  ;;  %11052 = vmatprep.mubr.msk.bf16.mxu1 %vm1927_vm0, %v12616_v35  ;;  %11719 = vmatprep.mubr.msk.bf16.mxu0 %vm1927_vm0, %v12618_v10  ;;  %v12630_v26 = vld [vmem:[%s13086_s7 + $0x440] ss:$8 sps:$4 sm:$0xff]   ;;  %v12631_v36 = vld [vmem:[%s13086_s7 + $0x454] ss:$8 sps:$4 sm:$0xff]  }
 0x442   : > { %v5323_v50 = vpop.f32.mrf.mxu1  ;;  %v8246_v17 = vpop.f32.mrf.mxu0  ;;  %v11524_v57 = vcombine.low %v11250_v47, %v11251_v59 }
 0x443   : > { %v9539_v31 = vmax.f32 %v9283_v22, 0.0  ;;  %v9021_v8 = vadd.f32 %v8244_v49, %v5322_v24  ;;  %v16330_v49 = vld [vmem:[#allocation133_spill] sm:$0xff]  ;;  %v12633_v24 = vld [vmem:[%s13086_s7 + $0x654] ss:$8 sps:$4 sm:$0xff]  }
 0x444   : > { %v5324_v0 = vpop.f32.mrf.mxu1  ;;  %v8247_v53 = vpop.f32.mrf.mxu0 }
 0x445   : > { %9796 = vst.msk [vmem:[%s14257_s9 + $0x288] sm:$0xff] %vm9714_vm1, %v9539_v31  ;;  %v9284_v29 = vadd.f32 %v14809_v1, %v9021_v8  ;;  %v5325_v4 = vadd.f32 %v5324_v0, %v16326_v12 }
 0x446   : > { %v5326_v18 = vpop.f32.mrf.mxu1  ;;  %v8249_v5 = vpop.f32.mrf.mxu0 }
 0x447   : > { %v9540_v39 = vmax.f32 %v9284_v29, 0.0  ;;  %v9022_v9 = vadd.f32 %v8247_v53, %v5325_v4  ;;  %v16331_v53 = vld [vmem:[#allocation135_spill] sm:$0xff]  ;;  %v11253_v29 = vld [vmem:[%s13086_s7 + $0x658] sm:$0xff] }
 0x448   : > { %v5329_v25 = vpop.f32.mrf.mxu1  ;;  %5520 = vmatmul.mubr.bf16.gmra.mxu1 %v12620_v54  ;;  %v8252_v44 = vpop.f32.mrf.mxu0  ;;  %8443 = vmatmul.mubr.bf16.gmra.mxu0 %v11520_v13  ;;  %v11252_v13 = vld [vmem:[%s13086_s7 + $0x650] sm:$0xff] }
 0x449   : > { %9797 = vst.msk [vmem:[%s14257_s9 + $0x290] sm:$0xff] %vm9714_vm1, %v9540_v39  ;;  %v9285_v58 = vadd.f32 %v14809_v1, %v9022_v9  ;;  %v5330_v23 = vadd.f32 %v5329_v25, %v16327_v42  ;;  %11053 = vmatprep.mubr.msk.bf16.mxu1 %vm1927_vm0, %v12621_v15  ;;  %11720 = vmatprep.mubr.msk.bf16.mxu0 %vm1927_vm0, %v12623_v14  ;;  %v12635_v39 = vld [vmem:[%s13086_s7 + $0x450] ss:$8 sps:$4 sm:$0xff]   ;;  %v12636_v42 = vld [vmem:[%s13086_s7 + $0x464] ss:$8 sps:$4 sm:$0xff]  }
 0x44a   : > { %v5331_v16 = vpop.f32.mrf.mxu1  ;;  %v8254_v3 = vpop.f32.mrf.mxu0  ;;  %v11526_v9 = vcombine.low %v11252_v13, %v11253_v29 }
 0x44b   : > { %v9541_v60 = vmax.f32 %v9285_v58, 0.0  ;;  %v9023_v37 = vadd.f32 %v8252_v44, %v5330_v23  ;;  %v16332_v44 = vld [vmem:[#allocation137_spill] sm:$0xff] }
 0x44c   : > { %v5332_v62 = vpop.f32.mrf.mxu1  ;;  %v8255_v20 = vpop.f32.mrf.mxu0  ;;  %v12638_v23 = vld [vmem:[%s13086_s7 + $0x664] ss:$8 sps:$4 sm:$0xff]  }
 0x44d   : > { %9798 = vst.msk [vmem:[%s14257_s9 + $0x298] sm:$0xff] %vm9714_vm1, %v9541_v60  ;;  %v9286_v51 = vadd.f32 %v14809_v1, %v9023_v37  ;;  %v5333_v27 = vadd.f32 %v5332_v62, %v16328_v56 }
 0x44e   : > { %v5334_v21 = vpop.f32.mrf.mxu1  ;;  %v8257_v55 = vpop.f32.mrf.mxu0 }
 0x44f   : > { %v9542_v41 = vmax.f32 %v9286_v51, 0.0  ;;  %v9024_v30 = vadd.f32 %v8255_v20, %v5333_v27  ;;  %v16333_v20 = vld [vmem:[#allocation139_spill] sm:$0xff]  ;;  %v11255_v51 = vld [vmem:[%s13086_s7 + $0x668] sm:$0xff] }
 0x450   : > { %v5337_v2 = vpop.f32.mrf.mxu1  ;;  %5528 = vmatmul.mubr.bf16.gmra.mxu1 %v12625_v7  ;;  %v8260_v48 = vpop.f32.mrf.mxu0  ;;  %8451 = vmatmul.mubr.bf16.gmra.mxu0 %v11522_v52  ;;  %v11254_v52 = vld [vmem:[%s13086_s7 + $0x660] sm:$0xff] }
 0x451   : > { %9799 = vst.msk [vmem:[%s14257_s9 + $0x2a0] sm:$0xff] %vm9714_vm1, %v9542_v41  ;;  %v9287_v61 = vadd.f32 %v14809_v1, %v9024_v30  ;;  %v5338_v11 = vadd.f32 %v5337_v2, %v16329_v38  ;;  %11054 = vmatprep.mubr.msk.bf16.mxu1 %vm1927_vm0, %v12626_v63  ;;  %11721 = vmatprep.mubr.msk.bf16.mxu0 %vm1927_vm0, %v12628_v43  ;;  %v12640_v41 = vld [vmem:[%s13086_s7 + $0x460] ss:$8 sps:$4 sm:$0xff]   ;;  %v12641_v38 = vld [vmem:[%s13086_s7 + $0x474] ss:$8 sps:$4 sm:$0xff]  }
 0x452   : > { %v5339_v19 = vpop.f32.mrf.mxu1  ;;  %v8262_v46 = vpop.f32.mrf.mxu0  ;;  %v11528_v30 = vcombine.low %v11254_v52, %v11255_v51 }
 0x453   : > { %v9543_v35 = vmax.f32 %v9287_v61, 0.0  ;;  %v9025_v10 = vadd.f32 %v8260_v48, %v5338_v11  ;;  %v16334_v48 = vld [vmem:[#allocation141_spill] sm:$0xff]  ;;  %v12643_v11 = vld [vmem:[%s13086_s7 + $0x674] ss:$8 sps:$4 sm:$0xff]  }
 0x454   : > { %v5340_v34 = vpop.f32.mrf.mxu1  ;;  %v8263_v6 = vpop.f32.mrf.mxu0 }
 0x455   : > { %9800 = vst.msk [vmem:[%s14257_s9 + $0x2a8] sm:$0xff] %vm9714_vm1, %v9543_v35  ;;  %v9288_v33 = vadd.f32 %v14809_v1, %v9025_v10  ;;  %v5341_v22 = vadd.f32 %v5340_v34, %v16330_v49 }
 0x456   : > { %v5342_v32 = vpop.f32.mrf.mxu1  ;;  %v8265_v45 = vpop.f32.mrf.mxu0 }
 0x457   : > { %v9544_v50 = vmax.f32 %v9288_v33, 0.0  ;;  %v9026_v17 = vadd.f32 %v8263_v6, %v5341_v22  ;;  %v16335_v6 = vld [vmem:[#allocation143_spill] sm:$0xff]  ;;  %v11257_v33 = vld [vmem:[%s13086_s7 + $0x678] sm:$0xff] }
 0x458   : > { %v5345_v31 = vpop.f32.mrf.mxu1  ;;  %5536 = vmatmul.mubr.bf16.gmra.mxu1 %v12630_v26  ;;  %v8268_v8 = vpop.f32.mrf.mxu0  ;;  %8459 = vmatmul.mubr.bf16.gmra.mxu0 %v11524_v57  ;;  %v11256_v57 = vld [vmem:[%s13086_s7 + $0x670] sm:$0xff] }
 0x459   : > { %9801 = vst.msk [vmem:[%s14257_s9 + $0x2b0] sm:$0xff] %vm9714_vm1, %v9544_v50  ;;  %v9289_v0 = vadd.f32 %v14809_v1, %v9026_v17  ;;  %v5346_v54 = vadd.f32 %v5345_v31, %v16331_v53  ;;  %11055 = vmatprep.mubr.msk.bf16.mxu1 %vm1927_vm0, %v12631_v36  ;;  %11722 = vmatprep.mubr.msk.bf16.mxu0 %vm1927_vm0, %v12633_v24  ;;  %v12645_v50 = vld [vmem:[%s13086_s7 + $0x470] ss:$8 sps:$4 sm:$0xff]   ;;  %v12646_v53 = vld [vmem:[%s13086_s7 + $0x484] ss:$8 sps:$4 sm:$0xff]  }
 0x45a   : > { %v5347_v12 = vpop.f32.mrf.mxu1  ;;  %v8270_v4 = vpop.f32.mrf.mxu0  ;;  %v11530_v17 = vcombine.low %v11256_v57, %v11257_v33 }
 0x45b   : > { %v9545_v15 = vmax.f32 %v9289_v0, 0.0  ;;  %v9027_v14 = vadd.f32 %v8268_v8, %v5346_v54  ;;  %v16336_v8 = vld [vmem:[#allocation145_spill] sm:$0xff] }
 0x45c   : > { %v5348_v18 = vpop.f32.mrf.mxu1  ;;  %v8271_v5 = vpop.f32.mrf.mxu0  ;;  %v12648_v54 = vld [vmem:[%s13086_s7 + $0x684] ss:$8 sps:$4 sm:$0xff]  }
 0x45d   : > { %9802 = vst.msk [vmem:[%s14257_s9 + $0x2b8] sm:$0xff] %vm9714_vm1, %v9545_v15  ;;  %v9290_v25 = vadd.f32 %v14809_v1, %v9027_v14  ;;  %v5349_v58 = vadd.f32 %v5348_v18, %v16332_v44 }
 0x45e   : > { %v5350_v40 = vpop.f32.mrf.mxu1  ;;  %v8273_v28 = vpop.f32.mrf.mxu0 }
 0x45f   : > { %v9546_v16 = vmax.f32 %v9290_v25, 0.0  ;;  %v9028_v3 = vadd.f32 %v8271_v5, %v5349_v58  ;;  %v16337_v5 = vld [vmem:[#allocation147_spill] sm:$0xff]  ;;  %v11259_v25 = vld [vmem:[%s13086_s7 + $0x688] sm:$0xff] }
 0x460   : > { %v5353_v60 = vpop.f32.mrf.mxu1  ;;  %5544 = vmatmul.mubr.bf16.gmra.mxu1 %v12635_v39  ;;  %v8276_v37 = vpop.f32.mrf.mxu0  ;;  %8467 = vmatmul.mubr.bf16.gmra.mxu0 %v11526_v9  ;;  %v11258_v9 = vld [vmem:[%s13086_s7 + $0x680] sm:$0xff] }
 0x461   : > { %9803 = vst.msk [vmem:[%s14257_s9 + $0x2c0] sm:$0xff] %vm9714_vm1, %v9546_v16  ;;  %v9291_v62 = vadd.f32 %v14809_v1, %v9028_v3  ;;  %v5354_v7 = vadd.f32 %v5353_v60, %v16333_v20  ;;  %11056 = vmatprep.mubr.msk.bf16.mxu1 %vm1927_vm0, %v12636_v42  ;;  %11723 = vmatprep.mubr.msk.bf16.mxu0 %vm1927_vm0, %v12638_v23  ;;  %v12650_v16 = vld [vmem:[%s13086_s7 + $0x480] ss:$8 sps:$4 sm:$0xff]   ;;  %v12651_v20 = vld [vmem:[%s13086_s7 + $0x494] ss:$8 sps:$4 sm:$0xff]  }
 0x462   : > { %v5355_v56 = vpop.f32.mrf.mxu1  ;;  %v8278_v27 = vpop.f32.mrf.mxu0  ;;  %v11532_v3 = vcombine.low %v11258_v9, %v11259_v25 }
 0x463   : > { %v9547_v63 = vmax.f32 %v9291_v62, 0.0  ;;  %v9029_v43 = vadd.f32 %v8276_v37, %v5354_v7  ;;  %v16338_v37 = vld [vmem:[#allocation149_spill] sm:$0xff]  ;;  %v12653_v7 = vld [vmem:[%s13086_s7 + $0x694] ss:$8 sps:$4 sm:$0xff]  }
 0x464   : > { %v5356_v21 = vpop.f32.mrf.mxu1  ;;  %v8279_v55 = vpop.f32.mrf.mxu0 }
 0x465   : > { %9804 = vst.msk [vmem:[%s14257_s9 + $0x2c8] sm:$0xff] %vm9714_vm1, %v9547_v63  ;;  %v9292_v2 = vadd.f32 %v14809_v1, %v9029_v43  ;;  %v5357_v61 = vadd.f32 %v5356_v21, %v16334_v48 }
 0x466   : > { %v5358_v47 = vpop.f32.mrf.mxu1  ;;  %v8281_v59 = vpop.f32.mrf.mxu0 }
 0x467   : > { %v9548_v19 = vmax.f32 %v9292_v2, 0.0  ;;  %v9030_v46 = vadd.f32 %v8279_v55, %v5357_v61  ;;  %v16339_v55 = vld [vmem:[#allocation151_spill] sm:$0xff]  ;;  %v11261_v2 = vld [vmem:[%s13086_s7 + $0x698] sm:$0xff] }
 0x468   : > { %v5361_v35 = vpop.f32.mrf.mxu1  ;;  %5552 = vmatmul.mubr.bf16.gmra.mxu1 %v12640_v41  ;;  %v8284_v10 = vpop.f32.mrf.mxu0  ;;  %8475 = vmatmul.mubr.bf16.gmra.mxu0 %v11528_v30  ;;  %v11260_v30 = vld [vmem:[%s13086_s7 + $0x690] sm:$0xff] }
 0x469   : > { %9805 = vst.msk [vmem:[%s14257_s9 + $0x2d0] sm:$0xff] %vm9714_vm1, %v9548_v19  ;;  %v9293_v34 = vadd.f32 %v14809_v1, %v9030_v46  ;;  %v5362_v26 = vadd.f32 %v5361_v35, %v16335_v6  ;;  %11057 = vmatprep.mubr.msk.bf16.mxu1 %vm1927_vm0, %v12641_v38  ;;  %11724 = vmatprep.mubr.msk.bf16.mxu0 %vm1927_vm0, %v12643_v11  ;;  %v12655_v19 = vld [vmem:[%s13086_s7 + $0x490] ss:$8 sps:$4 sm:$0xff]   ;;  %v12656_v6 = vld [vmem:[%s13086_s7 + $0x4a4] ss:$8 sps:$4 sm:$0xff]  }
 0x46a   : > { %v5363_v49 = vpop.f32.mrf.mxu1  ;;  %v8286_v22 = vpop.f32.mrf.mxu0  ;;  %v11534_v46 = vcombine.low %v11260_v30, %v11261_v2 }
 0x46b   : > { %v9549_v36 = vmax.f32 %v9293_v34, 0.0  ;;  %v9031_v24 = vadd.f32 %v8284_v10, %v5362_v26  ;;  %v16340_v10 = vld [vmem:[#allocation153_spill] sm:$0xff] }
 0x46c   : > { %v5364_v32 = vpop.f32.mrf.mxu1  ;;  %v8287_v45 = vpop.f32.mrf.mxu0  ;;  %v12658_v26 = vld [vmem:[%s13086_s7 + $0x6a4] ss:$8 sps:$4 sm:$0xff]  }
 0x46d   : > { %9806 = vst.msk [vmem:[%s14257_s9 + $0x2d8] sm:$0xff] %vm9714_vm1, %v9549_v36  ;;  %v9294_v31 = vadd.f32 %v14809_v1, %v9031_v24  ;;  %v5365_v0 = vadd.f32 %v5364_v32, %v16336_v8 }
 0x46e   : > { %v5366_v13 = vpop.f32.mrf.mxu1  ;;  %v8289_v29 = vpop.f32.mrf.mxu0 }
 0x46f   : > { %v9550_v12 = vmax.f32 %v9294_v31, 0.0  ;;  %v9032_v4 = vadd.f32 %v8287_v45, %v5365_v0  ;;  %v16341_v45 = vld [vmem:[#allocation155_spill] sm:$0xff]  ;;  %v11263_v31 = vld [vmem:[%s13086_s7 + $0x6a8] sm:$0xff] }
 0x470   : > { %v5369_v15 = vpop.f32.mrf.mxu1  ;;  %5560 = vmatmul.mubr.bf16.gmra.mxu1 %v12645_v50  ;;  %v8292_v14 = vpop.f32.mrf.mxu0  ;;  %8483 = vmatmul.mubr.bf16.gmra.mxu0 %v11530_v17  ;;  %v11262_v17 = vld [vmem:[%s13086_s7 + $0x6a0] sm:$0xff] }
 0x471   : > { %9807 = vst.msk [vmem:[%s14257_s9 + $0x2e0] sm:$0xff] %vm9714_vm1, %v9550_v12  ;;  %v9295_v18 = vadd.f32 %v14809_v1, %v9032_v4  ;;  %v5370_v39 = vadd.f32 %v5369_v15, %v16337_v5  ;;  %11058 = vmatprep.mubr.msk.bf16.mxu1 %vm1927_vm0, %v12646_v53  ;;  %11725 = vmatprep.mubr.msk.bf16.mxu0 %vm1927_vm0, %v12648_v54  ;;  %v12660_v12 = vld [vmem:[%s13086_s7 + $0x4a0] ss:$8 sps:$4 sm:$0xff]   ;;  %v12661_v5 = vld [vmem:[%s13086_s7 + $0x4b4] ss:$8 sps:$4 sm:$0xff]  }
 0x472   : > { %v5371_v44 = vpop.f32.mrf.mxu1  ;;  %v8294_v58 = vpop.f32.mrf.mxu0  ;;  %v11536_v4 = vcombine.low %v11262_v17, %v11263_v31 }
 0x473   : > { %v9551_v42 = vmax.f32 %v9295_v18, 0.0  ;;  %v9033_v23 = vadd.f32 %v8292_v14, %v5370_v39  ;;  %v16342_v14 = vld [vmem:[#allocation157_spill] sm:$0xff]  ;;  %v12663_v39 = vld [vmem:[%s13086_s7 + $0x6b4] ss:$8 sps:$4 sm:$0xff]  }
 0x474   : > { %v5372_v40 = vpop.f32.mrf.mxu1  ;;  %v8295_v28 = vpop.f32.mrf.mxu0 }
 0x475   : > { %9808 = vst.msk [vmem:[%s14257_s9 + $0x2e8] sm:$0xff] %vm9714_vm1, %v9551_v42  ;;  %v9296_v60 = vadd.f32 %v14809_v1, %v9033_v23  ;;  %v5373_v62 = vadd.f32 %v5372_v40, %v16338_v37 }
 0x476   : > { %v5374_v52 = vpop.f32.mrf.mxu1  ;;  %v8297_v51 = vpop.f32.mrf.mxu0 }
 0x477   : > { %v9552_v56 = vmax.f32 %v9296_v60, 0.0  ;;  %v9034_v27 = vadd.f32 %v8295_v28, %v5373_v62  ;;  %v16343_v28 = vld [vmem:[#allocation159_spill] sm:$0xff]  ;;  %v11265_v60 = vld [vmem:[%s13086_s7 + $0x6b8] sm:$0xff] }
 0x478   : > { %v5377_v63 = vpop.f32.mrf.mxu1  ;;  %5568 = vmatmul.mubr.bf16.gmra.mxu1 %v12650_v16  ;;  %v8300_v43 = vpop.f32.mrf.mxu0  ;;  %8491 = vmatmul.mubr.bf16.gmra.mxu0 %v11532_v3  ;;  %v11264_v3 = vld [vmem:[%s13086_s7 + $0x6b0] sm:$0xff] }
 0x479   : > { %9809 = vst.msk [vmem:[%s14257_s9 + $0x2f0] sm:$0xff] %vm9714_vm1, %v9552_v56  ;;  %v9297_v21 = vadd.f32 %v14809_v1, %v9034_v27  ;;  %v5378_v41 = vadd.f32 %v5377_v63, %v16339_v55  ;;  %11059 = vmatprep.mubr.msk.bf16.mxu1 %vm1927_vm0, %v12651_v20  ;;  %11726 = vmatprep.mubr.msk.bf16.mxu0 %vm1927_vm0, %v12653_v7  ;;  %v12665_v56 = vld [vmem:[%s13086_s7 + $0x4b0] ss:$8 sps:$4 sm:$0xff]   ;;  %v12666_v55 = vld [vmem:[%s13086_s7 + $0x4c4] ss:$8 sps:$4 sm:$0xff]  }
 0x47a   : > { %v5379_v48 = vpop.f32.mrf.mxu1  ;;  %v8302_v61 = vpop.f32.mrf.mxu0  ;;  %v11538_v27 = vcombine.low %v11264_v3, %v11265_v60 }
 0x47b   : > { %v9553_v38 = vmax.f32 %v9297_v21, 0.0  ;;  %v9035_v11 = vadd.f32 %v8300_v43, %v5378_v41  ;;  %v16344_v43 = vld [vmem:[#allocation161_spill] sm:$0xff] }
 0x47c   : > { %v5380_v47 = vpop.f32.mrf.mxu1  ;;  %v8303_v59 = vpop.f32.mrf.mxu0  ;;  %v12668_v41 = vld [vmem:[%s13086_s7 + $0x6c4] ss:$8 sps:$4 sm:$0xff]  }
 0x47d   : > { %9810 = vst.msk [vmem:[%s14257_s9 + $0x2f8] sm:$0xff] %vm9714_vm1, %v9553_v38  ;;  %v9298_v35 = vadd.f32 %v14809_v1, %v9035_v11  ;;  %v5381_v34 = vadd.f32 %v5380_v47, %v16340_v10 }
 0x47e   : > { %v5382_v57 = vpop.f32.mrf.mxu1  ;;  %v8305_v33 = vpop.f32.mrf.mxu0 }
 0x47f   : > { %v9554_v49 = vmax.f32 %v9298_v35, 0.0  ;;  %v9036_v22 = vadd.f32 %v8303_v59, %v5381_v34  ;;  %v16345_v59 = vld [vmem:[#allocation163_spill] sm:$0xff]  ;;  %v11267_v35 = vld [vmem:[%s13086_s7 + $0x6c8] sm:$0xff] }
 0x480   : > { %v5385_v36 = vpop.f32.mrf.mxu1  ;;  %5576 = vmatmul.mubr.bf16.gmra.mxu1 %v12655_v19  ;;  %v8308_v24 = vpop.f32.mrf.mxu0  ;;  %8499 = vmatmul.mubr.bf16.gmra.mxu0 %v11534_v46  ;;  %v11266_v46 = vld [vmem:[%s13086_s7 + $0x6c0] sm:$0xff] }
 0x481   : > { %9811 = vst.msk [vmem:[%s14257_s9 + $0x300] sm:$0xff] %vm9714_vm1, %v9554_v49  ;;  %v9299_v32 = vadd.f32 %v14809_v1, %v9036_v22  ;;  %v5386_v50 = vadd.f32 %v5385_v36, %v16341_v45  ;;  %11060 = vmatprep.mubr.msk.bf16.mxu1 %vm1927_vm0, %v12656_v6  ;;  %11727 = vmatprep.mubr.msk.bf16.mxu0 %vm1927_vm0, %v12658_v26  ;;  %v12670_v49 = vld [vmem:[%s13086_s7 + $0x4c0] ss:$8 sps:$4 sm:$0xff]   ;;  %v12671_v45 = vld [vmem:[%s13086_s7 + $0x4d4] ss:$8 sps:$4 sm:$0xff]  }
 0x482   : > { %v5387_v8 = vpop.f32.mrf.mxu1  ;;  %v8310_v0 = vpop.f32.mrf.mxu0  ;;  %v11540_v22 = vcombine.low %v11266_v46, %v11267_v35 }
 0x483   : > { %v9555_v53 = vmax.f32 %v9299_v32, 0.0  ;;  %v9037_v54 = vadd.f32 %v8308_v24, %v5386_v50  ;;  %v16346_v24 = vld [vmem:[#allocation165_spill] sm:$0xff]  ;;  %v12673_v50 = vld [vmem:[%s13086_s7 + $0x6d4] ss:$8 sps:$4 sm:$0xff]  }
 0x484   : > { %v5388_v13 = vpop.f32.mrf.mxu1  ;;  %v8311_v29 = vpop.f32.mrf.mxu0 }
 0x485   : > { %9812 = vst.msk [vmem:[%s14257_s9 + $0x308] sm:$0xff] %vm9714_vm1, %v9555_v53  ;;  %v9300_v15 = vadd.f32 %v14809_v1, %v9037_v54  ;;  %v5389_v18 = vadd.f32 %v5388_v13, %v16342_v14 }
 0x486   : > { %v5390_v9 = vpop.f32.mrf.mxu1  ;;  %v8313_v25 = vpop.f32.mrf.mxu0 }
 0x487   : > { %v9556_v44 = vmax.f32 %v9300_v15, 0.0  ;;  %v9038_v58 = vadd.f32 %v8311_v29, %v5389_v18  ;;  %v16347_v29 = vld [vmem:[#allocation167_spill] sm:$0xff]  ;;  %v11269_v15 = vld [vmem:[%s13086_s7 + $0x6d8] sm:$0xff] }
 0x488   : > { %v5393_v42 = vpop.f32.mrf.mxu1  ;;  %5584 = vmatmul.mubr.bf16.gmra.mxu1 %v12660_v12  ;;  %v8316_v23 = vpop.f32.mrf.mxu0  ;;  %8507 = vmatmul.mubr.bf16.gmra.mxu0 %v11536_v4  ;;  %v11268_v4 = vld [vmem:[%s13086_s7 + $0x6d0] sm:$0xff] }
 0x489   : > { %9813 = vst.msk [vmem:[%s14257_s9 + $0x310] sm:$0xff] %vm9714_vm1, %v9556_v44  ;;  %v9301_v40 = vadd.f32 %v14809_v1, %v9038_v58  ;;  %v5394_v16 = vadd.f32 %v5393_v42, %v16343_v28  ;;  %11061 = vmatprep.mubr.msk.bf16.mxu1 %vm1927_vm0, %v12661_v5  ;;  %11728 = vmatprep.mubr.msk.bf16.mxu0 %vm1927_vm0, %v12663_v39  ;;  %v12675_v44 = vld [vmem:[%s13086_s7 + $0x4d0] ss:$8 sps:$4 sm:$0xff]   ;;  %v12676_v28 = vld [vmem:[%s13086_s7 + $0x4e4] ss:$8 sps:$4 sm:$0xff]  }
 0x48a   : > { %v5395_v37 = vpop.f32.mrf.mxu1  ;;  %v8318_v62 = vpop.f32.mrf.mxu0  ;;  %v11542_v58 = vcombine.low %v11268_v4, %v11269_v15 }
 0x48b   : > { %v9557_v20 = vmax.f32 %v9301_v40, 0.0  ;;  %v9039_v7 = vadd.f32 %v8316_v23, %v5394_v16  ;;  %v16348_v23 = vld [vmem:[#allocation169_spill] sm:$0xff] }
 0x48c   : > { %v5396_v52 = vpop.f32.mrf.mxu1  ;;  %v8319_v51 = vpop.f32.mrf.mxu0  ;;  %v12678_v16 = vld [vmem:[%s13086_s7 + $0x6e4] ss:$8 sps:$4 sm:$0xff]  }
 0x48d   : > { %9814 = vst.msk [vmem:[%s14257_s9 + $0x318] sm:$0xff] %vm9714_vm1, %v9557_v20  ;;  %v9302_v63 = vadd.f32 %v14809_v1, %v9039_v7  ;;  %v5397_v21 = vadd.f32 %v5396_v52, %v16344_v43 }
 0x48e   : > { %v5398_v30 = vpop.f32.mrf.mxu1  ;;  %v8321_v2 = vpop.f32.mrf.mxu0 }
 0x48f   : > { %v9558_v48 = vmax.f32 %v9302_v63, 0.0  ;;  %v9040_v61 = vadd.f32 %v8319_v51, %v5397_v21  ;;  %v16349_v51 = vld [vmem:[#allocation171_spill] sm:$0xff]  ;;  %v11271_v63 = vld [vmem:[%s13086_s7 + $0x6e8] sm:$0xff] }
 0x490   : > { %v5401_v38 = vpop.f32.mrf.mxu1  ;;  %5592 = vmatmul.mubr.bf16.gmra.mxu1 %v12665_v56  ;;  %v8324_v11 = vpop.f32.mrf.mxu0  ;;  %8515 = vmatmul.mubr.bf16.gmra.mxu0 %v11538_v27  ;;  %v11270_v27 = vld [vmem:[%s13086_s7 + $0x6e0] sm:$0xff] }
 0x491   : > { %9815 = vst.msk [vmem:[%s14257_s9 + $0x320] sm:$0xff] %vm9714_vm1, %v9558_v48  ;;  %v9303_v47 = vadd.f32 %v14809_v1, %v9040_v61  ;;  %v5402_v19 = vadd.f32 %v5401_v38, %v16345_v59  ;;  %11062 = vmatprep.mubr.msk.bf16.mxu1 %vm1927_vm0, %v12666_v55  ;;  %11729 = vmatprep.mubr.msk.bf16.mxu0 %vm1927_vm0, %v12668_v41  ;;  %v12680_v48 = vld [vmem:[%s13086_s7 + $0x4e0] ss:$8 sps:$4 sm:$0xff]   ;;  %v12681_v59 = vld [vmem:[%s13086_s7 + $0x4f4] ss:$8 sps:$4 sm:$0xff]  }
 0x492   : > { %v5403_v10 = vpop.f32.mrf.mxu1  ;;  %v8326_v34 = vpop.f32.mrf.mxu0  ;;  %v11544_v61 = vcombine.low %v11270_v27, %v11271_v63 }
 0x493   : > { %v9559_v6 = vmax.f32 %v9303_v47, 0.0  ;;  %v9041_v26 = vadd.f32 %v8324_v11, %v5402_v19  ;;  %v16350_v11 = vld [vmem:[#allocation173_spill] sm:$0xff]  ;;  %v12683_v19 = vld [vmem:[%s13086_s7 + $0x6f4] ss:$8 sps:$4 sm:$0xff]  }
 0x494   : > { %v5404_v57 = vpop.f32.mrf.mxu1  ;;  %v8327_v33 = vpop.f32.mrf.mxu0 }
 0x495   : > { %9816 = vst.msk [vmem:[%s14257_s9 + $0x328] sm:$0xff] %vm9714_vm1, %v9559_v6  ;;  %v9304_v36 = vadd.f32 %v14809_v1, %v9041_v26  ;;  %v5405_v32 = vadd.f32 %v5404_v57, %v16346_v24 }
 0x496   : > { %v5406_v17 = vpop.f32.mrf.mxu1  ;;  %v8329_v31 = vpop.f32.mrf.mxu0 }
 0x497   : > { %v9560_v8 = vmax.f32 %v9304_v36, 0.0  ;;  %v9042_v0 = vadd.f32 %v8327_v33, %v5405_v32  ;;  %v16351_v33 = vld [vmem:[#allocation175_spill] sm:$0xff]  ;;  %v11273_v36 = vld [vmem:[%s13086_s7 + $0x6f8] sm:$0xff] }
 0x498   : > { %v5409_v53 = vpop.f32.mrf.mxu1  ;;  %5600 = vmatmul.mubr.bf16.gmra.mxu1 %v12670_v49  ;;  %v8332_v54 = vpop.f32.mrf.mxu0  ;;  %8523 = vmatmul.mubr.bf16.gmra.mxu0 %v11540_v22  ;;  %v11272_v22 = vld [vmem:[%s13086_s7 + $0x6f0] sm:$0xff] }
 0x499   : > { %9817 = vst.msk [vmem:[%s14257_s9 + $0x330] sm:$0xff] %vm9714_vm1, %v9560_v8  ;;  %v9305_v13 = vadd.f32 %v14809_v1, %v9042_v0  ;;  %v5410_v12 = vadd.f32 %v5409_v53, %v16347_v29  ;;  %11063 = vmatprep.mubr.msk.bf16.mxu1 %vm1927_vm0, %v12671_v45  ;;  %11730 = vmatprep.mubr.msk.bf16.mxu0 %vm1927_vm0, %v12673_v50  ;;  %v12685_v8 = vld [vmem:[%s13086_s7 + $0x4f0] ss:$8 sps:$4 sm:$0xff]   ;;  %v12686_v29 = vld [vmem:[%s13086_s7 + $0x504] ss:$8 sps:$4 sm:$0xff]  }
 0x49a   : > { %v5411_v14 = vpop.f32.mrf.mxu1  ;;  %v8334_v18 = vpop.f32.mrf.mxu0  ;;  %v11546_v0 = vcombine.low %v11272_v22, %v11273_v36 }
 0x49b   : > { %v9561_v5 = vmax.f32 %v9305_v13, 0.0  ;;  %v9043_v39 = vadd.f32 %v8332_v54, %v5410_v12  ;;  %v16352_v54 = vld [vmem:[#allocation177_spill] sm:$0xff] }
 0x49c   : > { %v5412_v9 = vpop.f32.mrf.mxu1  ;;  %v8335_v25 = vpop.f32.mrf.mxu0  ;;  %v12688_v12 = vld [vmem:[%s13086_s7 + $0x704] ss:$8 sps:$4 sm:$0xff]  }
 0x49d   : > { %9818 = vst.msk [vmem:[%s14257_s9 + $0x338] sm:$0xff] %vm9714_vm1, %v9561_v5  ;;  %v9306_v42 = vadd.f32 %v14809_v1, %v9043_v39  ;;  %v5413_v40 = vadd.f32 %v5412_v9, %v16348_v23 }
 0x49e   : > { %v5414_v3 = vpop.f32.mrf.mxu1  ;;  %v8337_v60 = vpop.f32.mrf.mxu0 }
 0x49f   : > { %v9562_v37 = vmax.f32 %v9306_v42, 0.0  ;;  %v9044_v62 = vadd.f32 %v8335_v25, %v5413_v40  ;;  %v16353_v25 = vld [vmem:[#allocation179_spill] sm:$0xff]  ;;  %v11275_v42 = vld [vmem:[%s13086_s7 + $0x708] sm:$0xff] }
 0x4a0   : > { %v5417_v20 = vpop.f32.mrf.mxu1  ;;  %5608 = vmatmul.mubr.bf16.gmra.mxu1 %v12675_v44  ;;  %v8340_v7 = vpop.f32.mrf.mxu0  ;;  %8531 = vmatmul.mubr.bf16.gmra.mxu0 %v11542_v58  ;;  %v11274_v58 = vld [vmem:[%s13086_s7 + $0x700] sm:$0xff] }
 0x4a1   : > { %9819 = vst.msk [vmem:[%s14257_s9 + $0x340] sm:$0xff] %vm9714_vm1, %v9562_v37  ;;  %v9307_v52 = vadd.f32 %v14809_v1, %v9044_v62  ;;  %v5418_v56 = vadd.f32 %v5417_v20, %v16349_v51  ;;  %11064 = vmatprep.mubr.msk.bf16.mxu1 %vm1927_vm0, %v12676_v28  ;;  %11731 = vmatprep.mubr.msk.bf16.mxu0 %vm1927_vm0, %v12678_v16  ;;  %v12690_v37 = vld [vmem:[%s13086_s7 + $0x500] ss:$8 sps:$4 sm:$0xff]   ;;  %v12691_v51 = vld [vmem:[%s13086_s7 + $0x514] ss:$8 sps:$4 sm:$0xff]  }
 0x4a2   : > { %v5419_v43 = vpop.f32.mrf.mxu1  ;;  %v8342_v21 = vpop.f32.mrf.mxu0  ;;  %v11548_v62 = vcombine.low %v11274_v58, %v11275_v42 }
 0x4a3   : > { %v9563_v55 = vmax.f32 %v9307_v52, 0.0  ;;  %v9045_v41 = vadd.f32 %v8340_v7, %v5418_v56  ;;  %v16354_v7 = vld [vmem:[#allocation181_spill] sm:$0xff]  ;;  %v12693_v56 = vld [vmem:[%s13086_s7 + $0x714] ss:$8 sps:$4 sm:$0xff]  }
 0x4a4   : > { %v5420_v30 = vpop.f32.mrf.mxu1  ;;  %v8343_v2 = vpop.f32.mrf.mxu0 }
 0x4a5   : > { %9820 = vst.msk [vmem:[%s14257_s9 + $0x348] sm:$0xff] %vm9714_vm1, %v9563_v55  ;;  %v9308_v38 = vadd.f32 %v14809_v1, %v9045_v41  ;;  %v5421_v47 = vadd.f32 %v5420_v30, %v16350_v11 }
 0x4a6   : > { %v5422_v46 = vpop.f32.mrf.mxu1  ;;  %v8345_v35 = vpop.f32.mrf.mxu0 }
 0x4a7   : > { %v9564_v10 = vmax.f32 %v9308_v38, 0.0  ;;  %v9046_v34 = vadd.f32 %v8343_v2, %v5421_v47  ;;  %v16355_v2 = vld [vmem:[#allocation183_spill] sm:$0xff]  ;;  %v11277_v38 = vld [vmem:[%s13086_s7 + $0x718] sm:$0xff] }
 0x4a8   : > { %v5425_v6 = vpop.f32.mrf.mxu1  ;;  %5616 = vmatmul.mubr.bf16.gmra.mxu1 %v12680_v48  ;;  %v8348_v26 = vpop.f32.mrf.mxu0  ;;  %8539 = vmatmul.mubr.bf16.gmra.mxu0 %v11544_v61  ;;  %v11276_v61 = vld [vmem:[%s13086_s7 + $0x710] sm:$0xff] }
 0x4a9   : > { %9821 = vst.msk [vmem:[%s14257_s9 + $0x350] sm:$0xff] %vm9714_vm1, %v9564_v10  ;;  %v9309_v57 = vadd.f32 %v14809_v1, %v9046_v34  ;;  %v5426_v49 = vadd.f32 %v5425_v6, %v16351_v33  ;;  %11065 = vmatprep.mubr.msk.bf16.mxu1 %vm1927_vm0, %v12681_v59  ;;  %11732 = vmatprep.mubr.msk.bf16.mxu0 %vm1927_vm0, %v12683_v19  ;;  %v12695_v10 = vld [vmem:[%s13086_s7 + $0x510] ss:$8 sps:$4 sm:$0xff]   ;;  %v12696_v33 = vld [vmem:[%s13086_s7 + $0x524] ss:$8 sps:$4 sm:$0xff]  }
 0x4aa   : > { %v5427_v24 = vpop.f32.mrf.mxu1  ;;  %v8350_v32 = vpop.f32.mrf.mxu0  ;;  %v11550_v34 = vcombine.low %v11276_v61, %v11277_v38 }
 0x4ab   : > { %v9565_v45 = vmax.f32 %v9309_v57, 0.0  ;;  %v9047_v50 = vadd.f32 %v8348_v26, %v5426_v49  ;;  %v16356_v26 = vld [vmem:[#allocation185_spill] sm:$0xff] }
 0x4ac   : > { %v5428_v17 = vpop.f32.mrf.mxu1  ;;  %v8351_v31 = vpop.f32.mrf.mxu0  ;;  %v12698_v49 = vld [vmem:[%s13086_s7 + $0x724] ss:$8 sps:$4 sm:$0xff]  }
 0x4ad   : > { %9822 = vst.msk [vmem:[%s14257_s9 + $0x358] sm:$0xff] %vm9714_vm1, %v9565_v45  ;;  %v9310_v53 = vadd.f32 %v14809_v1, %v9047_v50  ;;  %v5429_v13 = vadd.f32 %v5428_v17, %v16352_v54 }
 0x4ae   : > { %v5430_v4 = vpop.f32.mrf.mxu1  ;;  %v8353_v15 = vpop.f32.mrf.mxu0 }
 0x4af   : > { %v9566_v14 = vmax.f32 %v9310_v53, 0.0  ;;  %v9048_v18 = vadd.f32 %v8351_v31, %v5429_v13  ;;  %v16357_v31 = vld [vmem:[#allocation187_spill] sm:$0xff]  ;;  %v11279_v53 = vld [vmem:[%s13086_s7 + $0x728] sm:$0xff] }
 0x4b0   : > { %v5433_v5 = vpop.f32.mrf.mxu1  ;;  %5624 = vmatmul.mubr.bf16.gmra.mxu1 %v12685_v8  ;;  %v8356_v39 = vpop.f32.mrf.mxu0  ;;  %8547 = vmatmul.mubr.bf16.gmra.mxu0 %v11546_v0  ;;  %v11278_v0 = vld [vmem:[%s13086_s7 + $0x720] sm:$0xff] }
 0x4b1   : > { %9823 = vst.msk [vmem:[%s14257_s9 + $0x360] sm:$0xff] %vm9714_vm1, %v9566_v14  ;;  %v9311_v9 = vadd.f32 %v14809_v1, %v9048_v18  ;;  %v5434_v44 = vadd.f32 %v5433_v5, %v16353_v25  ;;  %11066 = vmatprep.mubr.msk.bf16.mxu1 %vm1927_vm0, %v12686_v29  ;;  %11733 = vmatprep.mubr.msk.bf16.mxu0 %vm1927_vm0, %v12688_v12  ;;  %v15093_v1 = vld [vmem:[%s16075_s2] ss:$0 sm:$0xff]  ;;  %v12701_v25 = vld [vmem:[%s13086_s7 + $0x534] ss:$8 sps:$4 sm:$0xff]  }
 0x4b2   : > { %v5435_v23 = vpop.f32.mrf.mxu1  ;;  %v8358_v40 = vpop.f32.mrf.mxu0  ;;  %v12700_v14 = vld [vmem:[%s13086_s7 + $0x520] ss:$8 sps:$4 sm:$0xff]   ;;  %v11552_v18 = vcombine.low %v11278_v0, %v11279_v53 }
 0x4b3   : > { %v9567_v28 = vmax.f32 %v9311_v9, 0.0  ;;  %v9049_v16 = vadd.f32 %v8356_v39, %v5434_v44  ;;  %v16358_v39 = vld [vmem:[#allocation189_spill] sm:$0xff]  ;;  %v12703_v44 = vld [vmem:[%s13086_s7 + $0x734] ss:$8 sps:$4 sm:$0xff]  }
 0x4b4   : > { %v5436_v3 = vpop.f32.mrf.mxu1  ;;  %v8359_v60 = vpop.f32.mrf.mxu0 }
 0x4b5   : > { %9824 = vst.msk [vmem:[%s14257_s9 + $0x368] sm:$0xff] %vm9714_vm1, %v9567_v28  ;;  %v9312_v20 = vadd.f32 %v15093_v1, %v9049_v16  ;;  %v5437_v52 = vadd.f32 %v5436_v3, %v16354_v7 }
 0x4b6   : > { %v5438_v27 = vpop.f32.mrf.mxu1  ;;  %v8361_v63 = vpop.f32.mrf.mxu0 }
 0x4b7   : > { %v9568_v43 = vmax.f32 %v9312_v20, 0.0  ;;  %v9050_v21 = vadd.f32 %v8359_v60, %v5437_v52  ;;  %v16359_v60 = vld [vmem:[#allocation191_spill] sm:$0xff]  ;;  %v11281_v20 = vld [vmem:[%s13086_s7 + $0x738] sm:$0xff] }
 0x4b8   : > { %v5441_v55 = vpop.f32.mrf.mxu1  ;;  %5632 = vmatmul.mubr.bf16.gmra.mxu1 %v12690_v37  ;;  %v8364_v41 = vpop.f32.mrf.mxu0  ;;  %8555 = vmatmul.mubr.bf16.gmra.mxu0 %v11548_v62  ;;  %v11280_v62 = vld [vmem:[%s13086_s7 + $0x730] sm:$0xff] }
 0x4b9   : > { %9825 = vst.msk [vmem:[%s14257_s9 + $0x370] sm:$0xff] %vm9714_vm1, %v9568_v43  ;;  %v9313_v30 = vadd.f32 %v15093_v1, %v9050_v21  ;;  %v5442_v48 = vadd.f32 %v5441_v55, %v16355_v2  ;;  %11067 = vmatprep.mubr.msk.bf16.mxu1 %vm1927_vm0, %v12691_v51  ;;  %11734 = vmatprep.mubr.msk.bf16.mxu0 %vm1927_vm0, %v12693_v56  ;;  %v12705_v43 = vld [vmem:[%s13086_s7 + $0x530] ss:$8 sps:$4 sm:$0xff]   ;;  %v12706_v2 = vld [vmem:[%s13086_s7 + $0x544] ss:$8 sps:$4 sm:$0xff]  }
 0x4ba   : > { %v5443_v11 = vpop.f32.mrf.mxu1  ;;  %v8366_v47 = vpop.f32.mrf.mxu0  ;;  %v11554_v21 = vcombine.low %v11280_v62, %v11281_v20 }
 0x4bb   : > { %v9569_v59 = vmax.f32 %v9313_v30, 0.0  ;;  %v9051_v19 = vadd.f32 %v8364_v41, %v5442_v48  ;;  %v16360_v41 = vld [vmem:[#allocation193_spill] sm:$0xff] }
 0x4bc   : > { %v5444_v46 = vpop.f32.mrf.mxu1  ;;  %v8367_v35 = vpop.f32.mrf.mxu0  ;;  %v12708_v48 = vld [vmem:[%s13086_s7 + $0x744] ss:$8 sps:$4 sm:$0xff]  }
 0x4bd   : > { %9826 = vst.msk [vmem:[%s14257_s9 + $0x378] sm:$0xff] %vm9714_vm1, %v9569_v59  ;;  %v9314_v6 = vadd.f32 %v15093_v1, %v9051_v19  ;;  %v5445_v57 = vadd.f32 %v5444_v46, %v16356_v26 }
 0x4be   : > { %v5446_v22 = vpop.f32.mrf.mxu1  ;;  %v8369_v36 = vpop.f32.mrf.mxu0 }
 0x4bf   : > { %v9570_v24 = vmax.f32 %v9314_v6, 0.0  ;;  %v9052_v32 = vadd.f32 %v8367_v35, %v5445_v57  ;;  %v16361_v35 = vld [vmem:[#allocation195_spill] sm:$0xff]  ;;  %v11283_v6 = vld [vmem:[%s13086_s7 + $0x748] sm:$0xff] }
 0x4c0   : > { %v5449_v45 = vpop.f32.mrf.mxu1  ;;  %5640 = vmatmul.mubr.bf16.gmra.mxu1 %v12695_v10  ;;  %v8372_v50 = vpop.f32.mrf.mxu0  ;;  %8563 = vmatmul.mubr.bf16.gmra.mxu0 %v11550_v34  ;;  %v11282_v34 = vld [vmem:[%s13086_s7 + $0x740] sm:$0xff] }
 0x4c1   : > { %9827 = vst.msk [vmem:[%s14257_s9 + $0x380] sm:$0xff] %vm9714_vm1, %v9570_v24  ;;  %v9315_v17 = vadd.f32 %v15093_v1, %v9052_v32  ;;  %v5450_v8 = vadd.f32 %v5449_v45, %v16357_v31  ;;  %11068 = vmatprep.mubr.msk.bf16.mxu1 %vm1927_vm0, %v12696_v33  ;;  %11735 = vmatprep.mubr.msk.bf16.mxu0 %vm1927_vm0, %v12698_v49  ;;  %v12710_v24 = vld [vmem:[%s13086_s7 + $0x540] ss:$8 sps:$4 sm:$0xff]   ;;  %v12711_v31 = vld [vmem:[%s13086_s7 + $0x554] ss:$8 sps:$4 sm:$0xff]  }
 0x4c2   : > { %v5451_v54 = vpop.f32.mrf.mxu1  ;;  %v8374_v13 = vpop.f32.mrf.mxu0  ;;  %v11556_v32 = vcombine.low %v11282_v34, %v11283_v6 }
 0x4c3   : > { %v9571_v29 = vmax.f32 %v9315_v17, 0.0  ;;  %v9053_v12 = vadd.f32 %v8372_v50, %v5450_v8  ;;  %v16362_v50 = vld [vmem:[#allocation197_spill] sm:$0xff]  ;;  %v12713_v8 = vld [vmem:[%s13086_s7 + $0x754] ss:$8 sps:$4 sm:$0xff]  }
 0x4c4   : > { %v5452_v4 = vpop.f32.mrf.mxu1  ;;  %v8375_v15 = vpop.f32.mrf.mxu0 }
 0x4c5   : > { %9828 = vst.msk [vmem:[%s14257_s9 + $0x388] sm:$0xff] %vm9714_vm1, %v9571_v29  ;;  %v9316_v5 = vadd.f32 %v15093_v1, %v9053_v12  ;;  %v5453_v9 = vadd.f32 %v5452_v4, %v16358_v39 }
 0x4c6   : > { %v5454_v58 = vpop.f32.mrf.mxu1  ;;  %v8377_v42 = vpop.f32.mrf.mxu0 }
 0x4c7   : > { %v9572_v23 = vmax.f32 %v9316_v5, 0.0  ;;  %v9054_v40 = vadd.f32 %v8375_v15, %v5453_v9  ;;  %v16363_v15 = vld [vmem:[#allocation199_spill] sm:$0xff]  ;;  %v11285_v5 = vld [vmem:[%s13086_s7 + $0x758] sm:$0xff] }
 0x4c8   : > { %v5457_v28 = vpop.f32.mrf.mxu1  ;;  %5648 = vmatmul.mubr.bf16.gmra.mxu1 %v12700_v14  ;;  %v8380_v16 = vpop.f32.mrf.mxu0  ;;  %8571 = vmatmul.mubr.bf16.gmra.mxu0 %v11552_v18  ;;  %v11284_v18 = vld [vmem:[%s13086_s7 + $0x750] sm:$0xff] }
 0x4c9   : > { %9829 = vst.msk [vmem:[%s14257_s9 + $0x390] sm:$0xff] %vm9714_vm1, %v9572_v23  ;;  %v9317_v3 = vadd.f32 %v15093_v1, %v9054_v40  ;;  %v5458_v37 = vadd.f32 %v5457_v28, %v16359_v60  ;;  %11069 = vmatprep.mubr.msk.bf16.mxu1 %vm1927_vm0, %v12701_v25  ;;  %11736 = vmatprep.mubr.msk.bf16.mxu0 %vm1927_vm0, %v12703_v44  ;;  %v12715_v23 = vld [vmem:[%s13086_s7 + $0x550] ss:$8 sps:$4 sm:$0xff]   ;;  %v12716_v60 = vld [vmem:[%s13086_s7 + $0x564] ss:$8 sps:$4 sm:$0xff]  }
 0x4ca   : > { %v5459_v7 = vpop.f32.mrf.mxu1  ;;  %v8382_v52 = vpop.f32.mrf.mxu0  ;;  %v11558_v40 = vcombine.low %v11284_v18, %v11285_v5 }
 0x4cb   : > { %v9573_v51 = vmax.f32 %v9317_v3, 0.0  ;;  %v9055_v56 = vadd.f32 %v8380_v16, %v5458_v37  ;;  %v16364_v16 = vld [vmem:[#allocation201_spill] sm:$0xff] }
 0x4cc   : > { %v5460_v27 = vpop.f32.mrf.mxu1  ;;  %v8383_v63 = vpop.f32.mrf.mxu0  ;;  %v12718_v37 = vld [vmem:[%s13086_s7 + $0x764] ss:$8 sps:$4 sm:$0xff]  }
 0x4cd   : > { %9830 = vst.msk [vmem:[%s14257_s9 + $0x398] sm:$0xff] %vm9714_vm1, %v9573_v51  ;;  %v9318_v55 = vadd.f32 %v15093_v1, %v9055_v56  ;;  %v5461_v30 = vadd.f32 %v5460_v27, %v16360_v41 }
 0x4ce   : > { %v5462_v61 = vpop.f32.mrf.mxu1  ;;  %v8385_v38 = vpop.f32.mrf.mxu0 }
 0x4cf   : > { %v9574_v11 = vmax.f32 %v9318_v55, 0.0  ;;  %v9056_v47 = vadd.f32 %v8383_v63, %v5461_v30  ;;  %v16365_v63 = vld [vmem:[#allocation203_spill] sm:$0xff]  ;;  %v11287_v55 = vld [vmem:[%s13086_s7 + $0x768] sm:$0xff] }
 0x4d0   : > { %v5465_v59 = vpop.f32.mrf.mxu1  ;;  %5656 = vmatmul.mubr.bf16.gmra.mxu1 %v12705_v43  ;;  %v8388_v19 = vpop.f32.mrf.mxu0  ;;  %8579 = vmatmul.mubr.bf16.gmra.mxu0 %v11554_v21  ;;  %v11286_v21 = vld [vmem:[%s13086_s7 + $0x760] sm:$0xff] }
 0x4d1   : > { %9831 = vst.msk [vmem:[%s14257_s9 + $0x3a0] sm:$0xff] %vm9714_vm1, %v9574_v11  ;;  %v9319_v46 = vadd.f32 %v15093_v1, %v9056_v47  ;;  %v5466_v10 = vadd.f32 %v5465_v59, %v16361_v35  ;;  %11070 = vmatprep.mubr.msk.bf16.mxu1 %vm1927_vm0, %v12706_v2  ;;  %11737 = vmatprep.mubr.msk.bf16.mxu0 %vm1927_vm0, %v12708_v48  ;;  %v12720_v11 = vld [vmem:[%s13086_s7 + $0x560] ss:$8 sps:$4 sm:$0xff]   ;;  %v12721_v35 = vld [vmem:[%s13086_s7 + $0x574] ss:$8 sps:$4 sm:$0xff]  }
 0x4d2   : > { %v5467_v26 = vpop.f32.mrf.mxu1  ;;  %v8390_v57 = vpop.f32.mrf.mxu0  ;;  %v11560_v47 = vcombine.low %v11286_v21, %v11287_v55 }
 0x4d3   : > { %v9575_v33 = vmax.f32 %v9319_v46, 0.0  ;;  %v9057_v49 = vadd.f32 %v8388_v19, %v5466_v10  ;;  %v16366_v19 = vld [vmem:[#allocation205_spill] sm:$0xff]  ;;  %v12723_v10 = vld [vmem:[%s13086_s7 + $0x774] ss:$8 sps:$4 sm:$0xff]  }
 0x4d4   : > { %v5468_v22 = vpop.f32.mrf.mxu1  ;;  %v8391_v36 = vpop.f32.mrf.mxu0 }
 0x4d5   : > { %9832 = vst.msk [vmem:[%s14257_s9 + $0x3a8] sm:$0xff] %vm9714_vm1, %v9575_v33  ;;  %v9320_v45 = vadd.f32 %v15093_v1, %v9057_v49  ;;  %v5469_v17 = vadd.f32 %v5468_v22, %v16362_v50 }
 0x4d6   : > { %v5470_v0 = vpop.f32.mrf.mxu1  ;;  %v8393_v53 = vpop.f32.mrf.mxu0 }
 0x4d7   : > { %v9576_v54 = vmax.f32 %v9320_v45, 0.0  ;;  %v9058_v13 = vadd.f32 %v8391_v36, %v5469_v17  ;;  %v16367_v36 = vld [vmem:[#allocation207_spill] sm:$0xff]  ;;  %v11289_v45 = vld [vmem:[%s13086_s7 + $0x778] sm:$0xff] }
 0x4d8   : > { %v5473_v29 = vpop.f32.mrf.mxu1  ;;  %5664 = vmatmul.mubr.bf16.gmra.mxu1 %v12710_v24  ;;  %v8396_v12 = vpop.f32.mrf.mxu0  ;;  %8587 = vmatmul.mubr.bf16.gmra.mxu0 %v11556_v32  ;;  %v11288_v32 = vld [vmem:[%s13086_s7 + $0x770] sm:$0xff] }
 0x4d9   : > { %9833 = vst.msk [vmem:[%s14257_s9 + $0x3b0] sm:$0xff] %vm9714_vm1, %v9576_v54  ;;  %v9321_v4 = vadd.f32 %v15093_v1, %v9058_v13  ;;  %v5474_v14 = vadd.f32 %v5473_v29, %v16363_v15  ;;  %11071 = vmatprep.mubr.msk.bf16.mxu1 %vm1927_vm0, %v12711_v31  ;;  %11738 = vmatprep.mubr.msk.bf16.mxu0 %vm1927_vm0, %v12713_v8  ;;  %v12725_v54 = vld [vmem:[%s13086_s7 + $0x570] ss:$8 sps:$4 sm:$0xff]   ;;  %v12726_v15 = vld [vmem:[%s13086_s7 + $0x584] ss:$8 sps:$4 sm:$0xff]  }
 0x4da   : > { %v5475_v39 = vpop.f32.mrf.mxu1  ;;  %v8398_v9 = vpop.f32.mrf.mxu0  ;;  %v11562_v13 = vcombine.low %v11288_v32, %v11289_v45 }
 0x4db   : > { %v9577_v25 = vmax.f32 %v9321_v4, 0.0  ;;  %v9059_v44 = vadd.f32 %v8396_v12, %v5474_v14  ;;  %v16368_v12 = vld [vmem:[#allocation209_spill] sm:$0xff] }
 0x4dc   : > { %v5476_v58 = vpop.f32.mrf.mxu1  ;;  %v8399_v42 = vpop.f32.mrf.mxu0  ;;  %v12728_v14 = vld [vmem:[%s13086_s7 + $0x784] ss:$8 sps:$4 sm:$0xff]  }
 0x4dd   : > { %9834 = vst.msk [vmem:[%s14257_s9 + $0x3b8] sm:$0xff] %vm9714_vm1, %v9577_v25  ;;  %v9322_v28 = vadd.f32 %v15093_v1, %v9059_v44  ;;  %v5477_v3 = vadd.f32 %v5476_v58, %v16364_v16 }
 0x4de   : > { %v5478_v62 = vpop.f32.mrf.mxu1  ;;  %v8401_v20 = vpop.f32.mrf.mxu0 }
 0x4df   : > { %v9578_v7 = vmax.f32 %v9322_v28, 0.0  ;;  %v9060_v52 = vadd.f32 %v8399_v42, %v5477_v3  ;;  %v16369_v42 = vld [vmem:[#allocation211_spill] sm:$0xff]  ;;  %v11291_v28 = vld [vmem:[%s13086_s7 + $0x788] sm:$0xff] }
 0x4e0   : > { %v5481_v51 = vpop.f32.mrf.mxu1  ;;  %5672 = vmatmul.mubr.bf16.gmra.mxu1 %v12715_v23  ;;  %v8404_v56 = vpop.f32.mrf.mxu0  ;;  %8595 = vmatmul.mubr.bf16.gmra.mxu0 %v11558_v40  ;;  %v11290_v40 = vld [vmem:[%s13086_s7 + $0x780] sm:$0xff] }
 0x4e1   : > { %9835 = vst.msk [vmem:[%s14257_s9 + $0x3c0] sm:$0xff] %vm9714_vm1, %v9578_v7  ;;  %v9323_v27 = vadd.f32 %v15093_v1, %v9060_v52  ;;  %v5482_v43 = vadd.f32 %v5481_v51, %v16365_v63  ;;  %11072 = vmatprep.mubr.msk.bf16.mxu1 %vm1927_vm0, %v12716_v60  ;;  %11739 = vmatprep.mubr.msk.bf16.mxu0 %vm1927_vm0, %v12718_v37  ;;  %v12730_v7 = vld [vmem:[%s13086_s7 + $0x580] ss:$8 sps:$4 sm:$0xff]   ;;  %v12731_v63 = vld [vmem:[%s13086_s7 + $0x594] ss:$8 sps:$4 sm:$0xff]  }
 0x4e2   : > { %v5483_v41 = vpop.f32.mrf.mxu1  ;;  %v8406_v30 = vpop.f32.mrf.mxu0  ;;  %v11564_v52 = vcombine.low %v11290_v40, %v11291_v28 }
 0x4e3   : > { %v9579_v2 = vmax.f32 %v9323_v27, 0.0  ;;  %v9061_v48 = vadd.f32 %v8404_v56, %v5482_v43  ;;  %v16370_v56 = vld [vmem:[#allocation213_spill] sm:$0xff]  ;;  %v12733_v43 = vld [vmem:[%s13086_s7 + $0x794] ss:$8 sps:$4 sm:$0xff]  }
 0x4e4   : > { %v5484_v61 = vpop.f32.mrf.mxu1  ;;  %v8407_v38 = vpop.f32.mrf.mxu0 }
 0x4e5   : > { %9836 = vst.msk [vmem:[%s14257_s9 + $0x3c8] sm:$0xff] %vm9714_vm1, %v9579_v2  ;;  %v9324_v59 = vadd.f32 %v15093_v1, %v9061_v48  ;;  %v5485_v46 = vadd.f32 %v5484_v61, %v16366_v19 }
 0x4e6   : > { %v5486_v34 = vpop.f32.mrf.mxu1  ;;  %v8409_v6 = vpop.f32.mrf.mxu0 }
 0x4e7   : > { %v9580_v26 = vmax.f32 %v9324_v59, 0.0  ;;  %v9062_v57 = vadd.f32 %v8407_v38, %v5485_v46  ;;  %v16371_v38 = vld [vmem:[#allocation5_spill] sm:$0xff]  ;;  %v11293_v59 = vld [vmem:[%s13086_s7 + $0x798] sm:$0xff] }
 0x4e8   : > { %v5489_v33 = vpop.f32.mrf.mxu1  ;;  %5680 = vmatmul.mubr.bf16.gmra.mxu1 %v12720_v11  ;;  %v8412_v49 = vpop.f32.mrf.mxu0  ;;  %8603 = vmatmul.mubr.bf16.gmra.mxu0 %v11560_v47  ;;  %v11292_v47 = vld [vmem:[%s13086_s7 + $0x790] sm:$0xff] }
 0x4e9   : > { %9837 = vst.msk [vmem:[%s14257_s9 + $0x3d0] sm:$0xff] %vm9714_vm1, %v9580_v26  ;;  %v9325_v22 = vadd.f32 %v15093_v1, %v9062_v57  ;;  %v5490_v24 = vadd.f32 %v5489_v33, %v16367_v36  ;;  %11073 = vmatprep.mubr.msk.bf16.mxu1 %vm1927_vm0, %v12721_v35  ;;  %11740 = vmatprep.mubr.msk.bf16.mxu0 %vm1927_vm0, %v12723_v10  ;;  %v12735_v26 = vld [vmem:[%s13086_s7 + $0x590] ss:$8 sps:$4 sm:$0xff]   ;;  %v12736_v36 = vld [vmem:[%s13086_s7 + $0x5a4] ss:$8 sps:$4 sm:$0xff]  }
 0x4ea   : > { %v5491_v50 = vpop.f32.mrf.mxu1  ;;  %v8414_v17 = vpop.f32.mrf.mxu0  ;;  %v11566_v57 = vcombine.low %v11292_v47, %v11293_v59 }
 0x4eb   : > { %v9581_v31 = vmax.f32 %v9325_v22, 0.0  ;;  %v9063_v8 = vadd.f32 %v8412_v49, %v5490_v24  ;;  %v16372_v49 = vld [vmem:[#allocation6_spill] sm:$0xff] }
 0x4ec   : > { %v5492_v0 = vpop.f32.mrf.mxu1  ;;  %v8415_v53 = vpop.f32.mrf.mxu0  ;;  %v12738_v24 = vld [vmem:[%s13086_s7 + $0x7a4] ss:$8 sps:$4 sm:$0xff]  }
 0x4ed   : > { %9838 = vst.msk [vmem:[%s14257_s9 + $0x3d8] sm:$0xff] %vm9714_vm1, %v9581_v31  ;;  %v9326_v29 = vadd.f32 %v15093_v1, %v9063_v8  ;;  %v5493_v4 = vadd.f32 %v5492_v0, %v16368_v12 }
 0x4ee   : > { %v5494_v18 = vpop.f32.mrf.mxu1  ;;  %v8417_v5 = vpop.f32.mrf.mxu0 }
 0x4ef   : > { %v9582_v39 = vmax.f32 %v9326_v29, 0.0  ;;  %v9064_v9 = vadd.f32 %v8415_v53, %v5493_v4  ;;  %v16373_v53 = vld [vmem:[#allocation7_spill] sm:$0xff]  ;;  %v11295_v29 = vld [vmem:[%s13086_s7 + $0x7a8] sm:$0xff] }
 0x4f0   : > { %v5497_v25 = vpop.f32.mrf.mxu1  ;;  %5688 = vmatmul.mubr.bf16.gmra.mxu1 %v12725_v54  ;;  %v8420_v44 = vpop.f32.mrf.mxu0  ;;  %8611 = vmatmul.mubr.bf16.gmra.mxu0 %v11562_v13  ;;  %v11294_v13 = vld [vmem:[%s13086_s7 + $0x7a0] sm:$0xff] }
 0x4f1   : > { %9839 = vst.msk [vmem:[%s14257_s9 + $0x3e0] sm:$0xff] %vm9714_vm1, %v9582_v39  ;;  %v9327_v58 = vadd.f32 %v15093_v1, %v9064_v9  ;;  %v5498_v23 = vadd.f32 %v5497_v25, %v16369_v42  ;;  %11074 = vmatprep.mubr.msk.bf16.mxu1 %vm1927_vm0, %v12726_v15  ;;  %11741 = vmatprep.mubr.msk.bf16.mxu0 %vm1927_vm0, %v12728_v14  ;;  %v12740_v39 = vld [vmem:[%s13086_s7 + $0x5a0] ss:$8 sps:$4 sm:$0xff]   ;;  %v12741_v42 = vld [vmem:[%s13086_s7 + $0x5b4] ss:$8 sps:$4 sm:$0xff]  }
 0x4f2   : > { %v5499_v16 = vpop.f32.mrf.mxu1  ;;  %v8422_v3 = vpop.f32.mrf.mxu0  ;;  %v11568_v9 = vcombine.low %v11294_v13, %v11295_v29 }
 0x4f3   : > { %v9583_v60 = vmax.f32 %v9327_v58, 0.0  ;;  %v9065_v37 = vadd.f32 %v8420_v44, %v5498_v23  ;;  %v16374_v44 = vld [vmem:[#allocation8_spill] sm:$0xff] }
 0x4f4   : > { %v5500_v62 = vpop.f32.mrf.mxu1  ;;  %v8423_v20 = vpop.f32.mrf.mxu0  ;;  %v12743_v23 = vld [vmem:[%s13086_s7 + $0x7b4] ss:$8 sps:$4 sm:$0xff]  }
 0x4f5   : > { %9840 = vst.msk [vmem:[%s14257_s9 + $0x3e8] sm:$0xff] %vm9714_vm1, %v9583_v60  ;;  %v9328_v51 = vadd.f32 %v15093_v1, %v9065_v37  ;;  %v5501_v27 = vadd.f32 %v5500_v62, %v16370_v56 }
 0x4f6   : > { %v5502_v21 = vpop.f32.mrf.mxu1  ;;  %v8425_v55 = vpop.f32.mrf.mxu0 }
 0x4f7   : > { %v9584_v41 = vmax.f32 %v9328_v51, 0.0  ;;  %v9066_v30 = vadd.f32 %v8423_v20, %v5501_v27  ;;  %v16375_v20 = vld [vmem:[#allocation9_spill] sm:$0xff]  ;;  %v11297_v51 = vld [vmem:[%s13086_s7 + $0x7b8] sm:$0xff] }
 0x4f8   : > { %v5505_v2 = vpop.f32.mrf.mxu1  ;;  %5696 = vmatmul.mubr.bf16.gmra.mxu1 %v12730_v7  ;;  %v8428_v48 = vpop.f32.mrf.mxu0  ;;  %8619 = vmatmul.mubr.bf16.gmra.mxu0 %v11564_v52  ;;  %v11296_v52 = vld [vmem:[%s13086_s7 + $0x7b0] sm:$0xff] }
 0x4f9   : > { %9841 = vst.msk [vmem:[%s14257_s9 + $0x3f0] sm:$0xff] %vm9714_vm1, %v9584_v41  ;;  %v9329_v61 = vadd.f32 %v15093_v1, %v9066_v30  ;;  %v5506_v11 = vadd.f32 %v5505_v2, %v16371_v38  ;;  %11075 = vmatprep.mubr.msk.bf16.mxu1 %vm1927_vm0, %v12731_v63  ;;  %11742 = vmatprep.mubr.msk.bf16.mxu0 %vm1927_vm0, %v12733_v43  ;;  %v12745_v41 = vld [vmem:[%s13086_s7 + $0x5b0] ss:$8 sps:$4 sm:$0xff]   ;;  %v12746_v38 = vld [vmem:[%s13086_s7 + $0x5c4] ss:$8 sps:$4 sm:$0xff]  }
 0x4fa   : > { %v5507_v19 = vpop.f32.mrf.mxu1  ;;  %v8430_v46 = vpop.f32.mrf.mxu0  ;;  %v11570_v30 = vcombine.low %v11296_v52, %v11297_v51 }
 0x4fb   : > { %v9585_v35 = vmax.f32 %v9329_v61, 0.0  ;;  %v9067_v10 = vadd.f32 %v8428_v48, %v5506_v11  ;;  %v16376_v48 = vld [vmem:[#allocation10_spill] sm:$0xff] }
 0x4fc   : > { %v5508_v34 = vpop.f32.mrf.mxu1  ;;  %v8431_v6 = vpop.f32.mrf.mxu0  ;;  %v12748_v11 = vld [vmem:[%s13086_s7 + $0x7c4] ss:$8 sps:$4 sm:$0xff]  }
 0x4fd   : > { %9842 = vst.msk [vmem:[%s14257_s9 + $0x3f8] sm:$0xff] %vm9714_vm1, %v9585_v35  ;;  %v9330_v33 = vadd.f32 %v15093_v1, %v9067_v10  ;;  %v5509_v22 = vadd.f32 %v5508_v34, %v16372_v49 }
 0x4fe   : > { %v5510_v32 = vpop.f32.mrf.mxu1  ;;  %v8433_v45 = vpop.f32.mrf.mxu0 }
 0x4ff   : > { %v9586_v50 = vmax.f32 %v9330_v33, 0.0  ;;  %v9068_v17 = vadd.f32 %v8431_v6, %v5509_v22  ;;  %v16377_v6 = vld [vmem:[#allocation11_spill] sm:$0xff]  ;;  %v11299_v33 = vld [vmem:[%s13086_s7 + $0x7c8] sm:$0xff] }
 0x500   : > { %v5513_v31 = vpop.f32.mrf.mxu1  ;;  %5704 = vmatmul.mubr.bf16.gmra.mxu1 %v12735_v26  ;;  %v8436_v8 = vpop.f32.mrf.mxu0  ;;  %8627 = vmatmul.mubr.bf16.gmra.mxu0 %v11566_v57  ;;  %v11298_v57 = vld [vmem:[%s13086_s7 + $0x7c0] sm:$0xff] }
 0x501   : > { %9843 = vst.msk [vmem:[%s14257_s9 + $0x400] sm:$0xff] %vm9714_vm1, %v9586_v50  ;;  %v9331_v0 = vadd.f32 %v15093_v1, %v9068_v17  ;;  %v5514_v54 = vadd.f32 %v5513_v31, %v16373_v53  ;;  %11076 = vmatprep.mubr.msk.bf16.mxu1 %vm1927_vm0, %v12736_v36  ;;  %11743 = vmatprep.mubr.msk.bf16.mxu0 %vm1927_vm0, %v12738_v24  ;;  %v12750_v50 = vld [vmem:[%s13086_s7 + $0x5c0] ss:$8 sps:$4 sm:$0xff]   ;;  %v12751_v53 = vld [vmem:[%s13086_s7 + $0x5d4] ss:$8 sps:$4 sm:$0xff]  }
 0x502   : > { %v5515_v12 = vpop.f32.mrf.mxu1  ;;  %v8438_v4 = vpop.f32.mrf.mxu0  ;;  %v11572_v17 = vcombine.low %v11298_v57, %v11299_v33 }
 0x503   : > { %v9587_v15 = vmax.f32 %v9331_v0, 0.0  ;;  %v9069_v14 = vadd.f32 %v8436_v8, %v5514_v54  ;;  %v16378_v8 = vld [vmem:[#allocation12_spill] sm:$0xff] }
 0x504   : > { %v5516_v18 = vpop.f32.mrf.mxu1  ;;  %v8439_v5 = vpop.f32.mrf.mxu0  ;;  %v12753_v54 = vld [vmem:[%s13086_s7 + $0x7d4] ss:$8 sps:$4 sm:$0xff]  }
 0x505   : > { %9844 = vst.msk [vmem:[%s14257_s9 + $0x408] sm:$0xff] %vm9714_vm1, %v9587_v15  ;;  %v9332_v25 = vadd.f32 %v15093_v1, %v9069_v14  ;;  %v5517_v58 = vadd.f32 %v5516_v18, %v16374_v44 }
 0x506   : > { %v5518_v40 = vpop.f32.mrf.mxu1  ;;  %v8441_v28 = vpop.f32.mrf.mxu0 }
 0x507   : > { %v9588_v16 = vmax.f32 %v9332_v25, 0.0  ;;  %v9070_v3 = vadd.f32 %v8439_v5, %v5517_v58  ;;  %v16379_v5 = vld [vmem:[#allocation13_spill] sm:$0xff]  ;;  %v11301_v25 = vld [vmem:[%s13086_s7 + $0x7d8] sm:$0xff] }
 0x508   : > { %v5521_v60 = vpop.f32.mrf.mxu1  ;;  %5712 = vmatmul.mubr.bf16.gmra.mxu1 %v12740_v39  ;;  %v8444_v37 = vpop.f32.mrf.mxu0  ;;  %8635 = vmatmul.mubr.bf16.gmra.mxu0 %v11568_v9  ;;  %v11300_v9 = vld [vmem:[%s13086_s7 + $0x7d0] sm:$0xff] }
 0x509   : > { %9845 = vst.msk [vmem:[%s14257_s9 + $0x410] sm:$0xff] %vm9714_vm1, %v9588_v16  ;;  %v9333_v62 = vadd.f32 %v15093_v1, %v9070_v3  ;;  %v5522_v7 = vadd.f32 %v5521_v60, %v16375_v20  ;;  %11077 = vmatprep.mubr.msk.bf16.mxu1 %vm1927_vm0, %v12741_v42  ;;  %11744 = vmatprep.mubr.msk.bf16.mxu0 %vm1927_vm0, %v12743_v23  ;;  %v12755_v16 = vld [vmem:[%s13086_s7 + $0x5d0] ss:$8 sps:$4 sm:$0xff]   ;;  %v12756_v20 = vld [vmem:[%s13086_s7 + $0x5e4] ss:$8 sps:$4 sm:$0xff]  }
 0x50a   : > { %v5523_v56 = vpop.f32.mrf.mxu1  ;;  %v8446_v27 = vpop.f32.mrf.mxu0  ;;  %v11574_v3 = vcombine.low %v11300_v9, %v11301_v25 }
 0x50b   : > { %v9589_v63 = vmax.f32 %v9333_v62, 0.0  ;;  %v9071_v43 = vadd.f32 %v8444_v37, %v5522_v7  ;;  %v16380_v37 = vld [vmem:[#allocation14_spill] sm:$0xff] }
 0x50c   : > { %v5524_v21 = vpop.f32.mrf.mxu1  ;;  %v8447_v55 = vpop.f32.mrf.mxu0  ;;  %v12758_v7 = vld [vmem:[%s13086_s7 + $0x7e4] ss:$8 sps:$4 sm:$0xff]  }
 0x50d   : > { %9846 = vst.msk [vmem:[%s14257_s9 + $0x418] sm:$0xff] %vm9714_vm1, %v9589_v63  ;;  %v9334_v2 = vadd.f32 %v15093_v1, %v9071_v43  ;;  %v5525_v61 = vadd.f32 %v5524_v21, %v16376_v48 }
 0x50e   : > { %v5526_v47 = vpop.f32.mrf.mxu1  ;;  %v8449_v59 = vpop.f32.mrf.mxu0 }
 0x50f   : > { %v9590_v19 = vmax.f32 %v9334_v2, 0.0  ;;  %v9072_v46 = vadd.f32 %v8447_v55, %v5525_v61  ;;  %v16381_v55 = vld [vmem:[#allocation15_spill] sm:$0xff]  ;;  %v11303_v2 = vld [vmem:[%s13086_s7 + $0x7e8] sm:$0xff] }
 0x510   : > { %v5529_v35 = vpop.f32.mrf.mxu1  ;;  %5720 = vmatmul.mubr.bf16.gmra.mxu1 %v12745_v41  ;;  %v8452_v10 = vpop.f32.mrf.mxu0  ;;  %8643 = vmatmul.mubr.bf16.gmra.mxu0 %v11570_v30  ;;  %v11302_v30 = vld [vmem:[%s13086_s7 + $0x7e0] sm:$0xff] }
 0x511   : > { %9847 = vst.msk [vmem:[%s14257_s9 + $0x420] sm:$0xff] %vm9714_vm1, %v9590_v19  ;;  %v9335_v34 = vadd.f32 %v15093_v1, %v9072_v46  ;;  %v5530_v26 = vadd.f32 %v5529_v35, %v16377_v6  ;;  %11078 = vmatprep.mubr.msk.bf16.mxu1 %vm1927_vm0, %v12746_v38  ;;  %11745 = vmatprep.mubr.msk.bf16.mxu0 %vm1927_vm0, %v12748_v11  ;;  %v12760_v19 = vld [vmem:[%s13086_s7 + $0x5e0] ss:$8 sps:$4 sm:$0xff]   ;;  %v12761_v6 = vld [vmem:[%s13086_s7 + $0x5f4] ss:$8 sps:$4 sm:$0xff]  }
 0x512   : > { %v5531_v49 = vpop.f32.mrf.mxu1  ;;  %v8454_v22 = vpop.f32.mrf.mxu0  ;;  %v11576_v46 = vcombine.low %v11302_v30, %v11303_v2 }
 0x513   : > { %v9591_v36 = vmax.f32 %v9335_v34, 0.0  ;;  %v9073_v24 = vadd.f32 %v8452_v10, %v5530_v26  ;;  %v16382_v10 = vld [vmem:[#allocation16_spill] sm:$0xff] }
 0x514   : > { %v5532_v32 = vpop.f32.mrf.mxu1  ;;  %v8455_v45 = vpop.f32.mrf.mxu0  ;;  %v12763_v26 = vld [vmem:[%s13086_s7 + $0x7f4] ss:$8 sps:$4 sm:$0xff]  }
 0x515   : > { %9848 = vst.msk [vmem:[%s14257_s9 + $0x428] sm:$0xff] %vm9714_vm1, %v9591_v36  ;;  %v9336_v31 = vadd.f32 %v15093_v1, %v9073_v24  ;;  %v5533_v0 = vadd.f32 %v5532_v32, %v16378_v8 }
 0x516   : > { %v5534_v13 = vpop.f32.mrf.mxu1  ;;  %v8457_v29 = vpop.f32.mrf.mxu0 }
 0x517   : > { %v9592_v12 = vmax.f32 %v9336_v31, 0.0  ;;  %v9074_v4 = vadd.f32 %v8455_v45, %v5533_v0  ;;  %v16383_v45 = vld [vmem:[#allocation17_spill] sm:$0xff]  ;;  %v11305_v31 = vld [vmem:[%s13086_s7 + $0x7f8] sm:$0xff] }
 0x518   : > { %v5537_v15 = vpop.f32.mrf.mxu1  ;;  %5728 = vmatmul.mubr.bf16.gmra.mxu1 %v12750_v50  ;;  %v8460_v14 = vpop.f32.mrf.mxu0  ;;  %8651 = vmatmul.mubr.bf16.gmra.mxu0 %v11572_v17  ;;  %v11304_v17 = vld [vmem:[%s13086_s7 + $0x7f0] sm:$0xff] }
 0x519   : > { %9849 = vst.msk [vmem:[%s14257_s9 + $0x430] sm:$0xff] %vm9714_vm1, %v9592_v12  ;;  %v9337_v18 = vadd.f32 %v15093_v1, %v9074_v4  ;;  %v5538_v39 = vadd.f32 %v5537_v15, %v16379_v5  ;;  %11079 = vmatprep.mubr.msk.bf16.mxu1 %vm1927_vm0, %v12751_v53  ;;  %11746 = vmatprep.mubr.msk.bf16.mxu0 %vm1927_vm0, %v12753_v54  ;;  %v12765_v12 = vld [vmem:[%s13086_s7 + $0x5f0] ss:$8 sps:$4 sm:$0xff]   ;;  %v12766_v5 = vld [vmem:[%s13086_s7 + $0x604] ss:$8 sps:$4 sm:$0xff]  }
 0x51a   : > { %v5539_v44 = vpop.f32.mrf.mxu1  ;;  %v8462_v58 = vpop.f32.mrf.mxu0  ;;  %v11578_v4 = vcombine.low %v11304_v17, %v11305_v31 }
 0x51b   : > { %v9593_v42 = vmax.f32 %v9337_v18, 0.0  ;;  %v9075_v23 = vadd.f32 %v8460_v14, %v5538_v39  ;;  %v16384_v14 = vld [vmem:[#allocation18_spill] sm:$0xff] }
 0x51c   : > { %v5540_v40 = vpop.f32.mrf.mxu1  ;;  %v8463_v28 = vpop.f32.mrf.mxu0  ;;  %v12768_v39 = vld [vmem:[%s13086_s7 + $0x804] ss:$8 sps:$4 sm:$0xff]  }
 0x51d   : > { %9850 = vst.msk [vmem:[%s14257_s9 + $0x438] sm:$0xff] %vm9714_vm1, %v9593_v42  ;;  %v9338_v60 = vadd.f32 %v15093_v1, %v9075_v23  ;;  %v5541_v62 = vadd.f32 %v5540_v40, %v16380_v37 }
 0x51e   : > { %v5542_v52 = vpop.f32.mrf.mxu1  ;;  %v8465_v51 = vpop.f32.mrf.mxu0 }
 0x51f   : > { %v9594_v56 = vmax.f32 %v9338_v60, 0.0  ;;  %v9076_v27 = vadd.f32 %v8463_v28, %v5541_v62  ;;  %v16385_v28 = vld [vmem:[#allocation19_spill] sm:$0xff]  ;;  %v11307_v60 = vld [vmem:[%s13086_s7 + $0x808] sm:$0xff] }
 0x520   : > { %v5545_v63 = vpop.f32.mrf.mxu1  ;;  %5736 = vmatmul.mubr.bf16.gmra.mxu1 %v12755_v16  ;;  %v8468_v43 = vpop.f32.mrf.mxu0  ;;  %8659 = vmatmul.mubr.bf16.gmra.mxu0 %v11574_v3  ;;  %v11306_v3 = vld [vmem:[%s13086_s7 + $0x800] sm:$0xff] }
 0x521   : > { %9851 = vst.msk [vmem:[%s14257_s9 + $0x440] sm:$0xff] %vm9714_vm1, %v9594_v56  ;;  %v9339_v21 = vadd.f32 %v15093_v1, %v9076_v27  ;;  %v5546_v41 = vadd.f32 %v5545_v63, %v16381_v55  ;;  %11080 = vmatprep.mubr.msk.bf16.mxu1 %vm1927_vm0, %v12756_v20  ;;  %11747 = vmatprep.mubr.msk.bf16.mxu0 %vm1927_vm0, %v12758_v7  ;;  %v12770_v56 = vld [vmem:[%s13086_s7 + $0x600] ss:$8 sps:$4 sm:$0xff]   ;;  %v12771_v55 = vld [vmem:[%s13086_s7 + $0x614] ss:$8 sps:$4 sm:$0xff]  }
 0x522   : > { %v5547_v48 = vpop.f32.mrf.mxu1  ;;  %v8470_v61 = vpop.f32.mrf.mxu0  ;;  %v11580_v27 = vcombine.low %v11306_v3, %v11307_v60 }
 0x523   : > { %v9595_v38 = vmax.f32 %v9339_v21, 0.0  ;;  %v9077_v11 = vadd.f32 %v8468_v43, %v5546_v41  ;;  %v16386_v43 = vld [vmem:[#allocation20_spill] sm:$0xff] }
 0x524   : > { %v5548_v47 = vpop.f32.mrf.mxu1  ;;  %v8471_v59 = vpop.f32.mrf.mxu0  ;;  %v12773_v41 = vld [vmem:[%s13086_s7 + $0x814] ss:$8 sps:$4 sm:$0xff]  }
 0x525   : > { %9852 = vst.msk [vmem:[%s14257_s9 + $0x448] sm:$0xff] %vm9714_vm1, %v9595_v38  ;;  %v9340_v35 = vadd.f32 %v15093_v1, %v9077_v11  ;;  %v5549_v34 = vadd.f32 %v5548_v47, %v16382_v10 }
 0x526   : > { %v5550_v57 = vpop.f32.mrf.mxu1  ;;  %v8473_v33 = vpop.f32.mrf.mxu0 }
 0x527   : > { %v9596_v49 = vmax.f32 %v9340_v35, 0.0  ;;  %v9078_v22 = vadd.f32 %v8471_v59, %v5549_v34  ;;  %v16387_v59 = vld [vmem:[#allocation21_spill] sm:$0xff]  ;;  %v11309_v35 = vld [vmem:[%s13086_s7 + $0x818] sm:$0xff] }
 0x528   : > { %v5553_v36 = vpop.f32.mrf.mxu1  ;;  %5744 = vmatmul.mubr.bf16.gmra.mxu1 %v12760_v19  ;;  %v8476_v24 = vpop.f32.mrf.mxu0  ;;  %8667 = vmatmul.mubr.bf16.gmra.mxu0 %v11576_v46  ;;  %v11308_v46 = vld [vmem:[%s13086_s7 + $0x810] sm:$0xff] }
 0x529   : > { %9853 = vst.msk [vmem:[%s14257_s9 + $0x450] sm:$0xff] %vm9714_vm1, %v9596_v49  ;;  %v9341_v32 = vadd.f32 %v15093_v1, %v9078_v22  ;;  %v5554_v50 = vadd.f32 %v5553_v36, %v16383_v45  ;;  %11081 = vmatprep.mubr.msk.bf16.mxu1 %vm1927_vm0, %v12761_v6  ;;  %11748 = vmatprep.mubr.msk.bf16.mxu0 %vm1927_vm0, %v12763_v26  ;;  %v12775_v49 = vld [vmem:[%s13086_s7 + $0x610] ss:$8 sps:$4 sm:$0xff]   ;;  %v12776_v45 = vld [vmem:[%s13086_s7 + $0x624] ss:$8 sps:$4 sm:$0xff]  }
 0x52a   : > { %v5555_v8 = vpop.f32.mrf.mxu1  ;;  %v8478_v0 = vpop.f32.mrf.mxu0  ;;  %v11582_v22 = vcombine.low %v11308_v46, %v11309_v35 }
 0x52b   : > { %v9597_v53 = vmax.f32 %v9341_v32, 0.0  ;;  %v9079_v54 = vadd.f32 %v8476_v24, %v5554_v50  ;;  %v16388_v24 = vld [vmem:[#allocation22_spill] sm:$0xff] }
 0x52c   : > { %v5556_v13 = vpop.f32.mrf.mxu1  ;;  %v8479_v29 = vpop.f32.mrf.mxu0  ;;  %v12778_v50 = vld [vmem:[%s13086_s7 + $0x824] ss:$8 sps:$4 sm:$0xff]  }
 0x52d   : > { %9854 = vst.msk [vmem:[%s14257_s9 + $0x458] sm:$0xff] %vm9714_vm1, %v9597_v53  ;;  %v9342_v15 = vadd.f32 %v15093_v1, %v9079_v54  ;;  %v5557_v18 = vadd.f32 %v5556_v13, %v16384_v14 }
 0x52e   : > { %v5558_v9 = vpop.f32.mrf.mxu1  ;;  %v8481_v25 = vpop.f32.mrf.mxu0 }
 0x52f   : > { %v9598_v44 = vmax.f32 %v9342_v15, 0.0  ;;  %v9080_v58 = vadd.f32 %v8479_v29, %v5557_v18  ;;  %v16389_v29 = vld [vmem:[#allocation23_spill] sm:$0xff]  ;;  %v11311_v15 = vld [vmem:[%s13086_s7 + $0x828] sm:$0xff] }
 0x530   : > { %v5561_v42 = vpop.f32.mrf.mxu1  ;;  %5752 = vmatmul.mubr.bf16.gmra.mxu1 %v12765_v12  ;;  %v8484_v23 = vpop.f32.mrf.mxu0  ;;  %8675 = vmatmul.mubr.bf16.gmra.mxu0 %v11578_v4  ;;  %v11310_v4 = vld [vmem:[%s13086_s7 + $0x820] sm:$0xff] }
 0x531   : > { %9855 = vst.msk [vmem:[%s14257_s9 + $0x460] sm:$0xff] %vm9714_vm1, %v9598_v44  ;;  %v9343_v40 = vadd.f32 %v15093_v1, %v9080_v58  ;;  %v5562_v16 = vadd.f32 %v5561_v42, %v16385_v28  ;;  %11082 = vmatprep.mubr.msk.bf16.mxu1 %vm1927_vm0, %v12766_v5  ;;  %11749 = vmatprep.mubr.msk.bf16.mxu0 %vm1927_vm0, %v12768_v39  ;;  %v12780_v44 = vld [vmem:[%s13086_s7 + $0x620] ss:$8 sps:$4 sm:$0xff]   ;;  %v12781_v28 = vld [vmem:[%s13086_s7 + $0x634] ss:$8 sps:$4 sm:$0xff]  }
 0x532   : > { %v5563_v37 = vpop.f32.mrf.mxu1  ;;  %v8486_v62 = vpop.f32.mrf.mxu0  ;;  %v11584_v58 = vcombine.low %v11310_v4, %v11311_v15 }
 0x533   : > { %v9599_v20 = vmax.f32 %v9343_v40, 0.0  ;;  %v9081_v7 = vadd.f32 %v8484_v23, %v5562_v16  ;;  %v16390_v23 = vld [vmem:[#allocation24_spill] sm:$0xff] }
 0x534   : > { %v5564_v52 = vpop.f32.mrf.mxu1  ;;  %v8487_v51 = vpop.f32.mrf.mxu0  ;;  %v12783_v16 = vld [vmem:[%s13086_s7 + $0x834] ss:$8 sps:$4 sm:$0xff]  }
 0x535   : > { %9856 = vst.msk [vmem:[%s14257_s9 + $0x468] sm:$0xff] %vm9714_vm1, %v9599_v20  ;;  %v9344_v63 = vadd.f32 %v15093_v1, %v9081_v7  ;;  %v5565_v21 = vadd.f32 %v5564_v52, %v16386_v43 }
 0x536   : > { %v5566_v30 = vpop.f32.mrf.mxu1  ;;  %v8489_v2 = vpop.f32.mrf.mxu0 }
 0x537   : > { %v9600_v48 = vmax.f32 %v9344_v63, 0.0  ;;  %v9082_v61 = vadd.f32 %v8487_v51, %v5565_v21  ;;  %v16391_v51 = vld [vmem:[#allocation25_spill] sm:$0xff]  ;;  %v11313_v63 = vld [vmem:[%s13086_s7 + $0x838] sm:$0xff] }
 0x538   : > { %v5569_v38 = vpop.f32.mrf.mxu1  ;;  %5760 = vmatmul.mubr.bf16.gmra.mxu1 %v12770_v56  ;;  %v8492_v11 = vpop.f32.mrf.mxu0  ;;  %8683 = vmatmul.mubr.bf16.gmra.mxu0 %v11580_v27  ;;  %v11312_v27 = vld [vmem:[%s13086_s7 + $0x830] sm:$0xff] }
 0x539   : > { %9857 = vst.msk [vmem:[%s14257_s9 + $0x470] sm:$0xff] %vm9714_vm1, %v9600_v48  ;;  %v9345_v47 = vadd.f32 %v15093_v1, %v9082_v61  ;;  %v5570_v19 = vadd.f32 %v5569_v38, %v16387_v59  ;;  %11083 = vmatprep.mubr.msk.bf16.mxu1 %vm1927_vm0, %v12771_v55  ;;  %11750 = vmatprep.mubr.msk.bf16.mxu0 %vm1927_vm0, %v12773_v41  ;;  %v12785_v48 = vld [vmem:[%s13086_s7 + $0x630] ss:$8 sps:$4 sm:$0xff]   ;;  %v12786_v59 = vld [vmem:[%s13086_s7 + $0x644] ss:$8 sps:$4 sm:$0xff]  }
 0x53a   : > { %v5571_v10 = vpop.f32.mrf.mxu1  ;;  %v8494_v34 = vpop.f32.mrf.mxu0  ;;  %v11586_v61 = vcombine.low %v11312_v27, %v11313_v63 }
 0x53b   : > { %v9601_v6 = vmax.f32 %v9345_v47, 0.0  ;;  %v9083_v26 = vadd.f32 %v8492_v11, %v5570_v19  ;;  %v16392_v11 = vld [vmem:[#allocation26_spill] sm:$0xff] }
 0x53c   : > { %v5572_v57 = vpop.f32.mrf.mxu1  ;;  %v8495_v33 = vpop.f32.mrf.mxu0  ;;  %v12788_v19 = vld [vmem:[%s13086_s7 + $0x844] ss:$8 sps:$4 sm:$0xff]  }
 0x53d   : > { %9858 = vst.msk [vmem:[%s14257_s9 + $0x478] sm:$0xff] %vm9714_vm1, %v9601_v6  ;;  %v9346_v36 = vadd.f32 %v15093_v1, %v9083_v26  ;;  %v5573_v32 = vadd.f32 %v5572_v57, %v16388_v24 }
 0x53e   : > { %v5574_v17 = vpop.f32.mrf.mxu1  ;;  %v8497_v31 = vpop.f32.mrf.mxu0 }
 0x53f   : > { %v9602_v8 = vmax.f32 %v9346_v36, 0.0  ;;  %v9084_v0 = vadd.f32 %v8495_v33, %v5573_v32  ;;  %v16393_v33 = vld [vmem:[#allocation27_spill] sm:$0xff]  ;;  %v11315_v36 = vld [vmem:[%s13086_s7 + $0x848] sm:$0xff] }
 0x540   : > { %v5577_v53 = vpop.f32.mrf.mxu1  ;;  %5768 = vmatmul.mubr.bf16.gmra.mxu1 %v12775_v49  ;;  %v8500_v54 = vpop.f32.mrf.mxu0  ;;  %8691 = vmatmul.mubr.bf16.gmra.mxu0 %v11582_v22  ;;  %v11314_v22 = vld [vmem:[%s13086_s7 + $0x840] sm:$0xff] }
 0x541   : > { %9859 = vst.msk [vmem:[%s14257_s9 + $0x480] sm:$0xff] %vm9714_vm1, %v9602_v8  ;;  %v9347_v13 = vadd.f32 %v15093_v1, %v9084_v0  ;;  %v5578_v12 = vadd.f32 %v5577_v53, %v16389_v29  ;;  %11084 = vmatprep.mubr.msk.bf16.mxu1 %vm1927_vm0, %v12776_v45  ;;  %11751 = vmatprep.mubr.msk.bf16.mxu0 %vm1927_vm0, %v12778_v50  ;;  %v12790_v8 = vld [vmem:[%s13086_s7 + $0x640] ss:$8 sps:$4 sm:$0xff]   ;;  %v12791_v29 = vld [vmem:[%s13086_s7 + $0x654] ss:$8 sps:$4 sm:$0xff]  }
 0x542   : > { %v5579_v14 = vpop.f32.mrf.mxu1  ;;  %v8502_v18 = vpop.f32.mrf.mxu0  ;;  %v11588_v0 = vcombine.low %v11314_v22, %v11315_v36 }
 0x543   : > { %v9603_v5 = vmax.f32 %v9347_v13, 0.0  ;;  %v9085_v39 = vadd.f32 %v8500_v54, %v5578_v12  ;;  %v16394_v54 = vld [vmem:[#allocation28_spill] sm:$0xff] }
 0x544   : > { %v5580_v9 = vpop.f32.mrf.mxu1  ;;  %v8503_v25 = vpop.f32.mrf.mxu0  ;;  %v12793_v12 = vld [vmem:[%s13086_s7 + $0x854] ss:$8 sps:$4 sm:$0xff]  }
 0x545   : > { %9860 = vst.msk [vmem:[%s14257_s9 + $0x488] sm:$0xff] %vm9714_vm1, %v9603_v5  ;;  %v9348_v42 = vadd.f32 %v15093_v1, %v9085_v39  ;;  %v5581_v40 = vadd.f32 %v5580_v9, %v16390_v23  ;;  %v15374_v1 = vld [vmem:[%s16075_s2] ss:$0 sm:$0xff] }
 0x546   : > { %v5582_v3 = vpop.f32.mrf.mxu1  ;;  %v8505_v60 = vpop.f32.mrf.mxu0 }
 0x547   : > { %v9604_v37 = vmax.f32 %v9348_v42, 0.0  ;;  %v9086_v62 = vadd.f32 %v8503_v25, %v5581_v40  ;;  %v16395_v25 = vld [vmem:[#allocation29_spill] sm:$0xff]  ;;  %v11317_v42 = vld [vmem:[%s13086_s7 + $0x858] sm:$0xff] }
 0x548   : > { %v5585_v20 = vpop.f32.mrf.mxu1  ;;  %5776 = vmatmul.mubr.bf16.gmra.mxu1 %v12780_v44  ;;  %v8508_v7 = vpop.f32.mrf.mxu0  ;;  %8699 = vmatmul.mubr.bf16.gmra.mxu0 %v11584_v58  ;;  %v11316_v58 = vld [vmem:[%s13086_s7 + $0x850] sm:$0xff] }
 0x549   : > { %9861 = vst.msk [vmem:[%s14257_s9 + $0x490] sm:$0xff] %vm9714_vm1, %v9604_v37  ;;  %v9349_v52 = vadd.f32 %v15374_v1, %v9086_v62  ;;  %v5586_v56 = vadd.f32 %v5585_v20, %v16391_v51  ;;  %11085 = vmatprep.mubr.msk.bf16.mxu1 %vm1927_vm0, %v12781_v28  ;;  %11752 = vmatprep.mubr.msk.bf16.mxu0 %vm1927_vm0, %v12783_v16  ;;  %v12795_v37 = vld [vmem:[%s13086_s7 + $0x650] ss:$8 sps:$4 sm:$0xff]   ;;  %v12796_v51 = vld [vmem:[%s13086_s7 + $0x664] ss:$8 sps:$4 sm:$0xff]  }
 0x54a   : > { %v5587_v43 = vpop.f32.mrf.mxu1  ;;  %v8510_v21 = vpop.f32.mrf.mxu0  ;;  %v11590_v62 = vcombine.low %v11316_v58, %v11317_v42 }
 0x54b   : > { %v9605_v55 = vmax.f32 %v9349_v52, 0.0  ;;  %v9087_v41 = vadd.f32 %v8508_v7, %v5586_v56  ;;  %v16396_v7 = vld [vmem:[#allocation30_spill] sm:$0xff] }
 0x54c   : > { %v5588_v30 = vpop.f32.mrf.mxu1  ;;  %v8511_v2 = vpop.f32.mrf.mxu0  ;;  %v12798_v56 = vld [vmem:[%s13086_s7 + $0x864] ss:$8 sps:$4 sm:$0xff]  }
 0x54d   : > { %9862 = vst.msk [vmem:[%s14257_s9 + $0x498] sm:$0xff] %vm9714_vm1, %v9605_v55  ;;  %v9350_v38 = vadd.f32 %v15374_v1, %v9087_v41  ;;  %v5589_v47 = vadd.f32 %v5588_v30, %v16392_v11 }
 0x54e   : > { %v5590_v46 = vpop.f32.mrf.mxu1  ;;  %v8513_v35 = vpop.f32.mrf.mxu0 }
 0x54f   : > { %v9606_v10 = vmax.f32 %v9350_v38, 0.0  ;;  %v9088_v34 = vadd.f32 %v8511_v2, %v5589_v47  ;;  %v16397_v2 = vld [vmem:[#allocation31_spill] sm:$0xff]  ;;  %v11319_v38 = vld [vmem:[%s13086_s7 + $0x868] sm:$0xff] }
 0x550   : > { %v5593_v6 = vpop.f32.mrf.mxu1  ;;  %5784 = vmatmul.mubr.bf16.gmra.mxu1 %v12785_v48  ;;  %v8516_v26 = vpop.f32.mrf.mxu0  ;;  %8707 = vmatmul.mubr.bf16.gmra.mxu0 %v11586_v61  ;;  %v11318_v61 = vld [vmem:[%s13086_s7 + $0x860] sm:$0xff] }
 0x551   : > { %9863 = vst.msk [vmem:[%s14257_s9 + $0x4a0] sm:$0xff] %vm9714_vm1, %v9606_v10  ;;  %v9351_v57 = vadd.f32 %v15374_v1, %v9088_v34  ;;  %v5594_v49 = vadd.f32 %v5593_v6, %v16393_v33  ;;  %11086 = vmatprep.mubr.msk.bf16.mxu1 %vm1927_vm0, %v12786_v59  ;;  %11753 = vmatprep.mubr.msk.bf16.mxu0 %vm1927_vm0, %v12788_v19  ;;  %v12800_v10 = vld [vmem:[%s13086_s7 + $0x660] ss:$8 sps:$4 sm:$0xff]   ;;  %v12801_v33 = vld [vmem:[%s13086_s7 + $0x674] ss:$8 sps:$4 sm:$0xff]  }
 0x552   : > { %v5595_v24 = vpop.f32.mrf.mxu1  ;;  %v8518_v32 = vpop.f32.mrf.mxu0  ;;  %v11592_v34 = vcombine.low %v11318_v61, %v11319_v38 }
 0x553   : > { %v9607_v45 = vmax.f32 %v9351_v57, 0.0  ;;  %v9089_v50 = vadd.f32 %v8516_v26, %v5594_v49  ;;  %v16398_v26 = vld [vmem:[#allocation32_spill] sm:$0xff] }
 0x554   : > { %v5596_v17 = vpop.f32.mrf.mxu1  ;;  %v8519_v31 = vpop.f32.mrf.mxu0  ;;  %v12803_v49 = vld [vmem:[%s13086_s7 + $0x874] ss:$8 sps:$4 sm:$0xff]  }
 0x555   : > { %9864 = vst.msk [vmem:[%s14257_s9 + $0x4a8] sm:$0xff] %vm9714_vm1, %v9607_v45  ;;  %v9352_v53 = vadd.f32 %v15374_v1, %v9089_v50  ;;  %v5597_v13 = vadd.f32 %v5596_v17, %v16394_v54 }
 0x556   : > { %v5598_v4 = vpop.f32.mrf.mxu1  ;;  %v8521_v15 = vpop.f32.mrf.mxu0 }
 0x557   : > { %v9608_v14 = vmax.f32 %v9352_v53, 0.0  ;;  %v9090_v18 = vadd.f32 %v8519_v31, %v5597_v13  ;;  %v16399_v31 = vld [vmem:[#allocation33_spill] sm:$0xff]  ;;  %v11321_v53 = vld [vmem:[%s13086_s7 + $0x878] sm:$0xff] }
 0x558   : > { %v5601_v5 = vpop.f32.mrf.mxu1  ;;  %5792 = vmatmul.mubr.bf16.gmra.mxu1 %v12790_v8  ;;  %v8524_v39 = vpop.f32.mrf.mxu0  ;;  %8715 = vmatmul.mubr.bf16.gmra.mxu0 %v11588_v0  ;;  %v11320_v0 = vld [vmem:[%s13086_s7 + $0x870] sm:$0xff] }
 0x559   : > { %9865 = vst.msk [vmem:[%s14257_s9 + $0x4b0] sm:$0xff] %vm9714_vm1, %v9608_v14  ;;  %v9353_v9 = vadd.f32 %v15374_v1, %v9090_v18  ;;  %v5602_v44 = vadd.f32 %v5601_v5, %v16395_v25  ;;  %11087 = vmatprep.mubr.msk.bf16.mxu1 %vm1927_vm0, %v12791_v29  ;;  %11754 = vmatprep.mubr.msk.bf16.mxu0 %vm1927_vm0, %v12793_v12  ;;  %v12805_v14 = vld [vmem:[%s13086_s7 + $0x670] ss:$8 sps:$4 sm:$0xff]   ;;  %v12806_v25 = vld [vmem:[%s13086_s7 + $0x684] ss:$8 sps:$4 sm:$0xff]  }
 0x55a   : > { %v5603_v23 = vpop.f32.mrf.mxu1  ;;  %v8526_v40 = vpop.f32.mrf.mxu0  ;;  %v11594_v18 = vcombine.low %v11320_v0, %v11321_v53 }
 0x55b   : > { %v9609_v28 = vmax.f32 %v9353_v9, 0.0  ;;  %v9091_v16 = vadd.f32 %v8524_v39, %v5602_v44  ;;  %v16400_v39 = vld [vmem:[#allocation34_spill] sm:$0xff] }
 0x55c   : > { %v5604_v3 = vpop.f32.mrf.mxu1  ;;  %v8527_v60 = vpop.f32.mrf.mxu0  ;;  %v12808_v44 = vld [vmem:[%s13086_s7 + $0x884] ss:$8 sps:$4 sm:$0xff]  }
 0x55d   : > { %9866 = vst.msk [vmem:[%s14257_s9 + $0x4b8] sm:$0xff] %vm9714_vm1, %v9609_v28  ;;  %v9354_v20 = vadd.f32 %v15374_v1, %v9091_v16  ;;  %v5605_v52 = vadd.f32 %v5604_v3, %v16396_v7 }
 0x55e   : > { %v5606_v27 = vpop.f32.mrf.mxu1  ;;  %v8529_v63 = vpop.f32.mrf.mxu0 }
 0x55f   : > { %v9610_v43 = vmax.f32 %v9354_v20, 0.0  ;;  %v9092_v21 = vadd.f32 %v8527_v60, %v5605_v52  ;;  %v16401_v60 = vld [vmem:[#allocation35_spill] sm:$0xff]  ;;  %v11323_v20 = vld [vmem:[%s13086_s7 + $0x888] sm:$0xff] }
 0x560   : > { %v5609_v55 = vpop.f32.mrf.mxu1  ;;  %5800 = vmatmul.mubr.bf16.gmra.mxu1 %v12795_v37  ;;  %v8532_v41 = vpop.f32.mrf.mxu0  ;;  %8723 = vmatmul.mubr.bf16.gmra.mxu0 %v11590_v62  ;;  %v11322_v62 = vld [vmem:[%s13086_s7 + $0x880] sm:$0xff] }
 0x561   : > { %9867 = vst.msk [vmem:[%s14257_s9 + $0x4c0] sm:$0xff] %vm9714_vm1, %v9610_v43  ;;  %v9355_v30 = vadd.f32 %v15374_v1, %v9092_v21  ;;  %v5610_v48 = vadd.f32 %v5609_v55, %v16397_v2  ;;  %11088 = vmatprep.mubr.msk.bf16.mxu1 %vm1927_vm0, %v12796_v51  ;;  %11755 = vmatprep.mubr.msk.bf16.mxu0 %vm1927_vm0, %v12798_v56  ;;  %v12810_v43 = vld [vmem:[%s13086_s7 + $0x680] ss:$8 sps:$4 sm:$0xff]   ;;  %v12811_v2 = vld [vmem:[%s13086_s7 + $0x694] ss:$8 sps:$4 sm:$0xff]  }
 0x562   : > { %v5611_v11 = vpop.f32.mrf.mxu1  ;;  %v8534_v47 = vpop.f32.mrf.mxu0  ;;  %v11596_v21 = vcombine.low %v11322_v62, %v11323_v20 }
 0x563   : > { %v9611_v59 = vmax.f32 %v9355_v30, 0.0  ;;  %v9093_v19 = vadd.f32 %v8532_v41, %v5610_v48  ;;  %v16402_v41 = vld [vmem:[#allocation36_spill] sm:$0xff] }
 0x564   : > { %v5612_v46 = vpop.f32.mrf.mxu1  ;;  %v8535_v35 = vpop.f32.mrf.mxu0  ;;  %v12813_v48 = vld [vmem:[%s13086_s7 + $0x894] ss:$8 sps:$4 sm:$0xff]  }
 0x565   : > { %9868 = vst.msk [vmem:[%s14257_s9 + $0x4c8] sm:$0xff] %vm9714_vm1, %v9611_v59  ;;  %v9356_v6 = vadd.f32 %v15374_v1, %v9093_v19  ;;  %v5613_v57 = vadd.f32 %v5612_v46, %v16398_v26 }
 0x566   : > { %v5614_v22 = vpop.f32.mrf.mxu1  ;;  %v8537_v36 = vpop.f32.mrf.mxu0 }
 0x567   : > { %v9612_v24 = vmax.f32 %v9356_v6, 0.0  ;;  %v9094_v32 = vadd.f32 %v8535_v35, %v5613_v57  ;;  %v16403_v35 = vld [vmem:[#allocation37_spill] sm:$0xff]  ;;  %v11325_v6 = vld [vmem:[%s13086_s7 + $0x898] sm:$0xff] }
 0x568   : > { %v5617_v45 = vpop.f32.mrf.mxu1  ;;  %5808 = vmatmul.mubr.bf16.gmra.mxu1 %v12800_v10  ;;  %v8540_v50 = vpop.f32.mrf.mxu0  ;;  %8731 = vmatmul.mubr.bf16.gmra.mxu0 %v11592_v34  ;;  %v11324_v34 = vld [vmem:[%s13086_s7 + $0x890] sm:$0xff] }
 0x569   : > { %9869 = vst.msk [vmem:[%s14257_s9 + $0x4d0] sm:$0xff] %vm9714_vm1, %v9612_v24  ;;  %v9357_v17 = vadd.f32 %v15374_v1, %v9094_v32  ;;  %v5618_v8 = vadd.f32 %v5617_v45, %v16399_v31  ;;  %11089 = vmatprep.mubr.msk.bf16.mxu1 %vm1927_vm0, %v12801_v33  ;;  %11756 = vmatprep.mubr.msk.bf16.mxu0 %vm1927_vm0, %v12803_v49  ;;  %v12815_v24 = vld [vmem:[%s13086_s7 + $0x690] ss:$8 sps:$4 sm:$0xff]   ;;  %v12816_v31 = vld [vmem:[%s13086_s7 + $0x6a4] ss:$8 sps:$4 sm:$0xff]  }
 0x56a   : > { %v5619_v54 = vpop.f32.mrf.mxu1  ;;  %v8542_v13 = vpop.f32.mrf.mxu0  ;;  %v11598_v32 = vcombine.low %v11324_v34, %v11325_v6 }
 0x56b   : > { %v9613_v29 = vmax.f32 %v9357_v17, 0.0  ;;  %v9095_v12 = vadd.f32 %v8540_v50, %v5618_v8  ;;  %v16404_v50 = vld [vmem:[#allocation38_spill] sm:$0xff] }
 0x56c   : > { %v5620_v4 = vpop.f32.mrf.mxu1  ;;  %v8543_v15 = vpop.f32.mrf.mxu0  ;;  %v12818_v8 = vld [vmem:[%s13086_s7 + $0x8a4] ss:$8 sps:$4 sm:$0xff]  }
 0x56d   : > { %9870 = vst.msk [vmem:[%s14257_s9 + $0x4d8] sm:$0xff] %vm9714_vm1, %v9613_v29  ;;  %v9358_v5 = vadd.f32 %v15374_v1, %v9095_v12  ;;  %v5621_v9 = vadd.f32 %v5620_v4, %v16400_v39 }
 0x56e   : > { %v5622_v58 = vpop.f32.mrf.mxu1  ;;  %v8545_v42 = vpop.f32.mrf.mxu0 }
 0x56f   : > { %v9614_v23 = vmax.f32 %v9358_v5, 0.0  ;;  %v9096_v40 = vadd.f32 %v8543_v15, %v5621_v9  ;;  %v16405_v15 = vld [vmem:[#allocation39_spill] sm:$0xff]  ;;  %v11327_v5 = vld [vmem:[%s13086_s7 + $0x8a8] sm:$0xff] }
 0x570   : > { %v5625_v28 = vpop.f32.mrf.mxu1  ;;  %5816 = vmatmul.mubr.bf16.gmra.mxu1 %v12805_v14  ;;  %v8548_v16 = vpop.f32.mrf.mxu0  ;;  %8739 = vmatmul.mubr.bf16.gmra.mxu0 %v11594_v18  ;;  %v11326_v18 = vld [vmem:[%s13086_s7 + $0x8a0] sm:$0xff] }
 0x571   : > { %9871 = vst.msk [vmem:[%s14257_s9 + $0x4e0] sm:$0xff] %vm9714_vm1, %v9614_v23  ;;  %v9359_v3 = vadd.f32 %v15374_v1, %v9096_v40  ;;  %v5626_v37 = vadd.f32 %v5625_v28, %v16401_v60  ;;  %11090 = vmatprep.mubr.msk.bf16.mxu1 %vm1927_vm0, %v12806_v25  ;;  %11757 = vmatprep.mubr.msk.bf16.mxu0 %vm1927_vm0, %v12808_v44  ;;  %v12820_v23 = vld [vmem:[%s13086_s7 + $0x6a0] ss:$8 sps:$4 sm:$0xff]   ;;  %v12821_v60 = vld [vmem:[%s13086_s7 + $0x6b4] ss:$8 sps:$4 sm:$0xff]  }
 0x572   : > { %v5627_v7 = vpop.f32.mrf.mxu1  ;;  %v8550_v52 = vpop.f32.mrf.mxu0  ;;  %v11600_v40 = vcombine.low %v11326_v18, %v11327_v5 }
 0x573   : > { %v9615_v51 = vmax.f32 %v9359_v3, 0.0  ;;  %v9097_v56 = vadd.f32 %v8548_v16, %v5626_v37  ;;  %v16406_v16 = vld [vmem:[#allocation40_spill] sm:$0xff] }
 0x574   : > { %v5628_v27 = vpop.f32.mrf.mxu1  ;;  %v8551_v63 = vpop.f32.mrf.mxu0  ;;  %v12823_v37 = vld [vmem:[%s13086_s7 + $0x8b4] ss:$8 sps:$4 sm:$0xff]  }
 0x575   : > { %9872 = vst.msk [vmem:[%s14257_s9 + $0x4e8] sm:$0xff] %vm9714_vm1, %v9615_v51  ;;  %v9360_v55 = vadd.f32 %v15374_v1, %v9097_v56  ;;  %v5629_v30 = vadd.f32 %v5628_v27, %v16402_v41 }
 0x576   : > { %v5630_v61 = vpop.f32.mrf.mxu1  ;;  %v8553_v38 = vpop.f32.mrf.mxu0 }
 0x577   : > { %v9616_v11 = vmax.f32 %v9360_v55, 0.0  ;;  %v9098_v47 = vadd.f32 %v8551_v63, %v5629_v30  ;;  %v16407_v63 = vld [vmem:[#allocation41_spill] sm:$0xff]  ;;  %v11329_v55 = vld [vmem:[%s13086_s7 + $0x8b8] sm:$0xff] }
 0x578   : > { %v5633_v59 = vpop.f32.mrf.mxu1  ;;  %5824 = vmatmul.mubr.bf16.gmra.mxu1 %v12810_v43  ;;  %v8556_v19 = vpop.f32.mrf.mxu0  ;;  %8747 = vmatmul.mubr.bf16.gmra.mxu0 %v11596_v21  ;;  %v11328_v21 = vld [vmem:[%s13086_s7 + $0x8b0] sm:$0xff] }
 0x579   : > { %9873 = vst.msk [vmem:[%s14257_s9 + $0x4f0] sm:$0xff] %vm9714_vm1, %v9616_v11  ;;  %v9361_v46 = vadd.f32 %v15374_v1, %v9098_v47  ;;  %v5634_v10 = vadd.f32 %v5633_v59, %v16403_v35  ;;  %11091 = vmatprep.mubr.msk.bf16.mxu1 %vm1927_vm0, %v12811_v2  ;;  %11758 = vmatprep.mubr.msk.bf16.mxu0 %vm1927_vm0, %v12813_v48  ;;  %v12825_v11 = vld [vmem:[%s13086_s7 + $0x6b0] ss:$8 sps:$4 sm:$0xff]   ;;  %v12826_v35 = vld [vmem:[%s13086_s7 + $0x6c4] ss:$8 sps:$4 sm:$0xff]  }
 0x57a   : > { %v5635_v26 = vpop.f32.mrf.mxu1  ;;  %v8558_v57 = vpop.f32.mrf.mxu0  ;;  %v11602_v47 = vcombine.low %v11328_v21, %v11329_v55 }
 0x57b   : > { %v9617_v33 = vmax.f32 %v9361_v46, 0.0  ;;  %v9099_v49 = vadd.f32 %v8556_v19, %v5634_v10  ;;  %v16408_v19 = vld [vmem:[#allocation42_spill] sm:$0xff] }
 0x57c   : > { %v5636_v22 = vpop.f32.mrf.mxu1  ;;  %v8559_v36 = vpop.f32.mrf.mxu0  ;;  %v12828_v10 = vld [vmem:[%s13086_s7 + $0x8c4] ss:$8 sps:$4 sm:$0xff]  }
 0x57d   : > { %9874 = vst.msk [vmem:[%s14257_s9 + $0x4f8] sm:$0xff] %vm9714_vm1, %v9617_v33  ;;  %v9362_v45 = vadd.f32 %v15374_v1, %v9099_v49  ;;  %v5637_v17 = vadd.f32 %v5636_v22, %v16404_v50 }
 0x57e   : > { %v5638_v0 = vpop.f32.mrf.mxu1  ;;  %v8561_v53 = vpop.f32.mrf.mxu0 }
 0x57f   : > { %v9618_v54 = vmax.f32 %v9362_v45, 0.0  ;;  %v9100_v13 = vadd.f32 %v8559_v36, %v5637_v17  ;;  %v16409_v36 = vld [vmem:[#allocation43_spill] sm:$0xff]  ;;  %v11331_v45 = vld [vmem:[%s13086_s7 + $0x8c8] sm:$0xff] }
 0x580   : > { %v5641_v29 = vpop.f32.mrf.mxu1  ;;  %5832 = vmatmul.mubr.bf16.gmra.mxu1 %v12815_v24  ;;  %v8564_v12 = vpop.f32.mrf.mxu0  ;;  %8755 = vmatmul.mubr.bf16.gmra.mxu0 %v11598_v32  ;;  %v11330_v32 = vld [vmem:[%s13086_s7 + $0x8c0] sm:$0xff] }
 0x581   : > { %9875 = vst.msk [vmem:[%s14257_s9 + $0x500] sm:$0xff] %vm9714_vm1, %v9618_v54  ;;  %v9363_v4 = vadd.f32 %v15374_v1, %v9100_v13  ;;  %v5642_v14 = vadd.f32 %v5641_v29, %v16405_v15  ;;  %11092 = vmatprep.mubr.msk.bf16.mxu1 %vm1927_vm0, %v12816_v31  ;;  %11759 = vmatprep.mubr.msk.bf16.mxu0 %vm1927_vm0, %v12818_v8  ;;  %v12830_v54 = vld [vmem:[%s13086_s7 + $0x6c0] ss:$8 sps:$4 sm:$0xff]   ;;  %v12831_v15 = vld [vmem:[%s13086_s7 + $0x6d4] ss:$8 sps:$4 sm:$0xff]  }
 0x582   : > { %v5643_v39 = vpop.f32.mrf.mxu1  ;;  %v8566_v9 = vpop.f32.mrf.mxu0  ;;  %v11604_v13 = vcombine.low %v11330_v32, %v11331_v45 }
 0x583   : > { %v9619_v25 = vmax.f32 %v9363_v4, 0.0  ;;  %v9101_v44 = vadd.f32 %v8564_v12, %v5642_v14  ;;  %v16410_v12 = vld [vmem:[#allocation44_spill] sm:$0xff] }
 0x584   : > { %v5644_v58 = vpop.f32.mrf.mxu1  ;;  %v8567_v42 = vpop.f32.mrf.mxu0  ;;  %v12833_v14 = vld [vmem:[%s13086_s7 + $0x8d4] ss:$8 sps:$4 sm:$0xff]  }
 0x585   : > { %9876 = vst.msk [vmem:[%s14257_s9 + $0x508] sm:$0xff] %vm9714_vm1, %v9619_v25  ;;  %v9364_v28 = vadd.f32 %v15374_v1, %v9101_v44  ;;  %v5645_v3 = vadd.f32 %v5644_v58, %v16406_v16 }
 0x586   : > { %v5646_v62 = vpop.f32.mrf.mxu1  ;;  %v8569_v20 = vpop.f32.mrf.mxu0 }
 0x587   : > { %v9620_v7 = vmax.f32 %v9364_v28, 0.0  ;;  %v9102_v52 = vadd.f32 %v8567_v42, %v5645_v3  ;;  %v16411_v42 = vld [vmem:[#allocation45_spill] sm:$0xff]  ;;  %v11333_v28 = vld [vmem:[%s13086_s7 + $0x8d8] sm:$0xff] }
 0x588   : > { %v5649_v51 = vpop.f32.mrf.mxu1  ;;  %5840 = vmatmul.mubr.bf16.gmra.mxu1 %v12820_v23  ;;  %v8572_v56 = vpop.f32.mrf.mxu0  ;;  %8763 = vmatmul.mubr.bf16.gmra.mxu0 %v11600_v40  ;;  %v11332_v40 = vld [vmem:[%s13086_s7 + $0x8d0] sm:$0xff] }
 0x589   : > { %9877 = vst.msk [vmem:[%s14257_s9 + $0x510] sm:$0xff] %vm9714_vm1, %v9620_v7  ;;  %v9365_v27 = vadd.f32 %v15374_v1, %v9102_v52  ;;  %v5650_v43 = vadd.f32 %v5649_v51, %v16407_v63  ;;  %11093 = vmatprep.mubr.msk.bf16.mxu1 %vm1927_vm0, %v12821_v60  ;;  %11760 = vmatprep.mubr.msk.bf16.mxu0 %vm1927_vm0, %v12823_v37  ;;  %v12835_v7 = vld [vmem:[%s13086_s7 + $0x6d0] ss:$8 sps:$4 sm:$0xff]   ;;  %v12836_v63 = vld [vmem:[%s13086_s7 + $0x6e4] ss:$8 sps:$4 sm:$0xff]  }
 0x58a   : > { %v5651_v41 = vpop.f32.mrf.mxu1  ;;  %v8574_v30 = vpop.f32.mrf.mxu0  ;;  %v11606_v52 = vcombine.low %v11332_v40, %v11333_v28 }
 0x58b   : > { %v9621_v2 = vmax.f32 %v9365_v27, 0.0  ;;  %v9103_v48 = vadd.f32 %v8572_v56, %v5650_v43  ;;  %v16412_v56 = vld [vmem:[#allocation46_spill] sm:$0xff] }
 0x58c   : > { %v5652_v61 = vpop.f32.mrf.mxu1  ;;  %v8575_v38 = vpop.f32.mrf.mxu0  ;;  %v12838_v43 = vld [vmem:[%s13086_s7 + $0x8e4] ss:$8 sps:$4 sm:$0xff]  }
 0x58d   : > { %9878 = vst.msk [vmem:[%s14257_s9 + $0x518] sm:$0xff] %vm9714_vm1, %v9621_v2  ;;  %v9366_v59 = vadd.f32 %v15374_v1, %v9103_v48  ;;  %v5653_v46 = vadd.f32 %v5652_v61, %v16408_v19 }
 0x58e   : > { %v5654_v34 = vpop.f32.mrf.mxu1  ;;  %v8577_v6 = vpop.f32.mrf.mxu0 }
 0x58f   : > { %v9622_v26 = vmax.f32 %v9366_v59, 0.0  ;;  %v9104_v57 = vadd.f32 %v8575_v38, %v5653_v46  ;;  %v16413_v38 = vld [vmem:[#allocation47_spill] sm:$0xff]  ;;  %v11335_v59 = vld [vmem:[%s13086_s7 + $0x8e8] sm:$0xff] }
 0x590   : > { %v5657_v33 = vpop.f32.mrf.mxu1  ;;  %5848 = vmatmul.mubr.bf16.gmra.mxu1 %v12825_v11  ;;  %v8580_v49 = vpop.f32.mrf.mxu0  ;;  %8771 = vmatmul.mubr.bf16.gmra.mxu0 %v11602_v47  ;;  %v11334_v47 = vld [vmem:[%s13086_s7 + $0x8e0] sm:$0xff] }
 0x591   : > { %9879 = vst.msk [vmem:[%s14257_s9 + $0x520] sm:$0xff] %vm9714_vm1, %v9622_v26  ;;  %v9367_v22 = vadd.f32 %v15374_v1, %v9104_v57  ;;  %v5658_v24 = vadd.f32 %v5657_v33, %v16409_v36  ;;  %11094 = vmatprep.mubr.msk.bf16.mxu1 %vm1927_vm0, %v12826_v35  ;;  %11761 = vmatprep.mubr.msk.bf16.mxu0 %vm1927_vm0, %v12828_v10  ;;  %v12840_v26 = vld [vmem:[%s13086_s7 + $0x6e0] ss:$8 sps:$4 sm:$0xff]   ;;  %v12841_v36 = vld [vmem:[%s13086_s7 + $0x6f4] ss:$8 sps:$4 sm:$0xff]  }
 0x592   : > { %v5659_v50 = vpop.f32.mrf.mxu1  ;;  %v8582_v17 = vpop.f32.mrf.mxu0  ;;  %v11608_v57 = vcombine.low %v11334_v47, %v11335_v59 }
 0x593   : > { %v9623_v31 = vmax.f32 %v9367_v22, 0.0  ;;  %v9105_v8 = vadd.f32 %v8580_v49, %v5658_v24  ;;  %v16414_v49 = vld [vmem:[#allocation48_spill] sm:$0xff] }
 0x594   : > { %v5660_v0 = vpop.f32.mrf.mxu1  ;;  %v8583_v53 = vpop.f32.mrf.mxu0  ;;  %v12843_v24 = vld [vmem:[%s13086_s7 + $0x8f4] ss:$8 sps:$4 sm:$0xff]  }
 0x595   : > { %9880 = vst.msk [vmem:[%s14257_s9 + $0x528] sm:$0xff] %vm9714_vm1, %v9623_v31  ;;  %v9368_v29 = vadd.f32 %v15374_v1, %v9105_v8  ;;  %v5661_v4 = vadd.f32 %v5660_v0, %v16410_v12 }
 0x596   : > { %v5662_v18 = vpop.f32.mrf.mxu1  ;;  %v8585_v5 = vpop.f32.mrf.mxu0 }
 0x597   : > { %v9624_v39 = vmax.f32 %v9368_v29, 0.0  ;;  %v9106_v9 = vadd.f32 %v8583_v53, %v5661_v4  ;;  %v16415_v53 = vld [vmem:[#allocation49_spill] sm:$0xff]  ;;  %v11337_v29 = vld [vmem:[%s13086_s7 + $0x8f8] sm:$0xff] }
 0x598   : > { %v5665_v25 = vpop.f32.mrf.mxu1  ;;  %5856 = vmatmul.mubr.bf16.gmra.mxu1 %v12830_v54  ;;  %v8588_v44 = vpop.f32.mrf.mxu0  ;;  %8779 = vmatmul.mubr.bf16.gmra.mxu0 %v11604_v13  ;;  %v11336_v13 = vld [vmem:[%s13086_s7 + $0x8f0] sm:$0xff] }
 0x599   : > { %9881 = vst.msk [vmem:[%s14257_s9 + $0x530] sm:$0xff] %vm9714_vm1, %v9624_v39  ;;  %v9369_v58 = vadd.f32 %v15374_v1, %v9106_v9  ;;  %v5666_v23 = vadd.f32 %v5665_v25, %v16411_v42  ;;  %11095 = vmatprep.mubr.msk.bf16.mxu1 %vm1927_vm0, %v12831_v15  ;;  %11762 = vmatprep.mubr.msk.bf16.mxu0 %vm1927_vm0, %v12833_v14  ;;  %v12845_v39 = vld [vmem:[%s13086_s7 + $0x6f0] ss:$8 sps:$4 sm:$0xff]   ;;  %v12846_v42 = vld [vmem:[%s13086_s7 + $0x704] ss:$8 sps:$4 sm:$0xff]  }
 0x59a   : > { %v5667_v16 = vpop.f32.mrf.mxu1  ;;  %v8590_v3 = vpop.f32.mrf.mxu0  ;;  %v11610_v9 = vcombine.low %v11336_v13, %v11337_v29 }
 0x59b   : > { %v9625_v60 = vmax.f32 %v9369_v58, 0.0  ;;  %v9107_v37 = vadd.f32 %v8588_v44, %v5666_v23  ;;  %v16416_v44 = vld [vmem:[#allocation50_spill] sm:$0xff] }
 0x59c   : > { %v5668_v62 = vpop.f32.mrf.mxu1  ;;  %v8591_v20 = vpop.f32.mrf.mxu0  ;;  %v12848_v23 = vld [vmem:[%s13086_s7 + $0x904] ss:$8 sps:$4 sm:$0xff]  }
 0x59d   : > { %9882 = vst.msk [vmem:[%s14257_s9 + $0x538] sm:$0xff] %vm9714_vm1, %v9625_v60  ;;  %v9370_v51 = vadd.f32 %v15374_v1, %v9107_v37  ;;  %v5669_v27 = vadd.f32 %v5668_v62, %v16412_v56 }
 0x59e   : > { %v5670_v21 = vpop.f32.mrf.mxu1  ;;  %v8593_v55 = vpop.f32.mrf.mxu0 }
 0x59f   : > { %v9626_v41 = vmax.f32 %v9370_v51, 0.0  ;;  %v9108_v30 = vadd.f32 %v8591_v20, %v5669_v27  ;;  %v16417_v20 = vld [vmem:[#allocation52_spill] sm:$0xff]  ;;  %v11339_v51 = vld [vmem:[%s13086_s7 + $0x908] sm:$0xff] }
 0x5a0   : > { %v5673_v2 = vpop.f32.mrf.mxu1  ;;  %5864 = vmatmul.mubr.bf16.gmra.mxu1 %v12835_v7  ;;  %v8596_v48 = vpop.f32.mrf.mxu0  ;;  %8787 = vmatmul.mubr.bf16.gmra.mxu0 %v11606_v52  ;;  %v11338_v52 = vld [vmem:[%s13086_s7 + $0x900] sm:$0xff] }
 0x5a1   : > { %9883 = vst.msk [vmem:[%s14257_s9 + $0x540] sm:$0xff] %vm9714_vm1, %v9626_v41  ;;  %v9371_v61 = vadd.f32 %v15374_v1, %v9108_v30  ;;  %v5674_v11 = vadd.f32 %v5673_v2, %v16413_v38  ;;  %11096 = vmatprep.mubr.msk.bf16.mxu1 %vm1927_vm0, %v12836_v63  ;;  %11763 = vmatprep.mubr.msk.bf16.mxu0 %vm1927_vm0, %v12838_v43  ;;  %v12850_v41 = vld [vmem:[%s13086_s7 + $0x700] ss:$8 sps:$4 sm:$0xff]   ;;  %v12851_v38 = vld [vmem:[%s13086_s7 + $0x714] ss:$8 sps:$4 sm:$0xff]  }
 0x5a2   : > { %v5675_v19 = vpop.f32.mrf.mxu1  ;;  %v8598_v46 = vpop.f32.mrf.mxu0  ;;  %v11612_v30 = vcombine.low %v11338_v52, %v11339_v51 }
 0x5a3   : > { %v9627_v35 = vmax.f32 %v9371_v61, 0.0  ;;  %v9109_v10 = vadd.f32 %v8596_v48, %v5674_v11  ;;  %v16418_v48 = vld [vmem:[#allocation54_spill] sm:$0xff]  ;;  %v12853_v11 = vld [vmem:[%s13086_s7 + $0x914] ss:$8 sps:$4 sm:$0xff]  }
 0x5a4   : > { %v5676_v34 = vpop.f32.mrf.mxu1  ;;  %v8599_v6 = vpop.f32.mrf.mxu0 }
 0x5a5   : > { %9884 = vst.msk [vmem:[%s14257_s9 + $0x548] sm:$0xff] %vm9714_vm1, %v9627_v35  ;;  %v9372_v33 = vadd.f32 %v15374_v1, %v9109_v10  ;;  %v5677_v22 = vadd.f32 %v5676_v34, %v16414_v49 }
 0x5a6   : > { %v5678_v32 = vpop.f32.mrf.mxu1  ;;  %v8601_v45 = vpop.f32.mrf.mxu0 }
 0x5a7   : > { %v9628_v50 = vmax.f32 %v9372_v33, 0.0  ;;  %v9110_v17 = vadd.f32 %v8599_v6, %v5677_v22  ;;  %v16419_v6 = vld [vmem:[#allocation56_spill] sm:$0xff] }
 0x5a8   : > { %v5681_v31 = vpop.f32.mrf.mxu1  ;;  %5872 = vmatmul.mubr.bf16.gmra.mxu1 %v12840_v26  ;;  %v8604_v8 = vpop.f32.mrf.mxu0  ;;  %8795 = vmatmul.mubr.bf16.gmra.mxu0 %v11608_v57  ;;  %v11340_v57 = vld [vmem:[%s13086_s7 + $0x910] sm:$0xff]  ;;  %v11341_v33 = vld [vmem:[%s13086_s7 + $0x918] sm:$0xff] }
 0x5a9   : > { %9885 = vst.msk [vmem:[%s14257_s9 + $0x550] sm:$0xff] %vm9714_vm1, %v9628_v50  ;;  %v9373_v0 = vadd.f32 %v15374_v1, %v9110_v17  ;;  %v5682_v54 = vadd.f32 %v5681_v31, %v16415_v53  ;;  %11097 = vmatprep.mubr.msk.bf16.mxu1 %vm1927_vm0, %v12841_v36  ;;  %11764 = vmatprep.mubr.msk.bf16.mxu0 %vm1927_vm0, %v12843_v24  ;;  %v12855_v50 = vld [vmem:[%s13086_s7 + $0x710] ss:$8 sps:$4 sm:$0xff]   ;;  %v12856_v53 = vld [vmem:[%s13086_s7 + $0x724] ss:$8 sps:$4 sm:$0xff]  }
 0x5aa   : > { %v5683_v12 = vpop.f32.mrf.mxu1  ;;  %v8606_v4 = vpop.f32.mrf.mxu0  ;;  %v11614_v17 = vcombine.low %v11340_v57, %v11341_v33 }
 0x5ab   : > { %v9629_v15 = vmax.f32 %v9373_v0, 0.0  ;;  %v9111_v14 = vadd.f32 %v8604_v8, %v5682_v54  ;;  %v16420_v8 = vld [vmem:[#allocation58_spill] sm:$0xff] }
 0x5ac   : > { %v5684_v18 = vpop.f32.mrf.mxu1  ;;  %v8607_v5 = vpop.f32.mrf.mxu0  ;;  %v12858_v54 = vld [vmem:[%s13086_s7 + $0x924] ss:$8 sps:$4 sm:$0xff]  }
 0x5ad   : > { %9886 = vst.msk [vmem:[%s14257_s9 + $0x558] sm:$0xff] %vm9714_vm1, %v9629_v15  ;;  %v9374_v25 = vadd.f32 %v15374_v1, %v9111_v14  ;;  %v5685_v58 = vadd.f32 %v5684_v18, %v16416_v44 }
 0x5ae   : > { %v5686_v40 = vpop.f32.mrf.mxu1  ;;  %v8609_v28 = vpop.f32.mrf.mxu0 }
 0x5af   : > { %v9630_v16 = vmax.f32 %v9374_v25, 0.0  ;;  %v9112_v3 = vadd.f32 %v8607_v5, %v5685_v58  ;;  %v16421_v5 = vld [vmem:[#allocation60_spill] sm:$0xff]  ;;  %v11343_v25 = vld [vmem:[%s13086_s7 + $0x928] sm:$0xff] }
 0x5b0   : > { %v5689_v60 = vpop.f32.mrf.mxu1  ;;  %5880 = vmatmul.mubr.bf16.gmra.mxu1 %v12845_v39  ;;  %v8612_v37 = vpop.f32.mrf.mxu0  ;;  %8803 = vmatmul.mubr.bf16.gmra.mxu0 %v11610_v9  ;;  %v11342_v9 = vld [vmem:[%s13086_s7 + $0x920] sm:$0xff] }
 0x5b1   : > { %9887 = vst.msk [vmem:[%s14257_s9 + $0x560] sm:$0xff] %vm9714_vm1, %v9630_v16  ;;  %v9375_v62 = vadd.f32 %v15374_v1, %v9112_v3  ;;  %v5690_v7 = vadd.f32 %v5689_v60, %v16417_v20  ;;  %11098 = vmatprep.mubr.msk.bf16.mxu1 %vm1927_vm0, %v12846_v42  ;;  %11765 = vmatprep.mubr.msk.bf16.mxu0 %vm1927_vm0, %v12848_v23  ;;  %v12860_v16 = vld [vmem:[%s13086_s7 + $0x720] ss:$8 sps:$4 sm:$0xff]   ;;  %v12861_v20 = vld [vmem:[%s13086_s7 + $0x734] ss:$8 sps:$4 sm:$0xff]  }
 0x5b2   : > { %v5691_v56 = vpop.f32.mrf.mxu1  ;;  %v8614_v27 = vpop.f32.mrf.mxu0  ;;  %v11616_v3 = vcombine.low %v11342_v9, %v11343_v25 }
 0x5b3   : > { %v9631_v63 = vmax.f32 %v9375_v62, 0.0  ;;  %v9113_v43 = vadd.f32 %v8612_v37, %v5690_v7  ;;  %v16422_v37 = vld [vmem:[#allocation62_spill] sm:$0xff]  ;;  %v12863_v7 = vld [vmem:[%s13086_s7 + $0x934] ss:$8 sps:$4 sm:$0xff]  }
 0x5b4   : > { %v5692_v21 = vpop.f32.mrf.mxu1  ;;  %v8615_v55 = vpop.f32.mrf.mxu0 }
 0x5b5   : > { %9888 = vst.msk [vmem:[%s14257_s9 + $0x568] sm:$0xff] %vm9714_vm1, %v9631_v63  ;;  %v9376_v2 = vadd.f32 %v15374_v1, %v9113_v43  ;;  %v5693_v61 = vadd.f32 %v5692_v21, %v16418_v48 }
 0x5b6   : > { %v5694_v47 = vpop.f32.mrf.mxu1  ;;  %v8617_v59 = vpop.f32.mrf.mxu0 }
 0x5b7   : > { %v9632_v19 = vmax.f32 %v9376_v2, 0.0  ;;  %v9114_v46 = vadd.f32 %v8615_v55, %v5693_v61  ;;  %v16423_v55 = vld [vmem:[#allocation64_spill] sm:$0xff] }
 0x5b8   : > { %v5697_v35 = vpop.f32.mrf.mxu1  ;;  %5888 = vmatmul.mubr.bf16.gmra.mxu1 %v12850_v41  ;;  %v8620_v10 = vpop.f32.mrf.mxu0  ;;  %8811 = vmatmul.mubr.bf16.gmra.mxu0 %v11612_v30  ;;  %v11344_v30 = vld [vmem:[%s13086_s7 + $0x930] sm:$0xff]  ;;  %v11345_v2 = vld [vmem:[%s13086_s7 + $0x938] sm:$0xff] }
 0x5b9   : > { %9889 = vst.msk [vmem:[%s14257_s9 + $0x570] sm:$0xff] %vm9714_vm1, %v9632_v19  ;;  %v9377_v34 = vadd.f32 %v15374_v1, %v9114_v46  ;;  %v5698_v26 = vadd.f32 %v5697_v35, %v16419_v6  ;;  %11099 = vmatprep.mubr.msk.bf16.mxu1 %vm1927_vm0, %v12851_v38  ;;  %11766 = vmatprep.mubr.msk.bf16.mxu0 %vm1927_vm0, %v12853_v11  ;;  %v12865_v19 = vld [vmem:[%s13086_s7 + $0x730] ss:$8 sps:$4 sm:$0xff]   ;;  %v12866_v6 = vld [vmem:[%s13086_s7 + $0x744] ss:$8 sps:$4 sm:$0xff]  }
 0x5ba   : > { %v5699_v49 = vpop.f32.mrf.mxu1  ;;  %v8622_v22 = vpop.f32.mrf.mxu0  ;;  %v11618_v46 = vcombine.low %v11344_v30, %v11345_v2 }
 0x5bb   : > { %v9633_v36 = vmax.f32 %v9377_v34, 0.0  ;;  %v9115_v24 = vadd.f32 %v8620_v10, %v5698_v26  ;;  %v16424_v10 = vld [vmem:[#allocation66_spill] sm:$0xff] }
 0x5bc   : > { %v5700_v32 = vpop.f32.mrf.mxu1  ;;  %v8623_v45 = vpop.f32.mrf.mxu0  ;;  %v12868_v26 = vld [vmem:[%s13086_s7 + $0x944] ss:$8 sps:$4 sm:$0xff]  }
 0x5bd   : > { %9890 = vst.msk [vmem:[%s14257_s9 + $0x578] sm:$0xff] %vm9714_vm1, %v9633_v36  ;;  %v9378_v31 = vadd.f32 %v15374_v1, %v9115_v24  ;;  %v5701_v0 = vadd.f32 %v5700_v32, %v16420_v8 }
 0x5be   : > { %v5702_v13 = vpop.f32.mrf.mxu1  ;;  %v8625_v29 = vpop.f32.mrf.mxu0 }
 0x5bf   : > { %v9634_v12 = vmax.f32 %v9378_v31, 0.0  ;;  %v9116_v4 = vadd.f32 %v8623_v45, %v5701_v0  ;;  %v16425_v45 = vld [vmem:[#allocation68_spill] sm:$0xff]  ;;  %v11347_v31 = vld [vmem:[%s13086_s7 + $0x948] sm:$0xff] }
 0x5c0   : > { %v5705_v15 = vpop.f32.mrf.mxu1  ;;  %5896 = vmatmul.mubr.bf16.gmra.mxu1 %v12855_v50  ;;  %v8628_v14 = vpop.f32.mrf.mxu0  ;;  %8819 = vmatmul.mubr.bf16.gmra.mxu0 %v11614_v17  ;;  %v11346_v17 = vld [vmem:[%s13086_s7 + $0x940] sm:$0xff] }
 0x5c1   : > { %9891 = vst.msk [vmem:[%s14257_s9 + $0x580] sm:$0xff] %vm9714_vm1, %v9634_v12  ;;  %v9379_v18 = vadd.f32 %v15374_v1, %v9116_v4  ;;  %v5706_v39 = vadd.f32 %v5705_v15, %v16421_v5  ;;  %11100 = vmatprep.mubr.msk.bf16.mxu1 %vm1927_vm0, %v12856_v53  ;;  %11767 = vmatprep.mubr.msk.bf16.mxu0 %vm1927_vm0, %v12858_v54  ;;  %v12870_v12 = vld [vmem:[%s13086_s7 + $0x740] ss:$8 sps:$4 sm:$0xff]   ;;  %v12871_v5 = vld [vmem:[%s13086_s7 + $0x754] ss:$8 sps:$4 sm:$0xff]  }
 0x5c2   : > { %v5707_v44 = vpop.f32.mrf.mxu1  ;;  %v8630_v58 = vpop.f32.mrf.mxu0  ;;  %v11620_v4 = vcombine.low %v11346_v17, %v11347_v31 }
 0x5c3   : > { %v9635_v42 = vmax.f32 %v9379_v18, 0.0  ;;  %v9117_v23 = vadd.f32 %v8628_v14, %v5706_v39  ;;  %v16426_v14 = vld [vmem:[#allocation70_spill] sm:$0xff]  ;;  %v12873_v39 = vld [vmem:[%s13086_s7 + $0x954] ss:$8 sps:$4 sm:$0xff]  }
 0x5c4   : > { %v5708_v40 = vpop.f32.mrf.mxu1  ;;  %v8631_v28 = vpop.f32.mrf.mxu0 }
 0x5c5   : > { %9892 = vst.msk [vmem:[%s14257_s9 + $0x588] sm:$0xff] %vm9714_vm1, %v9635_v42  ;;  %v9380_v60 = vadd.f32 %v15374_v1, %v9117_v23  ;;  %v5709_v62 = vadd.f32 %v5708_v40, %v16422_v37 }
 0x5c6   : > { %v5710_v52 = vpop.f32.mrf.mxu1  ;;  %v8633_v51 = vpop.f32.mrf.mxu0 }
 0x5c7   : > { %v9636_v56 = vmax.f32 %v9380_v60, 0.0  ;;  %v9118_v27 = vadd.f32 %v8631_v28, %v5709_v62  ;;  %v16427_v28 = vld [vmem:[#allocation72_spill] sm:$0xff] }
 0x5c8   : > { %v5713_v63 = vpop.f32.mrf.mxu1  ;;  %5904 = vmatmul.mubr.bf16.gmra.mxu1 %v12860_v16  ;;  %v8636_v43 = vpop.f32.mrf.mxu0  ;;  %8827 = vmatmul.mubr.bf16.gmra.mxu0 %v11616_v3  ;;  %v11348_v3 = vld [vmem:[%s13086_s7 + $0x950] sm:$0xff]  ;;  %v11349_v60 = vld [vmem:[%s13086_s7 + $0x958] sm:$0xff] }
 0x5c9   : > { %9893 = vst.msk [vmem:[%s14257_s9 + $0x590] sm:$0xff] %vm9714_vm1, %v9636_v56  ;;  %v9381_v21 = vadd.f32 %v15374_v1, %v9118_v27  ;;  %v5714_v41 = vadd.f32 %v5713_v63, %v16423_v55  ;;  %11101 = vmatprep.mubr.msk.bf16.mxu1 %vm1927_vm0, %v12861_v20  ;;  %11768 = vmatprep.mubr.msk.bf16.mxu0 %vm1927_vm0, %v12863_v7  ;;  %v12875_v56 = vld [vmem:[%s13086_s7 + $0x750] ss:$8 sps:$4 sm:$0xff]   ;;  %v12876_v55 = vld [vmem:[%s13086_s7 + $0x764] ss:$8 sps:$4 sm:$0xff]  }
 0x5ca   : > { %v5715_v48 = vpop.f32.mrf.mxu1  ;;  %v8638_v61 = vpop.f32.mrf.mxu0  ;;  %v11622_v27 = vcombine.low %v11348_v3, %v11349_v60 }
 0x5cb   : > { %v9637_v38 = vmax.f32 %v9381_v21, 0.0  ;;  %v9119_v11 = vadd.f32 %v8636_v43, %v5714_v41  ;;  %v16428_v43 = vld [vmem:[#allocation74_spill] sm:$0xff] }
 0x5cc   : > { %v5716_v47 = vpop.f32.mrf.mxu1  ;;  %v8639_v59 = vpop.f32.mrf.mxu0  ;;  %v12878_v41 = vld [vmem:[%s13086_s7 + $0x964] ss:$8 sps:$4 sm:$0xff]  }
 0x5cd   : > { %9894 = vst.msk [vmem:[%s14257_s9 + $0x598] sm:$0xff] %vm9714_vm1, %v9637_v38  ;;  %v9382_v35 = vadd.f32 %v15374_v1, %v9119_v11  ;;  %v5717_v34 = vadd.f32 %v5716_v47, %v16424_v10 }
 0x5ce   : > { %v5718_v57 = vpop.f32.mrf.mxu1  ;;  %v8641_v33 = vpop.f32.mrf.mxu0 }
 0x5cf   : > { %v9638_v49 = vmax.f32 %v9382_v35, 0.0  ;;  %v9120_v22 = vadd.f32 %v8639_v59, %v5717_v34  ;;  %v16429_v59 = vld [vmem:[#allocation76_spill] sm:$0xff]  ;;  %v11351_v35 = vld [vmem:[%s13086_s7 + $0x968] sm:$0xff] }
 0x5d0   : > { %v5721_v36 = vpop.f32.mrf.mxu1  ;;  %5912 = vmatmul.mubr.bf16.gmra.mxu1 %v12865_v19  ;;  %v8644_v24 = vpop.f32.mrf.mxu0  ;;  %8835 = vmatmul.mubr.bf16.gmra.mxu0 %v11618_v46  ;;  %v11350_v46 = vld [vmem:[%s13086_s7 + $0x960] sm:$0xff] }
 0x5d1   : > { %9895 = vst.msk [vmem:[%s14257_s9 + $0x5a0] sm:$0xff] %vm9714_vm1, %v9638_v49  ;;  %v9383_v32 = vadd.f32 %v15374_v1, %v9120_v22  ;;  %v5722_v50 = vadd.f32 %v5721_v36, %v16425_v45  ;;  %11102 = vmatprep.mubr.msk.bf16.mxu1 %vm1927_vm0, %v12866_v6  ;;  %11769 = vmatprep.mubr.msk.bf16.mxu0 %vm1927_vm0, %v12868_v26  ;;  %v12880_v49 = vld [vmem:[%s13086_s7 + $0x760] ss:$8 sps:$4 sm:$0xff]   ;;  %v12881_v45 = vld [vmem:[%s13086_s7 + $0x774] ss:$8 sps:$4 sm:$0xff]  }
 0x5d2   : > { %v5723_v8 = vpop.f32.mrf.mxu1  ;;  %v8646_v0 = vpop.f32.mrf.mxu0  ;;  %v11624_v22 = vcombine.low %v11350_v46, %v11351_v35 }
 0x5d3   : > { %v9639_v53 = vmax.f32 %v9383_v32, 0.0  ;;  %v9121_v54 = vadd.f32 %v8644_v24, %v5722_v50  ;;  %v16430_v24 = vld [vmem:[#allocation78_spill] sm:$0xff]  ;;  %v12883_v50 = vld [vmem:[%s13086_s7 + $0x974] ss:$8 sps:$4 sm:$0xff]  }
 0x5d4   : > { %v5724_v13 = vpop.f32.mrf.mxu1  ;;  %v8647_v29 = vpop.f32.mrf.mxu0 }
 0x5d5   : > { %9896 = vst.msk [vmem:[%s14257_s9 + $0x5a8] sm:$0xff] %vm9714_vm1, %v9639_v53  ;;  %v9384_v15 = vadd.f32 %v15374_v1, %v9121_v54  ;;  %v5725_v18 = vadd.f32 %v5724_v13, %v16426_v14 }
 0x5d6   : > { %v5726_v9 = vpop.f32.mrf.mxu1  ;;  %v8649_v25 = vpop.f32.mrf.mxu0 }
 0x5d7   : > { %v9640_v44 = vmax.f32 %v9384_v15, 0.0  ;;  %v9122_v58 = vadd.f32 %v8647_v29, %v5725_v18  ;;  %v16431_v29 = vld [vmem:[#allocation80_spill] sm:$0xff] }
 0x5d8   : > { %v5729_v42 = vpop.f32.mrf.mxu1  ;;  %5920 = vmatmul.mubr.bf16.gmra.mxu1 %v12870_v12  ;;  %v8652_v23 = vpop.f32.mrf.mxu0  ;;  %8843 = vmatmul.mubr.bf16.gmra.mxu0 %v11620_v4  ;;  %v11352_v4 = vld [vmem:[%s13086_s7 + $0x970] sm:$0xff]  ;;  %v11353_v15 = vld [vmem:[%s13086_s7 + $0x978] sm:$0xff] }
 0x5d9   : > { %9897 = vst.msk [vmem:[%s14257_s9 + $0x5b0] sm:$0xff] %vm9714_vm1, %v9640_v44  ;;  %v9385_v40 = vadd.f32 %v15374_v1, %v9122_v58  ;;  %v5730_v16 = vadd.f32 %v5729_v42, %v16427_v28  ;;  %11103 = vmatprep.mubr.msk.bf16.mxu1 %vm1927_vm0, %v12871_v5  ;;  %11770 = vmatprep.mubr.msk.bf16.mxu0 %vm1927_vm0, %v12873_v39  ;;  %v15658_v1 = vld [vmem:[%s16075_s2] ss:$0 sm:$0xff]  ;;  %v12885_v44 = vld [vmem:[%s13086_s7 + $0x770] ss:$8 sps:$4 sm:$0xff]  }
 0x5da   : > { %v5731_v37 = vpop.f32.mrf.mxu1  ;;  %v8654_v62 = vpop.f32.mrf.mxu0  ;;  %v11626_v58 = vcombine.low %v11352_v4, %v11353_v15  ;;  %v12886_v28 = vld [vmem:[%s13086_s7 + $0x784] ss:$8 sps:$4 sm:$0xff]  }
 0x5db   : > { %v9641_v20 = vmax.f32 %v9385_v40, 0.0  ;;  %v9123_v7 = vadd.f32 %v8652_v23, %v5730_v16  ;;  %v16432_v23 = vld [vmem:[#allocation82_spill] sm:$0xff] }
 0x5dc   : > { %v5732_v52 = vpop.f32.mrf.mxu1  ;;  %v8655_v51 = vpop.f32.mrf.mxu0  ;;  %v12888_v16 = vld [vmem:[%s13086_s7 + $0x984] ss:$8 sps:$4 sm:$0xff]  }
 0x5dd   : > { %9898 = vst.msk [vmem:[%s14257_s9 + $0x5b8] sm:$0xff] %vm9714_vm1, %v9641_v20  ;;  %v9386_v63 = vadd.f32 %v15658_v1, %v9123_v7  ;;  %v5733_v21 = vadd.f32 %v5732_v52, %v16428_v43 }
 0x5de   : > { %v5734_v30 = vpop.f32.mrf.mxu1  ;;  %v8657_v2 = vpop.f32.mrf.mxu0 }
 0x5df   : > { %v9642_v48 = vmax.f32 %v9386_v63, 0.0  ;;  %v9124_v61 = vadd.f32 %v8655_v51, %v5733_v21  ;;  %v16433_v51 = vld [vmem:[#allocation84_spill] sm:$0xff]  ;;  %v11355_v63 = vld [vmem:[%s13086_s7 + $0x988] sm:$0xff] }
 0x5e0   : > { %v5737_v38 = vpop.f32.mrf.mxu1  ;;  %5928 = vmatmul.mubr.bf16.gmra.mxu1 %v12875_v56  ;;  %v8660_v11 = vpop.f32.mrf.mxu0  ;;  %8851 = vmatmul.mubr.bf16.gmra.mxu0 %v11622_v27  ;;  %v11354_v27 = vld [vmem:[%s13086_s7 + $0x980] sm:$0xff] }
 0x5e1   : > { %9899 = vst.msk [vmem:[%s14257_s9 + $0x5c0] sm:$0xff] %vm9714_vm1, %v9642_v48  ;;  %v9387_v47 = vadd.f32 %v15658_v1, %v9124_v61  ;;  %v5738_v19 = vadd.f32 %v5737_v38, %v16429_v59  ;;  %11104 = vmatprep.mubr.msk.bf16.mxu1 %vm1927_vm0, %v12876_v55  ;;  %11771 = vmatprep.mubr.msk.bf16.mxu0 %vm1927_vm0, %v12878_v41  ;;  %v12890_v48 = vld [vmem:[%s13086_s7 + $0x780] ss:$8 sps:$4 sm:$0xff]   ;;  %v12891_v59 = vld [vmem:[%s13086_s7 + $0x794] ss:$8 sps:$4 sm:$0xff]  }
 0x5e2   : > { %v5739_v10 = vpop.f32.mrf.mxu1  ;;  %v8662_v34 = vpop.f32.mrf.mxu0  ;;  %v11628_v61 = vcombine.low %v11354_v27, %v11355_v63 }
 0x5e3   : > { %v9643_v6 = vmax.f32 %v9387_v47, 0.0  ;;  %v9125_v26 = vadd.f32 %v8660_v11, %v5738_v19  ;;  %v16434_v11 = vld [vmem:[#allocation86_spill] sm:$0xff]  ;;  %v12893_v19 = vld [vmem:[%s13086_s7 + $0x994] ss:$8 sps:$4 sm:$0xff]  }
 0x5e4   : > { %v5740_v57 = vpop.f32.mrf.mxu1  ;;  %v8663_v33 = vpop.f32.mrf.mxu0 }
 0x5e5   : > { %9900 = vst.msk [vmem:[%s14257_s9 + $0x5c8] sm:$0xff] %vm9714_vm1, %v9643_v6  ;;  %v9388_v36 = vadd.f32 %v15658_v1, %v9125_v26  ;;  %v5741_v32 = vadd.f32 %v5740_v57, %v16430_v24 }
 0x5e6   : > { %v5742_v17 = vpop.f32.mrf.mxu1  ;;  %v8665_v31 = vpop.f32.mrf.mxu0 }
 0x5e7   : > { %v9644_v8 = vmax.f32 %v9388_v36, 0.0  ;;  %v9126_v0 = vadd.f32 %v8663_v33, %v5741_v32  ;;  %v16435_v33 = vld [vmem:[#allocation88_spill] sm:$0xff] }
 0x5e8   : > { %v5745_v53 = vpop.f32.mrf.mxu1  ;;  %5936 = vmatmul.mubr.bf16.gmra.mxu1 %v12880_v49  ;;  %v8668_v54 = vpop.f32.mrf.mxu0  ;;  %8859 = vmatmul.mubr.bf16.gmra.mxu0 %v11624_v22  ;;  %v11356_v22 = vld [vmem:[%s13086_s7 + $0x990] sm:$0xff]  ;;  %v11357_v36 = vld [vmem:[%s13086_s7 + $0x998] sm:$0xff] }
 0x5e9   : > { %9901 = vst.msk [vmem:[%s14257_s9 + $0x5d0] sm:$0xff] %vm9714_vm1, %v9644_v8  ;;  %v9389_v13 = vadd.f32 %v15658_v1, %v9126_v0  ;;  %v5746_v12 = vadd.f32 %v5745_v53, %v16431_v29  ;;  %11105 = vmatprep.mubr.msk.bf16.mxu1 %vm1927_vm0, %v12881_v45  ;;  %11772 = vmatprep.mubr.msk.bf16.mxu0 %vm1927_vm0, %v12883_v50  ;;  %v12895_v8 = vld [vmem:[%s13086_s7 + $0x790] ss:$8 sps:$4 sm:$0xff]   ;;  %v12896_v29 = vld [vmem:[%s13086_s7 + $0x7a4] ss:$8 sps:$4 sm:$0xff]  }
 0x5ea   : > { %v5747_v14 = vpop.f32.mrf.mxu1  ;;  %v8670_v18 = vpop.f32.mrf.mxu0  ;;  %v11630_v0 = vcombine.low %v11356_v22, %v11357_v36 }
 0x5eb   : > { %v9645_v5 = vmax.f32 %v9389_v13, 0.0  ;;  %v9127_v39 = vadd.f32 %v8668_v54, %v5746_v12  ;;  %v16436_v54 = vld [vmem:[#allocation90_spill] sm:$0xff] }
 0x5ec   : > { %v5748_v9 = vpop.f32.mrf.mxu1  ;;  %v8671_v25 = vpop.f32.mrf.mxu0  ;;  %v12898_v12 = vld [vmem:[%s13086_s7 + $0x9a4] ss:$8 sps:$4 sm:$0xff]  }
 0x5ed   : > { %9902 = vst.msk [vmem:[%s14257_s9 + $0x5d8] sm:$0xff] %vm9714_vm1, %v9645_v5  ;;  %v9390_v42 = vadd.f32 %v15658_v1, %v9127_v39  ;;  %v5749_v40 = vadd.f32 %v5748_v9, %v16432_v23 }
 0x5ee   : > { %v5750_v3 = vpop.f32.mrf.mxu1  ;;  %v8673_v60 = vpop.f32.mrf.mxu0 }
 0x5ef   : > { %v9646_v37 = vmax.f32 %v9390_v42, 0.0  ;;  %v9128_v62 = vadd.f32 %v8671_v25, %v5749_v40  ;;  %v16437_v25 = vld [vmem:[#allocation92_spill] sm:$0xff]  ;;  %v11359_v42 = vld [vmem:[%s13086_s7 + $0x9a8] sm:$0xff] }
 0x5f0   : > { %v5753_v20 = vpop.f32.mrf.mxu1  ;;  %5944 = vmatmul.mubr.bf16.gmra.mxu1 %v12885_v44  ;;  %v8676_v7 = vpop.f32.mrf.mxu0  ;;  %8867 = vmatmul.mubr.bf16.gmra.mxu0 %v11626_v58  ;;  %v11358_v58 = vld [vmem:[%s13086_s7 + $0x9a0] sm:$0xff] }
 0x5f1   : > { %9903 = vst.msk [vmem:[%s14257_s9 + $0x5e0] sm:$0xff] %vm9714_vm1, %v9646_v37  ;;  %v9391_v52 = vadd.f32 %v15658_v1, %v9128_v62  ;;  %v5754_v56 = vadd.f32 %v5753_v20, %v16433_v51  ;;  %11106 = vmatprep.mubr.msk.bf16.mxu1 %vm1927_vm0, %v12886_v28  ;;  %11773 = vmatprep.mubr.msk.bf16.mxu0 %vm1927_vm0, %v12888_v16  ;;  %v12900_v37 = vld [vmem:[%s13086_s7 + $0x7a0] ss:$8 sps:$4 sm:$0xff]   ;;  %v12901_v51 = vld [vmem:[%s13086_s7 + $0x7b4] ss:$8 sps:$4 sm:$0xff]  }
 0x5f2   : > { %v5755_v43 = vpop.f32.mrf.mxu1  ;;  %v8678_v21 = vpop.f32.mrf.mxu0  ;;  %v11632_v62 = vcombine.low %v11358_v58, %v11359_v42 }
 0x5f3   : > { %v9647_v55 = vmax.f32 %v9391_v52, 0.0  ;;  %v9129_v41 = vadd.f32 %v8676_v7, %v5754_v56  ;;  %v16438_v7 = vld [vmem:[#allocation94_spill] sm:$0xff]  ;;  %v12903_v56 = vld [vmem:[%s13086_s7 + $0x9b4] ss:$8 sps:$4 sm:$0xff]  }
 0x5f4   : > { %v5756_v30 = vpop.f32.mrf.mxu1  ;;  %v8679_v2 = vpop.f32.mrf.mxu0 }
 0x5f5   : > { %9904 = vst.msk [vmem:[%s14257_s9 + $0x5e8] sm:$0xff] %vm9714_vm1, %v9647_v55  ;;  %v9392_v38 = vadd.f32 %v15658_v1, %v9129_v41  ;;  %v5757_v47 = vadd.f32 %v5756_v30, %v16434_v11 }
 0x5f6   : > { %v5758_v46 = vpop.f32.mrf.mxu1  ;;  %v8681_v35 = vpop.f32.mrf.mxu0 }
 0x5f7   : > { %v9648_v10 = vmax.f32 %v9392_v38, 0.0  ;;  %v9130_v34 = vadd.f32 %v8679_v2, %v5757_v47  ;;  %v16439_v2 = vld [vmem:[#allocation96_spill] sm:$0xff] }
 0x5f8   : > { %v5761_v6 = vpop.f32.mrf.mxu1  ;;  %5952 = vmatmul.mubr.bf16.gmra.mxu1 %v12890_v48  ;;  %v8684_v26 = vpop.f32.mrf.mxu0  ;;  %8875 = vmatmul.mubr.bf16.gmra.mxu0 %v11628_v61  ;;  %v11360_v61 = vld [vmem:[%s13086_s7 + $0x9b0] sm:$0xff]  ;;  %v11361_v38 = vld [vmem:[%s13086_s7 + $0x9b8] sm:$0xff] }
 0x5f9   : > { %9905 = vst.msk [vmem:[%s14257_s9 + $0x5f0] sm:$0xff] %vm9714_vm1, %v9648_v10  ;;  %v9393_v57 = vadd.f32 %v15658_v1, %v9130_v34  ;;  %v5762_v49 = vadd.f32 %v5761_v6, %v16435_v33  ;;  %11107 = vmatprep.mubr.msk.bf16.mxu1 %vm1927_vm0, %v12891_v59  ;;  %11774 = vmatprep.mubr.msk.bf16.mxu0 %vm1927_vm0, %v12893_v19  ;;  %v12905_v10 = vld [vmem:[%s13086_s7 + $0x7b0] ss:$8 sps:$4 sm:$0xff]   ;;  %v12906_v33 = vld [vmem:[%s13086_s7 + $0x7c4] ss:$8 sps:$4 sm:$0xff]  }
 0x5fa   : > { %v5763_v24 = vpop.f32.mrf.mxu1  ;;  %v8686_v32 = vpop.f32.mrf.mxu0  ;;  %v11634_v34 = vcombine.low %v11360_v61, %v11361_v38 }
 0x5fb   : > { %v9649_v45 = vmax.f32 %v9393_v57, 0.0  ;;  %v9131_v50 = vadd.f32 %v8684_v26, %v5762_v49  ;;  %v16440_v26 = vld [vmem:[#allocation98_spill] sm:$0xff] }
 0x5fc   : > { %v5764_v17 = vpop.f32.mrf.mxu1  ;;  %v8687_v31 = vpop.f32.mrf.mxu0  ;;  %v12908_v49 = vld [vmem:[%s13086_s7 + $0x9c4] ss:$8 sps:$4 sm:$0xff]  }
 0x5fd   : > { %9906 = vst.msk [vmem:[%s14257_s9 + $0x5f8] sm:$0xff] %vm9714_vm1, %v9649_v45  ;;  %v9394_v53 = vadd.f32 %v15658_v1, %v9131_v50  ;;  %v5765_v13 = vadd.f32 %v5764_v17, %v16436_v54 }
 0x5fe   : > { %v5766_v4 = vpop.f32.mrf.mxu1  ;;  %v8689_v15 = vpop.f32.mrf.mxu0 }
 0x5ff   : > { %v9650_v14 = vmax.f32 %v9394_v53, 0.0  ;;  %v9132_v18 = vadd.f32 %v8687_v31, %v5765_v13  ;;  %v16441_v31 = vld [vmem:[#allocation100_spill] sm:$0xff]  ;;  %v11363_v53 = vld [vmem:[%s13086_s7 + $0x9c8] sm:$0xff] }
 0x600   : > { %v5769_v5 = vpop.f32.mrf.mxu1  ;;  %5960 = vmatmul.mubr.bf16.gmra.mxu1 %v12895_v8  ;;  %v8692_v39 = vpop.f32.mrf.mxu0  ;;  %8883 = vmatmul.mubr.bf16.gmra.mxu0 %v11630_v0  ;;  %v11362_v0 = vld [vmem:[%s13086_s7 + $0x9c0] sm:$0xff] }
 0x601   : > { %9907 = vst.msk [vmem:[%s14257_s9 + $0x600] sm:$0xff] %vm9714_vm1, %v9650_v14  ;;  %v9395_v9 = vadd.f32 %v15658_v1, %v9132_v18  ;;  %v5770_v44 = vadd.f32 %v5769_v5, %v16437_v25  ;;  %11108 = vmatprep.mubr.msk.bf16.mxu1 %vm1927_vm0, %v12896_v29  ;;  %11775 = vmatprep.mubr.msk.bf16.mxu0 %vm1927_vm0, %v12898_v12  ;;  %v12910_v14 = vld [vmem:[%s13086_s7 + $0x7c0] ss:$8 sps:$4 sm:$0xff]   ;;  %v12911_v25 = vld [vmem:[%s13086_s7 + $0x7d4] ss:$8 sps:$4 sm:$0xff]  }
 0x602   : > { %v5771_v23 = vpop.f32.mrf.mxu1  ;;  %v8694_v40 = vpop.f32.mrf.mxu0  ;;  %v11636_v18 = vcombine.low %v11362_v0, %v11363_v53 }
 0x603   : > { %v9651_v28 = vmax.f32 %v9395_v9, 0.0  ;;  %v9133_v16 = vadd.f32 %v8692_v39, %v5770_v44  ;;  %v16442_v39 = vld [vmem:[#allocation102_spill] sm:$0xff]  ;;  %v12913_v44 = vld [vmem:[%s13086_s7 + $0x9d4] ss:$8 sps:$4 sm:$0xff]  }
 0x604   : > { %v5772_v3 = vpop.f32.mrf.mxu1  ;;  %v8695_v60 = vpop.f32.mrf.mxu0 }
 0x605   : > { %9908 = vst.msk [vmem:[%s14257_s9 + $0x608] sm:$0xff] %vm9714_vm1, %v9651_v28  ;;  %v9396_v20 = vadd.f32 %v15658_v1, %v9133_v16  ;;  %v5773_v52 = vadd.f32 %v5772_v3, %v16438_v7 }
 0x606   : > { %v5774_v27 = vpop.f32.mrf.mxu1  ;;  %v8697_v63 = vpop.f32.mrf.mxu0 }
 0x607   : > { %v9652_v43 = vmax.f32 %v9396_v20, 0.0  ;;  %v9134_v21 = vadd.f32 %v8695_v60, %v5773_v52  ;;  %v16443_v60 = vld [vmem:[#allocation104_spill] sm:$0xff] }
 0x608   : > { %v5777_v55 = vpop.f32.mrf.mxu1  ;;  %5968 = vmatmul.mubr.bf16.gmra.mxu1 %v12900_v37  ;;  %v8700_v41 = vpop.f32.mrf.mxu0  ;;  %8891 = vmatmul.mubr.bf16.gmra.mxu0 %v11632_v62  ;;  %v11364_v62 = vld [vmem:[%s13086_s7 + $0x9d0] sm:$0xff]  ;;  %v11365_v20 = vld [vmem:[%s13086_s7 + $0x9d8] sm:$0xff] }
 0x609   : > { %9909 = vst.msk [vmem:[%s14257_s9 + $0x610] sm:$0xff] %vm9714_vm1, %v9652_v43  ;;  %v9397_v30 = vadd.f32 %v15658_v1, %v9134_v21  ;;  %v5778_v48 = vadd.f32 %v5777_v55, %v16439_v2  ;;  %11109 = vmatprep.mubr.msk.bf16.mxu1 %vm1927_vm0, %v12901_v51  ;;  %11776 = vmatprep.mubr.msk.bf16.mxu0 %vm1927_vm0, %v12903_v56  ;;  %v12915_v43 = vld [vmem:[%s13086_s7 + $0x7d0] ss:$8 sps:$4 sm:$0xff]   ;;  %v12916_v2 = vld [vmem:[%s13086_s7 + $0x7e4] ss:$8 sps:$4 sm:$0xff]  }
 0x60a   : > { %v5779_v11 = vpop.f32.mrf.mxu1  ;;  %v8702_v47 = vpop.f32.mrf.mxu0  ;;  %v11638_v21 = vcombine.low %v11364_v62, %v11365_v20 }
 0x60b   : > { %v9653_v59 = vmax.f32 %v9397_v30, 0.0  ;;  %v9135_v19 = vadd.f32 %v8700_v41, %v5778_v48  ;;  %v16444_v41 = vld [vmem:[#allocation106_spill] sm:$0xff] }
 0x60c   : > { %v5780_v46 = vpop.f32.mrf.mxu1  ;;  %v8703_v35 = vpop.f32.mrf.mxu0  ;;  %v12918_v48 = vld [vmem:[%s13086_s7 + $0x9e4] ss:$8 sps:$4 sm:$0xff]  }
 0x60d   : > { %9910 = vst.msk [vmem:[%s14257_s9 + $0x618] sm:$0xff] %vm9714_vm1, %v9653_v59  ;;  %v9398_v6 = vadd.f32 %v15658_v1, %v9135_v19  ;;  %v5781_v57 = vadd.f32 %v5780_v46, %v16440_v26 }
 0x60e   : > { %v5782_v22 = vpop.f32.mrf.mxu1  ;;  %v8705_v36 = vpop.f32.mrf.mxu0 }
 0x60f   : > { %v9654_v24 = vmax.f32 %v9398_v6, 0.0  ;;  %v9136_v32 = vadd.f32 %v8703_v35, %v5781_v57  ;;  %v16445_v35 = vld [vmem:[#allocation108_spill] sm:$0xff]  ;;  %v11367_v6 = vld [vmem:[%s13086_s7 + $0x9e8] sm:$0xff] }
 0x610   : > { %v5785_v45 = vpop.f32.mrf.mxu1  ;;  %5976 = vmatmul.mubr.bf16.gmra.mxu1 %v12905_v10  ;;  %v8708_v50 = vpop.f32.mrf.mxu0  ;;  %8899 = vmatmul.mubr.bf16.gmra.mxu0 %v11634_v34  ;;  %v11366_v34 = vld [vmem:[%s13086_s7 + $0x9e0] sm:$0xff] }
 0x611   : > { %9911 = vst.msk [vmem:[%s14257_s9 + $0x620] sm:$0xff] %vm9714_vm1, %v9654_v24  ;;  %v9399_v17 = vadd.f32 %v15658_v1, %v9136_v32  ;;  %v5786_v8 = vadd.f32 %v5785_v45, %v16441_v31  ;;  %11110 = vmatprep.mubr.msk.bf16.mxu1 %vm1927_vm0, %v12906_v33  ;;  %11777 = vmatprep.mubr.msk.bf16.mxu0 %vm1927_vm0, %v12908_v49  ;;  %v12920_v24 = vld [vmem:[%s13086_s7 + $0x7e0] ss:$8 sps:$4 sm:$0xff]   ;;  %v12921_v31 = vld [vmem:[%s13086_s7 + $0x7f4] ss:$8 sps:$4 sm:$0xff]  }
 0x612   : > { %v5787_v54 = vpop.f32.mrf.mxu1  ;;  %v8710_v13 = vpop.f32.mrf.mxu0  ;;  %v11640_v32 = vcombine.low %v11366_v34, %v11367_v6 }
 0x613   : > { %v9655_v29 = vmax.f32 %v9399_v17, 0.0  ;;  %v9137_v12 = vadd.f32 %v8708_v50, %v5786_v8  ;;  %v16446_v50 = vld [vmem:[#allocation110_spill] sm:$0xff]  ;;  %v12923_v8 = vld [vmem:[%s13086_s7 + $0x9f4] ss:$8 sps:$4 sm:$0xff]  }
 0x614   : > { %v5788_v4 = vpop.f32.mrf.mxu1  ;;  %v8711_v15 = vpop.f32.mrf.mxu0 }
 0x615   : > { %9912 = vst.msk [vmem:[%s14257_s9 + $0x628] sm:$0xff] %vm9714_vm1, %v9655_v29  ;;  %v9400_v5 = vadd.f32 %v15658_v1, %v9137_v12  ;;  %v5789_v9 = vadd.f32 %v5788_v4, %v16442_v39 }
 0x616   : > { %v5790_v58 = vpop.f32.mrf.mxu1  ;;  %v8713_v42 = vpop.f32.mrf.mxu0 }
 0x617   : > { %v9656_v23 = vmax.f32 %v9400_v5, 0.0  ;;  %v9138_v40 = vadd.f32 %v8711_v15, %v5789_v9  ;;  %v16447_v15 = vld [vmem:[#allocation112_spill] sm:$0xff] }
 0x618   : > { %v5793_v28 = vpop.f32.mrf.mxu1  ;;  %5984 = vmatmul.mubr.bf16.gmra.mxu1 %v12910_v14  ;;  %v8716_v16 = vpop.f32.mrf.mxu0  ;;  %8907 = vmatmul.mubr.bf16.gmra.mxu0 %v11636_v18  ;;  %v11368_v18 = vld [vmem:[%s13086_s7 + $0x9f0] sm:$0xff]  ;;  %v11369_v5 = vld [vmem:[%s13086_s7 + $0x9f8] sm:$0xff] }
 0x619   : > { %9913 = vst.msk [vmem:[%s14257_s9 + $0x630] sm:$0xff] %vm9714_vm1, %v9656_v23  ;;  %v9401_v3 = vadd.f32 %v15658_v1, %v9138_v40  ;;  %v5794_v37 = vadd.f32 %v5793_v28, %v16443_v60  ;;  %11111 = vmatprep.mubr.msk.bf16.mxu1 %vm1927_vm0, %v12911_v25  ;;  %11778 = vmatprep.mubr.msk.bf16.mxu0 %vm1927_vm0, %v12913_v44  ;;  %v12925_v23 = vld [vmem:[%s13086_s7 + $0x7f0] ss:$8 sps:$4 sm:$0xff]  }
 0x61a   : > { %v5795_v7 = vpop.f32.mrf.mxu1  ;;  %v8718_v52 = vpop.f32.mrf.mxu0  ;;  %v11642_v40 = vcombine.low %v11368_v18, %v11369_v5 }
 0x61b   : > { %v9657_v51 = vmax.f32 %v9401_v3, 0.0  ;;  %v9139_v56 = vadd.f32 %v8716_v16, %v5794_v37  ;;  %v16448_v16 = vld [vmem:[#allocation114_spill] sm:$0xff] }
 0x61c   : > { %v5796_v27 = vpop.f32.mrf.mxu1  ;;  %v8719_v63 = vpop.f32.mrf.mxu0 }
 0x61d   : > { %9914 = vst.msk [vmem:[%s14257_s9 + $0x638] sm:$0xff] %vm9714_vm1, %v9657_v51  ;;  %v9402_v55 = vadd.f32 %v15658_v1, %v9139_v56  ;;  %v5797_v30 = vadd.f32 %v5796_v27, %v16444_v41  ;;  %v16449_v56 = vld [vmem:[#allocation116_spill] sm:$0xff] }
 0x61e   : > { %v5798_v61 = vpop.f32.mrf.mxu1  ;;  %v8721_v38 = vpop.f32.mrf.mxu0 }
 0x61f   : > { %v9658_v11 = vmax.f32 %v9402_v55, 0.0  ;;  %v9140_v47 = vadd.f32 %v8719_v63, %v5797_v30 }
 0x620   : > { %v5801_v59 = vpop.f32.mrf.mxu1  ;;  %5992 = vmatmul.mubr.bf16.gmra.mxu1 %v12915_v43  ;;  %v8724_v19 = vpop.f32.mrf.mxu0  ;;  %8915 = vmatmul.mubr.bf16.gmra.mxu0 %v11638_v21 }
 0x621   : > { %9915 = vst.msk [vmem:[%s14257_s9 + $0x640] sm:$0xff] %vm9714_vm1, %v9658_v11  ;;  %v9403_v46 = vadd.f32 %v15658_v1, %v9140_v47  ;;  %v5802_v10 = vadd.f32 %v5801_v59, %v16445_v35  ;;  %11112 = vmatprep.mubr.msk.bf16.mxu1 %vm1927_vm0, %v12916_v2  ;;  %11779 = vmatprep.mubr.msk.bf16.mxu0 %vm1927_vm0, %v12918_v48  ;;  %v16450_v48 = vld [vmem:[#allocation118_spill] sm:$0xff] }
 0x622   : > { %v5803_v26 = vpop.f32.mrf.mxu1  ;;  %v8726_v57 = vpop.f32.mrf.mxu0 }
 0x623   : > { %v9659_v33 = vmax.f32 %v9403_v46, 0.0  ;;  %v9141_v49 = vadd.f32 %v8724_v19, %v5802_v10  ;;  %v16451_v10 = vld [vmem:[#allocation120_spill] sm:$0xff] }
 0x624   : > { %v5804_v22 = vpop.f32.mrf.mxu1  ;;  %v8727_v36 = vpop.f32.mrf.mxu0 }
 0x625   : > { %9916 = vst.msk [vmem:[%s14257_s9 + $0x648] sm:$0xff] %vm9714_vm1, %v9659_v33  ;;  %v9404_v45 = vadd.f32 %v15658_v1, %v9141_v49  ;;  %v5805_v17 = vadd.f32 %v5804_v22, %v16446_v50 }
 0x626   : > { %v5806_v0 = vpop.f32.mrf.mxu1  ;;  %v8729_v53 = vpop.f32.mrf.mxu0 }
 0x627   : > { %v9660_v54 = vmax.f32 %v9404_v45, 0.0  ;;  %v9142_v13 = vadd.f32 %v8727_v36, %v5805_v17 }
 0x628   : > { %v5809_v29 = vpop.f32.mrf.mxu1  ;;  %6000 = vmatmul.mubr.bf16.gmra.mxu1 %v12920_v24  ;;  %v8732_v12 = vpop.f32.mrf.mxu0  ;;  %8923 = vmatmul.mubr.bf16.gmra.mxu0 %v11640_v32  ;;  %v16452_v24 = vld [vmem:[#allocation122_spill] sm:$0xff] }
 0x629   : > { %9917 = vst.msk [vmem:[%s14257_s9 + $0x650] sm:$0xff] %vm9714_vm1, %v9660_v54  ;;  %v9405_v4 = vadd.f32 %v15658_v1, %v9142_v13  ;;  %v5810_v14 = vadd.f32 %v5809_v29, %v16447_v15  ;;  %11113 = vmatprep.mubr.msk.bf16.mxu1 %vm1927_vm0, %v12921_v31  ;;  %11780 = vmatprep.mubr.msk.bf16.mxu0 %vm1927_vm0, %v12923_v8  ;;  %v16453_v54 = vld [vmem:[#allocation124_spill] sm:$0xff] }
 0x62a   : > { %v5811_v39 = vpop.f32.mrf.mxu1  ;;  %v8734_v9 = vpop.f32.mrf.mxu0 }
 0x62b   : > { %v9661_v25 = vmax.f32 %v9405_v4, 0.0  ;;  %v9143_v44 = vadd.f32 %v8732_v12, %v5810_v14  ;;  %v16454_v39 = vld [vmem:[#allocation126_spill] sm:$0xff] }
 0x62c   : > { %v5812_v58 = vpop.f32.mrf.mxu1  ;;  %v8735_v42 = vpop.f32.mrf.mxu0 }
 0x62d   : > { %9918 = vst.msk [vmem:[%s14257_s9 + $0x658] sm:$0xff] %vm9714_vm1, %v9661_v25  ;;  %v9406_v28 = vadd.f32 %v15658_v1, %v9143_v44  ;;  %v5813_v3 = vadd.f32 %v5812_v58, %v16448_v16  ;;  %v16455_v16 = vld [vmem:[#allocation128_spill] sm:$0xff] }
 0x62e   : > { %v5814_v60 = vpop.f32.mrf.mxu1  ;;  %v8737_v37 = vpop.f32.mrf.mxu0 }
 0x62f   : > { %v9662_v62 = vmax.f32 %v9406_v28, 0.0  ;;  %v9144_v20 = vadd.f32 %v8735_v42, %v5813_v3 }
 0x630   : > { %v5817_v7 = vpop.f32.mrf.mxu1  ;;  %6008 = vmatmul.mubr.bf16.gmra.mxu1 %v12925_v23  ;;  %v8740_v52 = vpop.f32.mrf.mxu0  ;;  %8931 = vmatmul.mubr.bf16.gmra.mxu0 %v11642_v40 }
 0x631   : > { %9919 = vst.msk [vmem:[%s14257_s9 + $0x660] sm:$0xff] %vm9714_vm1, %v9662_v62  ;;  %v9407_v51 = vadd.f32 %v15658_v1, %v9144_v20  ;;  %v5818_v27 = vadd.f32 %v5817_v7, %v16449_v56  ;;  %v16456_v56 = vld [vmem:[#allocation130_spill] sm:$0xff] }
 0x632   : > { %v5819_v63 = vpop.f32.mrf.mxu1  ;;  %v8742_v43 = vpop.f32.mrf.mxu0 }
 0x633   : > { %v9663_v21 = vmax.f32 %v9407_v51, 0.0  ;;  %v9145_v55 = vadd.f32 %v8740_v52, %v5818_v27 }
 0x634   : > { %v5820_v41 = vpop.f32.mrf.mxu1  ;;  %v8743_v30 = vpop.f32.mrf.mxu0 }
 0x635   : > { %9920 = vst.msk [vmem:[%s14257_s9 + $0x668] sm:$0xff] %vm9714_vm1, %v9663_v21  ;;  %v9408_v2 = vadd.f32 %v15658_v1, %v9145_v55  ;;  %v5821_v61 = vadd.f32 %v5820_v41, %v16450_v48  ;;  %v16457_v48 = vld [vmem:[#allocation132_spill] sm:$0xff] }
 0x636   : > { %v5822_v38 = vpop.f32.mrf.mxu1  ;;  %v8745_v11 = vpop.f32.mrf.mxu0 }
 0x637   : > { %v9664_v47 = vmax.f32 %v9408_v2, 0.0  ;;  %v9146_v59 = vadd.f32 %v8743_v30, %v5821_v61 }
 0x638   : > { %v5825_v19 = vpop.f32.mrf.mxu1  ;;  %v8748_v46 = vpop.f32.mrf.mxu0 }
 0x639   : > { %9921 = vst.msk [vmem:[%s14257_s9 + $0x670] sm:$0xff] %vm9714_vm1, %v9664_v47  ;;  %v9409_v35 = vadd.f32 %v15658_v1, %v9146_v59  ;;  %v5826_v34 = vadd.f32 %v5825_v19, %v16451_v10  ;;  %v16458_v10 = vld [vmem:[#allocation134_spill] sm:$0xff] }
 0x63a   : > { %v5827_v6 = vpop.f32.mrf.mxu1  ;;  %v8750_v26 = vpop.f32.mrf.mxu0 }
 0x63b   : > { %v9665_v57 = vmax.f32 %v9409_v35, 0.0  ;;  %v9147_v33 = vadd.f32 %v8748_v46, %v5826_v34 }
 0x63c   : > { %v5828_v49 = vpop.f32.mrf.mxu1  ;;  %v8751_v22 = vpop.f32.mrf.mxu0 }
 0x63d   : > { %9922 = vst.msk [vmem:[%s14257_s9 + $0x678] sm:$0xff] %vm9714_vm1, %v9665_v57  ;;  %v9410_v36 = vadd.f32 %v15658_v1, %v9147_v33  ;;  %v5829_v32 = vadd.f32 %v5828_v49, %v16452_v24  ;;  %v16459_v24 = vld [vmem:[#allocation136_spill] sm:$0xff] }
 0x63e   : > { %v5830_v45 = vpop.f32.mrf.mxu1  ;;  %v8753_v50 = vpop.f32.mrf.mxu0 }
 0x63f   : > { %v9666_v17 = vmax.f32 %v9410_v36, 0.0  ;;  %v9148_v31 = vadd.f32 %v8751_v22, %v5829_v32 }
 0x640   : > { %v5833_v8 = vpop.f32.mrf.mxu1  ;;  %v8756_v0 = vpop.f32.mrf.mxu0 }
 0x641   : > { %9923 = vst.msk [vmem:[%s14257_s9 + $0x680] sm:$0xff] %vm9714_vm1, %v9666_v17  ;;  %v9411_v53 = vadd.f32 %v15658_v1, %v9148_v31  ;;  %v5834_v13 = vadd.f32 %v5833_v8, %v16453_v54  ;;  %v16460_v54 = vld [vmem:[#allocation138_spill] sm:$0xff] }
 0x642   : > { %v5835_v29 = vpop.f32.mrf.mxu1  ;;  %v8758_v12 = vpop.f32.mrf.mxu0 }
 0x643   : > { %v9667_v4 = vmax.f32 %v9411_v53, 0.0  ;;  %v9149_v15 = vadd.f32 %v8756_v0, %v5834_v13 }
 0x644   : > { %v5836_v14 = vpop.f32.mrf.mxu1  ;;  %v8759_v18 = vpop.f32.mrf.mxu0 }
 0x645   : > { %9924 = vst.msk [vmem:[%s14257_s9 + $0x688] sm:$0xff] %vm9714_vm1, %v9667_v4  ;;  %v9412_v5 = vadd.f32 %v15658_v1, %v9149_v15  ;;  %v5837_v9 = vadd.f32 %v5836_v14, %v16454_v39  ;;  %v16461_v39 = vld [vmem:[#allocation140_spill] sm:$0xff] }
 0x646   : > { %v5838_v25 = vpop.f32.mrf.mxu1  ;;  %v8761_v44 = vpop.f32.mrf.mxu0 }
 0x647   : > { %v9668_v58 = vmax.f32 %v9412_v5, 0.0  ;;  %v9150_v42 = vadd.f32 %v8759_v18, %v5837_v9 }
 0x648   : > { %v5841_v23 = vpop.f32.mrf.mxu1  ;;  %v8764_v40 = vpop.f32.mrf.mxu0 }
 0x649   : > { %9925 = vst.msk [vmem:[%s14257_s9 + $0x690] sm:$0xff] %vm9714_vm1, %v9668_v58  ;;  %v9413_v28 = vadd.f32 %v15658_v1, %v9150_v42  ;;  %v5842_v3 = vadd.f32 %v5841_v23, %v16455_v16  ;;  %v16462_v16 = vld [vmem:[#allocation142_spill] sm:$0xff] }
 0x64a   : > { %v5843_v60 = vpop.f32.mrf.mxu1  ;;  %v8766_v37 = vpop.f32.mrf.mxu0 }
 0x64b   : > { %v9669_v62 = vmax.f32 %v9413_v28, 0.0  ;;  %v9151_v20 = vadd.f32 %v8764_v40, %v5842_v3 }
 0x64c   : > { %v5844_v7 = vpop.f32.mrf.mxu1  ;;  %v8767_v52 = vpop.f32.mrf.mxu0 }
 0x64d   : > { %9926 = vst.msk [vmem:[%s14257_s9 + $0x698] sm:$0xff] %vm9714_vm1, %v9669_v62  ;;  %v9414_v51 = vadd.f32 %v15658_v1, %v9151_v20  ;;  %v5845_v27 = vadd.f32 %v5844_v7, %v16456_v56  ;;  %v16463_v56 = vld [vmem:[#allocation144_spill] sm:$0xff] }
 0x64e   : > { %v5846_v63 = vpop.f32.mrf.mxu1  ;;  %v8769_v43 = vpop.f32.mrf.mxu0 }
 0x64f   : > { %v9670_v21 = vmax.f32 %v9414_v51, 0.0  ;;  %v9152_v55 = vadd.f32 %v8767_v52, %v5845_v27 }
 0x650   : > { %v5849_v41 = vpop.f32.mrf.mxu1  ;;  %v8772_v30 = vpop.f32.mrf.mxu0 }
 0x651   : > { %9927 = vst.msk [vmem:[%s14257_s9 + $0x6a0] sm:$0xff] %vm9714_vm1, %v9670_v21  ;;  %v9415_v2 = vadd.f32 %v15658_v1, %v9152_v55  ;;  %v5850_v61 = vadd.f32 %v5849_v41, %v16457_v48  ;;  %v16464_v48 = vld [vmem:[#allocation146_spill] sm:$0xff] }
 0x652   : > { %v5851_v38 = vpop.f32.mrf.mxu1  ;;  %v8774_v11 = vpop.f32.mrf.mxu0 }
 0x653   : > { %v9671_v47 = vmax.f32 %v9415_v2, 0.0  ;;  %v9153_v59 = vadd.f32 %v8772_v30, %v5850_v61 }
 0x654   : > { %v5852_v19 = vpop.f32.mrf.mxu1  ;;  %v8775_v46 = vpop.f32.mrf.mxu0 }
 0x655   : > { %9928 = vst.msk [vmem:[%s14257_s9 + $0x6a8] sm:$0xff] %vm9714_vm1, %v9671_v47  ;;  %v9416_v35 = vadd.f32 %v15658_v1, %v9153_v59  ;;  %v5853_v34 = vadd.f32 %v5852_v19, %v16458_v10  ;;  %v16465_v10 = vld [vmem:[#allocation148_spill] sm:$0xff] }
 0x656   : > { %v5854_v6 = vpop.f32.mrf.mxu1  ;;  %v8777_v26 = vpop.f32.mrf.mxu0 }
 0x657   : > { %v9672_v57 = vmax.f32 %v9416_v35, 0.0  ;;  %v9154_v33 = vadd.f32 %v8775_v46, %v5853_v34 }
 0x658   : > { %v5857_v49 = vpop.f32.mrf.mxu1  ;;  %v8780_v22 = vpop.f32.mrf.mxu0 }
 0x659   : > { %9929 = vst.msk [vmem:[%s14257_s9 + $0x6b0] sm:$0xff] %vm9714_vm1, %v9672_v57  ;;  %v9417_v36 = vadd.f32 %v15658_v1, %v9154_v33  ;;  %v5858_v32 = vadd.f32 %v5857_v49, %v16459_v24  ;;  %v16466_v24 = vld [vmem:[#allocation150_spill] sm:$0xff] }
 0x65a   : > { %v5859_v45 = vpop.f32.mrf.mxu1  ;;  %v8782_v50 = vpop.f32.mrf.mxu0 }
 0x65b   : > { %v9673_v17 = vmax.f32 %v9417_v36, 0.0  ;;  %v9155_v31 = vadd.f32 %v8780_v22, %v5858_v32 }
 0x65c   : > { %v5860_v8 = vpop.f32.mrf.mxu1  ;;  %v8783_v0 = vpop.f32.mrf.mxu0 }
 0x65d   : > { %9930 = vst.msk [vmem:[%s14257_s9 + $0x6b8] sm:$0xff] %vm9714_vm1, %v9673_v17  ;;  %v9418_v53 = vadd.f32 %v15658_v1, %v9155_v31  ;;  %v5861_v13 = vadd.f32 %v5860_v8, %v16460_v54  ;;  %v16467_v54 = vld [vmem:[#allocation152_spill] sm:$0xff] }
 0x65e   : > { %v5862_v29 = vpop.f32.mrf.mxu1  ;;  %v8785_v12 = vpop.f32.mrf.mxu0 }
 0x65f   : > { %v9674_v4 = vmax.f32 %v9418_v53, 0.0  ;;  %v9156_v15 = vadd.f32 %v8783_v0, %v5861_v13 }
 0x660   : > { %v5865_v14 = vpop.f32.mrf.mxu1  ;;  %v8788_v18 = vpop.f32.mrf.mxu0 }
 0x661   : > { %9931 = vst.msk [vmem:[%s14257_s9 + $0x6c0] sm:$0xff] %vm9714_vm1, %v9674_v4  ;;  %v9419_v5 = vadd.f32 %v15658_v1, %v9156_v15  ;;  %v5866_v9 = vadd.f32 %v5865_v14, %v16461_v39  ;;  %v16468_v39 = vld [vmem:[#allocation154_spill] sm:$0xff] }
 0x662   : > { %v5867_v25 = vpop.f32.mrf.mxu1  ;;  %v8790_v44 = vpop.f32.mrf.mxu0 }
 0x663   : > { %v9675_v58 = vmax.f32 %v9419_v5, 0.0  ;;  %v9157_v42 = vadd.f32 %v8788_v18, %v5866_v9 }
 0x664   : > { %v5868_v23 = vpop.f32.mrf.mxu1  ;;  %v8791_v40 = vpop.f32.mrf.mxu0 }
 0x665   : > { %9932 = vst.msk [vmem:[%s14257_s9 + $0x6c8] sm:$0xff] %vm9714_vm1, %v9675_v58  ;;  %v9420_v28 = vadd.f32 %v15658_v1, %v9157_v42  ;;  %v5869_v3 = vadd.f32 %v5868_v23, %v16462_v16  ;;  %v16469_v16 = vld [vmem:[#allocation156_spill] sm:$0xff] }
 0x666   : > { %v5870_v60 = vpop.f32.mrf.mxu1  ;;  %v8793_v37 = vpop.f32.mrf.mxu0 }
 0x667   : > { %v9676_v62 = vmax.f32 %v9420_v28, 0.0  ;;  %v9158_v20 = vadd.f32 %v8791_v40, %v5869_v3 }
 0x668   : > { %v5873_v7 = vpop.f32.mrf.mxu1  ;;  %v8796_v52 = vpop.f32.mrf.mxu0 }
 0x669   : > { %9933 = vst.msk [vmem:[%s14257_s9 + $0x6d0] sm:$0xff] %vm9714_vm1, %v9676_v62  ;;  %v9421_v51 = vadd.f32 %v15658_v1, %v9158_v20  ;;  %v5874_v27 = vadd.f32 %v5873_v7, %v16463_v56  ;;  %v16470_v56 = vld [vmem:[#allocation158_spill] sm:$0xff] }
 0x66a   : > { %v5875_v63 = vpop.f32.mrf.mxu1  ;;  %v8798_v43 = vpop.f32.mrf.mxu0 }
 0x66b   : > { %v9677_v21 = vmax.f32 %v9421_v51, 0.0  ;;  %v9159_v55 = vadd.f32 %v8796_v52, %v5874_v27 }
 0x66c   : > { %v5876_v41 = vpop.f32.mrf.mxu1  ;;  %v8799_v30 = vpop.f32.mrf.mxu0 }
 0x66d   : > { %9934 = vst.msk [vmem:[%s14257_s9 + $0x6d8] sm:$0xff] %vm9714_vm1, %v9677_v21  ;;  %v9422_v2 = vadd.f32 %v15658_v1, %v9159_v55  ;;  %v5877_v61 = vadd.f32 %v5876_v41, %v16464_v48  ;;  %v16471_v48 = vld [vmem:[#allocation160_spill] sm:$0xff] }
 0x66e   : > { %v5878_v38 = vpop.f32.mrf.mxu1  ;;  %v8801_v11 = vpop.f32.mrf.mxu0 }
 0x66f   : > { %v9678_v47 = vmax.f32 %v9422_v2, 0.0  ;;  %v9160_v59 = vadd.f32 %v8799_v30, %v5877_v61 }
 0x670   : > { %v5881_v19 = vpop.f32.mrf.mxu1  ;;  %v8804_v46 = vpop.f32.mrf.mxu0 }
 0x671   : > { %9935 = vst.msk [vmem:[%s14257_s9 + $0x6e0] sm:$0xff] %vm9714_vm1, %v9678_v47  ;;  %v9423_v35 = vadd.f32 %v15658_v1, %v9160_v59  ;;  %v5882_v34 = vadd.f32 %v5881_v19, %v16465_v10  ;;  %v16472_v10 = vld [vmem:[#allocation162_spill] sm:$0xff] }
 0x672   : > { %v5883_v6 = vpop.f32.mrf.mxu1  ;;  %v8806_v26 = vpop.f32.mrf.mxu0 }
 0x673   : > { %v9679_v57 = vmax.f32 %v9423_v35, 0.0  ;;  %v9161_v33 = vadd.f32 %v8804_v46, %v5882_v34 }
 0x674   : > { %v5884_v49 = vpop.f32.mrf.mxu1  ;;  %v8807_v22 = vpop.f32.mrf.mxu0 }
 0x675   : > { %9936 = vst.msk [vmem:[%s14257_s9 + $0x6e8] sm:$0xff] %vm9714_vm1, %v9679_v57  ;;  %v9424_v36 = vadd.f32 %v15658_v1, %v9161_v33  ;;  %v5885_v32 = vadd.f32 %v5884_v49, %v16466_v24  ;;  %v16473_v24 = vld [vmem:[#allocation164_spill] sm:$0xff] }
 0x676   : > { %v5886_v45 = vpop.f32.mrf.mxu1  ;;  %v8809_v50 = vpop.f32.mrf.mxu0 }
 0x677   : > { %v9680_v17 = vmax.f32 %v9424_v36, 0.0  ;;  %v9162_v31 = vadd.f32 %v8807_v22, %v5885_v32 }
 0x678   : > { %v5889_v8 = vpop.f32.mrf.mxu1  ;;  %v8812_v0 = vpop.f32.mrf.mxu0 }
 0x679   : > { %9937 = vst.msk [vmem:[%s14257_s9 + $0x6f0] sm:$0xff] %vm9714_vm1, %v9680_v17  ;;  %v9425_v53 = vadd.f32 %v15658_v1, %v9162_v31  ;;  %v5890_v13 = vadd.f32 %v5889_v8, %v16467_v54 }
 0x67a   : > { %v5891_v29 = vpop.f32.mrf.mxu1  ;;  %v8814_v12 = vpop.f32.mrf.mxu0 }
 0x67b   : > { %v9681_v4 = vmax.f32 %v9425_v53, 0.0  ;;  %v9163_v15 = vadd.f32 %v8812_v0, %v5890_v13  ;;  %v15917_v53 = vld [vmem:[%s16075_s2] ss:$0 sm:$0xff]  ;;  %v16474_v13 = vld [vmem:[#allocation166_spill] sm:$0xff] }
 0x67c   : > { %v5892_v14 = vpop.f32.mrf.mxu1  ;;  %v8815_v18 = vpop.f32.mrf.mxu0 }
 0x67d   : > { %9938 = vst.msk [vmem:[%s14257_s9 + $0x6f8] sm:$0xff] %vm9714_vm1, %v9681_v4  ;;  %v9426_v5 = vadd.f32 %v15658_v1, %v9163_v15  ;;  %v5893_v9 = vadd.f32 %v5892_v14, %v16468_v39  ;;  %v16475_v39 = vld [vmem:[#allocation168_spill] sm:$0xff] }
 0x67e   : > { %v5894_v25 = vpop.f32.mrf.mxu1  ;;  %v8817_v44 = vpop.f32.mrf.mxu0 }
 0x67f   : > { %v9682_v58 = vmax.f32 %v9426_v5, 0.0  ;;  %v9164_v42 = vadd.f32 %v8815_v18, %v5893_v9 }
 0x680   : > { %v5897_v23 = vpop.f32.mrf.mxu1  ;;  %v8820_v40 = vpop.f32.mrf.mxu0 }
 0x681   : > { %9939 = vst.msk [vmem:[%s14257_s9 + $0x700] sm:$0xff] %vm9714_vm1, %v9682_v58  ;;  %v9427_v28 = vadd.f32 %v15658_v1, %v9164_v42  ;;  %v5898_v3 = vadd.f32 %v5897_v23, %v16469_v16  ;;  %v16476_v16 = vld [vmem:[#allocation170_spill] sm:$0xff] }
 0x682   : > { %v5899_v60 = vpop.f32.mrf.mxu1  ;;  %v8822_v37 = vpop.f32.mrf.mxu0 }
 0x683   : > { %v9683_v62 = vmax.f32 %v9427_v28, 0.0  ;;  %v9165_v20 = vadd.f32 %v8820_v40, %v5898_v3 }
 0x684   : > { %v5900_v7 = vpop.f32.mrf.mxu1  ;;  %v8823_v52 = vpop.f32.mrf.mxu0 }
 0x685   : > { %9940 = vst.msk [vmem:[%s14257_s9 + $0x708] sm:$0xff] %vm9714_vm1, %v9683_v62  ;;  %v9428_v51 = vadd.f32 %v15658_v1, %v9165_v20  ;;  %v5901_v27 = vadd.f32 %v5900_v7, %v16470_v56  ;;  %v16477_v56 = vld [vmem:[#allocation172_spill] sm:$0xff] }
 0x686   : > { %v5902_v63 = vpop.f32.mrf.mxu1  ;;  %v8825_v43 = vpop.f32.mrf.mxu0 }
 0x687   : > { %v9684_v21 = vmax.f32 %v9428_v51, 0.0  ;;  %v9166_v55 = vadd.f32 %v8823_v52, %v5901_v27 }
 0x688   : > { %v5905_v41 = vpop.f32.mrf.mxu1  ;;  %v8828_v30 = vpop.f32.mrf.mxu0 }
 0x689   : > { %9941 = vst.msk [vmem:[%s14257_s9 + $0x710] sm:$0xff] %vm9714_vm1, %v9684_v21  ;;  %v9429_v2 = vadd.f32 %v15658_v1, %v9166_v55  ;;  %v5906_v61 = vadd.f32 %v5905_v41, %v16471_v48  ;;  %v16478_v48 = vld [vmem:[#allocation174_spill] sm:$0xff] }
 0x68a   : > { %v5907_v38 = vpop.f32.mrf.mxu1  ;;  %v8830_v11 = vpop.f32.mrf.mxu0 }
 0x68b   : > { %v9685_v47 = vmax.f32 %v9429_v2, 0.0  ;;  %v9167_v59 = vadd.f32 %v8828_v30, %v5906_v61 }
 0x68c   : > { %v5908_v19 = vpop.f32.mrf.mxu1  ;;  %v8831_v46 = vpop.f32.mrf.mxu0 }
 0x68d   : > { %9942 = vst.msk [vmem:[%s14257_s9 + $0x718] sm:$0xff] %vm9714_vm1, %v9685_v47  ;;  %v9430_v35 = vadd.f32 %v15658_v1, %v9167_v59  ;;  %v5909_v34 = vadd.f32 %v5908_v19, %v16472_v10  ;;  %v16479_v10 = vld [vmem:[#allocation176_spill] sm:$0xff] }
 0x68e   : > { %v5910_v6 = vpop.f32.mrf.mxu1  ;;  %v8833_v26 = vpop.f32.mrf.mxu0 }
 0x68f   : > { %v9686_v57 = vmax.f32 %v9430_v35, 0.0  ;;  %v9168_v33 = vadd.f32 %v8831_v46, %v5909_v34 }
 0x690   : > { %v5913_v49 = vpop.f32.mrf.mxu1  ;;  %v8836_v22 = vpop.f32.mrf.mxu0 }
 0x691   : > { %9943 = vst.msk [vmem:[%s14257_s9 + $0x720] sm:$0xff] %vm9714_vm1, %v9686_v57  ;;  %v9431_v36 = vadd.f32 %v15658_v1, %v9168_v33  ;;  %v5914_v32 = vadd.f32 %v5913_v49, %v16473_v24  ;;  %v16480_v24 = vld [vmem:[#allocation178_spill] sm:$0xff] }
 0x692   : > { %v5915_v45 = vpop.f32.mrf.mxu1  ;;  %v8838_v50 = vpop.f32.mrf.mxu0 }
 0x693   : > { %v9687_v17 = vmax.f32 %v9431_v36, 0.0  ;;  %v9169_v31 = vadd.f32 %v8836_v22, %v5914_v32 }
 0x694   : > { %v5916_v8 = vpop.f32.mrf.mxu1  ;;  %v8839_v0 = vpop.f32.mrf.mxu0 }
 0x695   : > { %9944 = vst.msk [vmem:[%s14257_s9 + $0x728] sm:$0xff] %vm9714_vm1, %v9687_v17  ;;  %v9432_v54 = vadd.f32 %v15917_v53, %v9169_v31  ;;  %v5917_v1 = vadd.f32 %v5916_v8, %v16474_v13  ;;  %v16481_v13 = vld [vmem:[#allocation180_spill] sm:$0xff] }
 0x696   : > { %v5918_v29 = vpop.f32.mrf.mxu1  ;;  %v8841_v12 = vpop.f32.mrf.mxu0 }
 0x697   : > { %v9688_v4 = vmax.f32 %v9432_v54, 0.0  ;;  %v9170_v15 = vadd.f32 %v8839_v0, %v5917_v1 }
 0x698   : > { %v5921_v14 = vpop.f32.mrf.mxu1  ;;  %v8844_v18 = vpop.f32.mrf.mxu0 }
 0x699   : > { %9945 = vst.msk [vmem:[%s14257_s9 + $0x730] sm:$0xff] %vm9714_vm1, %v9688_v4  ;;  %v9433_v5 = vadd.f32 %v15917_v53, %v9170_v15  ;;  %v5922_v9 = vadd.f32 %v5921_v14, %v16475_v39  ;;  %v16482_v39 = vld [vmem:[#allocation182_spill] sm:$0xff] }
 0x69a   : > { %v5923_v25 = vpop.f32.mrf.mxu1  ;;  %v8846_v44 = vpop.f32.mrf.mxu0 }
 0x69b   : > { %v9689_v58 = vmax.f32 %v9433_v5, 0.0  ;;  %v9171_v42 = vadd.f32 %v8844_v18, %v5922_v9 }
 0x69c   : > { %v5924_v23 = vpop.f32.mrf.mxu1  ;;  %v8847_v40 = vpop.f32.mrf.mxu0 }
 0x69d   : > { %9946 = vst.msk [vmem:[%s14257_s9 + $0x738] sm:$0xff] %vm9714_vm1, %v9689_v58  ;;  %v9434_v28 = vadd.f32 %v15917_v53, %v9171_v42  ;;  %v5925_v3 = vadd.f32 %v5924_v23, %v16476_v16  ;;  %v16483_v16 = vld [vmem:[#allocation184_spill] sm:$0xff] }
 0x69e   : > { %v5926_v60 = vpop.f32.mrf.mxu1  ;;  %v8849_v37 = vpop.f32.mrf.mxu0 }
 0x69f   : > { %v9690_v62 = vmax.f32 %v9434_v28, 0.0  ;;  %v9172_v20 = vadd.f32 %v8847_v40, %v5925_v3 }
 0x6a0   : > { %v5929_v7 = vpop.f32.mrf.mxu1  ;;  %v8852_v52 = vpop.f32.mrf.mxu0 }
 0x6a1   : > { %9947 = vst.msk [vmem:[%s14257_s9 + $0x740] sm:$0xff] %vm9714_vm1, %v9690_v62  ;;  %v9435_v51 = vadd.f32 %v15917_v53, %v9172_v20  ;;  %v5930_v27 = vadd.f32 %v5929_v7, %v16477_v56  ;;  %v16484_v56 = vld [vmem:[#allocation186_spill] sm:$0xff] }
 0x6a2   : > { %v5931_v63 = vpop.f32.mrf.mxu1  ;;  %v8854_v43 = vpop.f32.mrf.mxu0 }
 0x6a3   : > { %v9691_v21 = vmax.f32 %v9435_v51, 0.0  ;;  %v9173_v55 = vadd.f32 %v8852_v52, %v5930_v27 }
 0x6a4   : > { %v5932_v41 = vpop.f32.mrf.mxu1  ;;  %v8855_v30 = vpop.f32.mrf.mxu0 }
 0x6a5   : > { %9948 = vst.msk [vmem:[%s14257_s9 + $0x748] sm:$0xff] %vm9714_vm1, %v9691_v21  ;;  %v9436_v2 = vadd.f32 %v15917_v53, %v9173_v55  ;;  %v5933_v61 = vadd.f32 %v5932_v41, %v16478_v48  ;;  %v16485_v48 = vld [vmem:[#allocation188_spill] sm:$0xff] }
 0x6a6   : > { %v5934_v38 = vpop.f32.mrf.mxu1  ;;  %v8857_v11 = vpop.f32.mrf.mxu0 }
 0x6a7   : > { %v9692_v47 = vmax.f32 %v9436_v2, 0.0  ;;  %v9174_v59 = vadd.f32 %v8855_v30, %v5933_v61 }
 0x6a8   : > { %v5937_v19 = vpop.f32.mrf.mxu1  ;;  %v8860_v46 = vpop.f32.mrf.mxu0 }
 0x6a9   : > { %9949 = vst.msk [vmem:[%s14257_s9 + $0x750] sm:$0xff] %vm9714_vm1, %v9692_v47  ;;  %v9437_v35 = vadd.f32 %v15917_v53, %v9174_v59  ;;  %v5938_v34 = vadd.f32 %v5937_v19, %v16479_v10  ;;  %v16486_v10 = vld [vmem:[#allocation190_spill] sm:$0xff] }
 0x6aa   : > { %v5939_v6 = vpop.f32.mrf.mxu1  ;;  %v8862_v26 = vpop.f32.mrf.mxu0 }
 0x6ab   : > { %v9693_v57 = vmax.f32 %v9437_v35, 0.0  ;;  %v9175_v33 = vadd.f32 %v8860_v46, %v5938_v34 }
 0x6ac   : > { %v5940_v49 = vpop.f32.mrf.mxu1  ;;  %v8863_v22 = vpop.f32.mrf.mxu0 }
 0x6ad   : > { %9950 = vst.msk [vmem:[%s14257_s9 + $0x758] sm:$0xff] %vm9714_vm1, %v9693_v57  ;;  %v9438_v36 = vadd.f32 %v15917_v53, %v9175_v33  ;;  %v5941_v32 = vadd.f32 %v5940_v49, %v16480_v24  ;;  %v16487_v24 = vld [vmem:[#allocation192_spill] sm:$0xff] }
 0x6ae   : > { %v5942_v45 = vpop.f32.mrf.mxu1  ;;  %v8865_v50 = vpop.f32.mrf.mxu0 }
 0x6af   : > { %v9694_v17 = vmax.f32 %v9438_v36, 0.0  ;;  %v9176_v31 = vadd.f32 %v8863_v22, %v5941_v32 }
 0x6b0   : > { %v5945_v8 = vpop.f32.mrf.mxu1  ;;  %v8868_v0 = vpop.f32.mrf.mxu0 }
 0x6b1   : > { %9951 = vst.msk [vmem:[%s14257_s9 + $0x760] sm:$0xff] %vm9714_vm1, %v9694_v17  ;;  %v9439_v54 = vadd.f32 %v15917_v53, %v9176_v31  ;;  %v5946_v1 = vadd.f32 %v5945_v8, %v16481_v13  ;;  %v16488_v13 = vld [vmem:[#allocation194_spill] sm:$0xff] }
 0x6b2   : > { %v5947_v29 = vpop.f32.mrf.mxu1  ;;  %v8870_v12 = vpop.f32.mrf.mxu0 }
 0x6b3   : > { %v9695_v4 = vmax.f32 %v9439_v54, 0.0  ;;  %v9177_v15 = vadd.f32 %v8868_v0, %v5946_v1 }
 0x6b4   : > { %v5948_v14 = vpop.f32.mrf.mxu1  ;;  %v8871_v18 = vpop.f32.mrf.mxu0 }
 0x6b5   : > { %9952 = vst.msk [vmem:[%s14257_s9 + $0x768] sm:$0xff] %vm9714_vm1, %v9695_v4  ;;  %v9440_v5 = vadd.f32 %v15917_v53, %v9177_v15  ;;  %v5949_v9 = vadd.f32 %v5948_v14, %v16482_v39  ;;  %v16489_v39 = vld [vmem:[#allocation196_spill] sm:$0xff] }
 0x6b6   : > { %v5950_v25 = vpop.f32.mrf.mxu1  ;;  %v8873_v44 = vpop.f32.mrf.mxu0 }
 0x6b7   : > { %v9696_v58 = vmax.f32 %v9440_v5, 0.0  ;;  %v9178_v42 = vadd.f32 %v8871_v18, %v5949_v9 }
 0x6b8   : > { %v5953_v23 = vpop.f32.mrf.mxu1  ;;  %v8876_v40 = vpop.f32.mrf.mxu0 }
 0x6b9   : > { %9953 = vst.msk [vmem:[%s14257_s9 + $0x770] sm:$0xff] %vm9714_vm1, %v9696_v58  ;;  %v9441_v28 = vadd.f32 %v15917_v53, %v9178_v42  ;;  %v5954_v3 = vadd.f32 %v5953_v23, %v16483_v16  ;;  %v16490_v16 = vld [vmem:[#allocation198_spill] sm:$0xff] }
 0x6ba   : > { %v5955_v60 = vpop.f32.mrf.mxu1  ;;  %v8878_v37 = vpop.f32.mrf.mxu0 }
 0x6bb   : > { %v9697_v62 = vmax.f32 %v9441_v28, 0.0  ;;  %v9179_v20 = vadd.f32 %v8876_v40, %v5954_v3 }
 0x6bc   : > { %v5956_v7 = vpop.f32.mrf.mxu1  ;;  %v8879_v52 = vpop.f32.mrf.mxu0 }
 0x6bd   : > { %9954 = vst.msk [vmem:[%s14257_s9 + $0x778] sm:$0xff] %vm9714_vm1, %v9697_v62  ;;  %v9442_v51 = vadd.f32 %v15917_v53, %v9179_v20  ;;  %v5957_v27 = vadd.f32 %v5956_v7, %v16484_v56  ;;  %v16491_v56 = vld [vmem:[#allocation200_spill] sm:$0xff] }
 0x6be   : > { %v5958_v63 = vpop.f32.mrf.mxu1  ;;  %v8881_v43 = vpop.f32.mrf.mxu0 }
 0x6bf   : > { %v9698_v21 = vmax.f32 %v9442_v51, 0.0  ;;  %v9180_v55 = vadd.f32 %v8879_v52, %v5957_v27 }
 0x6c0   : > { %v5961_v41 = vpop.f32.mrf.mxu1  ;;  %v8884_v30 = vpop.f32.mrf.mxu0 }
 0x6c1   : > { %9955 = vst.msk [vmem:[%s14257_s9 + $0x780] sm:$0xff] %vm9714_vm1, %v9698_v21  ;;  %v9443_v2 = vadd.f32 %v15917_v53, %v9180_v55  ;;  %v5962_v61 = vadd.f32 %v5961_v41, %v16485_v48  ;;  %v16492_v48 = vld [vmem:[#allocation202_spill] sm:$0xff] }
 0x6c2   : > { %v5963_v38 = vpop.f32.mrf.mxu1  ;;  %v8886_v11 = vpop.f32.mrf.mxu0 }
 0x6c3   : > { %v9699_v47 = vmax.f32 %v9443_v2, 0.0  ;;  %v9181_v59 = vadd.f32 %v8884_v30, %v5962_v61 }
 0x6c4   : > { %v5964_v19 = vpop.f32.mrf.mxu1  ;;  %v8887_v46 = vpop.f32.mrf.mxu0 }
 0x6c5   : > { %9956 = vst.msk [vmem:[%s14257_s9 + $0x788] sm:$0xff] %vm9714_vm1, %v9699_v47  ;;  %v9444_v35 = vadd.f32 %v15917_v53, %v9181_v59  ;;  %v5965_v34 = vadd.f32 %v5964_v19, %v16486_v10  ;;  %v16493_v10 = vld [vmem:[#allocation204_spill] sm:$0xff] }
 0x6c6   : > { %v5966_v6 = vpop.f32.mrf.mxu1  ;;  %v8889_v26 = vpop.f32.mrf.mxu0 }
 0x6c7   : > { %v9700_v57 = vmax.f32 %v9444_v35, 0.0  ;;  %v9182_v33 = vadd.f32 %v8887_v46, %v5965_v34 }
 0x6c8   : > { %v5969_v49 = vpop.f32.mrf.mxu1  ;;  %v8892_v22 = vpop.f32.mrf.mxu0 }
 0x6c9   : > { %9957 = vst.msk [vmem:[%s14257_s9 + $0x790] sm:$0xff] %vm9714_vm1, %v9700_v57  ;;  %v9445_v36 = vadd.f32 %v15917_v53, %v9182_v33  ;;  %v5970_v32 = vadd.f32 %v5969_v49, %v16487_v24  ;;  %v16494_v24 = vld [vmem:[#allocation206_spill] sm:$0xff] }
 0x6ca   : > { %v5971_v45 = vpop.f32.mrf.mxu1  ;;  %v8894_v50 = vpop.f32.mrf.mxu0 }
 0x6cb   : > { %v9701_v17 = vmax.f32 %v9445_v36, 0.0  ;;  %v9183_v31 = vadd.f32 %v8892_v22, %v5970_v32 }
 0x6cc   : > { %v5972_v8 = vpop.f32.mrf.mxu1  ;;  %v8895_v0 = vpop.f32.mrf.mxu0 }
 0x6cd   : > { %9958 = vst.msk [vmem:[%s14257_s9 + $0x798] sm:$0xff] %vm9714_vm1, %v9701_v17  ;;  %v9446_v54 = vadd.f32 %v15917_v53, %v9183_v31  ;;  %v5973_v1 = vadd.f32 %v5972_v8, %v16488_v13  ;;  %v16495_v13 = vld [vmem:[#allocation208_spill] sm:$0xff] }
 0x6ce   : > { %v5974_v29 = vpop.f32.mrf.mxu1  ;;  %v8897_v12 = vpop.f32.mrf.mxu0 }
 0x6cf   : > { %v9702_v4 = vmax.f32 %v9446_v54, 0.0  ;;  %v9184_v15 = vadd.f32 %v8895_v0, %v5973_v1 }
 0x6d0   : > { %v5977_v14 = vpop.f32.mrf.mxu1  ;;  %v8900_v18 = vpop.f32.mrf.mxu0 }
 0x6d1   : > { %9959 = vst.msk [vmem:[%s14257_s9 + $0x7a0] sm:$0xff] %vm9714_vm1, %v9702_v4  ;;  %v9447_v5 = vadd.f32 %v15917_v53, %v9184_v15  ;;  %v5978_v9 = vadd.f32 %v5977_v14, %v16489_v39  ;;  %v16496_v39 = vld [vmem:[#allocation210_spill] sm:$0xff] }
 0x6d2   : > { %v5979_v25 = vpop.f32.mrf.mxu1  ;;  %v8902_v44 = vpop.f32.mrf.mxu0 }
 0x6d3   : > { %v9703_v58 = vmax.f32 %v9447_v5, 0.0  ;;  %v9185_v42 = vadd.f32 %v8900_v18, %v5978_v9 }
 0x6d4   : > { %v5980_v23 = vpop.f32.mrf.mxu1  ;;  %v8903_v40 = vpop.f32.mrf.mxu0 }
 0x6d5   : > { %9960 = vst.msk [vmem:[%s14257_s9 + $0x7a8] sm:$0xff] %vm9714_vm1, %v9703_v58  ;;  %v9448_v28 = vadd.f32 %v15917_v53, %v9185_v42  ;;  %v5981_v3 = vadd.f32 %v5980_v23, %v16490_v16  ;;  %v16497_v16 = vld [vmem:[#allocation212_spill] sm:$0xff] }
 0x6d6   : > { %v5982_v60 = vpop.f32.mrf.mxu1  ;;  %v8905_v37 = vpop.f32.mrf.mxu0 }
 0x6d7   : > { %v9704_v62 = vmax.f32 %v9448_v28, 0.0  ;;  %v9186_v20 = vadd.f32 %v8903_v40, %v5981_v3 }
 0x6d8   : > { %v5985_v7 = vpop.f32.mrf.mxu1  ;;  %v8908_v52 = vpop.f32.mrf.mxu0 }
 0x6d9   : > { %9961 = vst.msk [vmem:[%s14257_s9 + $0x7b0] sm:$0xff] %vm9714_vm1, %v9704_v62  ;;  %v9449_v51 = vadd.f32 %v15917_v53, %v9186_v20  ;;  %v5986_v27 = vadd.f32 %v5985_v7, %v16491_v56  ;;  %v16498_v56 = vld [vmem:[#allocation214_spill] sm:$0xff] }
 0x6da   : > { %v5987_v63 = vpop.f32.mrf.mxu1  ;;  %v8910_v43 = vpop.f32.mrf.mxu0 }
 0x6db   : > { %v9705_v21 = vmax.f32 %v9449_v51, 0.0  ;;  %v9187_v55 = vadd.f32 %v8908_v52, %v5986_v27 }
 0x6dc   : > { %v5988_v41 = vpop.f32.mrf.mxu1  ;;  %v8911_v30 = vpop.f32.mrf.mxu0 }
 0x6dd   : > { %9962 = vst.msk [vmem:[%s14257_s9 + $0x7b8] sm:$0xff] %vm9714_vm1, %v9705_v21  ;;  %v9450_v2 = vadd.f32 %v15917_v53, %v9187_v55  ;;  %v5989_v61 = vadd.f32 %v5988_v41, %v16492_v48 }
 0x6de   : > { %v5990_v38 = vpop.f32.mrf.mxu1  ;;  %v8913_v11 = vpop.f32.mrf.mxu0 }
 0x6df   : > { %v9706_v47 = vmax.f32 %v9450_v2, 0.0  ;;  %v9188_v59 = vadd.f32 %v8911_v30, %v5989_v61 }
 0x6e0   : > { %v5993_v19 = vpop.f32.mrf.mxu1  ;;  %v8916_v46 = vpop.f32.mrf.mxu0 }
 0x6e1   : > { %9963 = vst.msk [vmem:[%s14257_s9 + $0x7c0] sm:$0xff] %vm9714_vm1, %v9706_v47  ;;  %v9451_v35 = vadd.f32 %v15917_v53, %v9188_v59  ;;  %v5994_v34 = vadd.f32 %v5993_v19, %v16493_v10 }
 0x6e2   : > { %v5995_v6 = vpop.f32.mrf.mxu1  ;;  %v8918_v26 = vpop.f32.mrf.mxu0 }
 0x6e3   : > { %v9707_v57 = vmax.f32 %v9451_v35, 0.0  ;;  %v9189_v33 = vadd.f32 %v8916_v46, %v5994_v34 }
 0x6e4   : > { %v5996_v49 = vpop.f32.mrf.mxu1  ;;  %v8919_v22 = vpop.f32.mrf.mxu0 }
 0x6e5   : > { %9964 = vst.msk [vmem:[%s14257_s9 + $0x7c8] sm:$0xff] %vm9714_vm1, %v9707_v57  ;;  %v9452_v36 = vadd.f32 %v15917_v53, %v9189_v33  ;;  %v5997_v32 = vadd.f32 %v5996_v49, %v16494_v24 }
 0x6e6   : > { %v5998_v45 = vpop.f32.mrf.mxu1  ;;  %v8921_v50 = vpop.f32.mrf.mxu0 }
 0x6e7   : > { %v9708_v17 = vmax.f32 %v9452_v36, 0.0  ;;  %v9190_v31 = vadd.f32 %v8919_v22, %v5997_v32 }
 0x6e8   : > { %v6001_v8 = vpop.f32.mrf.mxu1  ;;  %v8924_v0 = vpop.f32.mrf.mxu0 }
 0x6e9   : > { %9965 = vst.msk [vmem:[%s14257_s9 + $0x7d0] sm:$0xff] %vm9714_vm1, %v9708_v17  ;;  %v9453_v54 = vadd.f32 %v15917_v53, %v9190_v31  ;;  %v6002_v1 = vadd.f32 %v6001_v8, %v16495_v13 }
 0x6ea   : > { %v6003_v29 = vpop.f32.mrf.mxu1  ;;  %v8926_v12 = vpop.f32.mrf.mxu0 }
 0x6eb   : > { %v9709_v4 = vmax.f32 %v9453_v54, 0.0  ;;  %v9191_v15 = vadd.f32 %v8924_v0, %v6002_v1 }
 0x6ec   : > { %v6004_v14 = vpop.f32.mrf.mxu1  ;;  %v8927_v18 = vpop.f32.mrf.mxu0 }
 0x6ed   : > { %9966 = vst.msk [vmem:[%s14257_s9 + $0x7d8] sm:$0xff] %vm9714_vm1, %v9709_v4  ;;  %v9454_v5 = vadd.f32 %v15917_v53, %v9191_v15  ;;  %v6005_v9 = vadd.f32 %v6004_v14, %v16496_v39 }
 0x6ee   : > { %v6006_v25 = vpop.f32.mrf.mxu1  ;;  %v8929_v44 = vpop.f32.mrf.mxu0 }
 0x6ef   : > { %v9710_v58 = vmax.f32 %v9454_v5, 0.0  ;;  %v9192_v42 = vadd.f32 %v8927_v18, %v6005_v9 }
 0x6f0   : > { %v6009_v23 = vpop.f32.mrf.mxu1  ;;  %v8932_v40 = vpop.f32.mrf.mxu0 }
 0x6f1   : > { %9967 = vst.msk [vmem:[%s14257_s9 + $0x7e0] sm:$0xff] %vm9714_vm1, %v9710_v58  ;;  %v9455_v28 = vadd.f32 %v15917_v53, %v9192_v42  ;;  %v6010_v3 = vadd.f32 %v6009_v23, %v16497_v16 }
 0x6f2   : > { %v6011_v60 = vpop.f32.mrf.mxu1  ;;  %v8934_v37 = vpop.f32.mrf.mxu0 }
 0x6f3   : > { %v9711_v62 = vmax.f32 %v9455_v28, 0.0  ;;  %v9193_v20 = vadd.f32 %v8932_v40, %v6010_v3 }
 0x6f4   : > { %v6012_v7 = vpop.f32.mrf.mxu1  ;;  %v8935_v52 = vpop.f32.mrf.mxu0 }
 0x6f5   : > { %9968 = vst.msk [vmem:[%s14257_s9 + $0x7e8] sm:$0xff] %vm9714_vm1, %v9711_v62  ;;  %v9456_v51 = vadd.f32 %v15917_v53, %v9193_v20  ;;  %v6013_v27 = vadd.f32 %v6012_v7, %v16498_v56 }
 0x6f6   : > { %v6014_v63 = vpop.f32.mrf.mxu1  ;;  %v8937_v43 = vpop.f32.mrf.mxu0 }
 0x6f7   : > { %v9712_v21 = vmax.f32 %v9456_v51, 0.0  ;;  %v9194_v55 = vadd.f32 %v8935_v52, %v6013_v27 }
 0x6f9   : > { %9969 = vst.msk [vmem:[%s14257_s9 + $0x7f0] sm:$0xff] %vm9714_vm1, %v9712_v21  ;;  %v9457_v41 = vadd.f32 %v15917_v53, %v9194_v55 }
 0x6fb   : > { %v9713_v30 = vmax.f32 %v9457_v41, 0.0 }
 0x6fd   : > { %9970 = vst.msk [vmem:[%s14257_s9 + $0x7f8] sm:$0xff] %vm9714_vm1, %v9713_v30 }
 0x6fe   : > { %12945 = shalt.err (!%p12942_p3)
}
 0x6ff   : > { %s12946_s4 = scalar_lea.hbm %s16025_s10, 32768  ;;  %s12950_s25 = scalar_lea.hbm %s16076_s3, 65536 }
 0x700   : > { %p12947_p4 = scmp.ne.s32.totalorder %s16025_s10, %s12946_s4  ;;  %p12951_p9 = scmp.lt.s32.totalorder %s16025_s10, %s16076_s3 }
 0x701   : > { %p12952_p10 = scmp.lt.s32.totalorder %s12950_s25, %s12946_s4 }
 0x702   : > { %p12948_p7 = pnand %p12947_p4, %p13056_p5 }
 0x703   : > { %p12953_p11 = por %p12952_p10, %p12951_p9 }
 0x704   : > { %p12949_p8 = pneg %p12948_p7 }
 0x706   : > { %p12954_p12 = pnand %p12953_p11, %p12949_p8 }
 0x708   : > { %12957 = shalt.err (!%p12954_p12)
}
 0x709   : > { %s12996_s28 = smov 128   ;;  %s12997_s7 = smov 8  }
 0x70a   : > { %11809 = dma.vmem_to_hbm [thread:$0]  (%p13056_p5), %s16027_s5, 32768, %s16025_s10, %s16033_s16, %s12996_s28, %s12996_s28, %s12997_s7  }
 0x70b PF: > { %p11815_p13 = scmp.ge.s32.totalorder %s12992_s15, 2  ;;  %s10001_s29 = sand.u32 1, %s12980_s12  }
 0x70c   : > { %s10002_s30 = scalar_lea.sflag [#allocation3], %s10001_s29 }
 0x70d   : > { %p11812_p0 = pnand %p11815_p13, %p13060_p6 }
 0x70f   : > { %p11813_p1 = pneg %p11812_p0 }
 0x711   : > { %12975 = dma.done.wait (%p11813_p1), %s10002_s30, 32768  }
 0x712   : > { %12977 = vsyncadd (%p11813_p1), %s10002_s30, 4294934528  ;;  %p13_p2 = scmp.ge.s32.totalorder %s13043_s18, 4   ;;  %s16499_s12 = smov %s12984_s13 }
 0x713   : > { %s16500_s13 = smov %s12988_s14  ;;  %s16501_s14 = smov %s13054_s21 }
 0x714   : > { %s16502_s15 = smov %s13043_s18  ;;  %15 = sbr.rel (!%p13_p2) target bundleno = 3 (0x3), region = 71 }
 0x719   :  { %10007 = vsyncpa [#allocation3], 1 }
 0x71a   :  { %10009 = vsyncpa [#allocation3 + $0x1], 1 }

</bundles_post_ra>
